<compile_context>
chip_gen: v6e
topology: v6e:2x2x1
jax: 0.10.0
libtpu: 0.0.40
codegen_flags: <defaults>
</compile_context>

<pallas_src>
import functools

import jax
import jax.numpy as jnp
from jax.experimental import pallas as pl
from jax.experimental.pallas import tpu as pltpu


# ----------------------------------------------------------------------------
# Fused MLP kernel: (K-tiled) Linear1 + bias + ReLU, then layers 2..N in the
# epilogue of the last K step, writing only the final logits.
# ----------------------------------------------------------------------------
def _fused_mlp_kernel(*refs, n_layers):
    # refs = (x, w1, b1, w2, b2, ..., wn, bn, o_ref, h1_acc)
    x_ref = refs[0]
    wb = refs[1:1 + 2 * n_layers]
    o_ref = refs[1 + 2 * n_layers]
    acc_ref = refs[2 + 2 * n_layers]

    k = pl.program_id(0)

    @pl.when(k == 0)
    def _():
        acc_ref[...] = jnp.zeros_like(acc_ref)

    # Layer 1 partial product for this K tile (f32 accumulation on the MXU).
    acc_ref[...] += jnp.dot(
        x_ref[...], wb[0][...], preferred_element_type=jnp.float32
    )

    @pl.when(k == pl.num_programs(0) - 1)
    def _():
        h = acc_ref[...] + wb[1][...]          # (M, H1) + (1, H1)
        if n_layers > 1:
            h = jnp.maximum(h, 0.0)            # ReLU after layer 1
        for i in range(1, n_layers):
            w_ref = wb[2 * i]
            b_ref = wb[2 * i + 1]
            h = jnp.dot(h, w_ref[...], preferred_element_type=jnp.float32)
            h = h + b_ref[...]
            if i != n_layers - 1:
                h = jnp.maximum(h, 0.0)        # ReLU on hidden layers only
        o_ref[...] = h.astype(o_ref.dtype)


def _pick_k_tile(M, K, H1, max_bytes=12 * 1024 * 1024):
    """Pick the K tile for layer 1.

    Prefer tk == K (no reduction grid) when the double-buffered f32 footprint
    of the x tile + W1 tile fits `max_bytes` (kept under v5e's 16 MiB default
    scoped VMEM).  Otherwise pick the largest multiple-of-128 divisor of K
    that fits; if K is not a multiple of 128, fall back to tk == K.
    """
    def footprint(tk):
        return 2 * 4 * (M * tk + tk * H1)      # double-buffered, f32

    if footprint(K) <= max_bytes or K % 128 != 0:
        return K
    best = 128
    t = 128
    while t <= K:
        if K % t == 0 and footprint(t) <= max_bytes:
            best = t
        t += 128
    return best


def mlpwsi_forward(x, params):
    """x: (B, 4000, D) float32; params: [(W_i, b_i)] -> logits (B, n_classes)."""
    B = x.shape[0]
    xf = x.reshape(B, -1)                      # nn.Flatten(start_dim=1)
    M, K = xf.shape
    n_layers = len(params)
    H1 = params[0][0].shape[1]
    n_out = params[-1][0].shape[1]

    tk = _pick_k_tile(M, K, H1)
    grid = (K // tk,)

    args = [xf]
    in_specs = [pl.BlockSpec((M, tk), lambda k: (0, k))]
    for i, (w, b) in enumerate(params):
        b2 = b.reshape(1, -1)
        if i == 0:
            # Only layer-1's weight is streamed along the reduction axis.
            in_specs.append(pl.BlockSpec((tk, H1), lambda k: (k, 0)))
        else:
            # Small weights: whole-array VMEM-resident blocks.
            in_specs.append(pl.BlockSpec(w.shape, lambda k: (0, 0)))
        in_specs.append(pl.BlockSpec(b2.shape, lambda k: (0, 0)))
        args.append(w)
        args.append(b2)

    kernel = functools.partial(_fused_mlp_kernel, n_layers=n_layers)

    return pl.pallas_call(
        kernel,
        out_shape=jax.ShapeDtypeStruct((M, n_out), jnp.float32),
        grid_spec=pltpu.PrefetchScalarGridSpec(
            num_scalar_prefetch=0,
            grid=grid,
            in_specs=in_specs,
            out_specs=pl.BlockSpec((M, n_out), lambda k: (0, 0)),
            scratch_shapes=[pltpu.VMEM((M, H1), jnp.float32)],
        ),
        compiler_params=pltpu.CompilerParams(
            dimension_semantics=("arbitrary",),
        ),
    )(*args)


# ----------------------------------------------------------------------------
# Parameter construction (PyTorch-default-style init) + plain-JAX reference
# ----------------------------------------------------------------------------
def init_mlpwsi_params(key, wsi_embedding_dim, hidden_dims, n_classes):
    """U(-1/sqrt(fan_in), 1/sqrt(fan_in)) for both weights and biases."""
    in_features = wsi_embedding_dim * 4000
    dims = [in_features] + list(hidden_dims) + [n_classes]
    params = []
    for i in range(len(dims) - 1):
        fan_in, fan_out = dims[i], dims[i + 1]
        key, kw, kb = jax.random.split(key, 3)
        bound = 1.0 / jnp.sqrt(jnp.float32(fan_in))
        w = jax.random.uniform(
            kw, (fan_in, fan_out), jnp.float32, minval=-bound, maxval=bound
        )
        b = jax.random.uniform(
            kb, (fan_out,), jnp.float32, minval=-bound, maxval=bound
        )
        params.append((w, b))
    return params


def mlpwsi_reference(x, params):
    B = x.shape[0]
    h = x.reshape(B, -1)
    n_layers = len(params)
    for i, (w, b) in enumerate(params):
        h = h @ w + b
        if i != n_layers - 1:
            h = jnp.maximum(h, 0.0)
    return h


if __name__ == "__main__":
    # Small shapes consistent with the module: 4000 patches are hard-coded in
    # MLPWSI; keep embedding dim / hidden dims / classes small.
    batch = 2
    wsi_embedding_dim = 4            # first Linear in_features = 4 * 4000 = 16000
    hidden_dims = [64, 32, 16]
    n_classes = 4

    key = jax.random.PRNGKey(0)
    key, kx = jax.random.split(key)
    x = jax.random.normal(kx, (batch, 4000, wsi_embedding_dim), jnp.float32)

    params = init_mlpwsi_params(key, wsi_embedding_dim, hidden_dims, n_classes)

    out = mlpwsi_forward(x, params)
    out = jax.block_until_ready(out)

    ref = mlpwsi_reference(x, params)
    assert out.shape == (batch, n_classes), out.shape
    assert jnp.allclose(out, ref, atol=1e-4, rtol=1e-4), (
        jnp.max(jnp.abs(out - ref))
    )

    print("KERNEL_OK")
</pallas_src>

<mosaic_0001>
module attributes {stable_mosaic.version = 11 : i64} {
  func.func @_fused_mlp_kernel(%arg0: i32, %arg1: memref<2x16000xf32, #tpu.memory_space<vmem>>, %arg2: memref<16000x64xf32, #tpu.memory_space<vmem>>, %arg3: memref<1x64xf32, #tpu.memory_space<vmem>>, %arg4: memref<64x32xf32, #tpu.memory_space<vmem>>, %arg5: memref<1x32xf32, #tpu.memory_space<vmem>>, %arg6: memref<32x16xf32, #tpu.memory_space<vmem>>, %arg7: memref<1x16xf32, #tpu.memory_space<vmem>>, %arg8: memref<16x4xf32, #tpu.memory_space<vmem>>, %arg9: memref<1x4xf32, #tpu.memory_space<vmem>>, %arg10: memref<2x4xf32, #tpu.memory_space<vmem>>, %arg11: memref<2x64xf32, #tpu.memory_space<vmem>>) attributes {dimension_semantics = [#tpu.dimension_semantics<arbitrary>], iteration_bounds = array<i64: 1>, scalar_prefetch = 0 : i64, scratch_operands = 1 : i64, tpu.core_type = #tpu.core_type<tc>, window_params = [{transform_indices = @transform_0, window_bounds = array<i64: 2, 16000>}, {transform_indices = @transform_1, window_bounds = array<i64: 16000, 64>}, {pipeline_mode = #tpu.pipeline_mode<synchronous>, transform_indices = @transform_2, window_bounds = array<i64: 1, 64>}, {pipeline_mode = #tpu.pipeline_mode<synchronous>, transform_indices = @transform_3, window_bounds = array<i64: 64, 32>}, {pipeline_mode = #tpu.pipeline_mode<synchronous>, transform_indices = @transform_4, window_bounds = array<i64: 1, 32>}, {pipeline_mode = #tpu.pipeline_mode<synchronous>, transform_indices = @transform_5, window_bounds = array<i64: 32, 16>}, {pipeline_mode = #tpu.pipeline_mode<synchronous>, transform_indices = @transform_6, window_bounds = array<i64: 1, 16>}, {pipeline_mode = #tpu.pipeline_mode<synchronous>, transform_indices = @transform_7, window_bounds = array<i64: 16, 4>}, {pipeline_mode = #tpu.pipeline_mode<synchronous>, transform_indices = @transform_8, window_bounds = array<i64: 1, 4>}, {pipeline_mode = #tpu.pipeline_mode<synchronous>, transform_indices = @transform_9, window_bounds = array<i64: 2, 4>}]} {
    %c0_i32 = arith.constant 0 : i32
    %0 = arith.cmpi eq, %arg0, %c0_i32 : i32
    %1 = arith.extui %0 : i1 to i32
    %c0_i32_0 = arith.constant 0 : i32
    %2 = arith.cmpi ne, %1, %c0_i32_0 : i32
    scf.if %2 {
      %cst_10 = arith.constant 0.000000e+00 : f32
      %12 = vector.broadcast %cst_10 : f32 to vector<2x64xf32>
      %c0_11 = arith.constant 0 : index
      %c0_12 = arith.constant 0 : index
      %13 = vector.load %arg11[%c0_11, %c0_12] : memref<2x64xf32, #tpu.memory_space<vmem>>, vector<2x64xf32>
      tpu.vector_store %arg11[%c0_11, %c0_12], %12 {strides = array<i32>} : memref<2x64xf32, #tpu.memory_space<vmem>>, vector<2x64xf32>,
    } else {
    }
    %c0 = arith.constant 0 : index
    %c0_1 = arith.constant 0 : index
    %3 = vector.load %arg11[%c0, %c0_1] : memref<2x64xf32, #tpu.memory_space<vmem>>, vector<2x64xf32>
    %c0_2 = arith.constant 0 : index
    %c0_3 = arith.constant 0 : index
    %4 = vector.load %arg1[%c0_2, %c0_3] : memref<2x16000xf32, #tpu.memory_space<vmem>>, vector<2x16000xf32>
    %c0_4 = arith.constant 0 : index
    %c0_5 = arith.constant 0 : index
    %5 = vector.load %arg2[%c0_4, %c0_5] : memref<16000x64xf32, #tpu.memory_space<vmem>>, vector<16000x64xf32>
    %cst = arith.constant dense<0.000000e+00> : vector<2x64xf32>
    %6 = tpu.matmul %4, %5, %cst {dimension_numbers = #tpu.dot_dimension_numbers<[1], [0], [0], [1], [0, 0, 1, 1], [], []>} : vector<2x16000xf32>, vector<16000x64xf32>, vector<2x64xf32> -> vector<2x64xf32>
    %7 = arith.addf %3, %6 : vector<2x64xf32>
    %c0_6 = arith.constant 0 : index
    %c0_7 = arith.constant 0 : index
    %8 = vector.load %arg11[%c0_6, %c0_7] : memref<2x64xf32, #tpu.memory_space<vmem>>, vector<2x64xf32>
    tpu.vector_store %arg11[%c0_6, %c0_7], %7 {strides = array<i32>} : memref<2x64xf32, #tpu.memory_space<vmem>>, vector<2x64xf32>,
    %c0_i32_8 = arith.constant 0 : i32
    %9 = arith.cmpi eq, %arg0, %c0_i32_8 : i32
    %10 = arith.extui %9 : i1 to i32
    %c0_i32_9 = arith.constant 0 : i32
    %11 = arith.cmpi ne, %10, %c0_i32_9 : i32
    scf.if %11 {
      %c0_10 = arith.constant 0 : index
      %c0_11 = arith.constant 0 : index
      %12 = vector.load %arg11[%c0_10, %c0_11] : memref<2x64xf32, #tpu.memory_space<vmem>>, vector<2x64xf32>
      %c0_12 = arith.constant 0 : index
      %c0_13 = arith.constant 0 : index
      %13 = vector.load %arg3[%c0_12, %c0_13] : memref<1x64xf32, #tpu.memory_space<vmem>>, vector<1x64xf32>
      %14 = vector.broadcast %13 : vector<1x64xf32> to vector<2x64xf32>
      %15 = arith.addf %12, %14 : vector<2x64xf32>
      %cst_14 = arith.constant 0.000000e+00 : f32
      %16 = vector.broadcast %cst_14 : f32 to vector<2x64xf32>
      %17 = arith.maximumf %15, %16 : vector<2x64xf32>
      %c0_15 = arith.constant 0 : index
      %c0_16 = arith.constant 0 : index
      %18 = vector.load %arg4[%c0_15, %c0_16] : memref<64x32xf32, #tpu.memory_space<vmem>>, vector<64x32xf32>
      %cst_17 = arith.constant dense<0.000000e+00> : vector<2x32xf32>
      %19 = tpu.matmul %17, %18, %cst_17 {dimension_numbers = #tpu.dot_dimension_numbers<[1], [0], [0], [1], [0, 0, 1, 1], [], []>} : vector<2x64xf32>, vector<64x32xf32>, vector<2x32xf32> -> vector<2x32xf32>
      %c0_18 = arith.constant 0 : index
      %c0_19 = arith.constant 0 : index
      %20 = vector.load %arg5[%c0_18, %c0_19] : memref<1x32xf32, #tpu.memory_space<vmem>>, vector<1x32xf32>
      %21 = vector.broadcast %20 : vector<1x32xf32> to vector<2x32xf32>
      %22 = arith.addf %19, %21 : vector<2x32xf32>
      %cst_20 = arith.constant 0.000000e+00 : f32
      %23 = vector.broadcast %cst_20 : f32 to vector<2x32xf32>
      %24 = arith.maximumf %22, %23 : vector<2x32xf32>
      %c0_21 = arith.constant 0 : index
      %c0_22 = arith.constant 0 : index
      %25 = vector.load %arg6[%c0_21, %c0_22] : memref<32x16xf32, #tpu.memory_space<vmem>>, vector<32x16xf32>
      %cst_23 = arith.constant dense<0.000000e+00> : vector<2x16xf32>
      %26 = tpu.matmul %24, %25, %cst_23 {dimension_numbers = #tpu.dot_dimension_numbers<[1], [0], [0], [1], [0, 0, 1, 1], [], []>} : vector<2x32xf32>, vector<32x16xf32>, vector<2x16xf32> -> vector<2x16xf32>
      %c0_24 = arith.constant 0 : index
      %c0_25 = arith.constant 0 : index
      %27 = vector.load %arg7[%c0_24, %c0_25] : memref<1x16xf32, #tpu.memory_space<vmem>>, vector<1x16xf32>
      %28 = vector.broadcast %27 : vector<1x16xf32> to vector<2x16xf32>
      %29 = arith.addf %26, %28 : vector<2x16xf32>
      %cst_26 = arith.constant 0.000000e+00 : f32
      %30 = vector.broadcast %cst_26 : f32 to vector<2x16xf32>
      %31 = arith.maximumf %29, %30 : vector<2x16xf32>
      %c0_27 = arith.constant 0 : index
      %c0_28 = arith.constant 0 : index
      %32 = vector.load %arg8[%c0_27, %c0_28] : memref<16x4xf32, #tpu.memory_space<vmem>>, vector<16x4xf32>
      %cst_29 = arith.constant dense<0.000000e+00> : vector<2x4xf32>
      %33 = tpu.matmul %31, %32, %cst_29 {dimension_numbers = #tpu.dot_dimension_numbers<[1], [0], [0], [1], [0, 0, 1, 1], [], []>} : vector<2x16xf32>, vector<16x4xf32>, vector<2x4xf32> -> vector<2x4xf32>
      %c0_30 = arith.constant 0 : index
      %c0_31 = arith.constant 0 : index
      %34 = vector.load %arg9[%c0_30, %c0_31] : memref<1x4xf32, #tpu.memory_space<vmem>>, vector<1x4xf32>
      %35 = vector.broadcast %34 : vector<1x4xf32> to vector<2x4xf32>
      %36 = arith.addf %33, %35 : vector<2x4xf32>
      %c0_32 = arith.constant 0 : index
      %c0_33 = arith.constant 0 : index
      %37 = vector.load %arg10[%c0_32, %c0_33] : memref<2x4xf32, #tpu.memory_space<vmem>>, vector<2x4xf32>
      tpu.vector_store %arg10[%c0_32, %c0_33], %36 {strides = array<i32>} : memref<2x4xf32, #tpu.memory_space<vmem>>, vector<2x4xf32>,
    } else {
    }
    return
  }
  func.func @transform_0(%arg0: i32) -> (i32, i32) {
    %c0_i32 = arith.constant 0 : i32
    %c0_i32_0 = arith.constant 0 : i32
    return %c0_i32, %arg0 : i32, i32
  }
  func.func @transform_1(%arg0: i32) -> (i32, i32) {
    %c0_i32 = arith.constant 0 : i32
    %c0_i32_0 = arith.constant 0 : i32
    return %arg0, %c0_i32 : i32, i32
  }
  func.func @transform_2(%arg0: i32) -> (i32, i32) {
    %c0_i32 = arith.constant 0 : i32
    %c0_i32_0 = arith.constant 0 : i32
    %c0_i32_1 = arith.constant 0 : i32
    return %c0_i32, %c0_i32_0 : i32, i32
  }
  func.func @transform_3(%arg0: i32) -> (i32, i32) {
    %c0_i32 = arith.constant 0 : i32
    %c0_i32_0 = arith.constant 0 : i32
    %c0_i32_1 = arith.constant 0 : i32
    return %c0_i32, %c0_i32_0 : i32, i32
  }
  func.func @transform_4(%arg0: i32) -> (i32, i32) {
    %c0_i32 = arith.constant 0 : i32
    %c0_i32_0 = arith.constant 0 : i32
    %c0_i32_1 = arith.constant 0 : i32
    return %c0_i32, %c0_i32_0 : i32, i32
  }
  func.func @transform_5(%arg0: i32) -> (i32, i32) {
    %c0_i32 = arith.constant 0 : i32
    %c0_i32_0 = arith.constant 0 : i32
    %c0_i32_1 = arith.constant 0 : i32
    return %c0_i32, %c0_i32_0 : i32, i32
  }
  func.func @transform_6(%arg0: i32) -> (i32, i32) {
    %c0_i32 = arith.constant 0 : i32
    %c0_i32_0 = arith.constant 0 : i32
    %c0_i32_1 = arith.constant 0 : i32
    return %c0_i32, %c0_i32_0 : i32, i32
  }
  func.func @transform_7(%arg0: i32) -> (i32, i32) {
    %c0_i32 = arith.constant 0 : i32
    %c0_i32_0 = arith.constant 0 : i32
    %c0_i32_1 = arith.constant 0 : i32
    return %c0_i32, %c0_i32_0 : i32, i32
  }
  func.func @transform_8(%arg0: i32) -> (i32, i32) {
    %c0_i32 = arith.constant 0 : i32
    %c0_i32_0 = arith.constant 0 : i32
    %c0_i32_1 = arith.constant 0 : i32
    return %c0_i32, %c0_i32_0 : i32, i32
  }
  func.func @transform_9(%arg0: i32) -> (i32, i32) {
    %c0_i32 = arith.constant 0 : i32
    %c0_i32_0 = arith.constant 0 : i32
    %c0_i32_1 = arith.constant 0 : i32
    return %c0_i32, %c0_i32_0 : i32, i32
  }
}

</mosaic_0001>

<bundles_post_ra>
// kernel: tpu_custom_call.1
= control target key start
LH: loop header
LB: loop body
LE: loop exit
PB: predicated region body
PF: predicated region fallthrough
CT: control target
= control target key end

     0   :  { %v9805_v30 = vmov 1983009808   ;;  %v2108_v32 = vlaneseq  ;;  %s16117_s0 = inlined_call_operand.vmem [shape: f32[2,16000], index: 0, kind: input, shape index: {}]   ;;  %s16118_s1 = inlined_call_operand.vmem [shape: f32[16000,64], index: 1, kind: input, shape index: {}]   ;;  %s16119_s2 = inlined_call_operand.vmem [shape: f32[1,64], index: 2, kind: input, shape index: {}]   ;;  %s16120_s3 = inlined_call_operand.vmem [shape: f32[64,32], index: 3, kind: input, shape index: {}]   ;;  %s16121_s4 = inlined_call_operand.vmem [shape: f32[1,32], index: 4, kind: input, shape index: {}]   ;;  %s16122_s5 = inlined_call_operand.vmem [shape: f32[32,16], index: 5, kind: input, shape index: {}]   ;;  %s16123_s6 = inlined_call_operand.vmem [shape: f32[1,16], index: 6, kind: input, shape index: {}]   ;;  %s16124_s7 = inlined_call_operand.vmem [shape: f32[16,4], index: 7, kind: input, shape index: {}]   ;;  %s16125_s8 = inlined_call_operand.vmem [shape: f32[1,4], index: 8, kind: input, shape index: {}]   ;;  %s16126_s9 = inlined_call_operand.hbm [shape: f32[2,4], index: 9, kind: output, shape index: {}]  }
   0x1   :  { %v103_v0 = vld [vmem:[%s16118_s1 + $0xf8] sm:$0xff]  ;;  %v102_v4 = vld [vmem:[%s16118_s1 + $0xf0] sm:$0xff]  ;;  %v101_v8 = vld [vmem:[%s16118_s1 + $0xe8] sm:$0xff]  ;;  %v2106_v31 = vunpack.c.l.s4 %v9805_v30 }
   0x2   :  { %v135_v1 = vld [vmem:[%s16118_s1 + $0x1f8] sm:$0xff]  ;;  %7472 = vmatprep.subr.mxu0 %v103_v0  ;;  %v134_v5 = vld [vmem:[%s16118_s1 + $0x1f0] sm:$0xff]  ;;  %v133_v9 = vld [vmem:[%s16118_s1 + $0x1e8] sm:$0xff]  ;;  %v2109_v42 = vshrl.u32 %v2108_v32, 7 }
   0x3   :  { %v87_v2 = vld [vmem:[%s16118_s1 + $0x78] sm:$0xff]  ;;  %7507 = vmatprep.subr.mxu1 %v135_v1  ;;  %v86_v6 = vld [vmem:[%s16118_s1 + $0x70] sm:$0xff]  ;;  %v85_v10 = vld [vmem:[%s16118_s1 + $0x68] sm:$0xff]  ;;  %v2107_v41 = vunpack.c.0.s8 %v2106_v31 }
   0x4   :  { %v119_v3 = vld [vmem:[%s16118_s1 + $0x178] sm:$0xff]  ;;  %7473 = vmatpush3.msra.mxu0 %v87_v2  ;;  %v118_v7 = vld [vmem:[%s16118_s1 + $0x170] sm:$0xff]  ;;  %v117_v11 = vld [vmem:[%s16118_s1 + $0x168] sm:$0xff] }
   0x5   :  { %7508 = vmatpush3.msra.mxu1 %v119_v3  ;;  %7474 = vmatprep.subr.mxu0 %v102_v4  ;;  %v100_v12 = vld [vmem:[%s16118_s1 + $0xe0] sm:$0xff]  ;;  %v99_v16 = vld [vmem:[%s16118_s1 + $0xd8] sm:$0xff]  ;;  %v98_v20 = vld [vmem:[%s16118_s1 + $0xd0] sm:$0xff]  ;;  %v9997_v51 = vsub.s32 %v2107_v41, %v2109_v42 }
   0x6   :  { %7509 = vmatprep.subr.mxu1 %v134_v5  ;;  %7475 = vmatpush3.msra.mxu0 %v86_v6  ;;  %v132_v13 = vld [vmem:[%s16118_s1 + $0x1e0] sm:$0xff]  ;;  %v131_v17 = vld [vmem:[%s16118_s1 + $0x1d8] sm:$0xff]  ;;  %v130_v21 = vld [vmem:[%s16118_s1 + $0x1d0] sm:$0xff] }
   0x7   :  { %7510 = vmatpush3.msra.mxu1 %v118_v7  ;;  %7476 = vmatprep.subr.mxu0 %v101_v8  ;;  %v84_v14 = vld [vmem:[%s16118_s1 + $0x60] sm:$0xff]  ;;  %v83_v18 = vld [vmem:[%s16118_s1 + $0x58] sm:$0xff]  ;;  %v82_v22 = vld [vmem:[%s16118_s1 + $0x50] sm:$0xff] }
   0x8   :  { %7511 = vmatprep.subr.mxu1 %v133_v9  ;;  %v116_v15 = vld [vmem:[%s16118_s1 + $0x160] sm:$0xff]  ;;  %7477 = vmatpush3.msra.mxu0 %v85_v10  ;;  %v115_v19 = vld [vmem:[%s16118_s1 + $0x158] sm:$0xff]  ;;  %v114_v23 = vld [vmem:[%s16118_s1 + $0x150] sm:$0xff] }
   0x9   :  { %7512 = vmatpush3.msra.mxu1 %v117_v11  ;;  %7478 = vmatprep.subr.mxu0 %v100_v12  ;;  %v97_v24 = vld [vmem:[%s16118_s1 + $0xc8] sm:$0xff]  ;;  %v96_v28 = vld [vmem:[%s16118_s1 + $0xc0] sm:$0xff]  ;;  %v95_v35 = vld [vmem:[%s16118_s1 + $0xb8] sm:$0xff] }
   0xa   :  { %7513 = vmatprep.subr.mxu1 %v132_v13  ;;  %7479 = vmatpush3.msra.mxu0 %v84_v14  ;;  %v129_v25 = vld [vmem:[%s16118_s1 + $0x1c8] sm:$0xff]  ;;  %v128_v29 = vld [vmem:[%s16118_s1 + $0x1c0] sm:$0xff]  ;;  %v127_v36 = vld [vmem:[%s16118_s1 + $0x1b8] sm:$0xff] }
   0xb   :  { %7514 = vmatpush3.msra.mxu1 %v116_v15  ;;  %7480 = vmatprep.subr.mxu0 %v99_v16  ;;  %v81_v26 = vld [vmem:[%s16118_s1 + $0x48] sm:$0xff]  ;;  %v80_v33 = vld [vmem:[%s16118_s1 + $0x40] sm:$0xff]  ;;  %v79_v37 = vld [vmem:[%s16118_s1 + $0x38] sm:$0xff] }
   0xc   :  { %7515 = vmatprep.subr.mxu1 %v131_v17  ;;  %7481 = vmatpush3.msra.mxu0 %v83_v18  ;;  %v113_v27 = vld [vmem:[%s16118_s1 + $0x148] sm:$0xff]  ;;  %v112_v34 = vld [vmem:[%s16118_s1 + $0x140] sm:$0xff]  ;;  %v111_v38 = vld [vmem:[%s16118_s1 + $0x138] sm:$0xff] }
   0xd   :  { %7516 = vmatpush3.msra.mxu1 %v115_v19  ;;  %7482 = vmatprep.subr.mxu0 %v98_v20  ;;  %v94_v39 = vld [vmem:[%s16118_s1 + $0xb0] sm:$0xff]  ;;  %v93_v45 = vld [vmem:[%s16118_s1 + $0xa8] sm:$0xff]  ;;  %v92_v49 = vld [vmem:[%s16118_s1 + $0xa0] sm:$0xff] }
   0xe   :  { %7517 = vmatprep.subr.mxu1 %v130_v21  ;;  %7483 = vmatpush3.msra.mxu0 %v82_v22  ;;  %v126_v40 = vld [vmem:[%s16118_s1 + $0x1b0] sm:$0xff]  ;;  %v125_v46 = vld [vmem:[%s16118_s1 + $0x1a8] sm:$0xff]  ;;  %v124_v50 = vld [vmem:[%s16118_s1 + $0x1a0] sm:$0xff] }
   0xf   :  { %7518 = vmatpush3.msra.mxu1 %v114_v23  ;;  %7484 = vmatprep.subr.mxu0 %v97_v24  ;;  %v78_v43 = vld [vmem:[%s16118_s1 + $0x30] sm:$0xff]  ;;  %v77_v47 = vld [vmem:[%s16118_s1 + $0x28] sm:$0xff]  ;;  %v76_v52 = vld [vmem:[%s16118_s1 + $0x20] sm:$0xff] }
  0x10   :  { %7519 = vmatprep.subr.mxu1 %v129_v25  ;;  %7485 = vmatpush3.msra.mxu0 %v81_v26  ;;  %v110_v44 = vld [vmem:[%s16118_s1 + $0x130] sm:$0xff]  ;;  %v109_v48 = vld [vmem:[%s16118_s1 + $0x128] sm:$0xff]  ;;  %v108_v53 = vld [vmem:[%s16118_s1 + $0x120] sm:$0xff] }
  0x11   :  { %7520 = vmatpush3.msra.mxu1 %v113_v27  ;;  %7486 = vmatprep.subr.mxu0 %v96_v28  ;;  %v40_v54 = vld [vmem:[%s16117_s0] sm:$0xff]  ;;  %v91_v55 = vld [vmem:[%s16118_s1 + $0x98] sm:$0xff]  ;;  %v90_v60 = vld [vmem:[%s16118_s1 + $0x90] sm:$0xff] }
  0x12   :  { %7521 = vmatprep.subr.mxu1 %v128_v29  ;;  %7487 = vmatpush3.msra.mxu0 %v80_v33  ;;  %v123_v56 = vld [vmem:[%s16118_s1 + $0x198] sm:$0xff]  ;;  %v2104_v57 = vcombine.high %v40_v54, %v40_v54  ;;  %v122_v61 = vld [vmem:[%s16118_s1 + $0x190] sm:$0xff]  ;;  %v2111_v62 = vrot.slane %v40_v54, %v9997_v51  ;;  %v89_v2 = vld [vmem:[%s16118_s1 + $0x88] sm:$0xff] }
  0x13   :  { %7522 = vmatpush3.msra.mxu1 %v112_v34  ;;  %7488 = vmatprep.subr.mxu0 %v95_v35  ;;  %v75_v58 = vld [vmem:[%s16118_s1 + $0x18] sm:$0xff]  ;;  %v74_v63 = vld [vmem:[%s16118_s1 + $0x10] sm:$0xff]  ;;  %v121_v3 = vld [vmem:[%s16118_s1 + $0x188] sm:$0xff] }
  0x14   :  { %7523 = vmatprep.subr.mxu1 %v127_v36  ;;  %7489 = vmatpush3.msra.mxu0 %v79_v37  ;;  %v107_v59 = vld [vmem:[%s16118_s1 + $0x118] sm:$0xff]  ;;  %v106_v0 = vld [vmem:[%s16118_s1 + $0x110] sm:$0xff]  ;;  %v2118_v1 = vrot.slane %v2104_v57, %v9997_v51  ;;  %v73_v4 = vld [vmem:[%s16118_s1 + $0x8] sm:$0xff]  ;;  %v2119_v8 = vcombine.high %v2111_v62, %v2111_v62 }
  0x15   :  { %7524 = vmatpush3.msra.mxu1 %v111_v38  ;;  %7490 = vmatprep.subr.mxu0 %v94_v39  ;;  %v105_v5 = vld [vmem:[%s16118_s1 + $0x108] sm:$0xff]  ;;  %v88_v6 = vld [vmem:[%s16118_s1 + $0x80] sm:$0xff]  ;;  %v167_v12 = vld [vmem:[%s16118_s1 + $0x2f8] sm:$0xff] }
  0x16   :  { %7525 = vmatprep.subr.mxu1 %v126_v40  ;;  %7491 = vmatpush3.msra.mxu0 %v78_v43  ;;  %v120_v7 = vld [vmem:[%s16118_s1 + $0x180] sm:$0xff]  ;;  %v2120_v10 = vcombine.high %v2118_v1, %v2118_v1  ;;  %v199_v13 = vld [vmem:[%s16118_s1 + $0x3f8] sm:$0xff]  ;;  %v166_v16 = vld [vmem:[%s16118_s1 + $0x2f0] sm:$0xff] }
  0x17   :  { %7526 = vmatpush3.msra.mxu1 %v110_v44  ;;  %7492 = vmatprep.subr.mxu0 %v93_v45  ;;  %v72_v9 = vld [vmem:[%s16118_s1] sm:$0xff]  ;;  %v151_v14 = vld [vmem:[%s16118_s1 + $0x278] sm:$0xff]  ;;  %v198_v17 = vld [vmem:[%s16118_s1 + $0x3f0] sm:$0xff] }
  0x18   :  { %7527 = vmatprep.subr.mxu1 %v125_v46  ;;  %7493 = vmatpush3.msra.mxu0 %v77_v47  ;;  %v104_v11 = vld [vmem:[%s16118_s1 + $0x100] sm:$0xff]  ;;  %v183_v15 = vld [vmem:[%s16118_s1 + $0x378] sm:$0xff]  ;;  %v150_v18 = vld [vmem:[%s16118_s1 + $0x270] sm:$0xff] }
  0x19   :  { %7528 = vmatpush3.msra.mxu1 %v109_v48  ;;  %7494 = vmatprep.subr.mxu0 %v92_v49  ;;  %v182_v19 = vld [vmem:[%s16118_s1 + $0x370] sm:$0xff]  ;;  %v165_v20 = vld [vmem:[%s16118_s1 + $0x2e8] sm:$0xff]  ;;  %v164_v24 = vld [vmem:[%s16118_s1 + $0x2e0] sm:$0xff] }
  0x1a   :  { %7529 = vmatprep.subr.mxu1 %v124_v50  ;;  %7495 = vmatpush3.msra.mxu0 %v76_v52  ;;  %v197_v21 = vld [vmem:[%s16118_s1 + $0x3e8] sm:$0xff]  ;;  %v196_v25 = vld [vmem:[%s16118_s1 + $0x3e0] sm:$0xff]  ;;  %v163_v28 = vld [vmem:[%s16118_s1 + $0x2d8] sm:$0xff] }
  0x1b   :  { %7530 = vmatpush3.msra.mxu1 %v108_v53  ;;  %7496 = vmatprep.subr.mxu0 %v91_v55  ;;  %v149_v22 = vld [vmem:[%s16118_s1 + $0x268] sm:$0xff]  ;;  %v148_v26 = vld [vmem:[%s16118_s1 + $0x260] sm:$0xff]  ;;  %v195_v29 = vld [vmem:[%s16118_s1 + $0x3d8] sm:$0xff] }
  0x1c   :  { %7531 = vmatprep.subr.mxu1 %v123_v56  ;;  %7497 = vmatpush3.msra.mxu0 %v75_v58  ;;  %v181_v23 = vld [vmem:[%s16118_s1 + $0x368] sm:$0xff]  ;;  %v180_v27 = vld [vmem:[%s16118_s1 + $0x360] sm:$0xff]  ;;  %v147_v30 = vld [vmem:[%s16118_s1 + $0x258] sm:$0xff] }
  0x1d   :  { %7532 = vmatpush3.msra.mxu1 %v107_v59  ;;  %7498 = vmatprep.subr.mxu0 %v90_v60  ;;  %v179_v31 = vld [vmem:[%s16118_s1 + $0x358] sm:$0xff]  ;;  %v162_v32 = vld [vmem:[%s16118_s1 + $0x2d0] sm:$0xff]  ;;  %v161_v36 = vld [vmem:[%s16118_s1 + $0x2c8] sm:$0xff] }
  0x1e   :  { %7533 = vmatprep.subr.mxu1 %v122_v61  ;;  %7499 = vmatpush3.msra.mxu0 %v74_v63  ;;  %v194_v33 = vld [vmem:[%s16118_s1 + $0x3d0] sm:$0xff]  ;;  %v193_v37 = vld [vmem:[%s16118_s1 + $0x3c8] sm:$0xff]  ;;  %v160_v40 = vld [vmem:[%s16118_s1 + $0x2c0] sm:$0xff] }
  0x1f   :  { %7534 = vmatpush3.msra.mxu1 %v106_v0  ;;  %7500 = vmatprep.subr.mxu0 %v89_v2  ;;  %v146_v34 = vld [vmem:[%s16118_s1 + $0x250] sm:$0xff]  ;;  %v145_v38 = vld [vmem:[%s16118_s1 + $0x248] sm:$0xff]  ;;  %v192_v41 = vld [vmem:[%s16118_s1 + $0x3c0] sm:$0xff] }
  0x20   :  { %7535 = vmatprep.subr.mxu1 %v121_v3  ;;  %7501 = vmatpush3.msra.mxu0 %v73_v4  ;;  %v178_v35 = vld [vmem:[%s16118_s1 + $0x350] sm:$0xff]  ;;  %v177_v39 = vld [vmem:[%s16118_s1 + $0x348] sm:$0xff]  ;;  %v144_v42 = vld [vmem:[%s16118_s1 + $0x240] sm:$0xff] }
  0x21   :  { %7536 = vmatpush3.msra.mxu1 %v105_v5  ;;  %7502 = vmatprep.subr.mxu0 %v88_v6  ;;  %v176_v43 = vld [vmem:[%s16118_s1 + $0x340] sm:$0xff]  ;;  %v159_v44 = vld [vmem:[%s16118_s1 + $0x2b8] sm:$0xff]  ;;  %v158_v48 = vld [vmem:[%s16118_s1 + $0x2b0] sm:$0xff] }
  0x22   :  { %7537 = vmatprep.subr.mxu1 %v120_v7  ;;  %7503 = vmatpush3.msra.mxu0 %v72_v9  ;;  %v191_v45 = vld [vmem:[%s16118_s1 + $0x3b8] sm:$0xff]  ;;  %v190_v49 = vld [vmem:[%s16118_s1 + $0x3b0] sm:$0xff]  ;;  %v157_v53 = vld [vmem:[%s16118_s1 + $0x2a8] sm:$0xff] }
  0x23   :  { %2827 = vmatprep.mubr.f32.mxu0 %v2119_v8  ;;  %7538 = vmatpush3.msra.mxu1 %v104_v11  ;;  %v143_v46 = vld [vmem:[%s16118_s1 + $0x238] sm:$0xff]  ;;  %v142_v50 = vld [vmem:[%s16118_s1 + $0x230] sm:$0xff]  ;;  %v189_v54 = vld [vmem:[%s16118_s1 + $0x3a8] sm:$0xff] }
  0x24   :  { %2897 = vmatprep.mubr.f32.mxu1 %v2120_v10  ;;  %2828 = vmatmul.mubr.f32.vlgmr.msra.gmra.mxu0 %v2111_v62  ;;  %v175_v47 = vld [vmem:[%s16118_s1 + $0x338] sm:$0xff]  ;;  %v174_v52 = vld [vmem:[%s16118_s1 + $0x330] sm:$0xff]  ;;  %v141_v55 = vld [vmem:[%s16118_s1 + $0x228] sm:$0xff] }
  0x25   :  { %2898 = vmatmul.mubr.f32.vlgmr.msra.gmra.mxu1 %v2118_v1  ;;  %7542 = vmatprep.subr.mxu0 %v167_v12  ;;  %v173_v56 = vld [vmem:[%s16118_s1 + $0x328] sm:$0xff]  ;;  %v156_v58 = vld [vmem:[%s16118_s1 + $0x2a0] sm:$0xff]  ;;  %v155_v62 = vld [vmem:[%s16118_s1 + $0x298] sm:$0xff] }
  0x26   :  { %7577 = vmatprep.subr.mxu1 %v199_v13  ;;  %7543 = vmatpush3.msra.mxu0 %v151_v14  ;;  %v41_v57 = vld [vmem:[%s16117_s0 + $0x8] sm:$0xff]  ;;  %v188_v59 = vld [vmem:[%s16118_s1 + $0x3a0] sm:$0xff]  ;;  %v187_v63 = vld [vmem:[%s16118_s1 + $0x398] sm:$0xff] }
  0x27   :  { %7578 = vmatpush3.msra.mxu1 %v183_v15  ;;  %7544 = vmatprep.subr.mxu0 %v166_v16  ;;  %v140_v60 = vld [vmem:[%s16118_s1 + $0x220] sm:$0xff]  ;;  %v2128_v0 = vrot.slane %v41_v57, %v9997_v51  ;;  %v2121_v1 = vcombine.high %v41_v57, %v41_v57  ;;  %v139_v2 = vld [vmem:[%s16118_s1 + $0x218] sm:$0xff]  ;;  %v154_v4 = vld [vmem:[%s16118_s1 + $0x290] sm:$0xff] }
  0x28   :  { %7579 = vmatprep.subr.mxu1 %v198_v17  ;;  %7545 = vmatpush3.msra.mxu0 %v150_v18  ;;  %v172_v61 = vld [vmem:[%s16118_s1 + $0x320] sm:$0xff]  ;;  %v171_v3 = vld [vmem:[%s16118_s1 + $0x318] sm:$0xff]  ;;  %v186_v5 = vld [vmem:[%s16118_s1 + $0x390] sm:$0xff] }
  0x29   :  { %7580 = vmatpush3.msra.mxu1 %v182_v19  ;;  %7546 = vmatprep.subr.mxu0 %v165_v20  ;;  %v138_v6 = vld [vmem:[%s16118_s1 + $0x210] sm:$0xff]  ;;  %v153_v8 = vld [vmem:[%s16118_s1 + $0x288] sm:$0xff]  ;;  %v2136_v10 = vcombine.high %v2128_v0, %v2128_v0  ;;  %v2135_v11 = vrot.slane %v2121_v1, %v9997_v51  ;;  %v152_v13 = vld [vmem:[%s16118_s1 + $0x280] sm:$0xff] }
  0x2a   :  { %7581 = vmatprep.subr.mxu1 %v197_v21  ;;  %7547 = vmatpush3.msra.mxu0 %v149_v22  ;;  %v170_v7 = vld [vmem:[%s16118_s1 + $0x310] sm:$0xff]  ;;  %v185_v9 = vld [vmem:[%s16118_s1 + $0x388] sm:$0xff]  ;;  %v136_v15 = vld [vmem:[%s16118_s1 + $0x200] sm:$0xff] }
  0x2b   :  { %7582 = vmatpush3.msra.mxu1 %v181_v23  ;;  %7548 = vmatprep.subr.mxu0 %v164_v24  ;;  %v137_v12 = vld [vmem:[%s16118_s1 + $0x208] sm:$0xff]  ;;  %v184_v16 = vld [vmem:[%s16118_s1 + $0x380] sm:$0xff]  ;;  %v231_v17 = vld [vmem:[%s16118_s1 + $0x4f8] sm:$0xff]  ;;  %v2137_v18 = vcombine.high %v2135_v11, %v2135_v11 }
  0x2c   :  { %7583 = vmatprep.subr.mxu1 %v196_v25  ;;  %7549 = vmatpush3.msra.mxu0 %v148_v26  ;;  %v169_v14 = vld [vmem:[%s16118_s1 + $0x308] sm:$0xff]  ;;  %v168_v19 = vld [vmem:[%s16118_s1 + $0x300] sm:$0xff]  ;;  %v215_v20 = vld [vmem:[%s16118_s1 + $0x478] sm:$0xff] }
  0x2d   :  { %7584 = vmatpush3.msra.mxu1 %v180_v27  ;;  %7550 = vmatprep.subr.mxu0 %v163_v28  ;;  %v230_v21 = vld [vmem:[%s16118_s1 + $0x4f0] sm:$0xff]  ;;  %v263_v22 = vld [vmem:[%s16118_s1 + $0x5f8] sm:$0xff]  ;;  %v229_v25 = vld [vmem:[%s16118_s1 + $0x4e8] sm:$0xff] }
  0x2e   :  { %7585 = vmatprep.subr.mxu1 %v195_v29  ;;  %7551 = vmatpush3.msra.mxu0 %v147_v30  ;;  %v214_v23 = vld [vmem:[%s16118_s1 + $0x470] sm:$0xff]  ;;  %v247_v24 = vld [vmem:[%s16118_s1 + $0x578] sm:$0xff]  ;;  %v213_v27 = vld [vmem:[%s16118_s1 + $0x468] sm:$0xff] }
  0x2f   :  { %7586 = vmatpush3.msra.mxu1 %v179_v31  ;;  %7552 = vmatprep.subr.mxu0 %v162_v32  ;;  %v262_v26 = vld [vmem:[%s16118_s1 + $0x5f0] sm:$0xff]  ;;  %v228_v29 = vld [vmem:[%s16118_s1 + $0x4e0] sm:$0xff]  ;;  %v261_v30 = vld [vmem:[%s16118_s1 + $0x5e8] sm:$0xff] }
  0x30   :  { %7587 = vmatprep.subr.mxu1 %v194_v33  ;;  %7553 = vmatpush3.msra.mxu0 %v146_v34  ;;  %v246_v28 = vld [vmem:[%s16118_s1 + $0x570] sm:$0xff]  ;;  %v212_v31 = vld [vmem:[%s16118_s1 + $0x460] sm:$0xff]  ;;  %v245_v32 = vld [vmem:[%s16118_s1 + $0x568] sm:$0xff] }
  0x31   :  { %7588 = vmatpush3.msra.mxu1 %v178_v35  ;;  %7554 = vmatprep.subr.mxu0 %v161_v36  ;;  %v227_v33 = vld [vmem:[%s16118_s1 + $0x4d8] sm:$0xff]  ;;  %v260_v34 = vld [vmem:[%s16118_s1 + $0x5e0] sm:$0xff] }
  0x32   :  { %7589 = vmatprep.subr.mxu1 %v193_v37  ;;  %7555 = vmatpush3.msra.mxu0 %v145_v38  ;;  %v211_v35 = vld [vmem:[%s16118_s1 + $0x458] sm:$0xff]  ;;  %v244_v36 = vld [vmem:[%s16118_s1 + $0x560] sm:$0xff]  ;;  %v226_v37 = vld [vmem:[%s16118_s1 + $0x4d0] sm:$0xff] }
  0x33   :  { %7590 = vmatpush3.msra.mxu1 %v177_v39  ;;  %7556 = vmatprep.subr.mxu0 %v160_v40  ;;  %v259_v38 = vld [vmem:[%s16118_s1 + $0x5d8] sm:$0xff]  ;;  %v210_v39 = vld [vmem:[%s16118_s1 + $0x450] sm:$0xff]  ;;  %v204_v1 = vld [vmem:[%s16118_s1 + $0x420] sm:$0xff] }
  0x34   :  { %7591 = vmatprep.subr.mxu1 %v192_v41  ;;  %7557 = vmatpush3.msra.mxu0 %v144_v42  ;;  %v243_v40 = vld [vmem:[%s16118_s1 + $0x558] sm:$0xff]  ;;  %v225_v41 = vld [vmem:[%s16118_s1 + $0x4c8] sm:$0xff]  ;;  %v258_v42 = vld [vmem:[%s16118_s1 + $0x5d0] sm:$0xff] }
  0x35   :  { %7592 = vmatpush3.msra.mxu1 %v176_v43  ;;  %7558 = vmatprep.subr.mxu0 %v159_v44  ;;  %v209_v43 = vld [vmem:[%s16118_s1 + $0x448] sm:$0xff]  ;;  %v242_v44 = vld [vmem:[%s16118_s1 + $0x550] sm:$0xff]  ;;  %v239_v57 = vld [vmem:[%s16118_s1 + $0x538] sm:$0xff] }
  0x36   :  { %7593 = vmatprep.subr.mxu1 %v191_v45  ;;  %7559 = vmatpush3.msra.mxu0 %v143_v46  ;;  %v224_v45 = vld [vmem:[%s16118_s1 + $0x4c0] sm:$0xff]  ;;  %v257_v46 = vld [vmem:[%s16118_s1 + $0x5c8] sm:$0xff] }
  0x37   :  { %7594 = vmatpush3.msra.mxu1 %v175_v47  ;;  %7560 = vmatprep.subr.mxu0 %v158_v48  ;;  %v208_v47 = vld [vmem:[%s16118_s1 + $0x440] sm:$0xff]  ;;  %v241_v48 = vld [vmem:[%s16118_s1 + $0x548] sm:$0xff] }
  0x38   :  { %7595 = vmatprep.subr.mxu1 %v190_v49  ;;  %7561 = vmatpush3.msra.mxu0 %v142_v50  ;;  %v223_v49 = vld [vmem:[%s16118_s1 + $0x4b8] sm:$0xff]  ;;  %v256_v50 = vld [vmem:[%s16118_s1 + $0x5c0] sm:$0xff] }
  0x39   :  { %7596 = vmatpush3.msra.mxu1 %v174_v52  ;;  %7562 = vmatprep.subr.mxu0 %v157_v53  ;;  %v207_v52 = vld [vmem:[%s16118_s1 + $0x438] sm:$0xff]  ;;  %v240_v53 = vld [vmem:[%s16118_s1 + $0x540] sm:$0xff] }
  0x3a   :  { %7597 = vmatprep.subr.mxu1 %v189_v54  ;;  %7563 = vmatpush3.msra.mxu0 %v141_v55  ;;  %v222_v54 = vld [vmem:[%s16118_s1 + $0x4b0] sm:$0xff]  ;;  %v255_v55 = vld [vmem:[%s16118_s1 + $0x5b8] sm:$0xff] }
  0x3b   :  { %7598 = vmatpush3.msra.mxu1 %v173_v56  ;;  %7564 = vmatprep.subr.mxu0 %v156_v58  ;;  %v206_v56 = vld [vmem:[%s16118_s1 + $0x430] sm:$0xff]  ;;  %v221_v58 = vld [vmem:[%s16118_s1 + $0x4a8] sm:$0xff] }
  0x3c   :  { %7599 = vmatprep.subr.mxu1 %v188_v59  ;;  %7565 = vmatpush3.msra.mxu0 %v140_v60  ;;  %v254_v59 = vld [vmem:[%s16118_s1 + $0x5b0] sm:$0xff]  ;;  %v205_v60 = vld [vmem:[%s16118_s1 + $0x428] sm:$0xff] }
  0x3d   :  { %7600 = vmatpush3.msra.mxu1 %v172_v61  ;;  %7566 = vmatprep.subr.mxu0 %v155_v62  ;;  %v238_v61 = vld [vmem:[%s16118_s1 + $0x530] sm:$0xff]  ;;  %v220_v62 = vld [vmem:[%s16118_s1 + $0x4a0] sm:$0xff] }
  0x3e   :  { %7601 = vmatprep.subr.mxu1 %v187_v63  ;;  %7567 = vmatpush3.msra.mxu0 %v139_v2  ;;  %v253_v63 = vld [vmem:[%s16118_s1 + $0x5a8] sm:$0xff] }
  0x3f   :  { %7602 = vmatpush3.msra.mxu1 %v171_v3  ;;  %7568 = vmatprep.subr.mxu0 %v154_v4  ;;  %v237_v2 = vld [vmem:[%s16118_s1 + $0x528] sm:$0xff]  ;;  %v219_v3 = vld [vmem:[%s16118_s1 + $0x498] sm:$0xff]  ;;  %v252_v4 = vld [vmem:[%s16118_s1 + $0x5a0] sm:$0xff] }
  0x40   :  { %7603 = vmatprep.subr.mxu1 %v186_v5  ;;  %7569 = vmatpush3.msra.mxu0 %v138_v6  ;;  %v203_v5 = vld [vmem:[%s16118_s1 + $0x418] sm:$0xff]  ;;  %v236_v6 = vld [vmem:[%s16118_s1 + $0x520] sm:$0xff] }
  0x41   :  { %7604 = vmatpush3.msra.mxu1 %v170_v7  ;;  %7570 = vmatprep.subr.mxu0 %v153_v8  ;;  %v218_v8 = vld [vmem:[%s16118_s1 + $0x490] sm:$0xff] }
  0x42   :  { %7605 = vmatprep.subr.mxu1 %v185_v9  ;;  %7571 = vmatpush3.msra.mxu0 %v137_v12  ;;  %v251_v9 = vld [vmem:[%s16118_s1 + $0x598] sm:$0xff] }
  0x43   :  { %2967 = vmatprep.mubr.f32.mxu0 %v2136_v10  ;;  %7572 = vmatprep.subr.mxu0 %v152_v13  ;;  %v235_v12 = vld [vmem:[%s16118_s1 + $0x518] sm:$0xff]  ;;  %v217_v13 = vld [vmem:[%s16118_s1 + $0x488] sm:$0xff] }
  0x44   :  { %7606 = vmatpush3.msra.mxu1 %v169_v14  ;;  %7573 = vmatpush3.msra.mxu0 %v136_v15  ;;  %v250_v14 = vld [vmem:[%s16118_s1 + $0x590] sm:$0xff]  ;;  %v201_v15 = vld [vmem:[%s16118_s1 + $0x408] sm:$0xff] }
  0x45   :  { %7607 = vmatprep.subr.mxu1 %v184_v16  ;;  %2968 = vmatmul.mubr.f32.vlgmr.msra.gmra.mxu0 %v2128_v0  ;;  %v42_v0 = vld [vmem:[%s16117_s0 + $0x10] sm:$0xff] }
  0x46   :  { %7612 = vmatprep.subr.mxu0 %v231_v17  ;;  %7608 = vmatpush3.msra.mxu1 %v168_v19  ;;  %v2138_v7 = vcombine.high %v42_v0, %v42_v0  ;;  %v2145_v10 = vrot.slane %v42_v0, %v9997_v51  ;;  %v234_v16 = vld [vmem:[%s16118_s1 + $0x510] sm:$0xff]  ;;  %v249_v19 = vld [vmem:[%s16118_s1 + $0x588] sm:$0xff]  ;;  %v303_v0 = vld [vmem:[%s16118_s1 + $0x738] sm:$0xff] }
  0x47   :  { %3037 = vmatprep.mubr.f32.mxu1 %v2137_v18  ;;  %7613 = vmatpush3.msra.mxu0 %v215_v20  ;;  %v216_v18 = vld [vmem:[%s16118_s1 + $0x480] sm:$0xff] }
  0x48   :  { %3038 = vmatmul.mubr.f32.vlgmr.msra.gmra.mxu1 %v2135_v11  ;;  %7614 = vmatprep.subr.mxu0 %v230_v21  ;;  %v202_v11 = vld [vmem:[%s16118_s1 + $0x410] sm:$0xff]  ;;  %v2152_v17 = vrot.slane %v2138_v7, %v9997_v51  ;;  %v2153_v20 = vcombine.high %v2145_v10, %v2145_v10  ;;  %v200_v21 = vld [vmem:[%s16118_s1 + $0x400] sm:$0xff]  ;;  %v43_v7 = vld [vmem:[%s16117_s0 + $0x18] sm:$0xff] }
  0x49   :  { %7647 = vmatprep.subr.mxu1 %v263_v22  ;;  %7615 = vmatpush3.msra.mxu0 %v214_v23  ;;  %v233_v22 = vld [vmem:[%s16118_s1 + $0x508] sm:$0xff]  ;;  %v248_v23 = vld [vmem:[%s16118_s1 + $0x580] sm:$0xff] }
  0x4a   :  { %7648 = vmatpush3.msra.mxu1 %v247_v24  ;;  %7616 = vmatprep.subr.mxu0 %v229_v25  ;;  %v295_v24 = vld [vmem:[%s16118_s1 + $0x6f8] sm:$0xff]  ;;  %v2154_v25 = vcombine.high %v2152_v17, %v2152_v17 }
  0x4b   :  { %7649 = vmatprep.subr.mxu1 %v262_v26  ;;  %7617 = vmatpush3.msra.mxu0 %v213_v27  ;;  %v232_v26 = vld [vmem:[%s16118_s1 + $0x500] sm:$0xff]  ;;  %v279_v27 = vld [vmem:[%s16118_s1 + $0x678] sm:$0xff] }
  0x4c   :  { %7650 = vmatpush3.msra.mxu1 %v246_v28  ;;  %7618 = vmatprep.subr.mxu0 %v228_v29  ;;  %v294_v28 = vld [vmem:[%s16118_s1 + $0x6f0] sm:$0xff]  ;;  %v327_v29 = vld [vmem:[%s16118_s1 + $0x7f8] sm:$0xff] }
  0x4d   :  { %7651 = vmatprep.subr.mxu1 %v261_v30  ;;  %7619 = vmatpush3.msra.mxu0 %v212_v31  ;;  %v278_v30 = vld [vmem:[%s16118_s1 + $0x670] sm:$0xff]  ;;  %v311_v31 = vld [vmem:[%s16118_s1 + $0x778] sm:$0xff] }
  0x4e   :  { %7652 = vmatpush3.msra.mxu1 %v245_v32  ;;  %7620 = vmatprep.subr.mxu0 %v227_v33  ;;  %v293_v32 = vld [vmem:[%s16118_s1 + $0x6e8] sm:$0xff]  ;;  %v326_v33 = vld [vmem:[%s16118_s1 + $0x7f0] sm:$0xff] }
  0x4f   :  { %7653 = vmatprep.subr.mxu1 %v260_v34  ;;  %7621 = vmatpush3.msra.mxu0 %v211_v35  ;;  %v277_v34 = vld [vmem:[%s16118_s1 + $0x668] sm:$0xff]  ;;  %v310_v35 = vld [vmem:[%s16118_s1 + $0x770] sm:$0xff] }
  0x50   :  { %7654 = vmatpush3.msra.mxu1 %v244_v36  ;;  %7622 = vmatprep.subr.mxu0 %v226_v37  ;;  %v292_v36 = vld [vmem:[%s16118_s1 + $0x6e0] sm:$0xff]  ;;  %v325_v37 = vld [vmem:[%s16118_s1 + $0x7e8] sm:$0xff] }
  0x51   :  { %7655 = vmatprep.subr.mxu1 %v259_v38  ;;  %7623 = vmatpush3.msra.mxu0 %v210_v39  ;;  %v276_v38 = vld [vmem:[%s16118_s1 + $0x660] sm:$0xff]  ;;  %v309_v39 = vld [vmem:[%s16118_s1 + $0x768] sm:$0xff] }
  0x52   :  { %7656 = vmatpush3.msra.mxu1 %v243_v40  ;;  %7624 = vmatprep.subr.mxu0 %v225_v41  ;;  %v291_v40 = vld [vmem:[%s16118_s1 + $0x6d8] sm:$0xff]  ;;  %v324_v41 = vld [vmem:[%s16118_s1 + $0x7e0] sm:$0xff] }
  0x53   :  { %7657 = vmatprep.subr.mxu1 %v258_v42  ;;  %7625 = vmatpush3.msra.mxu0 %v209_v43  ;;  %v275_v42 = vld [vmem:[%s16118_s1 + $0x658] sm:$0xff]  ;;  %v308_v43 = vld [vmem:[%s16118_s1 + $0x760] sm:$0xff] }
  0x54   :  { %7658 = vmatpush3.msra.mxu1 %v242_v44  ;;  %7626 = vmatprep.subr.mxu0 %v224_v45  ;;  %v290_v44 = vld [vmem:[%s16118_s1 + $0x6d0] sm:$0xff]  ;;  %v323_v45 = vld [vmem:[%s16118_s1 + $0x7d8] sm:$0xff] }
  0x55   :  { %7659 = vmatprep.subr.mxu1 %v257_v46  ;;  %7627 = vmatpush3.msra.mxu0 %v208_v47  ;;  %v274_v46 = vld [vmem:[%s16118_s1 + $0x650] sm:$0xff]  ;;  %v307_v47 = vld [vmem:[%s16118_s1 + $0x758] sm:$0xff] }
  0x56   :  { %7660 = vmatpush3.msra.mxu1 %v241_v48  ;;  %7628 = vmatprep.subr.mxu0 %v223_v49  ;;  %v289_v48 = vld [vmem:[%s16118_s1 + $0x6c8] sm:$0xff]  ;;  %v322_v49 = vld [vmem:[%s16118_s1 + $0x7d0] sm:$0xff] }
  0x57   :  { %7661 = vmatprep.subr.mxu1 %v256_v50  ;;  %7629 = vmatpush3.msra.mxu0 %v207_v52  ;;  %v273_v50 = vld [vmem:[%s16118_s1 + $0x648] sm:$0xff]  ;;  %v306_v52 = vld [vmem:[%s16118_s1 + $0x750] sm:$0xff] }
  0x58   :  { %7662 = vmatpush3.msra.mxu1 %v240_v53  ;;  %7630 = vmatprep.subr.mxu0 %v222_v54  ;;  %v288_v53 = vld [vmem:[%s16118_s1 + $0x6c0] sm:$0xff]  ;;  %v321_v54 = vld [vmem:[%s16118_s1 + $0x7c8] sm:$0xff] }
  0x59   :  { %7663 = vmatprep.subr.mxu1 %v255_v55  ;;  %7631 = vmatpush3.msra.mxu0 %v206_v56  ;;  %v272_v55 = vld [vmem:[%s16118_s1 + $0x640] sm:$0xff]  ;;  %v305_v56 = vld [vmem:[%s16118_s1 + $0x748] sm:$0xff] }
  0x5a   :  { %7664 = vmatpush3.msra.mxu1 %v239_v57  ;;  %7632 = vmatprep.subr.mxu0 %v221_v58  ;;  %v287_v57 = vld [vmem:[%s16118_s1 + $0x6b8] sm:$0xff]  ;;  %v320_v58 = vld [vmem:[%s16118_s1 + $0x7c0] sm:$0xff] }
  0x5b   :  { %7665 = vmatprep.subr.mxu1 %v254_v59  ;;  %7633 = vmatpush3.msra.mxu0 %v205_v60  ;;  %v271_v59 = vld [vmem:[%s16118_s1 + $0x638] sm:$0xff]  ;;  %v304_v60 = vld [vmem:[%s16118_s1 + $0x740] sm:$0xff] }
  0x5c   :  { %7666 = vmatpush3.msra.mxu1 %v238_v61  ;;  %7634 = vmatprep.subr.mxu0 %v220_v62  ;;  %v286_v61 = vld [vmem:[%s16118_s1 + $0x6b0] sm:$0xff]  ;;  %v319_v62 = vld [vmem:[%s16118_s1 + $0x7b8] sm:$0xff] }
  0x5d   :  { %7667 = vmatprep.subr.mxu1 %v253_v63  ;;  %7635 = vmatpush3.msra.mxu0 %v204_v1  ;;  %v270_v63 = vld [vmem:[%s16118_s1 + $0x630] sm:$0xff]  ;;  %v285_v1 = vld [vmem:[%s16118_s1 + $0x6a8] sm:$0xff] }
  0x5e   :  { %7668 = vmatpush3.msra.mxu1 %v237_v2  ;;  %7636 = vmatprep.subr.mxu0 %v219_v3  ;;  %v318_v2 = vld [vmem:[%s16118_s1 + $0x7b0] sm:$0xff]  ;;  %v269_v3 = vld [vmem:[%s16118_s1 + $0x628] sm:$0xff] }
  0x5f   :  { %7669 = vmatprep.subr.mxu1 %v252_v4  ;;  %7637 = vmatpush3.msra.mxu0 %v203_v5  ;;  %v302_v4 = vld [vmem:[%s16118_s1 + $0x730] sm:$0xff]  ;;  %v284_v5 = vld [vmem:[%s16118_s1 + $0x6a0] sm:$0xff] }
  0x60   :  { %7670 = vmatpush3.msra.mxu1 %v236_v6  ;;  %7638 = vmatprep.subr.mxu0 %v218_v8  ;;  %v317_v6 = vld [vmem:[%s16118_s1 + $0x7a8] sm:$0xff]  ;;  %v268_v8 = vld [vmem:[%s16118_s1 + $0x620] sm:$0xff] }
  0x61   :  { %7671 = vmatprep.subr.mxu1 %v251_v9  ;;  %7639 = vmatpush3.msra.mxu0 %v202_v11  ;;  %v301_v9 = vld [vmem:[%s16118_s1 + $0x728] sm:$0xff]  ;;  %v316_v11 = vld [vmem:[%s16118_s1 + $0x7a0] sm:$0xff] }
  0x62   :  { %7672 = vmatpush3.msra.mxu1 %v235_v12  ;;  %7640 = vmatprep.subr.mxu0 %v217_v13  ;;  %v267_v12 = vld [vmem:[%s16118_s1 + $0x618] sm:$0xff]  ;;  %v300_v13 = vld [vmem:[%s16118_s1 + $0x720] sm:$0xff] }
  0x63   :  { %7673 = vmatprep.subr.mxu1 %v250_v14  ;;  %7641 = vmatpush3.msra.mxu0 %v201_v15  ;;  %v2155_v14 = vcombine.high %v43_v7, %v43_v7  ;;  %v282_v15 = vld [vmem:[%s16118_s1 + $0x690] sm:$0xff] }
  0x64   :  { %7674 = vmatpush3.msra.mxu1 %v234_v16  ;;  %7642 = vmatprep.subr.mxu0 %v216_v18  ;;  %v315_v16 = vld [vmem:[%s16118_s1 + $0x798] sm:$0xff]  ;;  %v266_v18 = vld [vmem:[%s16118_s1 + $0x610] sm:$0xff] }
  0x65   :  { %7675 = vmatprep.subr.mxu1 %v249_v19  ;;  %7643 = vmatpush3.msra.mxu0 %v200_v21  ;;  %v299_v19 = vld [vmem:[%s16118_s1 + $0x718] sm:$0xff]  ;;  %v314_v21 = vld [vmem:[%s16118_s1 + $0x790] sm:$0xff] }
  0x66   :  { %3107 = vmatprep.mubr.f32.mxu0 %v2153_v20  ;;  %7676 = vmatpush3.msra.mxu1 %v233_v22  ;;  %v281_v20 = vld [vmem:[%s16118_s1 + $0x688] sm:$0xff] }
  0x67   :  { %3108 = vmatmul.mubr.f32.vlgmr.msra.gmra.mxu0 %v2145_v10  ;;  %7677 = vmatprep.subr.mxu1 %v248_v23  ;;  %v283_v10 = vld [vmem:[%s16118_s1 + $0x698] sm:$0xff]  ;;  %v265_v22 = vld [vmem:[%s16118_s1 + $0x608] sm:$0xff]  ;;  %v298_v23 = vld [vmem:[%s16118_s1 + $0x710] sm:$0xff] }
  0x68   :  { %7682 = vmatprep.subr.mxu0 %v295_v24  ;;  %7678 = vmatpush3.msra.mxu1 %v232_v26  ;;  %v2169_v24 = vrot.slane %v2155_v14, %v9997_v51  ;;  %v313_v26 = vld [vmem:[%s16118_s1 + $0x788] sm:$0xff]  ;;  %v44_v14 = vld [vmem:[%s16117_s0 + $0x20] sm:$0xff] }
  0x69   :  { %3177 = vmatprep.mubr.f32.mxu1 %v2154_v25  ;;  %7683 = vmatpush3.msra.mxu0 %v279_v27  ;;  %v280_v25 = vld [vmem:[%s16118_s1 + $0x680] sm:$0xff] }
  0x6a   :  { %3178 = vmatmul.mubr.f32.vlgmr.msra.gmra.mxu1 %v2152_v17  ;;  %7684 = vmatprep.subr.mxu0 %v294_v28  ;;  %v2162_v17 = vrot.slane %v43_v7, %v9997_v51  ;;  %v264_v28 = vld [vmem:[%s16118_s1 + $0x600] sm:$0xff]  ;;  %v367_v7 = vld [vmem:[%s16118_s1 + $0x938] sm:$0xff] }
  0x6b   :  { %7717 = vmatprep.subr.mxu1 %v327_v29  ;;  %7685 = vmatpush3.msra.mxu0 %v278_v30  ;;  %v297_v29 = vld [vmem:[%s16118_s1 + $0x708] sm:$0xff]  ;;  %v312_v30 = vld [vmem:[%s16118_s1 + $0x780] sm:$0xff] }
  0x6c   :  { %7718 = vmatpush3.msra.mxu1 %v311_v31  ;;  %7686 = vmatprep.subr.mxu0 %v293_v32  ;;  %v2170_v27 = vcombine.high %v2162_v17, %v2162_v17  ;;  %v359_v31 = vld [vmem:[%s16118_s1 + $0x8f8] sm:$0xff]  ;;  %v2171_v32 = vcombine.high %v2169_v24, %v2169_v24 }
  0x6d   :  { %7719 = vmatprep.subr.mxu1 %v326_v33  ;;  %7687 = vmatpush3.msra.mxu0 %v277_v34  ;;  %v296_v33 = vld [vmem:[%s16118_s1 + $0x700] sm:$0xff]  ;;  %v343_v34 = vld [vmem:[%s16118_s1 + $0x878] sm:$0xff] }
  0x6e   :  { %7720 = vmatpush3.msra.mxu1 %v310_v35  ;;  %7688 = vmatprep.subr.mxu0 %v292_v36  ;;  %v358_v35 = vld [vmem:[%s16118_s1 + $0x8f0] sm:$0xff]  ;;  %v391_v36 = vld [vmem:[%s16118_s1 + $0x9f8] sm:$0xff] }
  0x6f   :  { %7721 = vmatprep.subr.mxu1 %v325_v37  ;;  %7689 = vmatpush3.msra.mxu0 %v276_v38  ;;  %v342_v37 = vld [vmem:[%s16118_s1 + $0x870] sm:$0xff]  ;;  %v375_v38 = vld [vmem:[%s16118_s1 + $0x978] sm:$0xff] }
  0x70   :  { %7722 = vmatpush3.msra.mxu1 %v309_v39  ;;  %7690 = vmatprep.subr.mxu0 %v291_v40  ;;  %v357_v39 = vld [vmem:[%s16118_s1 + $0x8e8] sm:$0xff]  ;;  %v390_v40 = vld [vmem:[%s16118_s1 + $0x9f0] sm:$0xff] }
  0x71   :  { %7723 = vmatprep.subr.mxu1 %v324_v41  ;;  %7691 = vmatpush3.msra.mxu0 %v275_v42  ;;  %v341_v41 = vld [vmem:[%s16118_s1 + $0x868] sm:$0xff]  ;;  %v374_v42 = vld [vmem:[%s16118_s1 + $0x970] sm:$0xff] }
  0x72   :  { %7724 = vmatpush3.msra.mxu1 %v308_v43  ;;  %7692 = vmatprep.subr.mxu0 %v290_v44  ;;  %v356_v43 = vld [vmem:[%s16118_s1 + $0x8e0] sm:$0xff]  ;;  %v389_v44 = vld [vmem:[%s16118_s1 + $0x9e8] sm:$0xff] }
  0x73   :  { %7725 = vmatprep.subr.mxu1 %v323_v45  ;;  %7693 = vmatpush3.msra.mxu0 %v274_v46  ;;  %v340_v45 = vld [vmem:[%s16118_s1 + $0x860] sm:$0xff]  ;;  %v373_v46 = vld [vmem:[%s16118_s1 + $0x968] sm:$0xff] }
  0x74   :  { %7726 = vmatpush3.msra.mxu1 %v307_v47  ;;  %7694 = vmatprep.subr.mxu0 %v289_v48  ;;  %v355_v47 = vld [vmem:[%s16118_s1 + $0x8d8] sm:$0xff]  ;;  %v388_v48 = vld [vmem:[%s16118_s1 + $0x9e0] sm:$0xff] }
  0x75   :  { %7727 = vmatprep.subr.mxu1 %v322_v49  ;;  %7695 = vmatpush3.msra.mxu0 %v273_v50  ;;  %v339_v49 = vld [vmem:[%s16118_s1 + $0x858] sm:$0xff]  ;;  %v372_v50 = vld [vmem:[%s16118_s1 + $0x960] sm:$0xff] }
  0x76   :  { %7728 = vmatpush3.msra.mxu1 %v306_v52  ;;  %7696 = vmatprep.subr.mxu0 %v288_v53  ;;  %v354_v52 = vld [vmem:[%s16118_s1 + $0x8d0] sm:$0xff]  ;;  %v387_v53 = vld [vmem:[%s16118_s1 + $0x9d8] sm:$0xff] }
  0x77   :  { %7729 = vmatprep.subr.mxu1 %v321_v54  ;;  %7697 = vmatpush3.msra.mxu0 %v272_v55  ;;  %v338_v54 = vld [vmem:[%s16118_s1 + $0x850] sm:$0xff]  ;;  %v371_v55 = vld [vmem:[%s16118_s1 + $0x958] sm:$0xff] }
  0x78   :  { %7730 = vmatpush3.msra.mxu1 %v305_v56  ;;  %7698 = vmatprep.subr.mxu0 %v287_v57  ;;  %v353_v56 = vld [vmem:[%s16118_s1 + $0x8c8] sm:$0xff]  ;;  %v386_v57 = vld [vmem:[%s16118_s1 + $0x9d0] sm:$0xff] }
  0x79   :  { %7731 = vmatprep.subr.mxu1 %v320_v58  ;;  %7699 = vmatpush3.msra.mxu0 %v271_v59  ;;  %v337_v58 = vld [vmem:[%s16118_s1 + $0x848] sm:$0xff]  ;;  %v370_v59 = vld [vmem:[%s16118_s1 + $0x950] sm:$0xff] }
  0x7a   :  { %7732 = vmatpush3.msra.mxu1 %v304_v60  ;;  %7700 = vmatprep.subr.mxu0 %v286_v61  ;;  %v352_v60 = vld [vmem:[%s16118_s1 + $0x8c0] sm:$0xff]  ;;  %v385_v61 = vld [vmem:[%s16118_s1 + $0x9c8] sm:$0xff] }
  0x7b   :  { %7733 = vmatprep.subr.mxu1 %v319_v62  ;;  %7701 = vmatpush3.msra.mxu0 %v270_v63  ;;  %v336_v62 = vld [vmem:[%s16118_s1 + $0x840] sm:$0xff]  ;;  %v369_v63 = vld [vmem:[%s16118_s1 + $0x948] sm:$0xff] }
  0x7c   :  { %7734 = vmatpush3.msra.mxu1 %v303_v0  ;;  %7702 = vmatprep.subr.mxu0 %v285_v1  ;;  %v351_v0 = vld [vmem:[%s16118_s1 + $0x8b8] sm:$0xff]  ;;  %v384_v1 = vld [vmem:[%s16118_s1 + $0x9c0] sm:$0xff] }
  0x7d   :  { %7735 = vmatprep.subr.mxu1 %v318_v2  ;;  %7703 = vmatpush3.msra.mxu0 %v269_v3  ;;  %v335_v2 = vld [vmem:[%s16118_s1 + $0x838] sm:$0xff]  ;;  %v368_v3 = vld [vmem:[%s16118_s1 + $0x940] sm:$0xff] }
  0x7e   :  { %7736 = vmatpush3.msra.mxu1 %v302_v4  ;;  %7704 = vmatprep.subr.mxu0 %v284_v5  ;;  %v350_v4 = vld [vmem:[%s16118_s1 + $0x8b0] sm:$0xff]  ;;  %v383_v5 = vld [vmem:[%s16118_s1 + $0x9b8] sm:$0xff] }
  0x7f   :  { %7737 = vmatprep.subr.mxu1 %v317_v6  ;;  %7705 = vmatpush3.msra.mxu0 %v268_v8  ;;  %v334_v6 = vld [vmem:[%s16118_s1 + $0x830] sm:$0xff]  ;;  %v349_v8 = vld [vmem:[%s16118_s1 + $0x8a8] sm:$0xff] }
  0x80   :  { %7738 = vmatpush3.msra.mxu1 %v301_v9  ;;  %7706 = vmatprep.subr.mxu0 %v283_v10  ;;  %v382_v9 = vld [vmem:[%s16118_s1 + $0x9b0] sm:$0xff]  ;;  %v333_v10 = vld [vmem:[%s16118_s1 + $0x828] sm:$0xff] }
  0x81   :  { %7739 = vmatprep.subr.mxu1 %v316_v11  ;;  %7707 = vmatpush3.msra.mxu0 %v267_v12  ;;  %v366_v11 = vld [vmem:[%s16118_s1 + $0x930] sm:$0xff]  ;;  %v348_v12 = vld [vmem:[%s16118_s1 + $0x8a0] sm:$0xff] }
  0x82   :  { %7740 = vmatpush3.msra.mxu1 %v300_v13  ;;  %7708 = vmatprep.subr.mxu0 %v282_v15  ;;  %v381_v13 = vld [vmem:[%s16118_s1 + $0x9a8] sm:$0xff]  ;;  %v332_v15 = vld [vmem:[%s16118_s1 + $0x820] sm:$0xff] }
  0x83   :  { %7741 = vmatprep.subr.mxu1 %v315_v16  ;;  %7709 = vmatpush3.msra.mxu0 %v266_v18  ;;  %v365_v16 = vld [vmem:[%s16118_s1 + $0x928] sm:$0xff]  ;;  %v380_v18 = vld [vmem:[%s16118_s1 + $0x9a0] sm:$0xff] }
  0x84   :  { %7742 = vmatpush3.msra.mxu1 %v299_v19  ;;  %7710 = vmatprep.subr.mxu0 %v281_v20  ;;  %v331_v19 = vld [vmem:[%s16118_s1 + $0x818] sm:$0xff]  ;;  %v364_v20 = vld [vmem:[%s16118_s1 + $0x920] sm:$0xff] }
  0x85   :  { %7743 = vmatprep.subr.mxu1 %v314_v21  ;;  %7711 = vmatpush3.msra.mxu0 %v265_v22  ;;  %v2172_v21 = vcombine.high %v44_v14, %v44_v14  ;;  %v346_v22 = vld [vmem:[%s16118_s1 + $0x890] sm:$0xff] }
  0x86   :  { %7744 = vmatpush3.msra.mxu1 %v298_v23  ;;  %7712 = vmatprep.subr.mxu0 %v280_v25  ;;  %v379_v23 = vld [vmem:[%s16118_s1 + $0x998] sm:$0xff]  ;;  %v330_v25 = vld [vmem:[%s16118_s1 + $0x810] sm:$0xff] }
  0x87   :  { %7745 = vmatprep.subr.mxu1 %v313_v26  ;;  %7713 = vmatpush3.msra.mxu0 %v264_v28  ;;  %v363_v26 = vld [vmem:[%s16118_s1 + $0x918] sm:$0xff]  ;;  %v378_v28 = vld [vmem:[%s16118_s1 + $0x990] sm:$0xff] }
  0x88   :  { %3247 = vmatprep.mubr.f32.mxu0 %v2170_v27  ;;  %7746 = vmatpush3.msra.mxu1 %v297_v29  ;;  %v345_v27 = vld [vmem:[%s16118_s1 + $0x888] sm:$0xff] }
  0x89   :  { %3248 = vmatmul.mubr.f32.vlgmr.msra.gmra.mxu0 %v2162_v17  ;;  %7747 = vmatprep.subr.mxu1 %v312_v30  ;;  %v347_v17 = vld [vmem:[%s16118_s1 + $0x898] sm:$0xff]  ;;  %v329_v29 = vld [vmem:[%s16118_s1 + $0x808] sm:$0xff]  ;;  %v362_v30 = vld [vmem:[%s16118_s1 + $0x910] sm:$0xff] }
  0x8a   :  { %7752 = vmatprep.subr.mxu0 %v359_v31  ;;  %7748 = vmatpush3.msra.mxu1 %v296_v33  ;;  %v2186_v31 = vrot.slane %v2172_v21, %v9997_v51  ;;  %v377_v33 = vld [vmem:[%s16118_s1 + $0x988] sm:$0xff] }
  0x8b   :  { %3317 = vmatprep.mubr.f32.mxu1 %v2171_v32  ;;  %7753 = vmatpush3.msra.mxu0 %v343_v34  ;;  %v344_v32 = vld [vmem:[%s16118_s1 + $0x880] sm:$0xff]  ;;  %v45_v21 = vld [vmem:[%s16117_s0 + $0x28] sm:$0xff] }
  0x8c   :  { %3318 = vmatmul.mubr.f32.vlgmr.msra.gmra.mxu1 %v2169_v24  ;;  %7754 = vmatprep.subr.mxu0 %v358_v35  ;;  %v2179_v24 = vrot.slane %v44_v14, %v9997_v51  ;;  %v328_v35 = vld [vmem:[%s16118_s1 + $0x800] sm:$0xff]  ;;  %v431_v14 = vld [vmem:[%s16118_s1 + $0xb38] sm:$0xff] }
  0x8d   :  { %7787 = vmatprep.subr.mxu1 %v391_v36  ;;  %7755 = vmatpush3.msra.mxu0 %v342_v37  ;;  %v361_v36 = vld [vmem:[%s16118_s1 + $0x908] sm:$0xff]  ;;  %v376_v37 = vld [vmem:[%s16118_s1 + $0x980] sm:$0xff] }
  0x8e   :  { %7788 = vmatpush3.msra.mxu1 %v375_v38  ;;  %7756 = vmatprep.subr.mxu0 %v357_v39  ;;  %v2187_v34 = vcombine.high %v2179_v24, %v2179_v24  ;;  %v423_v38 = vld [vmem:[%s16118_s1 + $0xaf8] sm:$0xff]  ;;  %v2188_v39 = vcombine.high %v2186_v31, %v2186_v31 }
  0x8f   :  { %7789 = vmatprep.subr.mxu1 %v390_v40  ;;  %7757 = vmatpush3.msra.mxu0 %v341_v41  ;;  %v360_v40 = vld [vmem:[%s16118_s1 + $0x900] sm:$0xff]  ;;  %v407_v41 = vld [vmem:[%s16118_s1 + $0xa78] sm:$0xff] }
  0x90   :  { %7790 = vmatpush3.msra.mxu1 %v374_v42  ;;  %7758 = vmatprep.subr.mxu0 %v356_v43  ;;  %v422_v42 = vld [vmem:[%s16118_s1 + $0xaf0] sm:$0xff]  ;;  %v455_v43 = vld [vmem:[%s16118_s1 + $0xbf8] sm:$0xff] }
  0x91   :  { %7791 = vmatprep.subr.mxu1 %v389_v44  ;;  %7759 = vmatpush3.msra.mxu0 %v340_v45  ;;  %v406_v44 = vld [vmem:[%s16118_s1 + $0xa70] sm:$0xff]  ;;  %v439_v45 = vld [vmem:[%s16118_s1 + $0xb78] sm:$0xff] }
  0x92   :  { %7792 = vmatpush3.msra.mxu1 %v373_v46  ;;  %7760 = vmatprep.subr.mxu0 %v355_v47  ;;  %v421_v46 = vld [vmem:[%s16118_s1 + $0xae8] sm:$0xff]  ;;  %v454_v47 = vld [vmem:[%s16118_s1 + $0xbf0] sm:$0xff] }
  0x93   :  { %7793 = vmatprep.subr.mxu1 %v388_v48  ;;  %7761 = vmatpush3.msra.mxu0 %v339_v49  ;;  %v405_v48 = vld [vmem:[%s16118_s1 + $0xa68] sm:$0xff]  ;;  %v438_v49 = vld [vmem:[%s16118_s1 + $0xb70] sm:$0xff] }
  0x94   :  { %7794 = vmatpush3.msra.mxu1 %v372_v50  ;;  %7762 = vmatprep.subr.mxu0 %v354_v52  ;;  %v420_v50 = vld [vmem:[%s16118_s1 + $0xae0] sm:$0xff]  ;;  %v453_v52 = vld [vmem:[%s16118_s1 + $0xbe8] sm:$0xff] }
  0x95   :  { %7795 = vmatprep.subr.mxu1 %v387_v53  ;;  %7763 = vmatpush3.msra.mxu0 %v338_v54  ;;  %v404_v53 = vld [vmem:[%s16118_s1 + $0xa60] sm:$0xff]  ;;  %v437_v54 = vld [vmem:[%s16118_s1 + $0xb68] sm:$0xff] }
  0x96   :  { %7796 = vmatpush3.msra.mxu1 %v371_v55  ;;  %7764 = vmatprep.subr.mxu0 %v353_v56  ;;  %v419_v55 = vld [vmem:[%s16118_s1 + $0xad8] sm:$0xff]  ;;  %v452_v56 = vld [vmem:[%s16118_s1 + $0xbe0] sm:$0xff] }
  0x97   :  { %7797 = vmatprep.subr.mxu1 %v386_v57  ;;  %7765 = vmatpush3.msra.mxu0 %v337_v58  ;;  %v403_v57 = vld [vmem:[%s16118_s1 + $0xa58] sm:$0xff]  ;;  %v436_v58 = vld [vmem:[%s16118_s1 + $0xb60] sm:$0xff] }
  0x98   :  { %7798 = vmatpush3.msra.mxu1 %v370_v59  ;;  %7766 = vmatprep.subr.mxu0 %v352_v60  ;;  %v418_v59 = vld [vmem:[%s16118_s1 + $0xad0] sm:$0xff]  ;;  %v451_v60 = vld [vmem:[%s16118_s1 + $0xbd8] sm:$0xff] }
  0x99   :  { %7799 = vmatprep.subr.mxu1 %v385_v61  ;;  %7767 = vmatpush3.msra.mxu0 %v336_v62  ;;  %v402_v61 = vld [vmem:[%s16118_s1 + $0xa50] sm:$0xff]  ;;  %v435_v62 = vld [vmem:[%s16118_s1 + $0xb58] sm:$0xff] }
  0x9a   :  { %7800 = vmatpush3.msra.mxu1 %v369_v63  ;;  %7768 = vmatprep.subr.mxu0 %v351_v0  ;;  %v417_v63 = vld [vmem:[%s16118_s1 + $0xac8] sm:$0xff]  ;;  %v450_v0 = vld [vmem:[%s16118_s1 + $0xbd0] sm:$0xff] }
  0x9b   :  { %7801 = vmatprep.subr.mxu1 %v384_v1  ;;  %7769 = vmatpush3.msra.mxu0 %v335_v2  ;;  %v401_v1 = vld [vmem:[%s16118_s1 + $0xa48] sm:$0xff]  ;;  %v434_v2 = vld [vmem:[%s16118_s1 + $0xb50] sm:$0xff] }
  0x9c   :  { %7802 = vmatpush3.msra.mxu1 %v368_v3  ;;  %7770 = vmatprep.subr.mxu0 %v350_v4  ;;  %v416_v3 = vld [vmem:[%s16118_s1 + $0xac0] sm:$0xff]  ;;  %v449_v4 = vld [vmem:[%s16118_s1 + $0xbc8] sm:$0xff] }
  0x9d   :  { %7803 = vmatprep.subr.mxu1 %v383_v5  ;;  %7771 = vmatpush3.msra.mxu0 %v334_v6  ;;  %v400_v5 = vld [vmem:[%s16118_s1 + $0xa40] sm:$0xff]  ;;  %v433_v6 = vld [vmem:[%s16118_s1 + $0xb48] sm:$0xff] }
  0x9e   :  { %7804 = vmatpush3.msra.mxu1 %v367_v7  ;;  %7772 = vmatprep.subr.mxu0 %v349_v8  ;;  %v415_v7 = vld [vmem:[%s16118_s1 + $0xab8] sm:$0xff]  ;;  %v448_v8 = vld [vmem:[%s16118_s1 + $0xbc0] sm:$0xff] }
  0x9f   :  { %7805 = vmatprep.subr.mxu1 %v382_v9  ;;  %7773 = vmatpush3.msra.mxu0 %v333_v10  ;;  %v399_v9 = vld [vmem:[%s16118_s1 + $0xa38] sm:$0xff]  ;;  %v432_v10 = vld [vmem:[%s16118_s1 + $0xb40] sm:$0xff] }
  0xa0   :  { %7806 = vmatpush3.msra.mxu1 %v366_v11  ;;  %7774 = vmatprep.subr.mxu0 %v348_v12  ;;  %v414_v11 = vld [vmem:[%s16118_s1 + $0xab0] sm:$0xff]  ;;  %v447_v12 = vld [vmem:[%s16118_s1 + $0xbb8] sm:$0xff] }
  0xa1   :  { %7807 = vmatprep.subr.mxu1 %v381_v13  ;;  %7775 = vmatpush3.msra.mxu0 %v332_v15  ;;  %v398_v13 = vld [vmem:[%s16118_s1 + $0xa30] sm:$0xff]  ;;  %v413_v15 = vld [vmem:[%s16118_s1 + $0xaa8] sm:$0xff] }
  0xa2   :  { %7808 = vmatpush3.msra.mxu1 %v365_v16  ;;  %7776 = vmatprep.subr.mxu0 %v347_v17  ;;  %v446_v16 = vld [vmem:[%s16118_s1 + $0xbb0] sm:$0xff]  ;;  %v397_v17 = vld [vmem:[%s16118_s1 + $0xa28] sm:$0xff] }
  0xa3   :  { %7809 = vmatprep.subr.mxu1 %v380_v18  ;;  %7777 = vmatpush3.msra.mxu0 %v331_v19  ;;  %v430_v18 = vld [vmem:[%s16118_s1 + $0xb30] sm:$0xff]  ;;  %v412_v19 = vld [vmem:[%s16118_s1 + $0xaa0] sm:$0xff] }
  0xa4   :  { %7810 = vmatpush3.msra.mxu1 %v364_v20  ;;  %7778 = vmatprep.subr.mxu0 %v346_v22  ;;  %v445_v20 = vld [vmem:[%s16118_s1 + $0xba8] sm:$0xff]  ;;  %v396_v22 = vld [vmem:[%s16118_s1 + $0xa20] sm:$0xff] }
  0xa5   :  { %7811 = vmatprep.subr.mxu1 %v379_v23  ;;  %7779 = vmatpush3.msra.mxu0 %v330_v25  ;;  %v429_v23 = vld [vmem:[%s16118_s1 + $0xb28] sm:$0xff]  ;;  %v444_v25 = vld [vmem:[%s16118_s1 + $0xba0] sm:$0xff] }
  0xa6   :  { %7812 = vmatpush3.msra.mxu1 %v363_v26  ;;  %7780 = vmatprep.subr.mxu0 %v345_v27  ;;  %v395_v26 = vld [vmem:[%s16118_s1 + $0xa18] sm:$0xff]  ;;  %v428_v27 = vld [vmem:[%s16118_s1 + $0xb20] sm:$0xff] }
  0xa7   :  { %7813 = vmatprep.subr.mxu1 %v378_v28  ;;  %7781 = vmatpush3.msra.mxu0 %v329_v29  ;;  %v2189_v28 = vcombine.high %v45_v21, %v45_v21  ;;  %v410_v29 = vld [vmem:[%s16118_s1 + $0xa90] sm:$0xff] }
  0xa8   :  { %7814 = vmatpush3.msra.mxu1 %v362_v30  ;;  %7782 = vmatprep.subr.mxu0 %v344_v32  ;;  %v443_v30 = vld [vmem:[%s16118_s1 + $0xb98] sm:$0xff]  ;;  %v394_v32 = vld [vmem:[%s16118_s1 + $0xa10] sm:$0xff] }
  0xa9   :  { %7815 = vmatprep.subr.mxu1 %v377_v33  ;;  %7783 = vmatpush3.msra.mxu0 %v328_v35  ;;  %v427_v33 = vld [vmem:[%s16118_s1 + $0xb18] sm:$0xff]  ;;  %v442_v35 = vld [vmem:[%s16118_s1 + $0xb90] sm:$0xff] }
  0xaa   :  { %3387 = vmatprep.mubr.f32.mxu0 %v2187_v34  ;;  %7816 = vmatpush3.msra.mxu1 %v361_v36  ;;  %v409_v34 = vld [vmem:[%s16118_s1 + $0xa88] sm:$0xff] }
  0xab   :  { %3388 = vmatmul.mubr.f32.vlgmr.msra.gmra.mxu0 %v2179_v24  ;;  %7817 = vmatprep.subr.mxu1 %v376_v37  ;;  %v411_v24 = vld [vmem:[%s16118_s1 + $0xa98] sm:$0xff]  ;;  %v393_v36 = vld [vmem:[%s16118_s1 + $0xa08] sm:$0xff]  ;;  %v426_v37 = vld [vmem:[%s16118_s1 + $0xb10] sm:$0xff] }
  0xac   :  { %7822 = vmatprep.subr.mxu0 %v423_v38  ;;  %7818 = vmatpush3.msra.mxu1 %v360_v40  ;;  %v2203_v38 = vrot.slane %v2189_v28, %v9997_v51  ;;  %v441_v40 = vld [vmem:[%s16118_s1 + $0xb88] sm:$0xff]  ;;  %v46_v28 = vld [vmem:[%s16117_s0 + $0x30] sm:$0xff] }
  0xad   :  { %3457 = vmatprep.mubr.f32.mxu1 %v2188_v39  ;;  %7823 = vmatpush3.msra.mxu0 %v407_v41  ;;  %v408_v39 = vld [vmem:[%s16118_s1 + $0xa80] sm:$0xff] }
  0xae   :  { %3458 = vmatmul.mubr.f32.vlgmr.msra.gmra.mxu1 %v2186_v31  ;;  %7824 = vmatprep.subr.mxu0 %v422_v42  ;;  %v2196_v31 = vrot.slane %v45_v21, %v9997_v51  ;;  %v392_v42 = vld [vmem:[%s16118_s1 + $0xa00] sm:$0xff]  ;;  %v495_v21 = vld [vmem:[%s16118_s1 + $0xd38] sm:$0xff] }
  0xaf   :  { %7857 = vmatprep.subr.mxu1 %v455_v43  ;;  %7825 = vmatpush3.msra.mxu0 %v406_v44  ;;  %v425_v43 = vld [vmem:[%s16118_s1 + $0xb08] sm:$0xff]  ;;  %v440_v44 = vld [vmem:[%s16118_s1 + $0xb80] sm:$0xff] }
  0xb0   :  { %7858 = vmatpush3.msra.mxu1 %v439_v45  ;;  %7826 = vmatprep.subr.mxu0 %v421_v46  ;;  %v2204_v41 = vcombine.high %v2196_v31, %v2196_v31  ;;  %v487_v45 = vld [vmem:[%s16118_s1 + $0xcf8] sm:$0xff]  ;;  %v2205_v46 = vcombine.high %v2203_v38, %v2203_v38 }
  0xb1   :  { %7859 = vmatprep.subr.mxu1 %v454_v47  ;;  %7827 = vmatpush3.msra.mxu0 %v405_v48  ;;  %v424_v47 = vld [vmem:[%s16118_s1 + $0xb00] sm:$0xff]  ;;  %v471_v48 = vld [vmem:[%s16118_s1 + $0xc78] sm:$0xff] }
  0xb2   :  { %7860 = vmatpush3.msra.mxu1 %v438_v49  ;;  %7828 = vmatprep.subr.mxu0 %v420_v50  ;;  %v486_v49 = vld [vmem:[%s16118_s1 + $0xcf0] sm:$0xff]  ;;  %v519_v50 = vld [vmem:[%s16118_s1 + $0xdf8] sm:$0xff] }
  0xb3   :  { %7861 = vmatprep.subr.mxu1 %v453_v52  ;;  %7829 = vmatpush3.msra.mxu0 %v404_v53  ;;  %v470_v52 = vld [vmem:[%s16118_s1 + $0xc70] sm:$0xff]  ;;  %v503_v53 = vld [vmem:[%s16118_s1 + $0xd78] sm:$0xff] }
  0xb4   :  { %7862 = vmatpush3.msra.mxu1 %v437_v54  ;;  %7830 = vmatprep.subr.mxu0 %v419_v55  ;;  %v485_v54 = vld [vmem:[%s16118_s1 + $0xce8] sm:$0xff]  ;;  %v518_v55 = vld [vmem:[%s16118_s1 + $0xdf0] sm:$0xff] }
  0xb5   :  { %7863 = vmatprep.subr.mxu1 %v452_v56  ;;  %7831 = vmatpush3.msra.mxu0 %v403_v57  ;;  %v469_v56 = vld [vmem:[%s16118_s1 + $0xc68] sm:$0xff]  ;;  %v502_v57 = vld [vmem:[%s16118_s1 + $0xd70] sm:$0xff] }
  0xb6   :  { %7864 = vmatpush3.msra.mxu1 %v436_v58  ;;  %7832 = vmatprep.subr.mxu0 %v418_v59  ;;  %v484_v58 = vld [vmem:[%s16118_s1 + $0xce0] sm:$0xff]  ;;  %v517_v59 = vld [vmem:[%s16118_s1 + $0xde8] sm:$0xff] }
  0xb7   :  { %7865 = vmatprep.subr.mxu1 %v451_v60  ;;  %7833 = vmatpush3.msra.mxu0 %v402_v61  ;;  %v468_v60 = vld [vmem:[%s16118_s1 + $0xc60] sm:$0xff]  ;;  %v501_v61 = vld [vmem:[%s16118_s1 + $0xd68] sm:$0xff] }
  0xb8   :  { %7866 = vmatpush3.msra.mxu1 %v435_v62  ;;  %7834 = vmatprep.subr.mxu0 %v417_v63  ;;  %v483_v62 = vld [vmem:[%s16118_s1 + $0xcd8] sm:$0xff]  ;;  %v516_v63 = vld [vmem:[%s16118_s1 + $0xde0] sm:$0xff] }
  0xb9   :  { %7867 = vmatprep.subr.mxu1 %v450_v0  ;;  %7835 = vmatpush3.msra.mxu0 %v401_v1  ;;  %v467_v0 = vld [vmem:[%s16118_s1 + $0xc58] sm:$0xff]  ;;  %v500_v1 = vld [vmem:[%s16118_s1 + $0xd60] sm:$0xff] }
  0xba   :  { %7868 = vmatpush3.msra.mxu1 %v434_v2  ;;  %7836 = vmatprep.subr.mxu0 %v416_v3  ;;  %v482_v2 = vld [vmem:[%s16118_s1 + $0xcd0] sm:$0xff]  ;;  %v515_v3 = vld [vmem:[%s16118_s1 + $0xdd8] sm:$0xff] }
  0xbb   :  { %7869 = vmatprep.subr.mxu1 %v449_v4  ;;  %7837 = vmatpush3.msra.mxu0 %v400_v5  ;;  %v466_v4 = vld [vmem:[%s16118_s1 + $0xc50] sm:$0xff]  ;;  %v499_v5 = vld [vmem:[%s16118_s1 + $0xd58] sm:$0xff] }
  0xbc   :  { %7870 = vmatpush3.msra.mxu1 %v433_v6  ;;  %7838 = vmatprep.subr.mxu0 %v415_v7  ;;  %v481_v6 = vld [vmem:[%s16118_s1 + $0xcc8] sm:$0xff]  ;;  %v514_v7 = vld [vmem:[%s16118_s1 + $0xdd0] sm:$0xff] }
  0xbd   :  { %7871 = vmatprep.subr.mxu1 %v448_v8  ;;  %7839 = vmatpush3.msra.mxu0 %v399_v9  ;;  %v465_v8 = vld [vmem:[%s16118_s1 + $0xc48] sm:$0xff]  ;;  %v498_v9 = vld [vmem:[%s16118_s1 + $0xd50] sm:$0xff] }
  0xbe   :  { %7872 = vmatpush3.msra.mxu1 %v432_v10  ;;  %7840 = vmatprep.subr.mxu0 %v414_v11  ;;  %v480_v10 = vld [vmem:[%s16118_s1 + $0xcc0] sm:$0xff]  ;;  %v513_v11 = vld [vmem:[%s16118_s1 + $0xdc8] sm:$0xff] }
  0xbf   :  { %7873 = vmatprep.subr.mxu1 %v447_v12  ;;  %7841 = vmatpush3.msra.mxu0 %v398_v13  ;;  %v464_v12 = vld [vmem:[%s16118_s1 + $0xc40] sm:$0xff]  ;;  %v497_v13 = vld [vmem:[%s16118_s1 + $0xd48] sm:$0xff] }
  0xc0   :  { %7874 = vmatpush3.msra.mxu1 %v431_v14  ;;  %7842 = vmatprep.subr.mxu0 %v413_v15  ;;  %v479_v14 = vld [vmem:[%s16118_s1 + $0xcb8] sm:$0xff]  ;;  %v512_v15 = vld [vmem:[%s16118_s1 + $0xdc0] sm:$0xff] }
  0xc1   :  { %7875 = vmatprep.subr.mxu1 %v446_v16  ;;  %7843 = vmatpush3.msra.mxu0 %v397_v17  ;;  %v463_v16 = vld [vmem:[%s16118_s1 + $0xc38] sm:$0xff]  ;;  %v496_v17 = vld [vmem:[%s16118_s1 + $0xd40] sm:$0xff] }
  0xc2   :  { %7876 = vmatpush3.msra.mxu1 %v430_v18  ;;  %7844 = vmatprep.subr.mxu0 %v412_v19  ;;  %v478_v18 = vld [vmem:[%s16118_s1 + $0xcb0] sm:$0xff]  ;;  %v511_v19 = vld [vmem:[%s16118_s1 + $0xdb8] sm:$0xff] }
  0xc3   :  { %7877 = vmatprep.subr.mxu1 %v445_v20  ;;  %7845 = vmatpush3.msra.mxu0 %v396_v22  ;;  %v462_v20 = vld [vmem:[%s16118_s1 + $0xc30] sm:$0xff]  ;;  %v477_v22 = vld [vmem:[%s16118_s1 + $0xca8] sm:$0xff] }
  0xc4   :  { %7878 = vmatpush3.msra.mxu1 %v429_v23  ;;  %7846 = vmatprep.subr.mxu0 %v411_v24  ;;  %v510_v23 = vld [vmem:[%s16118_s1 + $0xdb0] sm:$0xff]  ;;  %v461_v24 = vld [vmem:[%s16118_s1 + $0xc28] sm:$0xff] }
  0xc5   :  { %7879 = vmatprep.subr.mxu1 %v444_v25  ;;  %7847 = vmatpush3.msra.mxu0 %v395_v26  ;;  %v494_v25 = vld [vmem:[%s16118_s1 + $0xd30] sm:$0xff]  ;;  %v476_v26 = vld [vmem:[%s16118_s1 + $0xca0] sm:$0xff] }
  0xc6   :  { %7880 = vmatpush3.msra.mxu1 %v428_v27  ;;  %7848 = vmatprep.subr.mxu0 %v410_v29  ;;  %v509_v27 = vld [vmem:[%s16118_s1 + $0xda8] sm:$0xff]  ;;  %v460_v29 = vld [vmem:[%s16118_s1 + $0xc20] sm:$0xff] }
  0xc7   :  { %7881 = vmatprep.subr.mxu1 %v443_v30  ;;  %7849 = vmatpush3.msra.mxu0 %v394_v32  ;;  %v493_v30 = vld [vmem:[%s16118_s1 + $0xd28] sm:$0xff]  ;;  %v508_v32 = vld [vmem:[%s16118_s1 + $0xda0] sm:$0xff] }
  0xc8   :  { %7882 = vmatpush3.msra.mxu1 %v427_v33  ;;  %7850 = vmatprep.subr.mxu0 %v409_v34  ;;  %v459_v33 = vld [vmem:[%s16118_s1 + $0xc18] sm:$0xff]  ;;  %v492_v34 = vld [vmem:[%s16118_s1 + $0xd20] sm:$0xff] }
  0xc9   :  { %7883 = vmatprep.subr.mxu1 %v442_v35  ;;  %7851 = vmatpush3.msra.mxu0 %v393_v36  ;;  %v2206_v35 = vcombine.high %v46_v28, %v46_v28 }
  0xca   :  { %7884 = vmatpush3.msra.mxu1 %v426_v37  ;;  %7852 = vmatprep.subr.mxu0 %v408_v39 }
  0xcb   :  { %7885 = vmatprep.subr.mxu1 %v441_v40  ;;  %7853 = vmatpush3.msra.mxu0 %v392_v42 }
  0xcc   :  { %3527 = vmatprep.mubr.f32.mxu0 %v2204_v41  ;;  %7886 = vmatpush3.msra.mxu1 %v425_v43 }
  0xcd   :  { %3528 = vmatmul.mubr.f32.vlgmr.msra.gmra.mxu0 %v2196_v31  ;;  %7887 = vmatprep.subr.mxu1 %v440_v44  ;;  %v475_v31 = vld [vmem:[%s16118_s1 + $0xc98] sm:$0xff] }
  0xce   :  { %7892 = vmatprep.subr.mxu0 %v487_v45  ;;  %7888 = vmatpush3.msra.mxu1 %v424_v47 }
  0xcf   :  { %3597 = vmatprep.mubr.f32.mxu1 %v2205_v46  ;;  %7893 = vmatpush3.msra.mxu0 %v471_v48 }
  0xd0   :  { %3598 = vmatmul.mubr.f32.vlgmr.msra.gmra.mxu1 %v2203_v38  ;;  %7894 = vmatprep.subr.mxu0 %v486_v49 }
  0xd1   :  { %7927 = vmatprep.subr.mxu1 %v519_v50  ;;  %7895 = vmatpush3.msra.mxu0 %v470_v52 }
  0xd2   :  { %7928 = vmatpush3.msra.mxu1 %v503_v53  ;;  %7896 = vmatprep.subr.mxu0 %v485_v54 }
  0xd3   :  { %7929 = vmatprep.subr.mxu1 %v518_v55  ;;  %7897 = vmatpush3.msra.mxu0 %v469_v56 }
  0xd4   :  { %7930 = vmatpush3.msra.mxu1 %v502_v57  ;;  %7898 = vmatprep.subr.mxu0 %v484_v58 }
  0xd5   :  { %7931 = vmatprep.subr.mxu1 %v517_v59  ;;  %7899 = vmatpush3.msra.mxu0 %v468_v60 }
  0xd6   :  { %7932 = vmatpush3.msra.mxu1 %v501_v61  ;;  %7900 = vmatprep.subr.mxu0 %v483_v62 }
  0xd7   :  { %7933 = vmatprep.subr.mxu1 %v516_v63  ;;  %7901 = vmatpush3.msra.mxu0 %v467_v0 }
  0xd8   :  { %7934 = vmatpush3.msra.mxu1 %v500_v1  ;;  %7902 = vmatprep.subr.mxu0 %v482_v2 }
  0xd9   :  { %7935 = vmatprep.subr.mxu1 %v515_v3  ;;  %7903 = vmatpush3.msra.mxu0 %v466_v4 }
  0xda   :  { %7936 = vmatpush3.msra.mxu1 %v499_v5  ;;  %7904 = vmatprep.subr.mxu0 %v481_v6 }
  0xdb   :  { %7937 = vmatprep.subr.mxu1 %v514_v7  ;;  %7905 = vmatpush3.msra.mxu0 %v465_v8 }
  0xdc   :  { %7938 = vmatpush3.msra.mxu1 %v498_v9  ;;  %7906 = vmatprep.subr.mxu0 %v480_v10 }
  0xdd   :  { %7939 = vmatprep.subr.mxu1 %v513_v11  ;;  %7907 = vmatpush3.msra.mxu0 %v464_v12 }
  0xde   :  { %7940 = vmatpush3.msra.mxu1 %v497_v13  ;;  %7908 = vmatprep.subr.mxu0 %v479_v14 }
  0xdf   :  { %7941 = vmatprep.subr.mxu1 %v512_v15  ;;  %7909 = vmatpush3.msra.mxu0 %v463_v16 }
  0xe0   :  { %7942 = vmatpush3.msra.mxu1 %v496_v17  ;;  %7910 = vmatprep.subr.mxu0 %v478_v18 }
  0xe1   :  { %7943 = vmatprep.subr.mxu1 %v511_v19  ;;  %7911 = vmatpush3.msra.mxu0 %v462_v20 }
  0xe2   :  { %7944 = vmatpush3.msra.mxu1 %v495_v21  ;;  %7912 = vmatprep.subr.mxu0 %v477_v22 }
  0xe3   :  { %7945 = vmatprep.subr.mxu1 %v510_v23  ;;  %7913 = vmatpush3.msra.mxu0 %v461_v24 }
  0xe4   :  { %7946 = vmatpush3.msra.mxu1 %v494_v25  ;;  %7914 = vmatprep.subr.mxu0 %v476_v26 }
  0xe5   :  { %7947 = vmatprep.subr.mxu1 %v509_v27 }
  0xe6   :  { %14 = vsyncpa [#allocation4], 0  ;;  %7915 = vmatpush3.msra.mxu0 %v460_v29  ;;  %7948 = vmatpush3.msra.mxu1 %v493_v30  ;;  %v474_v36 = vld [vmem:[%s16118_s1 + $0xc90] sm:$0xff]  ;;  %v507_v37 = vld [vmem:[%s16118_s1 + $0xd98] sm:$0xff]  ;;  %v2213_v38 = vrot.slane %v46_v28, %v9997_v51  ;;  %v2220_v45 = vrot.slane %v2206_v35, %v9997_v51  ;;  %vm9807_vm0 = vmmov 0   ;;  %vm37_vm1 = vcmask 517120  }
  0xe7   :  { %7916 = vmatprep.subr.mxu0 %v475_v31  ;;  %7949 = vmatprep.subr.mxu1 %v508_v32  ;;  %v458_v39 = vld [vmem:[%s16118_s1 + $0xc10] sm:$0xff]  ;;  %v491_v40 = vld [vmem:[%s16118_s1 + $0xd18] sm:$0xff]  ;;  %v473_v41 = vld [vmem:[%s16118_s1 + $0xc88] sm:$0xff]  ;;  %vm7204_vm2 = vcmask 523264   ;;  %vm7290_vm3 = vcmask 261120   ;;  %vm7374_vm4 = vcmask 130048  }
  0xe8   :  { %7917 = vmatpush3.msra.mxu0 %v459_v33  ;;  %7950 = vmatpush3.msra.mxu1 %v492_v34  ;;  %v506_v42 = vld [vmem:[%s16118_s1 + $0xd90] sm:$0xff]  ;;  %v457_v43 = vld [vmem:[%s16118_s1 + $0xc08] sm:$0xff]  ;;  %v472_v46 = vld [vmem:[%s16118_s1 + $0xc80] sm:$0xff]  ;;  %v2221_v48 = vcombine.high %v2213_v38, %v2213_v38  ;;  %v2222_v54 = vcombine.high %v2220_v45, %v2220_v45  ;;  %s9808_s27 = smov [#allocation3]   ;;  %vm7448_vm5 = vcmask 25600  }
  0xe9   :  { %7918 = vmatprep.subr.mxu0 %v474_v36  ;;  %7951 = vmatprep.subr.mxu1 %v507_v37  ;;  %v490_v44 = vld [vmem:[%s16118_s1 + $0xd10] sm:$0xff]  ;;  %v505_v47 = vld [vmem:[%s16118_s1 + $0xd88] sm:$0xff]  ;;  %v456_v49 = vld [vmem:[%s16118_s1 + $0xc00] sm:$0xff]  ;;  %s7456_s28 = sshll.u32 %s9808_s27, 4  ;;  %s7457_s28 = int_to_ptr.vmem [resolvable:$true] %s7456_s28 }
  0xea   :  { %7919 = vmatpush3.msra.mxu0 %v458_v39  ;;  %7952 = vmatpush3.msra.mxu1 %v491_v40  ;;  %v489_v50 = vld [vmem:[%s16118_s1 + $0xd08] sm:$0xff]  ;;  %v504_v52 = vld [vmem:[%s16118_s1 + $0xd80] sm:$0xff]  ;;  %v551_v53 = vld [vmem:[%s16118_s1 + $0xef8] sm:$0xff]  ;;  %p9788_p1 = scmp.lt.s32.totalorder %s7457_s28, %s7457_s28 }
  0xeb   :  { %7920 = vmatprep.subr.mxu0 %v473_v41  ;;  %7953 = vmatprep.subr.mxu1 %v506_v42  ;;  %v488_v55 = vld [vmem:[%s16118_s1 + $0xd00] sm:$0xff]  ;;  %v535_v56 = vld [vmem:[%s16118_s1 + $0xe78] sm:$0xff]  ;;  %v550_v57 = vld [vmem:[%s16118_s1 + $0xef0] sm:$0xff] }
  0xec   :  { %7921 = vmatpush3.msra.mxu0 %v457_v43  ;;  %7954 = vmatpush3.msra.mxu1 %v490_v44  ;;  %v583_v58 = vld [vmem:[%s16118_s1 + $0xff8] sm:$0xff]  ;;  %v534_v59 = vld [vmem:[%s16118_s1 + $0xe70] sm:$0xff]  ;;  %v549_v61 = vld [vmem:[%s16118_s1 + $0xee8] sm:$0xff] }
  0xed   :  { %7922 = vmatprep.subr.mxu0 %v472_v46  ;;  %7955 = vmatprep.subr.mxu1 %v505_v47  ;;  %v567_v60 = vld [vmem:[%s16118_s1 + $0xf78] sm:$0xff]  ;;  %v582_v62 = vld [vmem:[%s16118_s1 + $0xff0] sm:$0xff]  ;;  %v533_v63 = vld [vmem:[%s16118_s1 + $0xe68] sm:$0xff] }
  0xee   :  { %7923 = vmatpush3.msra.mxu0 %v456_v49  ;;  %3667 = vmatprep.mubr.f32.mxu0 %v2221_v48  ;;  %v566_v0 = vld [vmem:[%s16118_s1 + $0xf70] sm:$0xff]  ;;  %v548_v1 = vld [vmem:[%s16118_s1 + $0xee0] sm:$0xff]  ;;  %v581_v2 = vld [vmem:[%s16118_s1 + $0xfe8] sm:$0xff] }
  0xef   :  { %7956 = vmatpush3.msra.mxu1 %v489_v50  ;;  %3668 = vmatmul.mubr.f32.vlgmr.msra.gmra.mxu0 %v2213_v38  ;;  %v532_v3 = vld [vmem:[%s16118_s1 + $0xe60] sm:$0xff]  ;;  %v565_v4 = vld [vmem:[%s16118_s1 + $0xf68] sm:$0xff]  ;;  %v547_v5 = vld [vmem:[%s16118_s1 + $0xed8] sm:$0xff] }
  0xf0   :  { %7957 = vmatprep.subr.mxu1 %v504_v52  ;;  %7962 = vmatprep.subr.mxu0 %v551_v53  ;;  %v580_v6 = vld [vmem:[%s16118_s1 + $0xfe0] sm:$0xff]  ;;  %v531_v7 = vld [vmem:[%s16118_s1 + $0xe58] sm:$0xff]  ;;  %v546_v9 = vld [vmem:[%s16118_s1 + $0xed0] sm:$0xff] }
  0xf1   :  { %7958 = vmatpush3.msra.mxu1 %v488_v55  ;;  %3737 = vmatprep.mubr.f32.mxu1 %v2222_v54  ;;  %v564_v8 = vld [vmem:[%s16118_s1 + $0xf60] sm:$0xff]  ;;  %v579_v10 = vld [vmem:[%s16118_s1 + $0xfd8] sm:$0xff]  ;;  %v530_v11 = vld [vmem:[%s16118_s1 + $0xe50] sm:$0xff] }
  0xf2   :  { %7963 = vmatpush3.msra.mxu0 %v535_v56  ;;  %3738 = vmatmul.mubr.f32.vlgmr.msra.gmra.mxu1 %v2220_v45  ;;  %v563_v12 = vld [vmem:[%s16118_s1 + $0xf58] sm:$0xff]  ;;  %v545_v13 = vld [vmem:[%s16118_s1 + $0xec8] sm:$0xff]  ;;  %v578_v14 = vld [vmem:[%s16118_s1 + $0xfd0] sm:$0xff] }
  0xf3   :  { %7964 = vmatprep.subr.mxu0 %v550_v57  ;;  %7997 = vmatprep.subr.mxu1 %v583_v58  ;;  %v529_v15 = vld [vmem:[%s16118_s1 + $0xe48] sm:$0xff]  ;;  %v562_v16 = vld [vmem:[%s16118_s1 + $0xf50] sm:$0xff]  ;;  %v544_v17 = vld [vmem:[%s16118_s1 + $0xec0] sm:$0xff] }
  0xf4   :  { %7965 = vmatpush3.msra.mxu0 %v534_v59  ;;  %7998 = vmatpush3.msra.mxu1 %v567_v60  ;;  %v577_v18 = vld [vmem:[%s16118_s1 + $0xfc8] sm:$0xff]  ;;  %v528_v19 = vld [vmem:[%s16118_s1 + $0xe40] sm:$0xff]  ;;  %v543_v21 = vld [vmem:[%s16118_s1 + $0xeb8] sm:$0xff] }
  0xf5   :  { %7966 = vmatprep.subr.mxu0 %v549_v61  ;;  %7999 = vmatprep.subr.mxu1 %v582_v62  ;;  %v561_v20 = vld [vmem:[%s16118_s1 + $0xf48] sm:$0xff]  ;;  %v576_v22 = vld [vmem:[%s16118_s1 + $0xfc0] sm:$0xff]  ;;  %v527_v23 = vld [vmem:[%s16118_s1 + $0xe38] sm:$0xff] }
  0xf6   :  { %7967 = vmatpush3.msra.mxu0 %v533_v63  ;;  %8000 = vmatpush3.msra.mxu1 %v566_v0  ;;  %v560_v24 = vld [vmem:[%s16118_s1 + $0xf40] sm:$0xff]  ;;  %v542_v25 = vld [vmem:[%s16118_s1 + $0xeb0] sm:$0xff]  ;;  %v575_v26 = vld [vmem:[%s16118_s1 + $0xfb8] sm:$0xff] }
  0xf7   :  { %7968 = vmatprep.subr.mxu0 %v548_v1  ;;  %8001 = vmatprep.subr.mxu1 %v581_v2  ;;  %v526_v27 = vld [vmem:[%s16118_s1 + $0xe30] sm:$0xff]  ;;  %v559_v28 = vld [vmem:[%s16118_s1 + $0xf38] sm:$0xff]  ;;  %v541_v29 = vld [vmem:[%s16118_s1 + $0xea8] sm:$0xff] }
  0xf8   :  { %7969 = vmatpush3.msra.mxu0 %v532_v3  ;;  %8002 = vmatpush3.msra.mxu1 %v565_v4  ;;  %v574_v30 = vld [vmem:[%s16118_s1 + $0xfb0] sm:$0xff]  ;;  %v525_v31 = vld [vmem:[%s16118_s1 + $0xe28] sm:$0xff]  ;;  %v540_v33 = vld [vmem:[%s16118_s1 + $0xea0] sm:$0xff] }
  0xf9   :  { %7970 = vmatprep.subr.mxu0 %v547_v5  ;;  %8003 = vmatprep.subr.mxu1 %v580_v6  ;;  %v558_v32 = vld [vmem:[%s16118_s1 + $0xf30] sm:$0xff]  ;;  %v573_v34 = vld [vmem:[%s16118_s1 + $0xfa8] sm:$0xff]  ;;  %v47_v35 = vld [vmem:[%s16117_s0 + $0x38] sm:$0xff] }
  0xfa   :  { %7971 = vmatpush3.msra.mxu0 %v531_v7  ;;  %8004 = vmatpush3.msra.mxu1 %v564_v8  ;;  %v524_v36 = vld [vmem:[%s16118_s1 + $0xe20] sm:$0xff]  ;;  %v557_v37 = vld [vmem:[%s16118_s1 + $0xf28] sm:$0xff]  ;;  %v539_v38 = vld [vmem:[%s16118_s1 + $0xe98] sm:$0xff]  ;;  %v2223_v42 = vcombine.high %v47_v35, %v47_v35  ;;  %v2230_v45 = vrot.slane %v47_v35, %v9997_v51 }
  0xfb   :  { %7972 = vmatprep.subr.mxu0 %v546_v9  ;;  %8005 = vmatprep.subr.mxu1 %v579_v10  ;;  %v572_v39 = vld [vmem:[%s16118_s1 + $0xfa0] sm:$0xff]  ;;  %v523_v40 = vld [vmem:[%s16118_s1 + $0xe18] sm:$0xff]  ;;  %v538_v43 = vld [vmem:[%s16118_s1 + $0xe90] sm:$0xff] }
  0xfc   :  { %7973 = vmatpush3.msra.mxu0 %v530_v11  ;;  %8006 = vmatpush3.msra.mxu1 %v563_v12  ;;  %v556_v41 = vld [vmem:[%s16118_s1 + $0xf20] sm:$0xff]  ;;  %v571_v44 = vld [vmem:[%s16118_s1 + $0xf98] sm:$0xff]  ;;  %v522_v46 = vld [vmem:[%s16118_s1 + $0xe10] sm:$0xff]  ;;  %v2237_v53 = vrot.slane %v2223_v42, %v9997_v51  ;;  %v2238_v56 = vcombine.high %v2230_v45, %v2230_v45 }
  0xfd   :  { %7974 = vmatprep.subr.mxu0 %v545_v13  ;;  %8007 = vmatprep.subr.mxu1 %v578_v14  ;;  %v555_v47 = vld [vmem:[%s16118_s1 + $0xf18] sm:$0xff]  ;;  %v537_v48 = vld [vmem:[%s16118_s1 + $0xe88] sm:$0xff]  ;;  %v570_v49 = vld [vmem:[%s16118_s1 + $0xf90] sm:$0xff] }
  0xfe   :  { %7975 = vmatpush3.msra.mxu0 %v529_v15  ;;  %8008 = vmatpush3.msra.mxu1 %v562_v16  ;;  %v521_v50 = vld [vmem:[%s16118_s1 + $0xe08] sm:$0xff]  ;;  %v554_v52 = vld [vmem:[%s16118_s1 + $0xf10] sm:$0xff]  ;;  %v536_v54 = vld [vmem:[%s16118_s1 + $0xe80] sm:$0xff]  ;;  %v2239_v61 = vcombine.high %v2237_v53, %v2237_v53 }
  0xff   :  { %7976 = vmatprep.subr.mxu0 %v544_v17  ;;  %8009 = vmatprep.subr.mxu1 %v577_v18  ;;  %v569_v55 = vld [vmem:[%s16118_s1 + $0xf88] sm:$0xff]  ;;  %v520_v57 = vld [vmem:[%s16118_s1 + $0xe00] sm:$0xff]  ;;  %v615_v60 = vld [vmem:[%s16118_s1 + $0x10f8] sm:$0xff] }
 0x100   :  { %7977 = vmatpush3.msra.mxu0 %v528_v19  ;;  %8010 = vmatpush3.msra.mxu1 %v561_v20  ;;  %v553_v58 = vld [vmem:[%s16118_s1 + $0xf08] sm:$0xff]  ;;  %v568_v59 = vld [vmem:[%s16118_s1 + $0xf80] sm:$0xff]  ;;  %v599_v63 = vld [vmem:[%s16118_s1 + $0x1078] sm:$0xff] }
 0x101   :  { %7978 = vmatprep.subr.mxu0 %v543_v21  ;;  %8011 = vmatprep.subr.mxu1 %v576_v22  ;;  %v552_v62 = vld [vmem:[%s16118_s1 + $0xf00] sm:$0xff]  ;;  %v614_v0 = vld [vmem:[%s16118_s1 + $0x10f0] sm:$0xff]  ;;  %v647_v1 = vld [vmem:[%s16118_s1 + $0x11f8] sm:$0xff] }
 0x102   :  { %7979 = vmatpush3.msra.mxu0 %v527_v23  ;;  %8012 = vmatpush3.msra.mxu1 %v560_v24  ;;  %v598_v2 = vld [vmem:[%s16118_s1 + $0x1070] sm:$0xff]  ;;  %v631_v3 = vld [vmem:[%s16118_s1 + $0x1178] sm:$0xff]  ;;  %v613_v4 = vld [vmem:[%s16118_s1 + $0x10e8] sm:$0xff] }
 0x103   :  { %7980 = vmatprep.subr.mxu0 %v542_v25  ;;  %8013 = vmatprep.subr.mxu1 %v575_v26  ;;  %v646_v5 = vld [vmem:[%s16118_s1 + $0x11f0] sm:$0xff]  ;;  %v597_v6 = vld [vmem:[%s16118_s1 + $0x1068] sm:$0xff]  ;;  %v612_v8 = vld [vmem:[%s16118_s1 + $0x10e0] sm:$0xff] }
 0x104   :  { %7981 = vmatpush3.msra.mxu0 %v526_v27  ;;  %8014 = vmatpush3.msra.mxu1 %v559_v28  ;;  %v630_v7 = vld [vmem:[%s16118_s1 + $0x1170] sm:$0xff]  ;;  %v645_v9 = vld [vmem:[%s16118_s1 + $0x11e8] sm:$0xff]  ;;  %v596_v10 = vld [vmem:[%s16118_s1 + $0x1060] sm:$0xff] }
 0x105   :  { %7982 = vmatprep.subr.mxu0 %v541_v29  ;;  %8015 = vmatprep.subr.mxu1 %v574_v30  ;;  %v629_v11 = vld [vmem:[%s16118_s1 + $0x1168] sm:$0xff]  ;;  %v611_v12 = vld [vmem:[%s16118_s1 + $0x10d8] sm:$0xff]  ;;  %v644_v13 = vld [vmem:[%s16118_s1 + $0x11e0] sm:$0xff] }
 0x106   :  { %7983 = vmatpush3.msra.mxu0 %v525_v31  ;;  %8016 = vmatpush3.msra.mxu1 %v558_v32  ;;  %v595_v14 = vld [vmem:[%s16118_s1 + $0x1058] sm:$0xff]  ;;  %v628_v15 = vld [vmem:[%s16118_s1 + $0x1160] sm:$0xff]  ;;  %v610_v16 = vld [vmem:[%s16118_s1 + $0x10d0] sm:$0xff] }
 0x107   :  { %7984 = vmatprep.subr.mxu0 %v540_v33  ;;  %8017 = vmatprep.subr.mxu1 %v573_v34  ;;  %v643_v17 = vld [vmem:[%s16118_s1 + $0x11d8] sm:$0xff]  ;;  %v594_v18 = vld [vmem:[%s16118_s1 + $0x1050] sm:$0xff]  ;;  %v609_v20 = vld [vmem:[%s16118_s1 + $0x10c8] sm:$0xff] }
 0x108   :  { %7985 = vmatpush3.msra.mxu0 %v524_v36  ;;  %8018 = vmatpush3.msra.mxu1 %v557_v37  ;;  %v627_v19 = vld [vmem:[%s16118_s1 + $0x1158] sm:$0xff]  ;;  %v642_v21 = vld [vmem:[%s16118_s1 + $0x11d0] sm:$0xff]  ;;  %v593_v22 = vld [vmem:[%s16118_s1 + $0x1048] sm:$0xff] }
 0x109   :  { %7986 = vmatprep.subr.mxu0 %v539_v38  ;;  %8019 = vmatprep.subr.mxu1 %v572_v39  ;;  %v626_v23 = vld [vmem:[%s16118_s1 + $0x1150] sm:$0xff]  ;;  %v608_v24 = vld [vmem:[%s16118_s1 + $0x10c0] sm:$0xff]  ;;  %v641_v25 = vld [vmem:[%s16118_s1 + $0x11c8] sm:$0xff] }
 0x10a   :  { %7987 = vmatpush3.msra.mxu0 %v523_v40  ;;  %8020 = vmatpush3.msra.mxu1 %v556_v41  ;;  %v592_v26 = vld [vmem:[%s16118_s1 + $0x1040] sm:$0xff]  ;;  %v625_v27 = vld [vmem:[%s16118_s1 + $0x1148] sm:$0xff]  ;;  %v607_v28 = vld [vmem:[%s16118_s1 + $0x10b8] sm:$0xff] }
 0x10b   :  { %7988 = vmatprep.subr.mxu0 %v538_v43  ;;  %8021 = vmatprep.subr.mxu1 %v571_v44  ;;  %v640_v29 = vld [vmem:[%s16118_s1 + $0x11c0] sm:$0xff]  ;;  %v591_v30 = vld [vmem:[%s16118_s1 + $0x1038] sm:$0xff]  ;;  %v606_v32 = vld [vmem:[%s16118_s1 + $0x10b0] sm:$0xff] }
 0x10c   :  { %7989 = vmatpush3.msra.mxu0 %v522_v46  ;;  %8022 = vmatpush3.msra.mxu1 %v555_v47  ;;  %v624_v31 = vld [vmem:[%s16118_s1 + $0x1140] sm:$0xff]  ;;  %v639_v33 = vld [vmem:[%s16118_s1 + $0x11b8] sm:$0xff]  ;;  %v590_v34 = vld [vmem:[%s16118_s1 + $0x1030] sm:$0xff] }
 0x10d   :  { %7990 = vmatprep.subr.mxu0 %v537_v48  ;;  %8023 = vmatprep.subr.mxu1 %v570_v49  ;;  %v623_v35 = vld [vmem:[%s16118_s1 + $0x1138] sm:$0xff]  ;;  %v605_v36 = vld [vmem:[%s16118_s1 + $0x10a8] sm:$0xff]  ;;  %v638_v37 = vld [vmem:[%s16118_s1 + $0x11b0] sm:$0xff] }
 0x10e   :  { %7991 = vmatpush3.msra.mxu0 %v521_v50  ;;  %8024 = vmatpush3.msra.mxu1 %v554_v52  ;;  %v589_v38 = vld [vmem:[%s16118_s1 + $0x1028] sm:$0xff]  ;;  %v622_v39 = vld [vmem:[%s16118_s1 + $0x1130] sm:$0xff]  ;;  %v604_v40 = vld [vmem:[%s16118_s1 + $0x10a0] sm:$0xff] }
 0x10f   :  { %7992 = vmatprep.subr.mxu0 %v536_v54  ;;  %8025 = vmatprep.subr.mxu1 %v569_v55  ;;  %v637_v41 = vld [vmem:[%s16118_s1 + $0x11a8] sm:$0xff]  ;;  %v48_v42 = vld [vmem:[%s16117_s0 + $0x40] sm:$0xff]  ;;  %v587_v47 = vld [vmem:[%s16118_s1 + $0x1018] sm:$0xff] }
 0x110   :  { %7993 = vmatpush3.msra.mxu0 %v520_v57  ;;  %3807 = vmatprep.mubr.f32.mxu0 %v2238_v56  ;;  %v588_v43 = vld [vmem:[%s16118_s1 + $0x1020] sm:$0xff]  ;;  %v621_v44 = vld [vmem:[%s16118_s1 + $0x1128] sm:$0xff]  ;;  %v2240_v49 = vcombine.high %v48_v42, %v48_v42  ;;  %v602_v50 = vld [vmem:[%s16118_s1 + $0x1090] sm:$0xff] }
 0x111   :  { %8026 = vmatpush3.msra.mxu1 %v553_v58  ;;  %3808 = vmatmul.mubr.f32.vlgmr.msra.gmra.mxu0 %v2230_v45  ;;  %v603_v45 = vld [vmem:[%s16118_s1 + $0x1098] sm:$0xff]  ;;  %v636_v46 = vld [vmem:[%s16118_s1 + $0x11a0] sm:$0xff]  ;;  %v586_v54 = vld [vmem:[%s16118_s1 + $0x1010] sm:$0xff] }
 0x112   :  { %8027 = vmatprep.subr.mxu1 %v568_v59  ;;  %8032 = vmatprep.subr.mxu0 %v615_v60  ;;  %v620_v48 = vld [vmem:[%s16118_s1 + $0x1120] sm:$0xff]  ;;  %v635_v52 = vld [vmem:[%s16118_s1 + $0x1198] sm:$0xff]  ;;  %v601_v56 = vld [vmem:[%s16118_s1 + $0x1088] sm:$0xff]  ;;  %v2254_v60 = vrot.slane %v2240_v49, %v9997_v51 }
 0x113   :  { %8028 = vmatpush3.msra.mxu1 %v552_v62  ;;  %3877 = vmatprep.mubr.f32.mxu1 %v2239_v61  ;;  %v619_v55 = vld [vmem:[%s16118_s1 + $0x1118] sm:$0xff]  ;;  %v634_v57 = vld [vmem:[%s16118_s1 + $0x1190] sm:$0xff]  ;;  %v585_v58 = vld [vmem:[%s16118_s1 + $0x1008] sm:$0xff] }
 0x114   :  { %8033 = vmatpush3.msra.mxu0 %v599_v63  ;;  %3878 = vmatmul.mubr.f32.vlgmr.msra.gmra.mxu1 %v2237_v53  ;;  %v2247_v53 = vrot.slane %v48_v42, %v9997_v51  ;;  %v618_v59 = vld [vmem:[%s16118_s1 + $0x1110] sm:$0xff]  ;;  %v600_v61 = vld [vmem:[%s16118_s1 + $0x1080] sm:$0xff]  ;;  %v633_v62 = vld [vmem:[%s16118_s1 + $0x1188] sm:$0xff] }
 0x115   :  { %8034 = vmatprep.subr.mxu0 %v614_v0  ;;  %8067 = vmatprep.subr.mxu1 %v647_v1  ;;  %v584_v0 = vld [vmem:[%s16118_s1 + $0x1000] sm:$0xff]  ;;  %v617_v1 = vld [vmem:[%s16118_s1 + $0x1108] sm:$0xff]  ;;  %v687_v42 = vld [vmem:[%s16118_s1 + $0x1338] sm:$0xff] }
 0x116   :  { %8035 = vmatpush3.msra.mxu0 %v598_v2  ;;  %8068 = vmatpush3.msra.mxu1 %v631_v3  ;;  %v2255_v63 = vcombine.high %v2247_v53, %v2247_v53  ;;  %v632_v2 = vld [vmem:[%s16118_s1 + $0x1180] sm:$0xff]  ;;  %v679_v3 = vld [vmem:[%s16118_s1 + $0x12f8] sm:$0xff]  ;;  %v49_v49 = vld [vmem:[%s16117_s0 + $0x48] sm:$0xff] }
 0x117   :  { %8036 = vmatprep.subr.mxu0 %v613_v4  ;;  %8069 = vmatprep.subr.mxu1 %v646_v5  ;;  %v2256_v4 = vcombine.high %v2254_v60, %v2254_v60  ;;  %v616_v5 = vld [vmem:[%s16118_s1 + $0x1100] sm:$0xff] }
 0x118   :  { %8037 = vmatpush3.msra.mxu0 %v597_v6  ;;  %8070 = vmatpush3.msra.mxu1 %v630_v7  ;;  %v663_v6 = vld [vmem:[%s16118_s1 + $0x1278] sm:$0xff]  ;;  %v678_v7 = vld [vmem:[%s16118_s1 + $0x12f0] sm:$0xff] }
 0x119   :  { %8038 = vmatprep.subr.mxu0 %v612_v8  ;;  %8071 = vmatprep.subr.mxu1 %v645_v9  ;;  %v711_v8 = vld [vmem:[%s16118_s1 + $0x13f8] sm:$0xff]  ;;  %v662_v9 = vld [vmem:[%s16118_s1 + $0x1270] sm:$0xff] }
 0x11a   :  { %8039 = vmatpush3.msra.mxu0 %v596_v10  ;;  %8072 = vmatpush3.msra.mxu1 %v629_v11  ;;  %v695_v10 = vld [vmem:[%s16118_s1 + $0x1378] sm:$0xff]  ;;  %v677_v11 = vld [vmem:[%s16118_s1 + $0x12e8] sm:$0xff] }
 0x11b   :  { %8040 = vmatprep.subr.mxu0 %v611_v12  ;;  %8073 = vmatprep.subr.mxu1 %v644_v13  ;;  %v710_v12 = vld [vmem:[%s16118_s1 + $0x13f0] sm:$0xff]  ;;  %v661_v13 = vld [vmem:[%s16118_s1 + $0x1268] sm:$0xff] }
 0x11c   :  { %8041 = vmatpush3.msra.mxu0 %v595_v14  ;;  %8074 = vmatpush3.msra.mxu1 %v628_v15  ;;  %v694_v14 = vld [vmem:[%s16118_s1 + $0x1370] sm:$0xff]  ;;  %v676_v15 = vld [vmem:[%s16118_s1 + $0x12e0] sm:$0xff] }
 0x11d   :  { %8042 = vmatprep.subr.mxu0 %v610_v16  ;;  %8075 = vmatprep.subr.mxu1 %v643_v17  ;;  %v709_v16 = vld [vmem:[%s16118_s1 + $0x13e8] sm:$0xff]  ;;  %v660_v17 = vld [vmem:[%s16118_s1 + $0x1260] sm:$0xff] }
 0x11e   :  { %8043 = vmatpush3.msra.mxu0 %v594_v18  ;;  %8076 = vmatpush3.msra.mxu1 %v627_v19  ;;  %v693_v18 = vld [vmem:[%s16118_s1 + $0x1368] sm:$0xff]  ;;  %v675_v19 = vld [vmem:[%s16118_s1 + $0x12d8] sm:$0xff] }
 0x11f   :  { %8044 = vmatprep.subr.mxu0 %v609_v20  ;;  %8077 = vmatprep.subr.mxu1 %v642_v21  ;;  %v708_v20 = vld [vmem:[%s16118_s1 + $0x13e0] sm:$0xff]  ;;  %v659_v21 = vld [vmem:[%s16118_s1 + $0x1258] sm:$0xff] }
 0x120   :  { %8045 = vmatpush3.msra.mxu0 %v593_v22  ;;  %8078 = vmatpush3.msra.mxu1 %v626_v23  ;;  %v692_v22 = vld [vmem:[%s16118_s1 + $0x1360] sm:$0xff]  ;;  %v674_v23 = vld [vmem:[%s16118_s1 + $0x12d0] sm:$0xff] }
 0x121   :  { %8046 = vmatprep.subr.mxu0 %v608_v24  ;;  %8079 = vmatprep.subr.mxu1 %v641_v25  ;;  %v707_v24 = vld [vmem:[%s16118_s1 + $0x13d8] sm:$0xff]  ;;  %v658_v25 = vld [vmem:[%s16118_s1 + $0x1250] sm:$0xff] }
 0x122   :  { %8047 = vmatpush3.msra.mxu0 %v592_v26  ;;  %8080 = vmatpush3.msra.mxu1 %v625_v27  ;;  %v691_v26 = vld [vmem:[%s16118_s1 + $0x1358] sm:$0xff]  ;;  %v673_v27 = vld [vmem:[%s16118_s1 + $0x12c8] sm:$0xff] }
 0x123   :  { %8048 = vmatprep.subr.mxu0 %v607_v28  ;;  %8081 = vmatprep.subr.mxu1 %v640_v29  ;;  %v706_v28 = vld [vmem:[%s16118_s1 + $0x13d0] sm:$0xff]  ;;  %v657_v29 = vld [vmem:[%s16118_s1 + $0x1248] sm:$0xff] }
 0x124   :  { %8049 = vmatpush3.msra.mxu0 %v591_v30  ;;  %8082 = vmatpush3.msra.mxu1 %v624_v31  ;;  %v690_v30 = vld [vmem:[%s16118_s1 + $0x1350] sm:$0xff]  ;;  %v672_v31 = vld [vmem:[%s16118_s1 + $0x12c0] sm:$0xff] }
 0x125   :  { %8050 = vmatprep.subr.mxu0 %v606_v32  ;;  %8083 = vmatprep.subr.mxu1 %v639_v33  ;;  %v705_v32 = vld [vmem:[%s16118_s1 + $0x13c8] sm:$0xff]  ;;  %v656_v33 = vld [vmem:[%s16118_s1 + $0x1240] sm:$0xff] }
 0x126   :  { %8051 = vmatpush3.msra.mxu0 %v590_v34  ;;  %8084 = vmatpush3.msra.mxu1 %v623_v35  ;;  %v689_v34 = vld [vmem:[%s16118_s1 + $0x1348] sm:$0xff]  ;;  %v671_v35 = vld [vmem:[%s16118_s1 + $0x12b8] sm:$0xff] }
 0x127   :  { %8052 = vmatprep.subr.mxu0 %v605_v36  ;;  %8085 = vmatprep.subr.mxu1 %v638_v37  ;;  %v704_v36 = vld [vmem:[%s16118_s1 + $0x13c0] sm:$0xff]  ;;  %v655_v37 = vld [vmem:[%s16118_s1 + $0x1238] sm:$0xff] }
 0x128   :  { %8053 = vmatpush3.msra.mxu0 %v589_v38  ;;  %8086 = vmatpush3.msra.mxu1 %v622_v39  ;;  %v688_v38 = vld [vmem:[%s16118_s1 + $0x1340] sm:$0xff]  ;;  %v670_v39 = vld [vmem:[%s16118_s1 + $0x12b0] sm:$0xff] }
 0x129   :  { %8054 = vmatprep.subr.mxu0 %v604_v40  ;;  %8087 = vmatprep.subr.mxu1 %v637_v41  ;;  %v703_v40 = vld [vmem:[%s16118_s1 + $0x13b8] sm:$0xff]  ;;  %v654_v41 = vld [vmem:[%s16118_s1 + $0x1230] sm:$0xff] }
 0x12a   :  { %8055 = vmatpush3.msra.mxu0 %v588_v43  ;;  %8088 = vmatpush3.msra.mxu1 %v621_v44  ;;  %v669_v43 = vld [vmem:[%s16118_s1 + $0x12a8] sm:$0xff]  ;;  %v702_v44 = vld [vmem:[%s16118_s1 + $0x13b0] sm:$0xff] }
 0x12b   :  { %8056 = vmatprep.subr.mxu0 %v603_v45  ;;  %8089 = vmatprep.subr.mxu1 %v636_v46  ;;  %v653_v45 = vld [vmem:[%s16118_s1 + $0x1228] sm:$0xff]  ;;  %v686_v46 = vld [vmem:[%s16118_s1 + $0x1330] sm:$0xff] }
 0x12c   :  { %8057 = vmatpush3.msra.mxu0 %v587_v47  ;;  %8090 = vmatpush3.msra.mxu1 %v620_v48  ;;  %v668_v47 = vld [vmem:[%s16118_s1 + $0x12a0] sm:$0xff]  ;;  %v701_v48 = vld [vmem:[%s16118_s1 + $0x13a8] sm:$0xff] }
 0x12d   :  { %8058 = vmatprep.subr.mxu0 %v602_v50  ;;  %8091 = vmatprep.subr.mxu1 %v635_v52  ;;  %v652_v50 = vld [vmem:[%s16118_s1 + $0x1220] sm:$0xff]  ;;  %v685_v52 = vld [vmem:[%s16118_s1 + $0x1328] sm:$0xff] }
 0x12e   :  { %8059 = vmatpush3.msra.mxu0 %v586_v54  ;;  %8092 = vmatpush3.msra.mxu1 %v619_v55  ;;  %v700_v54 = vld [vmem:[%s16118_s1 + $0x13a0] sm:$0xff]  ;;  %v651_v55 = vld [vmem:[%s16118_s1 + $0x1218] sm:$0xff] }
 0x12f   :  { %8060 = vmatprep.subr.mxu0 %v601_v56  ;;  %8093 = vmatprep.subr.mxu1 %v634_v57  ;;  %v684_v56 = vld [vmem:[%s16118_s1 + $0x1320] sm:$0xff]  ;;  %v2257_v57 = vcombine.high %v49_v49, %v49_v49 }
 0x130   :  { %8061 = vmatpush3.msra.mxu0 %v585_v58  ;;  %8094 = vmatpush3.msra.mxu1 %v618_v59  ;;  %v666_v58 = vld [vmem:[%s16118_s1 + $0x1290] sm:$0xff]  ;;  %v699_v59 = vld [vmem:[%s16118_s1 + $0x1398] sm:$0xff] }
 0x131   :  { %8062 = vmatprep.subr.mxu0 %v600_v61  ;;  %8095 = vmatprep.subr.mxu1 %v633_v62  ;;  %v650_v61 = vld [vmem:[%s16118_s1 + $0x1210] sm:$0xff]  ;;  %v683_v62 = vld [vmem:[%s16118_s1 + $0x1318] sm:$0xff] }
 0x132   :  { %8063 = vmatpush3.msra.mxu0 %v584_v0  ;;  %3947 = vmatprep.mubr.f32.mxu0 %v2255_v63  ;;  %v665_v63 = vld [vmem:[%s16118_s1 + $0x1288] sm:$0xff]  ;;  %v698_v0 = vld [vmem:[%s16118_s1 + $0x1390] sm:$0xff] }
 0x133   :  { %8096 = vmatpush3.msra.mxu1 %v617_v1  ;;  %3948 = vmatmul.mubr.f32.vlgmr.msra.gmra.mxu0 %v2247_v53  ;;  %v667_v53 = vld [vmem:[%s16118_s1 + $0x1298] sm:$0xff]  ;;  %v649_v1 = vld [vmem:[%s16118_s1 + $0x1208] sm:$0xff] }
 0x134   :  { %8097 = vmatprep.subr.mxu1 %v632_v2  ;;  %8102 = vmatprep.subr.mxu0 %v679_v3  ;;  %v682_v2 = vld [vmem:[%s16118_s1 + $0x1310] sm:$0xff]  ;;  %v2271_v3 = vrot.slane %v2257_v57, %v9997_v51 }
 0x135   :  { %8098 = vmatpush3.msra.mxu1 %v616_v5  ;;  %4017 = vmatprep.mubr.f32.mxu1 %v2256_v4  ;;  %v664_v4 = vld [vmem:[%s16118_s1 + $0x1280] sm:$0xff]  ;;  %v697_v5 = vld [vmem:[%s16118_s1 + $0x1388] sm:$0xff]  ;;  %v50_v57 = vld [vmem:[%s16117_s0 + $0x50] sm:$0xff] }
 0x136   :  { %8103 = vmatpush3.msra.mxu0 %v663_v6  ;;  %4018 = vmatmul.mubr.f32.vlgmr.msra.gmra.mxu1 %v2254_v60  ;;  %v2264_v60 = vrot.slane %v49_v49, %v9997_v51  ;;  %v751_v49 = vld [vmem:[%s16118_s1 + $0x1538] sm:$0xff] }
 0x137   :  { %8104 = vmatprep.subr.mxu0 %v678_v7  ;;  %8137 = vmatprep.subr.mxu1 %v711_v8  ;;  %v648_v7 = vld [vmem:[%s16118_s1 + $0x1200] sm:$0xff]  ;;  %v681_v8 = vld [vmem:[%s16118_s1 + $0x1308] sm:$0xff] }
 0x138   :  { %8105 = vmatpush3.msra.mxu0 %v662_v9  ;;  %8138 = vmatpush3.msra.mxu1 %v695_v10  ;;  %v2272_v6 = vcombine.high %v2264_v60, %v2264_v60  ;;  %v696_v9 = vld [vmem:[%s16118_s1 + $0x1380] sm:$0xff]  ;;  %v743_v10 = vld [vmem:[%s16118_s1 + $0x14f8] sm:$0xff] }
 0x139   :  { %8106 = vmatprep.subr.mxu0 %v677_v11  ;;  %8139 = vmatprep.subr.mxu1 %v710_v12  ;;  %v2273_v11 = vcombine.high %v2271_v3, %v2271_v3  ;;  %v680_v12 = vld [vmem:[%s16118_s1 + $0x1300] sm:$0xff] }
 0x13a   :  { %8107 = vmatpush3.msra.mxu0 %v661_v13  ;;  %8140 = vmatpush3.msra.mxu1 %v694_v14  ;;  %v727_v13 = vld [vmem:[%s16118_s1 + $0x1478] sm:$0xff]  ;;  %v742_v14 = vld [vmem:[%s16118_s1 + $0x14f0] sm:$0xff] }
 0x13b   :  { %8108 = vmatprep.subr.mxu0 %v676_v15  ;;  %8141 = vmatprep.subr.mxu1 %v709_v16  ;;  %v775_v15 = vld [vmem:[%s16118_s1 + $0x15f8] sm:$0xff]  ;;  %v726_v16 = vld [vmem:[%s16118_s1 + $0x1470] sm:$0xff] }
 0x13c   :  { %8109 = vmatpush3.msra.mxu0 %v660_v17  ;;  %8142 = vmatpush3.msra.mxu1 %v693_v18  ;;  %v759_v17 = vld [vmem:[%s16118_s1 + $0x1578] sm:$0xff]  ;;  %v741_v18 = vld [vmem:[%s16118_s1 + $0x14e8] sm:$0xff] }
 0x13d   :  { %8110 = vmatprep.subr.mxu0 %v675_v19  ;;  %8143 = vmatprep.subr.mxu1 %v708_v20  ;;  %v774_v19 = vld [vmem:[%s16118_s1 + $0x15f0] sm:$0xff]  ;;  %v725_v20 = vld [vmem:[%s16118_s1 + $0x1468] sm:$0xff] }
 0x13e   :  { %8111 = vmatpush3.msra.mxu0 %v659_v21  ;;  %8144 = vmatpush3.msra.mxu1 %v692_v22  ;;  %v758_v21 = vld [vmem:[%s16118_s1 + $0x1570] sm:$0xff]  ;;  %v740_v22 = vld [vmem:[%s16118_s1 + $0x14e0] sm:$0xff] }
 0x13f   :  { %8112 = vmatprep.subr.mxu0 %v674_v23  ;;  %8145 = vmatprep.subr.mxu1 %v707_v24  ;;  %v773_v23 = vld [vmem:[%s16118_s1 + $0x15e8] sm:$0xff]  ;;  %v724_v24 = vld [vmem:[%s16118_s1 + $0x1460] sm:$0xff] }
 0x140   :  { %8113 = vmatpush3.msra.mxu0 %v658_v25  ;;  %8146 = vmatpush3.msra.mxu1 %v691_v26  ;;  %v757_v25 = vld [vmem:[%s16118_s1 + $0x1568] sm:$0xff]  ;;  %v739_v26 = vld [vmem:[%s16118_s1 + $0x14d8] sm:$0xff] }
 0x141   :  { %8114 = vmatprep.subr.mxu0 %v673_v27  ;;  %8147 = vmatprep.subr.mxu1 %v706_v28  ;;  %v772_v27 = vld [vmem:[%s16118_s1 + $0x15e0] sm:$0xff]  ;;  %v723_v28 = vld [vmem:[%s16118_s1 + $0x1458] sm:$0xff] }
 0x142   :  { %8115 = vmatpush3.msra.mxu0 %v657_v29  ;;  %8148 = vmatpush3.msra.mxu1 %v690_v30  ;;  %v756_v29 = vld [vmem:[%s16118_s1 + $0x1560] sm:$0xff]  ;;  %v738_v30 = vld [vmem:[%s16118_s1 + $0x14d0] sm:$0xff] }
 0x143   :  { %8116 = vmatprep.subr.mxu0 %v672_v31  ;;  %8149 = vmatprep.subr.mxu1 %v705_v32  ;;  %v771_v31 = vld [vmem:[%s16118_s1 + $0x15d8] sm:$0xff]  ;;  %v722_v32 = vld [vmem:[%s16118_s1 + $0x1450] sm:$0xff] }
 0x144   :  { %8117 = vmatpush3.msra.mxu0 %v656_v33  ;;  %8150 = vmatpush3.msra.mxu1 %v689_v34  ;;  %v755_v33 = vld [vmem:[%s16118_s1 + $0x1558] sm:$0xff]  ;;  %v737_v34 = vld [vmem:[%s16118_s1 + $0x14c8] sm:$0xff] }
 0x145   :  { %8118 = vmatprep.subr.mxu0 %v671_v35  ;;  %8151 = vmatprep.subr.mxu1 %v704_v36  ;;  %v770_v35 = vld [vmem:[%s16118_s1 + $0x15d0] sm:$0xff]  ;;  %v721_v36 = vld [vmem:[%s16118_s1 + $0x1448] sm:$0xff] }
 0x146   :  { %8119 = vmatpush3.msra.mxu0 %v655_v37  ;;  %8152 = vmatpush3.msra.mxu1 %v688_v38  ;;  %v754_v37 = vld [vmem:[%s16118_s1 + $0x1550] sm:$0xff]  ;;  %v736_v38 = vld [vmem:[%s16118_s1 + $0x14c0] sm:$0xff] }
 0x147   :  { %8120 = vmatprep.subr.mxu0 %v670_v39  ;;  %8153 = vmatprep.subr.mxu1 %v703_v40  ;;  %v769_v39 = vld [vmem:[%s16118_s1 + $0x15c8] sm:$0xff]  ;;  %v720_v40 = vld [vmem:[%s16118_s1 + $0x1440] sm:$0xff] }
 0x148   :  { %8121 = vmatpush3.msra.mxu0 %v654_v41  ;;  %8154 = vmatpush3.msra.mxu1 %v687_v42  ;;  %v753_v41 = vld [vmem:[%s16118_s1 + $0x1548] sm:$0xff]  ;;  %v735_v42 = vld [vmem:[%s16118_s1 + $0x14b8] sm:$0xff] }
 0x149   :  { %8122 = vmatprep.subr.mxu0 %v669_v43  ;;  %8155 = vmatprep.subr.mxu1 %v702_v44  ;;  %v768_v43 = vld [vmem:[%s16118_s1 + $0x15c0] sm:$0xff]  ;;  %v719_v44 = vld [vmem:[%s16118_s1 + $0x1438] sm:$0xff] }
 0x14a   :  { %8123 = vmatpush3.msra.mxu0 %v653_v45  ;;  %8156 = vmatpush3.msra.mxu1 %v686_v46  ;;  %v752_v45 = vld [vmem:[%s16118_s1 + $0x1540] sm:$0xff]  ;;  %v734_v46 = vld [vmem:[%s16118_s1 + $0x14b0] sm:$0xff] }
 0x14b   :  { %8124 = vmatprep.subr.mxu0 %v668_v47  ;;  %8157 = vmatprep.subr.mxu1 %v701_v48  ;;  %v767_v47 = vld [vmem:[%s16118_s1 + $0x15b8] sm:$0xff]  ;;  %v718_v48 = vld [vmem:[%s16118_s1 + $0x1430] sm:$0xff] }
 0x14c   :  { %8125 = vmatpush3.msra.mxu0 %v652_v50  ;;  %8158 = vmatpush3.msra.mxu1 %v685_v52  ;;  %v733_v50 = vld [vmem:[%s16118_s1 + $0x14a8] sm:$0xff]  ;;  %v766_v52 = vld [vmem:[%s16118_s1 + $0x15b0] sm:$0xff] }
 0x14d   :  { %8126 = vmatprep.subr.mxu0 %v667_v53  ;;  %8159 = vmatprep.subr.mxu1 %v700_v54  ;;  %v717_v53 = vld [vmem:[%s16118_s1 + $0x1428] sm:$0xff]  ;;  %v750_v54 = vld [vmem:[%s16118_s1 + $0x1530] sm:$0xff] }
 0x14e   :  { %8127 = vmatpush3.msra.mxu0 %v651_v55  ;;  %8160 = vmatpush3.msra.mxu1 %v684_v56  ;;  %v732_v55 = vld [vmem:[%s16118_s1 + $0x14a0] sm:$0xff]  ;;  %v765_v56 = vld [vmem:[%s16118_s1 + $0x15a8] sm:$0xff] }
 0x14f   :  { %8128 = vmatprep.subr.mxu0 %v666_v58  ;;  %8161 = vmatprep.subr.mxu1 %v699_v59  ;;  %v716_v58 = vld [vmem:[%s16118_s1 + $0x1420] sm:$0xff]  ;;  %v749_v59 = vld [vmem:[%s16118_s1 + $0x1528] sm:$0xff] }
 0x150   :  { %8129 = vmatpush3.msra.mxu0 %v650_v61  ;;  %8162 = vmatpush3.msra.mxu1 %v683_v62  ;;  %v764_v61 = vld [vmem:[%s16118_s1 + $0x15a0] sm:$0xff]  ;;  %v715_v62 = vld [vmem:[%s16118_s1 + $0x1418] sm:$0xff] }
 0x151   :  { %8130 = vmatprep.subr.mxu0 %v665_v63  ;;  %8163 = vmatprep.subr.mxu1 %v698_v0  ;;  %v748_v63 = vld [vmem:[%s16118_s1 + $0x1520] sm:$0xff]  ;;  %v2274_v0 = vcombine.high %v50_v57, %v50_v57 }
 0x152   :  { %8131 = vmatpush3.msra.mxu0 %v649_v1  ;;  %8164 = vmatpush3.msra.mxu1 %v682_v2  ;;  %v730_v1 = vld [vmem:[%s16118_s1 + $0x1490] sm:$0xff]  ;;  %v763_v2 = vld [vmem:[%s16118_s1 + $0x1598] sm:$0xff] }
 0x153   :  { %8132 = vmatprep.subr.mxu0 %v664_v4  ;;  %8165 = vmatprep.subr.mxu1 %v697_v5  ;;  %v714_v4 = vld [vmem:[%s16118_s1 + $0x1410] sm:$0xff]  ;;  %v747_v5 = vld [vmem:[%s16118_s1 + $0x1518] sm:$0xff] }
 0x154   :  { %8133 = vmatpush3.msra.mxu0 %v648_v7  ;;  %4087 = vmatprep.mubr.f32.mxu0 %v2272_v6  ;;  %v729_v6 = vld [vmem:[%s16118_s1 + $0x1488] sm:$0xff]  ;;  %v762_v7 = vld [vmem:[%s16118_s1 + $0x1590] sm:$0xff] }
 0x155   :  { %8166 = vmatpush3.msra.mxu1 %v681_v8  ;;  %4088 = vmatmul.mubr.f32.vlgmr.msra.gmra.mxu0 %v2264_v60  ;;  %v731_v60 = vld [vmem:[%s16118_s1 + $0x1498] sm:$0xff]  ;;  %v713_v8 = vld [vmem:[%s16118_s1 + $0x1408] sm:$0xff] }
 0x156   :  { %8167 = vmatprep.subr.mxu1 %v696_v9  ;;  %8172 = vmatprep.subr.mxu0 %v743_v10  ;;  %v746_v9 = vld [vmem:[%s16118_s1 + $0x1510] sm:$0xff]  ;;  %v2288_v10 = vrot.slane %v2274_v0, %v9997_v51  ;;  %v51_v0 = vld [vmem:[%s16117_s0 + $0x58] sm:$0xff] }
 0x157   :  { %8168 = vmatpush3.msra.mxu1 %v680_v12  ;;  %4157 = vmatprep.mubr.f32.mxu1 %v2273_v11  ;;  %v728_v11 = vld [vmem:[%s16118_s1 + $0x1480] sm:$0xff]  ;;  %v761_v12 = vld [vmem:[%s16118_s1 + $0x1588] sm:$0xff] }
 0x158   :  { %8173 = vmatpush3.msra.mxu0 %v727_v13  ;;  %4158 = vmatmul.mubr.f32.vlgmr.msra.gmra.mxu1 %v2271_v3  ;;  %v2281_v3 = vrot.slane %v50_v57, %v9997_v51  ;;  %v815_v57 = vld [vmem:[%s16118_s1 + $0x1738] sm:$0xff] }
 0x159   :  { %8174 = vmatprep.subr.mxu0 %v742_v14  ;;  %8207 = vmatprep.subr.mxu1 %v775_v15  ;;  %v712_v14 = vld [vmem:[%s16118_s1 + $0x1400] sm:$0xff]  ;;  %v745_v15 = vld [vmem:[%s16118_s1 + $0x1508] sm:$0xff] }
 0x15a   :  { %8175 = vmatpush3.msra.mxu0 %v726_v16  ;;  %8208 = vmatpush3.msra.mxu1 %v759_v17  ;;  %v2289_v13 = vcombine.high %v2281_v3, %v2281_v3  ;;  %v760_v16 = vld [vmem:[%s16118_s1 + $0x1580] sm:$0xff]  ;;  %v807_v17 = vld [vmem:[%s16118_s1 + $0x16f8] sm:$0xff] }
 0x15b   :  { %8176 = vmatprep.subr.mxu0 %v741_v18  ;;  %8209 = vmatprep.subr.mxu1 %v774_v19  ;;  %v2290_v18 = vcombine.high %v2288_v10, %v2288_v10  ;;  %v744_v19 = vld [vmem:[%s16118_s1 + $0x1500] sm:$0xff] }
 0x15c   :  { %8177 = vmatpush3.msra.mxu0 %v725_v20  ;;  %8210 = vmatpush3.msra.mxu1 %v758_v21  ;;  %v791_v20 = vld [vmem:[%s16118_s1 + $0x1678] sm:$0xff]  ;;  %v806_v21 = vld [vmem:[%s16118_s1 + $0x16f0] sm:$0xff] }
 0x15d   :  { %8178 = vmatprep.subr.mxu0 %v740_v22  ;;  %8211 = vmatprep.subr.mxu1 %v773_v23  ;;  %v839_v22 = vld [vmem:[%s16118_s1 + $0x17f8] sm:$0xff]  ;;  %v790_v23 = vld [vmem:[%s16118_s1 + $0x1670] sm:$0xff] }
 0x15e   :  { %8179 = vmatpush3.msra.mxu0 %v724_v24  ;;  %8212 = vmatpush3.msra.mxu1 %v757_v25  ;;  %v823_v24 = vld [vmem:[%s16118_s1 + $0x1778] sm:$0xff]  ;;  %v805_v25 = vld [vmem:[%s16118_s1 + $0x16e8] sm:$0xff] }
 0x15f   :  { %8180 = vmatprep.subr.mxu0 %v739_v26  ;;  %8213 = vmatprep.subr.mxu1 %v772_v27  ;;  %v838_v26 = vld [vmem:[%s16118_s1 + $0x17f0] sm:$0xff]  ;;  %v789_v27 = vld [vmem:[%s16118_s1 + $0x1668] sm:$0xff] }
 0x160   :  { %8181 = vmatpush3.msra.mxu0 %v723_v28  ;;  %8214 = vmatpush3.msra.mxu1 %v756_v29  ;;  %v822_v28 = vld [vmem:[%s16118_s1 + $0x1770] sm:$0xff]  ;;  %v804_v29 = vld [vmem:[%s16118_s1 + $0x16e0] sm:$0xff] }
 0x161   :  { %8182 = vmatprep.subr.mxu0 %v738_v30  ;;  %8215 = vmatprep.subr.mxu1 %v771_v31  ;;  %v837_v30 = vld [vmem:[%s16118_s1 + $0x17e8] sm:$0xff]  ;;  %v788_v31 = vld [vmem:[%s16118_s1 + $0x1660] sm:$0xff] }
 0x162   :  { %8183 = vmatpush3.msra.mxu0 %v722_v32  ;;  %8216 = vmatpush3.msra.mxu1 %v755_v33  ;;  %v821_v32 = vld [vmem:[%s16118_s1 + $0x1768] sm:$0xff]  ;;  %v803_v33 = vld [vmem:[%s16118_s1 + $0x16d8] sm:$0xff] }
 0x163   :  { %8184 = vmatprep.subr.mxu0 %v737_v34  ;;  %8217 = vmatprep.subr.mxu1 %v770_v35  ;;  %v836_v34 = vld [vmem:[%s16118_s1 + $0x17e0] sm:$0xff]  ;;  %v787_v35 = vld [vmem:[%s16118_s1 + $0x1658] sm:$0xff] }
 0x164   :  { %8185 = vmatpush3.msra.mxu0 %v721_v36  ;;  %8218 = vmatpush3.msra.mxu1 %v754_v37  ;;  %v820_v36 = vld [vmem:[%s16118_s1 + $0x1760] sm:$0xff]  ;;  %v802_v37 = vld [vmem:[%s16118_s1 + $0x16d0] sm:$0xff] }
 0x165   :  { %8186 = vmatprep.subr.mxu0 %v736_v38  ;;  %8219 = vmatprep.subr.mxu1 %v769_v39  ;;  %v835_v38 = vld [vmem:[%s16118_s1 + $0x17d8] sm:$0xff]  ;;  %v786_v39 = vld [vmem:[%s16118_s1 + $0x1650] sm:$0xff] }
 0x166   :  { %8187 = vmatpush3.msra.mxu0 %v720_v40  ;;  %8220 = vmatpush3.msra.mxu1 %v753_v41  ;;  %v819_v40 = vld [vmem:[%s16118_s1 + $0x1758] sm:$0xff]  ;;  %v801_v41 = vld [vmem:[%s16118_s1 + $0x16c8] sm:$0xff] }
 0x167   :  { %8188 = vmatprep.subr.mxu0 %v735_v42  ;;  %8221 = vmatprep.subr.mxu1 %v768_v43  ;;  %v834_v42 = vld [vmem:[%s16118_s1 + $0x17d0] sm:$0xff]  ;;  %v785_v43 = vld [vmem:[%s16118_s1 + $0x1648] sm:$0xff] }
 0x168   :  { %8189 = vmatpush3.msra.mxu0 %v719_v44  ;;  %8222 = vmatpush3.msra.mxu1 %v752_v45  ;;  %v818_v44 = vld [vmem:[%s16118_s1 + $0x1750] sm:$0xff]  ;;  %v800_v45 = vld [vmem:[%s16118_s1 + $0x16c0] sm:$0xff] }
 0x169   :  { %8190 = vmatprep.subr.mxu0 %v734_v46  ;;  %8223 = vmatprep.subr.mxu1 %v767_v47  ;;  %v833_v46 = vld [vmem:[%s16118_s1 + $0x17c8] sm:$0xff]  ;;  %v784_v47 = vld [vmem:[%s16118_s1 + $0x1640] sm:$0xff] }
 0x16a   :  { %8191 = vmatpush3.msra.mxu0 %v718_v48  ;;  %8224 = vmatpush3.msra.mxu1 %v751_v49  ;;  %v817_v48 = vld [vmem:[%s16118_s1 + $0x1748] sm:$0xff]  ;;  %v799_v49 = vld [vmem:[%s16118_s1 + $0x16b8] sm:$0xff] }
 0x16b   :  { %8192 = vmatprep.subr.mxu0 %v733_v50  ;;  %8225 = vmatprep.subr.mxu1 %v766_v52  ;;  %v832_v50 = vld [vmem:[%s16118_s1 + $0x17c0] sm:$0xff]  ;;  %v783_v52 = vld [vmem:[%s16118_s1 + $0x1638] sm:$0xff] }
 0x16c   :  { %8193 = vmatpush3.msra.mxu0 %v717_v53  ;;  %8226 = vmatpush3.msra.mxu1 %v750_v54  ;;  %v816_v53 = vld [vmem:[%s16118_s1 + $0x1740] sm:$0xff]  ;;  %v798_v54 = vld [vmem:[%s16118_s1 + $0x16b0] sm:$0xff] }
 0x16d   :  { %8194 = vmatprep.subr.mxu0 %v732_v55  ;;  %8227 = vmatprep.subr.mxu1 %v765_v56  ;;  %v831_v55 = vld [vmem:[%s16118_s1 + $0x17b8] sm:$0xff]  ;;  %v782_v56 = vld [vmem:[%s16118_s1 + $0x1630] sm:$0xff] }
 0x16e   :  { %8195 = vmatpush3.msra.mxu0 %v716_v58  ;;  %8228 = vmatpush3.msra.mxu1 %v749_v59  ;;  %v797_v58 = vld [vmem:[%s16118_s1 + $0x16a8] sm:$0xff]  ;;  %v830_v59 = vld [vmem:[%s16118_s1 + $0x17b0] sm:$0xff] }
 0x16f   :  { %8196 = vmatprep.subr.mxu0 %v731_v60  ;;  %8229 = vmatprep.subr.mxu1 %v764_v61  ;;  %v781_v60 = vld [vmem:[%s16118_s1 + $0x1628] sm:$0xff]  ;;  %v814_v61 = vld [vmem:[%s16118_s1 + $0x1730] sm:$0xff] }
 0x170   :  { %8197 = vmatpush3.msra.mxu0 %v715_v62  ;;  %8230 = vmatpush3.msra.mxu1 %v748_v63  ;;  %v796_v62 = vld [vmem:[%s16118_s1 + $0x16a0] sm:$0xff]  ;;  %v829_v63 = vld [vmem:[%s16118_s1 + $0x17a8] sm:$0xff] }
 0x171   :  { %8198 = vmatprep.subr.mxu0 %v730_v1  ;;  %8231 = vmatprep.subr.mxu1 %v763_v2  ;;  %v780_v1 = vld [vmem:[%s16118_s1 + $0x1620] sm:$0xff]  ;;  %v813_v2 = vld [vmem:[%s16118_s1 + $0x1728] sm:$0xff] }
 0x172   :  { %8199 = vmatpush3.msra.mxu0 %v714_v4  ;;  %8232 = vmatpush3.msra.mxu1 %v747_v5  ;;  %v828_v4 = vld [vmem:[%s16118_s1 + $0x17a0] sm:$0xff]  ;;  %v779_v5 = vld [vmem:[%s16118_s1 + $0x1618] sm:$0xff] }
 0x173   :  { %8200 = vmatprep.subr.mxu0 %v729_v6  ;;  %8233 = vmatprep.subr.mxu1 %v762_v7  ;;  %v812_v6 = vld [vmem:[%s16118_s1 + $0x1720] sm:$0xff]  ;;  %v2291_v7 = vcombine.high %v51_v0, %v51_v0 }
 0x174   :  { %8201 = vmatpush3.msra.mxu0 %v713_v8  ;;  %8234 = vmatpush3.msra.mxu1 %v746_v9  ;;  %v794_v8 = vld [vmem:[%s16118_s1 + $0x1690] sm:$0xff]  ;;  %v827_v9 = vld [vmem:[%s16118_s1 + $0x1798] sm:$0xff] }
 0x175   :  { %8202 = vmatprep.subr.mxu0 %v728_v11  ;;  %8235 = vmatprep.subr.mxu1 %v761_v12  ;;  %v778_v11 = vld [vmem:[%s16118_s1 + $0x1610] sm:$0xff]  ;;  %v811_v12 = vld [vmem:[%s16118_s1 + $0x1718] sm:$0xff] }
 0x176   :  { %8203 = vmatpush3.msra.mxu0 %v712_v14  ;;  %4227 = vmatprep.mubr.f32.mxu0 %v2289_v13  ;;  %v793_v13 = vld [vmem:[%s16118_s1 + $0x1688] sm:$0xff]  ;;  %v826_v14 = vld [vmem:[%s16118_s1 + $0x1790] sm:$0xff] }
 0x177   :  { %8236 = vmatpush3.msra.mxu1 %v745_v15  ;;  %4228 = vmatmul.mubr.f32.vlgmr.msra.gmra.mxu0 %v2281_v3  ;;  %v795_v3 = vld [vmem:[%s16118_s1 + $0x1698] sm:$0xff]  ;;  %v777_v15 = vld [vmem:[%s16118_s1 + $0x1608] sm:$0xff] }
 0x178   :  { %8237 = vmatprep.subr.mxu1 %v760_v16  ;;  %8242 = vmatprep.subr.mxu0 %v807_v17  ;;  %v810_v16 = vld [vmem:[%s16118_s1 + $0x1710] sm:$0xff]  ;;  %v2305_v17 = vrot.slane %v2291_v7, %v9997_v51  ;;  %v52_v7 = vld [vmem:[%s16117_s0 + $0x60] sm:$0xff] }
 0x179   :  { %8238 = vmatpush3.msra.mxu1 %v744_v19  ;;  %4297 = vmatprep.mubr.f32.mxu1 %v2290_v18  ;;  %v792_v18 = vld [vmem:[%s16118_s1 + $0x1680] sm:$0xff]  ;;  %v825_v19 = vld [vmem:[%s16118_s1 + $0x1788] sm:$0xff] }
 0x17a   :  { %8243 = vmatpush3.msra.mxu0 %v791_v20  ;;  %4298 = vmatmul.mubr.f32.vlgmr.msra.gmra.mxu1 %v2288_v10  ;;  %v2298_v10 = vrot.slane %v51_v0, %v9997_v51  ;;  %v879_v0 = vld [vmem:[%s16118_s1 + $0x1938] sm:$0xff] }
 0x17b   :  { %8244 = vmatprep.subr.mxu0 %v806_v21  ;;  %8277 = vmatprep.subr.mxu1 %v839_v22  ;;  %v776_v21 = vld [vmem:[%s16118_s1 + $0x1600] sm:$0xff]  ;;  %v809_v22 = vld [vmem:[%s16118_s1 + $0x1708] sm:$0xff] }
 0x17c   :  { %8245 = vmatpush3.msra.mxu0 %v790_v23  ;;  %8278 = vmatpush3.msra.mxu1 %v823_v24  ;;  %v2306_v20 = vcombine.high %v2298_v10, %v2298_v10  ;;  %v824_v23 = vld [vmem:[%s16118_s1 + $0x1780] sm:$0xff]  ;;  %v871_v24 = vld [vmem:[%s16118_s1 + $0x18f8] sm:$0xff] }
 0x17d   :  { %8246 = vmatprep.subr.mxu0 %v805_v25  ;;  %8279 = vmatprep.subr.mxu1 %v838_v26  ;;  %v2307_v25 = vcombine.high %v2305_v17, %v2305_v17  ;;  %v808_v26 = vld [vmem:[%s16118_s1 + $0x1700] sm:$0xff] }
 0x17e   :  { %8247 = vmatpush3.msra.mxu0 %v789_v27  ;;  %8280 = vmatpush3.msra.mxu1 %v822_v28  ;;  %v855_v27 = vld [vmem:[%s16118_s1 + $0x1878] sm:$0xff]  ;;  %v870_v28 = vld [vmem:[%s16118_s1 + $0x18f0] sm:$0xff] }
 0x17f   :  { %8248 = vmatprep.subr.mxu0 %v804_v29  ;;  %8281 = vmatprep.subr.mxu1 %v837_v30  ;;  %v903_v29 = vld [vmem:[%s16118_s1 + $0x19f8] sm:$0xff]  ;;  %v854_v30 = vld [vmem:[%s16118_s1 + $0x1870] sm:$0xff] }
 0x180   :  { %8249 = vmatpush3.msra.mxu0 %v788_v31  ;;  %8282 = vmatpush3.msra.mxu1 %v821_v32  ;;  %v887_v31 = vld [vmem:[%s16118_s1 + $0x1978] sm:$0xff]  ;;  %v869_v32 = vld [vmem:[%s16118_s1 + $0x18e8] sm:$0xff] }
 0x181   :  { %8250 = vmatprep.subr.mxu0 %v803_v33  ;;  %8283 = vmatprep.subr.mxu1 %v836_v34  ;;  %v902_v33 = vld [vmem:[%s16118_s1 + $0x19f0] sm:$0xff]  ;;  %v853_v34 = vld [vmem:[%s16118_s1 + $0x1868] sm:$0xff] }
 0x182   :  { %8251 = vmatpush3.msra.mxu0 %v787_v35  ;;  %8284 = vmatpush3.msra.mxu1 %v820_v36  ;;  %v886_v35 = vld [vmem:[%s16118_s1 + $0x1970] sm:$0xff]  ;;  %v868_v36 = vld [vmem:[%s16118_s1 + $0x18e0] sm:$0xff] }
 0x183   :  { %8252 = vmatprep.subr.mxu0 %v802_v37  ;;  %8285 = vmatprep.subr.mxu1 %v835_v38  ;;  %v901_v37 = vld [vmem:[%s16118_s1 + $0x19e8] sm:$0xff]  ;;  %v852_v38 = vld [vmem:[%s16118_s1 + $0x1860] sm:$0xff] }
 0x184   :  { %8253 = vmatpush3.msra.mxu0 %v786_v39  ;;  %8286 = vmatpush3.msra.mxu1 %v819_v40  ;;  %v885_v39 = vld [vmem:[%s16118_s1 + $0x1968] sm:$0xff]  ;;  %v867_v40 = vld [vmem:[%s16118_s1 + $0x18d8] sm:$0xff] }
 0x185   :  { %8254 = vmatprep.subr.mxu0 %v801_v41  ;;  %8287 = vmatprep.subr.mxu1 %v834_v42  ;;  %v900_v41 = vld [vmem:[%s16118_s1 + $0x19e0] sm:$0xff]  ;;  %v851_v42 = vld [vmem:[%s16118_s1 + $0x1858] sm:$0xff] }
 0x186   :  { %8255 = vmatpush3.msra.mxu0 %v785_v43  ;;  %8288 = vmatpush3.msra.mxu1 %v818_v44  ;;  %v884_v43 = vld [vmem:[%s16118_s1 + $0x1960] sm:$0xff]  ;;  %v866_v44 = vld [vmem:[%s16118_s1 + $0x18d0] sm:$0xff] }
 0x187   :  { %8256 = vmatprep.subr.mxu0 %v800_v45  ;;  %8289 = vmatprep.subr.mxu1 %v833_v46  ;;  %v899_v45 = vld [vmem:[%s16118_s1 + $0x19d8] sm:$0xff]  ;;  %v850_v46 = vld [vmem:[%s16118_s1 + $0x1850] sm:$0xff] }
 0x188   :  { %8257 = vmatpush3.msra.mxu0 %v784_v47  ;;  %8290 = vmatpush3.msra.mxu1 %v817_v48  ;;  %v883_v47 = vld [vmem:[%s16118_s1 + $0x1958] sm:$0xff]  ;;  %v865_v48 = vld [vmem:[%s16118_s1 + $0x18c8] sm:$0xff] }
 0x189   :  { %8258 = vmatprep.subr.mxu0 %v799_v49  ;;  %8291 = vmatprep.subr.mxu1 %v832_v50  ;;  %v898_v49 = vld [vmem:[%s16118_s1 + $0x19d0] sm:$0xff]  ;;  %v849_v50 = vld [vmem:[%s16118_s1 + $0x1848] sm:$0xff] }
 0x18a   :  { %8259 = vmatpush3.msra.mxu0 %v783_v52  ;;  %8292 = vmatpush3.msra.mxu1 %v816_v53  ;;  %v882_v52 = vld [vmem:[%s16118_s1 + $0x1950] sm:$0xff]  ;;  %v864_v53 = vld [vmem:[%s16118_s1 + $0x18c0] sm:$0xff] }
 0x18b   :  { %8260 = vmatprep.subr.mxu0 %v798_v54  ;;  %8293 = vmatprep.subr.mxu1 %v831_v55  ;;  %v897_v54 = vld [vmem:[%s16118_s1 + $0x19c8] sm:$0xff]  ;;  %v848_v55 = vld [vmem:[%s16118_s1 + $0x1840] sm:$0xff] }
 0x18c   :  { %8261 = vmatpush3.msra.mxu0 %v782_v56  ;;  %8294 = vmatpush3.msra.mxu1 %v815_v57  ;;  %v881_v56 = vld [vmem:[%s16118_s1 + $0x1948] sm:$0xff]  ;;  %v863_v57 = vld [vmem:[%s16118_s1 + $0x18b8] sm:$0xff] }
 0x18d   :  { %8262 = vmatprep.subr.mxu0 %v797_v58  ;;  %8295 = vmatprep.subr.mxu1 %v830_v59  ;;  %v896_v58 = vld [vmem:[%s16118_s1 + $0x19c0] sm:$0xff]  ;;  %v847_v59 = vld [vmem:[%s16118_s1 + $0x1838] sm:$0xff] }
 0x18e   :  { %8263 = vmatpush3.msra.mxu0 %v781_v60  ;;  %8296 = vmatpush3.msra.mxu1 %v814_v61  ;;  %v880_v60 = vld [vmem:[%s16118_s1 + $0x1940] sm:$0xff]  ;;  %v862_v61 = vld [vmem:[%s16118_s1 + $0x18b0] sm:$0xff] }
 0x18f   :  { %8264 = vmatprep.subr.mxu0 %v796_v62  ;;  %8297 = vmatprep.subr.mxu1 %v829_v63  ;;  %v895_v62 = vld [vmem:[%s16118_s1 + $0x19b8] sm:$0xff]  ;;  %v846_v63 = vld [vmem:[%s16118_s1 + $0x1830] sm:$0xff] }
 0x190   :  { %8265 = vmatpush3.msra.mxu0 %v780_v1  ;;  %8298 = vmatpush3.msra.mxu1 %v813_v2  ;;  %v861_v1 = vld [vmem:[%s16118_s1 + $0x18a8] sm:$0xff]  ;;  %v894_v2 = vld [vmem:[%s16118_s1 + $0x19b0] sm:$0xff] }
 0x191   :  { %8266 = vmatprep.subr.mxu0 %v795_v3  ;;  %8299 = vmatprep.subr.mxu1 %v828_v4  ;;  %v845_v3 = vld [vmem:[%s16118_s1 + $0x1828] sm:$0xff]  ;;  %v878_v4 = vld [vmem:[%s16118_s1 + $0x1930] sm:$0xff] }
 0x192   :  { %8267 = vmatpush3.msra.mxu0 %v779_v5  ;;  %8300 = vmatpush3.msra.mxu1 %v812_v6  ;;  %v860_v5 = vld [vmem:[%s16118_s1 + $0x18a0] sm:$0xff]  ;;  %v893_v6 = vld [vmem:[%s16118_s1 + $0x19a8] sm:$0xff] }
 0x193   :  { %8268 = vmatprep.subr.mxu0 %v794_v8  ;;  %8301 = vmatprep.subr.mxu1 %v827_v9  ;;  %v844_v8 = vld [vmem:[%s16118_s1 + $0x1820] sm:$0xff]  ;;  %v877_v9 = vld [vmem:[%s16118_s1 + $0x1928] sm:$0xff] }
 0x194   :  { %8269 = vmatpush3.msra.mxu0 %v778_v11  ;;  %8302 = vmatpush3.msra.mxu1 %v811_v12  ;;  %v892_v11 = vld [vmem:[%s16118_s1 + $0x19a0] sm:$0xff]  ;;  %v843_v12 = vld [vmem:[%s16118_s1 + $0x1818] sm:$0xff] }
 0x195   :  { %8270 = vmatprep.subr.mxu0 %v793_v13  ;;  %8303 = vmatprep.subr.mxu1 %v826_v14  ;;  %v876_v13 = vld [vmem:[%s16118_s1 + $0x1920] sm:$0xff]  ;;  %v2308_v14 = vcombine.high %v52_v7, %v52_v7 }
 0x196   :  { %8271 = vmatpush3.msra.mxu0 %v777_v15  ;;  %8304 = vmatpush3.msra.mxu1 %v810_v16  ;;  %v858_v15 = vld [vmem:[%s16118_s1 + $0x1890] sm:$0xff]  ;;  %v891_v16 = vld [vmem:[%s16118_s1 + $0x1998] sm:$0xff] }
 0x197   :  { %8272 = vmatprep.subr.mxu0 %v792_v18  ;;  %8305 = vmatprep.subr.mxu1 %v825_v19  ;;  %v842_v18 = vld [vmem:[%s16118_s1 + $0x1810] sm:$0xff]  ;;  %v875_v19 = vld [vmem:[%s16118_s1 + $0x1918] sm:$0xff] }
 0x198   :  { %8273 = vmatpush3.msra.mxu0 %v776_v21  ;;  %4367 = vmatprep.mubr.f32.mxu0 %v2306_v20  ;;  %v857_v20 = vld [vmem:[%s16118_s1 + $0x1888] sm:$0xff]  ;;  %v890_v21 = vld [vmem:[%s16118_s1 + $0x1990] sm:$0xff] }
 0x199   :  { %8306 = vmatpush3.msra.mxu1 %v809_v22  ;;  %4368 = vmatmul.mubr.f32.vlgmr.msra.gmra.mxu0 %v2298_v10  ;;  %v859_v10 = vld [vmem:[%s16118_s1 + $0x1898] sm:$0xff]  ;;  %v841_v22 = vld [vmem:[%s16118_s1 + $0x1808] sm:$0xff] }
 0x19a   :  { %8307 = vmatprep.subr.mxu1 %v824_v23  ;;  %8312 = vmatprep.subr.mxu0 %v871_v24  ;;  %v874_v23 = vld [vmem:[%s16118_s1 + $0x1910] sm:$0xff]  ;;  %v2322_v24 = vrot.slane %v2308_v14, %v9997_v51  ;;  %v53_v14 = vld [vmem:[%s16117_s0 + $0x68] sm:$0xff] }
 0x19b   :  { %8308 = vmatpush3.msra.mxu1 %v808_v26  ;;  %4437 = vmatprep.mubr.f32.mxu1 %v2307_v25  ;;  %v856_v25 = vld [vmem:[%s16118_s1 + $0x1880] sm:$0xff]  ;;  %v889_v26 = vld [vmem:[%s16118_s1 + $0x1988] sm:$0xff] }
 0x19c   :  { %8313 = vmatpush3.msra.mxu0 %v855_v27  ;;  %4438 = vmatmul.mubr.f32.vlgmr.msra.gmra.mxu1 %v2305_v17  ;;  %v2315_v17 = vrot.slane %v52_v7, %v9997_v51  ;;  %v943_v7 = vld [vmem:[%s16118_s1 + $0x1b38] sm:$0xff] }
 0x19d   :  { %8314 = vmatprep.subr.mxu0 %v870_v28  ;;  %8347 = vmatprep.subr.mxu1 %v903_v29  ;;  %v840_v28 = vld [vmem:[%s16118_s1 + $0x1800] sm:$0xff]  ;;  %v873_v29 = vld [vmem:[%s16118_s1 + $0x1908] sm:$0xff] }
 0x19e   :  { %8315 = vmatpush3.msra.mxu0 %v854_v30  ;;  %8348 = vmatpush3.msra.mxu1 %v887_v31  ;;  %v2323_v27 = vcombine.high %v2315_v17, %v2315_v17  ;;  %v888_v30 = vld [vmem:[%s16118_s1 + $0x1980] sm:$0xff]  ;;  %v935_v31 = vld [vmem:[%s16118_s1 + $0x1af8] sm:$0xff] }
 0x19f   :  { %8316 = vmatprep.subr.mxu0 %v869_v32  ;;  %8349 = vmatprep.subr.mxu1 %v902_v33  ;;  %v2324_v32 = vcombine.high %v2322_v24, %v2322_v24  ;;  %v872_v33 = vld [vmem:[%s16118_s1 + $0x1900] sm:$0xff] }
 0x1a0   :  { %8317 = vmatpush3.msra.mxu0 %v853_v34  ;;  %8350 = vmatpush3.msra.mxu1 %v886_v35  ;;  %v919_v34 = vld [vmem:[%s16118_s1 + $0x1a78] sm:$0xff]  ;;  %v934_v35 = vld [vmem:[%s16118_s1 + $0x1af0] sm:$0xff] }
 0x1a1   :  { %8318 = vmatprep.subr.mxu0 %v868_v36  ;;  %8351 = vmatprep.subr.mxu1 %v901_v37  ;;  %v967_v36 = vld [vmem:[%s16118_s1 + $0x1bf8] sm:$0xff]  ;;  %v918_v37 = vld [vmem:[%s16118_s1 + $0x1a70] sm:$0xff] }
 0x1a2   :  { %8319 = vmatpush3.msra.mxu0 %v852_v38  ;;  %8352 = vmatpush3.msra.mxu1 %v885_v39  ;;  %v951_v38 = vld [vmem:[%s16118_s1 + $0x1b78] sm:$0xff]  ;;  %v933_v39 = vld [vmem:[%s16118_s1 + $0x1ae8] sm:$0xff] }
 0x1a3   :  { %8320 = vmatprep.subr.mxu0 %v867_v40  ;;  %8353 = vmatprep.subr.mxu1 %v900_v41  ;;  %v966_v40 = vld [vmem:[%s16118_s1 + $0x1bf0] sm:$0xff]  ;;  %v917_v41 = vld [vmem:[%s16118_s1 + $0x1a68] sm:$0xff] }
 0x1a4   :  { %8321 = vmatpush3.msra.mxu0 %v851_v42  ;;  %8354 = vmatpush3.msra.mxu1 %v884_v43  ;;  %v950_v42 = vld [vmem:[%s16118_s1 + $0x1b70] sm:$0xff]  ;;  %v932_v43 = vld [vmem:[%s16118_s1 + $0x1ae0] sm:$0xff] }
 0x1a5   :  { %8322 = vmatprep.subr.mxu0 %v866_v44  ;;  %8355 = vmatprep.subr.mxu1 %v899_v45  ;;  %v965_v44 = vld [vmem:[%s16118_s1 + $0x1be8] sm:$0xff]  ;;  %v916_v45 = vld [vmem:[%s16118_s1 + $0x1a60] sm:$0xff] }
 0x1a6   :  { %8323 = vmatpush3.msra.mxu0 %v850_v46  ;;  %8356 = vmatpush3.msra.mxu1 %v883_v47  ;;  %v949_v46 = vld [vmem:[%s16118_s1 + $0x1b68] sm:$0xff]  ;;  %v931_v47 = vld [vmem:[%s16118_s1 + $0x1ad8] sm:$0xff] }
 0x1a7   :  { %8324 = vmatprep.subr.mxu0 %v865_v48  ;;  %8357 = vmatprep.subr.mxu1 %v898_v49  ;;  %v964_v48 = vld [vmem:[%s16118_s1 + $0x1be0] sm:$0xff]  ;;  %v915_v49 = vld [vmem:[%s16118_s1 + $0x1a58] sm:$0xff] }
 0x1a8   :  { %8325 = vmatpush3.msra.mxu0 %v849_v50  ;;  %8358 = vmatpush3.msra.mxu1 %v882_v52  ;;  %v948_v50 = vld [vmem:[%s16118_s1 + $0x1b60] sm:$0xff]  ;;  %v930_v52 = vld [vmem:[%s16118_s1 + $0x1ad0] sm:$0xff] }
 0x1a9   :  { %8326 = vmatprep.subr.mxu0 %v864_v53  ;;  %8359 = vmatprep.subr.mxu1 %v897_v54  ;;  %v963_v53 = vld [vmem:[%s16118_s1 + $0x1bd8] sm:$0xff]  ;;  %v914_v54 = vld [vmem:[%s16118_s1 + $0x1a50] sm:$0xff] }
 0x1aa   :  { %8327 = vmatpush3.msra.mxu0 %v848_v55  ;;  %8360 = vmatpush3.msra.mxu1 %v881_v56  ;;  %v947_v55 = vld [vmem:[%s16118_s1 + $0x1b58] sm:$0xff]  ;;  %v929_v56 = vld [vmem:[%s16118_s1 + $0x1ac8] sm:$0xff] }
 0x1ab   :  { %8328 = vmatprep.subr.mxu0 %v863_v57  ;;  %8361 = vmatprep.subr.mxu1 %v896_v58  ;;  %v962_v57 = vld [vmem:[%s16118_s1 + $0x1bd0] sm:$0xff]  ;;  %v913_v58 = vld [vmem:[%s16118_s1 + $0x1a48] sm:$0xff] }
 0x1ac   :  { %8329 = vmatpush3.msra.mxu0 %v847_v59  ;;  %8362 = vmatpush3.msra.mxu1 %v880_v60  ;;  %v946_v59 = vld [vmem:[%s16118_s1 + $0x1b50] sm:$0xff]  ;;  %v928_v60 = vld [vmem:[%s16118_s1 + $0x1ac0] sm:$0xff] }
 0x1ad   :  { %8330 = vmatprep.subr.mxu0 %v862_v61  ;;  %8363 = vmatprep.subr.mxu1 %v895_v62  ;;  %v961_v61 = vld [vmem:[%s16118_s1 + $0x1bc8] sm:$0xff]  ;;  %v912_v62 = vld [vmem:[%s16118_s1 + $0x1a40] sm:$0xff] }
 0x1ae   :  { %8331 = vmatpush3.msra.mxu0 %v846_v63  ;;  %8364 = vmatpush3.msra.mxu1 %v879_v0  ;;  %v945_v63 = vld [vmem:[%s16118_s1 + $0x1b48] sm:$0xff]  ;;  %v927_v0 = vld [vmem:[%s16118_s1 + $0x1ab8] sm:$0xff] }
 0x1af   :  { %8332 = vmatprep.subr.mxu0 %v861_v1  ;;  %8365 = vmatprep.subr.mxu1 %v894_v2  ;;  %v960_v1 = vld [vmem:[%s16118_s1 + $0x1bc0] sm:$0xff]  ;;  %v911_v2 = vld [vmem:[%s16118_s1 + $0x1a38] sm:$0xff] }
 0x1b0   :  { %8333 = vmatpush3.msra.mxu0 %v845_v3  ;;  %8366 = vmatpush3.msra.mxu1 %v878_v4  ;;  %v944_v3 = vld [vmem:[%s16118_s1 + $0x1b40] sm:$0xff]  ;;  %v926_v4 = vld [vmem:[%s16118_s1 + $0x1ab0] sm:$0xff] }
 0x1b1   :  { %8334 = vmatprep.subr.mxu0 %v860_v5  ;;  %8367 = vmatprep.subr.mxu1 %v893_v6  ;;  %v959_v5 = vld [vmem:[%s16118_s1 + $0x1bb8] sm:$0xff]  ;;  %v910_v6 = vld [vmem:[%s16118_s1 + $0x1a30] sm:$0xff] }
 0x1b2   :  { %8335 = vmatpush3.msra.mxu0 %v844_v8  ;;  %8368 = vmatpush3.msra.mxu1 %v877_v9  ;;  %v925_v8 = vld [vmem:[%s16118_s1 + $0x1aa8] sm:$0xff]  ;;  %v958_v9 = vld [vmem:[%s16118_s1 + $0x1bb0] sm:$0xff] }
 0x1b3   :  { %8336 = vmatprep.subr.mxu0 %v859_v10  ;;  %8369 = vmatprep.subr.mxu1 %v892_v11  ;;  %v909_v10 = vld [vmem:[%s16118_s1 + $0x1a28] sm:$0xff]  ;;  %v942_v11 = vld [vmem:[%s16118_s1 + $0x1b30] sm:$0xff] }
 0x1b4   :  { %8337 = vmatpush3.msra.mxu0 %v843_v12  ;;  %8370 = vmatpush3.msra.mxu1 %v876_v13  ;;  %v924_v12 = vld [vmem:[%s16118_s1 + $0x1aa0] sm:$0xff]  ;;  %v957_v13 = vld [vmem:[%s16118_s1 + $0x1ba8] sm:$0xff] }
 0x1b5   :  { %8338 = vmatprep.subr.mxu0 %v858_v15  ;;  %8371 = vmatprep.subr.mxu1 %v891_v16  ;;  %v908_v15 = vld [vmem:[%s16118_s1 + $0x1a20] sm:$0xff]  ;;  %v941_v16 = vld [vmem:[%s16118_s1 + $0x1b28] sm:$0xff] }
 0x1b6   :  { %8339 = vmatpush3.msra.mxu0 %v842_v18  ;;  %8372 = vmatpush3.msra.mxu1 %v875_v19  ;;  %v956_v18 = vld [vmem:[%s16118_s1 + $0x1ba0] sm:$0xff]  ;;  %v907_v19 = vld [vmem:[%s16118_s1 + $0x1a18] sm:$0xff] }
 0x1b7   :  { %8340 = vmatprep.subr.mxu0 %v857_v20  ;;  %8373 = vmatprep.subr.mxu1 %v890_v21  ;;  %v940_v20 = vld [vmem:[%s16118_s1 + $0x1b20] sm:$0xff]  ;;  %v2325_v21 = vcombine.high %v53_v14, %v53_v14 }
 0x1b8   :  { %8341 = vmatpush3.msra.mxu0 %v841_v22  ;;  %8374 = vmatpush3.msra.mxu1 %v874_v23  ;;  %v922_v22 = vld [vmem:[%s16118_s1 + $0x1a90] sm:$0xff]  ;;  %v955_v23 = vld [vmem:[%s16118_s1 + $0x1b98] sm:$0xff] }
 0x1b9   :  { %8342 = vmatprep.subr.mxu0 %v856_v25  ;;  %8375 = vmatprep.subr.mxu1 %v889_v26  ;;  %v906_v25 = vld [vmem:[%s16118_s1 + $0x1a10] sm:$0xff]  ;;  %v939_v26 = vld [vmem:[%s16118_s1 + $0x1b18] sm:$0xff] }
 0x1ba   :  { %8343 = vmatpush3.msra.mxu0 %v840_v28  ;;  %4507 = vmatprep.mubr.f32.mxu0 %v2323_v27  ;;  %v921_v27 = vld [vmem:[%s16118_s1 + $0x1a88] sm:$0xff]  ;;  %v954_v28 = vld [vmem:[%s16118_s1 + $0x1b90] sm:$0xff] }
 0x1bb   :  { %8376 = vmatpush3.msra.mxu1 %v873_v29  ;;  %4508 = vmatmul.mubr.f32.vlgmr.msra.gmra.mxu0 %v2315_v17  ;;  %v923_v17 = vld [vmem:[%s16118_s1 + $0x1a98] sm:$0xff]  ;;  %v905_v29 = vld [vmem:[%s16118_s1 + $0x1a08] sm:$0xff] }
 0x1bc   :  { %8377 = vmatprep.subr.mxu1 %v888_v30  ;;  %8382 = vmatprep.subr.mxu0 %v935_v31  ;;  %v938_v30 = vld [vmem:[%s16118_s1 + $0x1b10] sm:$0xff]  ;;  %v2339_v31 = vrot.slane %v2325_v21, %v9997_v51 }
 0x1bd   :  { %8378 = vmatpush3.msra.mxu1 %v872_v33  ;;  %4577 = vmatprep.mubr.f32.mxu1 %v2324_v32  ;;  %v920_v32 = vld [vmem:[%s16118_s1 + $0x1a80] sm:$0xff]  ;;  %v953_v33 = vld [vmem:[%s16118_s1 + $0x1b88] sm:$0xff]  ;;  %v54_v21 = vld [vmem:[%s16117_s0 + $0x70] sm:$0xff] }
 0x1be   :  { %8383 = vmatpush3.msra.mxu0 %v919_v34  ;;  %4578 = vmatmul.mubr.f32.vlgmr.msra.gmra.mxu1 %v2322_v24  ;;  %v2332_v24 = vrot.slane %v53_v14, %v9997_v51  ;;  %v1007_v14 = vld [vmem:[%s16118_s1 + $0x1d38] sm:$0xff] }
 0x1bf   :  { %8384 = vmatprep.subr.mxu0 %v934_v35  ;;  %8417 = vmatprep.subr.mxu1 %v967_v36  ;;  %v904_v35 = vld [vmem:[%s16118_s1 + $0x1a00] sm:$0xff]  ;;  %v937_v36 = vld [vmem:[%s16118_s1 + $0x1b08] sm:$0xff] }
 0x1c0   :  { %8385 = vmatpush3.msra.mxu0 %v918_v37  ;;  %8418 = vmatpush3.msra.mxu1 %v951_v38  ;;  %v2340_v34 = vcombine.high %v2332_v24, %v2332_v24  ;;  %v952_v37 = vld [vmem:[%s16118_s1 + $0x1b80] sm:$0xff]  ;;  %v999_v38 = vld [vmem:[%s16118_s1 + $0x1cf8] sm:$0xff] }
 0x1c1   :  { %8386 = vmatprep.subr.mxu0 %v933_v39  ;;  %8419 = vmatprep.subr.mxu1 %v966_v40  ;;  %v2341_v39 = vcombine.high %v2339_v31, %v2339_v31  ;;  %v936_v40 = vld [vmem:[%s16118_s1 + $0x1b00] sm:$0xff] }
 0x1c2   :  { %8387 = vmatpush3.msra.mxu0 %v917_v41  ;;  %8420 = vmatpush3.msra.mxu1 %v950_v42  ;;  %v983_v41 = vld [vmem:[%s16118_s1 + $0x1c78] sm:$0xff]  ;;  %v998_v42 = vld [vmem:[%s16118_s1 + $0x1cf0] sm:$0xff] }
 0x1c3   :  { %8388 = vmatprep.subr.mxu0 %v932_v43  ;;  %8421 = vmatprep.subr.mxu1 %v965_v44  ;;  %v1031_v43 = vld [vmem:[%s16118_s1 + $0x1df8] sm:$0xff]  ;;  %v982_v44 = vld [vmem:[%s16118_s1 + $0x1c70] sm:$0xff] }
 0x1c4   :  { %8389 = vmatpush3.msra.mxu0 %v916_v45  ;;  %8422 = vmatpush3.msra.mxu1 %v949_v46  ;;  %v1015_v45 = vld [vmem:[%s16118_s1 + $0x1d78] sm:$0xff]  ;;  %v997_v46 = vld [vmem:[%s16118_s1 + $0x1ce8] sm:$0xff] }
 0x1c5   :  { %8390 = vmatprep.subr.mxu0 %v931_v47  ;;  %8423 = vmatprep.subr.mxu1 %v964_v48  ;;  %v1030_v47 = vld [vmem:[%s16118_s1 + $0x1df0] sm:$0xff]  ;;  %v981_v48 = vld [vmem:[%s16118_s1 + $0x1c68] sm:$0xff] }
 0x1c6   :  { %8391 = vmatpush3.msra.mxu0 %v915_v49  ;;  %8424 = vmatpush3.msra.mxu1 %v948_v50  ;;  %v1014_v49 = vld [vmem:[%s16118_s1 + $0x1d70] sm:$0xff]  ;;  %v996_v50 = vld [vmem:[%s16118_s1 + $0x1ce0] sm:$0xff] }
 0x1c7   :  { %8392 = vmatprep.subr.mxu0 %v930_v52  ;;  %8425 = vmatprep.subr.mxu1 %v963_v53  ;;  %v1029_v52 = vld [vmem:[%s16118_s1 + $0x1de8] sm:$0xff]  ;;  %v980_v53 = vld [vmem:[%s16118_s1 + $0x1c60] sm:$0xff] }
 0x1c8   :  { %8393 = vmatpush3.msra.mxu0 %v914_v54  ;;  %8426 = vmatpush3.msra.mxu1 %v947_v55  ;;  %v1013_v54 = vld [vmem:[%s16118_s1 + $0x1d68] sm:$0xff]  ;;  %v995_v55 = vld [vmem:[%s16118_s1 + $0x1cd8] sm:$0xff] }
 0x1c9   :  { %8394 = vmatprep.subr.mxu0 %v929_v56  ;;  %8427 = vmatprep.subr.mxu1 %v962_v57  ;;  %v1028_v56 = vld [vmem:[%s16118_s1 + $0x1de0] sm:$0xff]  ;;  %v979_v57 = vld [vmem:[%s16118_s1 + $0x1c58] sm:$0xff] }
 0x1ca   :  { %8395 = vmatpush3.msra.mxu0 %v913_v58  ;;  %8428 = vmatpush3.msra.mxu1 %v946_v59  ;;  %v1012_v58 = vld [vmem:[%s16118_s1 + $0x1d60] sm:$0xff]  ;;  %v994_v59 = vld [vmem:[%s16118_s1 + $0x1cd0] sm:$0xff] }
 0x1cb   :  { %8396 = vmatprep.subr.mxu0 %v928_v60  ;;  %8429 = vmatprep.subr.mxu1 %v961_v61  ;;  %v1027_v60 = vld [vmem:[%s16118_s1 + $0x1dd8] sm:$0xff]  ;;  %v978_v61 = vld [vmem:[%s16118_s1 + $0x1c50] sm:$0xff] }
 0x1cc   :  { %8397 = vmatpush3.msra.mxu0 %v912_v62  ;;  %8430 = vmatpush3.msra.mxu1 %v945_v63  ;;  %v1011_v62 = vld [vmem:[%s16118_s1 + $0x1d58] sm:$0xff]  ;;  %v993_v63 = vld [vmem:[%s16118_s1 + $0x1cc8] sm:$0xff] }
 0x1cd   :  { %8398 = vmatprep.subr.mxu0 %v927_v0  ;;  %8431 = vmatprep.subr.mxu1 %v960_v1  ;;  %v1026_v0 = vld [vmem:[%s16118_s1 + $0x1dd0] sm:$0xff]  ;;  %v977_v1 = vld [vmem:[%s16118_s1 + $0x1c48] sm:$0xff] }
 0x1ce   :  { %8399 = vmatpush3.msra.mxu0 %v911_v2  ;;  %8432 = vmatpush3.msra.mxu1 %v944_v3  ;;  %v1010_v2 = vld [vmem:[%s16118_s1 + $0x1d50] sm:$0xff]  ;;  %v992_v3 = vld [vmem:[%s16118_s1 + $0x1cc0] sm:$0xff] }
 0x1cf   :  { %8400 = vmatprep.subr.mxu0 %v926_v4  ;;  %8433 = vmatprep.subr.mxu1 %v959_v5  ;;  %v1025_v4 = vld [vmem:[%s16118_s1 + $0x1dc8] sm:$0xff]  ;;  %v976_v5 = vld [vmem:[%s16118_s1 + $0x1c40] sm:$0xff] }
 0x1d0   :  { %8401 = vmatpush3.msra.mxu0 %v910_v6  ;;  %8434 = vmatpush3.msra.mxu1 %v943_v7  ;;  %v1009_v6 = vld [vmem:[%s16118_s1 + $0x1d48] sm:$0xff]  ;;  %v991_v7 = vld [vmem:[%s16118_s1 + $0x1cb8] sm:$0xff] }
 0x1d1   :  { %8402 = vmatprep.subr.mxu0 %v925_v8  ;;  %8435 = vmatprep.subr.mxu1 %v958_v9  ;;  %v1024_v8 = vld [vmem:[%s16118_s1 + $0x1dc0] sm:$0xff]  ;;  %v975_v9 = vld [vmem:[%s16118_s1 + $0x1c38] sm:$0xff] }
 0x1d2   :  { %8403 = vmatpush3.msra.mxu0 %v909_v10  ;;  %8436 = vmatpush3.msra.mxu1 %v942_v11  ;;  %v1008_v10 = vld [vmem:[%s16118_s1 + $0x1d40] sm:$0xff]  ;;  %v990_v11 = vld [vmem:[%s16118_s1 + $0x1cb0] sm:$0xff] }
 0x1d3   :  { %8404 = vmatprep.subr.mxu0 %v924_v12  ;;  %8437 = vmatprep.subr.mxu1 %v957_v13  ;;  %v1023_v12 = vld [vmem:[%s16118_s1 + $0x1db8] sm:$0xff]  ;;  %v974_v13 = vld [vmem:[%s16118_s1 + $0x1c30] sm:$0xff] }
 0x1d4   :  { %8405 = vmatpush3.msra.mxu0 %v908_v15  ;;  %8438 = vmatpush3.msra.mxu1 %v941_v16  ;;  %v989_v15 = vld [vmem:[%s16118_s1 + $0x1ca8] sm:$0xff]  ;;  %v1022_v16 = vld [vmem:[%s16118_s1 + $0x1db0] sm:$0xff] }
 0x1d5   :  { %8406 = vmatprep.subr.mxu0 %v923_v17  ;;  %8439 = vmatprep.subr.mxu1 %v956_v18  ;;  %v973_v17 = vld [vmem:[%s16118_s1 + $0x1c28] sm:$0xff]  ;;  %v1006_v18 = vld [vmem:[%s16118_s1 + $0x1d30] sm:$0xff] }
 0x1d6   :  { %8407 = vmatpush3.msra.mxu0 %v907_v19  ;;  %8440 = vmatpush3.msra.mxu1 %v940_v20  ;;  %v988_v19 = vld [vmem:[%s16118_s1 + $0x1ca0] sm:$0xff]  ;;  %v1021_v20 = vld [vmem:[%s16118_s1 + $0x1da8] sm:$0xff] }
 0x1d7   :  { %8408 = vmatprep.subr.mxu0 %v922_v22  ;;  %8441 = vmatprep.subr.mxu1 %v955_v23  ;;  %v972_v22 = vld [vmem:[%s16118_s1 + $0x1c20] sm:$0xff]  ;;  %v1005_v23 = vld [vmem:[%s16118_s1 + $0x1d28] sm:$0xff] }
 0x1d8   :  { %8409 = vmatpush3.msra.mxu0 %v906_v25  ;;  %8442 = vmatpush3.msra.mxu1 %v939_v26  ;;  %v1020_v25 = vld [vmem:[%s16118_s1 + $0x1da0] sm:$0xff]  ;;  %v971_v26 = vld [vmem:[%s16118_s1 + $0x1c18] sm:$0xff] }
 0x1d9   :  { %8410 = vmatprep.subr.mxu0 %v921_v27  ;;  %8443 = vmatprep.subr.mxu1 %v954_v28  ;;  %v1004_v27 = vld [vmem:[%s16118_s1 + $0x1d20] sm:$0xff]  ;;  %v2342_v28 = vcombine.high %v54_v21, %v54_v21 }
 0x1da   :  { %8411 = vmatpush3.msra.mxu0 %v905_v29  ;;  %8444 = vmatpush3.msra.mxu1 %v938_v30  ;;  %v986_v29 = vld [vmem:[%s16118_s1 + $0x1c90] sm:$0xff]  ;;  %v1019_v30 = vld [vmem:[%s16118_s1 + $0x1d98] sm:$0xff] }
 0x1db   :  { %8412 = vmatprep.subr.mxu0 %v920_v32  ;;  %8445 = vmatprep.subr.mxu1 %v953_v33  ;;  %v970_v32 = vld [vmem:[%s16118_s1 + $0x1c10] sm:$0xff]  ;;  %v1003_v33 = vld [vmem:[%s16118_s1 + $0x1d18] sm:$0xff] }
 0x1dc   :  { %8413 = vmatpush3.msra.mxu0 %v904_v35  ;;  %4647 = vmatprep.mubr.f32.mxu0 %v2340_v34  ;;  %v985_v34 = vld [vmem:[%s16118_s1 + $0x1c88] sm:$0xff]  ;;  %v1018_v35 = vld [vmem:[%s16118_s1 + $0x1d90] sm:$0xff] }
 0x1dd   :  { %8446 = vmatpush3.msra.mxu1 %v937_v36  ;;  %4648 = vmatmul.mubr.f32.vlgmr.msra.gmra.mxu0 %v2332_v24  ;;  %v987_v24 = vld [vmem:[%s16118_s1 + $0x1c98] sm:$0xff]  ;;  %v969_v36 = vld [vmem:[%s16118_s1 + $0x1c08] sm:$0xff] }
 0x1de   :  { %8447 = vmatprep.subr.mxu1 %v952_v37  ;;  %8452 = vmatprep.subr.mxu0 %v999_v38  ;;  %v1002_v37 = vld [vmem:[%s16118_s1 + $0x1d10] sm:$0xff]  ;;  %v2356_v38 = vrot.slane %v2342_v28, %v9997_v51  ;;  %v55_v28 = vld [vmem:[%s16117_s0 + $0x78] sm:$0xff] }
 0x1df   :  { %8448 = vmatpush3.msra.mxu1 %v936_v40  ;;  %4717 = vmatprep.mubr.f32.mxu1 %v2341_v39  ;;  %v984_v39 = vld [vmem:[%s16118_s1 + $0x1c80] sm:$0xff]  ;;  %v1017_v40 = vld [vmem:[%s16118_s1 + $0x1d88] sm:$0xff] }
 0x1e0   :  { %8453 = vmatpush3.msra.mxu0 %v983_v41  ;;  %4718 = vmatmul.mubr.f32.vlgmr.msra.gmra.mxu1 %v2339_v31  ;;  %v2349_v31 = vrot.slane %v54_v21, %v9997_v51  ;;  %v1071_v21 = vld [vmem:[%s16118_s1 + $0x1f38] sm:$0xff] }
 0x1e1   :  { %8454 = vmatprep.subr.mxu0 %v998_v42  ;;  %8487 = vmatprep.subr.mxu1 %v1031_v43  ;;  %v968_v42 = vld [vmem:[%s16118_s1 + $0x1c00] sm:$0xff]  ;;  %v1001_v43 = vld [vmem:[%s16118_s1 + $0x1d08] sm:$0xff] }
 0x1e2   :  { %8455 = vmatpush3.msra.mxu0 %v982_v44  ;;  %8488 = vmatpush3.msra.mxu1 %v1015_v45  ;;  %v2357_v41 = vcombine.high %v2349_v31, %v2349_v31  ;;  %v1016_v44 = vld [vmem:[%s16118_s1 + $0x1d80] sm:$0xff]  ;;  %v1063_v45 = vld [vmem:[%s16118_s1 + $0x1ef8] sm:$0xff] }
 0x1e3   :  { %8456 = vmatprep.subr.mxu0 %v997_v46  ;;  %8489 = vmatprep.subr.mxu1 %v1030_v47  ;;  %v2358_v46 = vcombine.high %v2356_v38, %v2356_v38  ;;  %v1000_v47 = vld [vmem:[%s16118_s1 + $0x1d00] sm:$0xff] }
 0x1e4   :  { %8457 = vmatpush3.msra.mxu0 %v981_v48  ;;  %8490 = vmatpush3.msra.mxu1 %v1014_v49  ;;  %v1047_v48 = vld [vmem:[%s16118_s1 + $0x1e78] sm:$0xff]  ;;  %v1062_v49 = vld [vmem:[%s16118_s1 + $0x1ef0] sm:$0xff] }
 0x1e5   :  { %8458 = vmatprep.subr.mxu0 %v996_v50  ;;  %8491 = vmatprep.subr.mxu1 %v1029_v52  ;;  %v1095_v50 = vld [vmem:[%s16118_s1 + $0x1ff8] sm:$0xff]  ;;  %v1046_v52 = vld [vmem:[%s16118_s1 + $0x1e70] sm:$0xff] }
 0x1e6   :  { %8459 = vmatpush3.msra.mxu0 %v980_v53  ;;  %8492 = vmatpush3.msra.mxu1 %v1013_v54  ;;  %v1079_v53 = vld [vmem:[%s16118_s1 + $0x1f78] sm:$0xff]  ;;  %v1061_v54 = vld [vmem:[%s16118_s1 + $0x1ee8] sm:$0xff] }
 0x1e7   :  { %8460 = vmatprep.subr.mxu0 %v995_v55  ;;  %8493 = vmatprep.subr.mxu1 %v1028_v56  ;;  %v1094_v55 = vld [vmem:[%s16118_s1 + $0x1ff0] sm:$0xff]  ;;  %v1045_v56 = vld [vmem:[%s16118_s1 + $0x1e68] sm:$0xff] }
 0x1e8   :  { %8461 = vmatpush3.msra.mxu0 %v979_v57  ;;  %8494 = vmatpush3.msra.mxu1 %v1012_v58  ;;  %v1078_v57 = vld [vmem:[%s16118_s1 + $0x1f70] sm:$0xff]  ;;  %v1060_v58 = vld [vmem:[%s16118_s1 + $0x1ee0] sm:$0xff] }
 0x1e9   :  { %8462 = vmatprep.subr.mxu0 %v994_v59  ;;  %8495 = vmatprep.subr.mxu1 %v1027_v60  ;;  %v1093_v59 = vld [vmem:[%s16118_s1 + $0x1fe8] sm:$0xff]  ;;  %v1044_v60 = vld [vmem:[%s16118_s1 + $0x1e60] sm:$0xff] }
 0x1ea   :  { %8463 = vmatpush3.msra.mxu0 %v978_v61  ;;  %8496 = vmatpush3.msra.mxu1 %v1011_v62  ;;  %v1077_v61 = vld [vmem:[%s16118_s1 + $0x1f68] sm:$0xff]  ;;  %v1059_v62 = vld [vmem:[%s16118_s1 + $0x1ed8] sm:$0xff] }
 0x1eb   :  { %8464 = vmatprep.subr.mxu0 %v993_v63  ;;  %8497 = vmatprep.subr.mxu1 %v1026_v0  ;;  %v1092_v63 = vld [vmem:[%s16118_s1 + $0x1fe0] sm:$0xff]  ;;  %v1043_v0 = vld [vmem:[%s16118_s1 + $0x1e58] sm:$0xff] }
 0x1ec   :  { %8465 = vmatpush3.msra.mxu0 %v977_v1  ;;  %8498 = vmatpush3.msra.mxu1 %v1010_v2  ;;  %v1076_v1 = vld [vmem:[%s16118_s1 + $0x1f60] sm:$0xff]  ;;  %v1058_v2 = vld [vmem:[%s16118_s1 + $0x1ed0] sm:$0xff] }
 0x1ed   :  { %8466 = vmatprep.subr.mxu0 %v992_v3  ;;  %8499 = vmatprep.subr.mxu1 %v1025_v4  ;;  %v1091_v3 = vld [vmem:[%s16118_s1 + $0x1fd8] sm:$0xff]  ;;  %v1042_v4 = vld [vmem:[%s16118_s1 + $0x1e50] sm:$0xff] }
 0x1ee   :  { %8467 = vmatpush3.msra.mxu0 %v976_v5  ;;  %8500 = vmatpush3.msra.mxu1 %v1009_v6  ;;  %v1075_v5 = vld [vmem:[%s16118_s1 + $0x1f58] sm:$0xff]  ;;  %v1057_v6 = vld [vmem:[%s16118_s1 + $0x1ec8] sm:$0xff] }
 0x1ef   :  { %8468 = vmatprep.subr.mxu0 %v991_v7  ;;  %8501 = vmatprep.subr.mxu1 %v1024_v8  ;;  %v1090_v7 = vld [vmem:[%s16118_s1 + $0x1fd0] sm:$0xff]  ;;  %v1041_v8 = vld [vmem:[%s16118_s1 + $0x1e48] sm:$0xff] }
 0x1f0   :  { %8469 = vmatpush3.msra.mxu0 %v975_v9  ;;  %8502 = vmatpush3.msra.mxu1 %v1008_v10  ;;  %v1074_v9 = vld [vmem:[%s16118_s1 + $0x1f50] sm:$0xff]  ;;  %v1056_v10 = vld [vmem:[%s16118_s1 + $0x1ec0] sm:$0xff] }
 0x1f1   :  { %8470 = vmatprep.subr.mxu0 %v990_v11  ;;  %8503 = vmatprep.subr.mxu1 %v1023_v12  ;;  %v1089_v11 = vld [vmem:[%s16118_s1 + $0x1fc8] sm:$0xff]  ;;  %v1040_v12 = vld [vmem:[%s16118_s1 + $0x1e40] sm:$0xff] }
 0x1f2   :  { %8471 = vmatpush3.msra.mxu0 %v974_v13  ;;  %8504 = vmatpush3.msra.mxu1 %v1007_v14  ;;  %v1073_v13 = vld [vmem:[%s16118_s1 + $0x1f48] sm:$0xff]  ;;  %v1055_v14 = vld [vmem:[%s16118_s1 + $0x1eb8] sm:$0xff] }
 0x1f3   :  { %8472 = vmatprep.subr.mxu0 %v989_v15  ;;  %8505 = vmatprep.subr.mxu1 %v1022_v16  ;;  %v1088_v15 = vld [vmem:[%s16118_s1 + $0x1fc0] sm:$0xff]  ;;  %v1039_v16 = vld [vmem:[%s16118_s1 + $0x1e38] sm:$0xff] }
 0x1f4   :  { %8473 = vmatpush3.msra.mxu0 %v973_v17  ;;  %8506 = vmatpush3.msra.mxu1 %v1006_v18  ;;  %v1072_v17 = vld [vmem:[%s16118_s1 + $0x1f40] sm:$0xff]  ;;  %v1054_v18 = vld [vmem:[%s16118_s1 + $0x1eb0] sm:$0xff] }
 0x1f5   :  { %8474 = vmatprep.subr.mxu0 %v988_v19  ;;  %8507 = vmatprep.subr.mxu1 %v1021_v20  ;;  %v1087_v19 = vld [vmem:[%s16118_s1 + $0x1fb8] sm:$0xff]  ;;  %v1038_v20 = vld [vmem:[%s16118_s1 + $0x1e30] sm:$0xff] }
 0x1f6   :  { %8475 = vmatpush3.msra.mxu0 %v972_v22  ;;  %8508 = vmatpush3.msra.mxu1 %v1005_v23  ;;  %v1053_v22 = vld [vmem:[%s16118_s1 + $0x1ea8] sm:$0xff]  ;;  %v1086_v23 = vld [vmem:[%s16118_s1 + $0x1fb0] sm:$0xff] }
 0x1f7   :  { %8476 = vmatprep.subr.mxu0 %v987_v24  ;;  %8509 = vmatprep.subr.mxu1 %v1020_v25  ;;  %v1037_v24 = vld [vmem:[%s16118_s1 + $0x1e28] sm:$0xff]  ;;  %v1070_v25 = vld [vmem:[%s16118_s1 + $0x1f30] sm:$0xff] }
 0x1f8   :  { %8477 = vmatpush3.msra.mxu0 %v971_v26  ;;  %8510 = vmatpush3.msra.mxu1 %v1004_v27  ;;  %v1052_v26 = vld [vmem:[%s16118_s1 + $0x1ea0] sm:$0xff]  ;;  %v1085_v27 = vld [vmem:[%s16118_s1 + $0x1fa8] sm:$0xff] }
 0x1f9   :  { %8478 = vmatprep.subr.mxu0 %v986_v29  ;;  %8511 = vmatprep.subr.mxu1 %v1019_v30  ;;  %v1036_v29 = vld [vmem:[%s16118_s1 + $0x1e20] sm:$0xff]  ;;  %v1069_v30 = vld [vmem:[%s16118_s1 + $0x1f28] sm:$0xff] }
 0x1fa   :  { %8479 = vmatpush3.msra.mxu0 %v970_v32  ;;  %8512 = vmatpush3.msra.mxu1 %v1003_v33  ;;  %v1084_v32 = vld [vmem:[%s16118_s1 + $0x1fa0] sm:$0xff]  ;;  %v1035_v33 = vld [vmem:[%s16118_s1 + $0x1e18] sm:$0xff] }
 0x1fb   :  { %8480 = vmatprep.subr.mxu0 %v985_v34  ;;  %8513 = vmatprep.subr.mxu1 %v1018_v35  ;;  %v1068_v34 = vld [vmem:[%s16118_s1 + $0x1f20] sm:$0xff]  ;;  %v2359_v35 = vcombine.high %v55_v28, %v55_v28 }
 0x1fc   :  { %8481 = vmatpush3.msra.mxu0 %v969_v36  ;;  %8514 = vmatpush3.msra.mxu1 %v1002_v37  ;;  %v1050_v36 = vld [vmem:[%s16118_s1 + $0x1e90] sm:$0xff]  ;;  %v1083_v37 = vld [vmem:[%s16118_s1 + $0x1f98] sm:$0xff] }
 0x1fd   :  { %8482 = vmatprep.subr.mxu0 %v984_v39  ;;  %8515 = vmatprep.subr.mxu1 %v1017_v40  ;;  %v1034_v39 = vld [vmem:[%s16118_s1 + $0x1e10] sm:$0xff]  ;;  %v1067_v40 = vld [vmem:[%s16118_s1 + $0x1f18] sm:$0xff] }
 0x1fe   :  { %8483 = vmatpush3.msra.mxu0 %v968_v42  ;;  %4787 = vmatprep.mubr.f32.mxu0 %v2357_v41  ;;  %v1049_v41 = vld [vmem:[%s16118_s1 + $0x1e88] sm:$0xff]  ;;  %v1082_v42 = vld [vmem:[%s16118_s1 + $0x1f90] sm:$0xff] }
 0x1ff   :  { %8516 = vmatpush3.msra.mxu1 %v1001_v43  ;;  %4788 = vmatmul.mubr.f32.vlgmr.msra.gmra.mxu0 %v2349_v31  ;;  %v1051_v31 = vld [vmem:[%s16118_s1 + $0x1e98] sm:$0xff]  ;;  %v1033_v43 = vld [vmem:[%s16118_s1 + $0x1e08] sm:$0xff] }
 0x200   :  { %8517 = vmatprep.subr.mxu1 %v1016_v44  ;;  %8522 = vmatprep.subr.mxu0 %v1063_v45  ;;  %v1066_v44 = vld [vmem:[%s16118_s1 + $0x1f10] sm:$0xff]  ;;  %v2373_v45 = vrot.slane %v2359_v35, %v9997_v51  ;;  %v56_v35 = vld [vmem:[%s16117_s0 + $0x80] sm:$0xff] }
 0x201   :  { %8518 = vmatpush3.msra.mxu1 %v1000_v47  ;;  %4857 = vmatprep.mubr.f32.mxu1 %v2358_v46  ;;  %v1048_v46 = vld [vmem:[%s16118_s1 + $0x1e80] sm:$0xff]  ;;  %v1081_v47 = vld [vmem:[%s16118_s1 + $0x1f88] sm:$0xff] }
 0x202   :  { %8523 = vmatpush3.msra.mxu0 %v1047_v48  ;;  %4858 = vmatmul.mubr.f32.vlgmr.msra.gmra.mxu1 %v2356_v38  ;;  %v2366_v38 = vrot.slane %v55_v28, %v9997_v51  ;;  %v1135_v28 = vld [vmem:[%s16118_s1 + $0x2138] sm:$0xff] }
 0x203   :  { %8524 = vmatprep.subr.mxu0 %v1062_v49  ;;  %8557 = vmatprep.subr.mxu1 %v1095_v50  ;;  %v1032_v49 = vld [vmem:[%s16118_s1 + $0x1e00] sm:$0xff]  ;;  %v1065_v50 = vld [vmem:[%s16118_s1 + $0x1f08] sm:$0xff] }
 0x204   :  { %8525 = vmatpush3.msra.mxu0 %v1046_v52  ;;  %8558 = vmatpush3.msra.mxu1 %v1079_v53  ;;  %v2374_v48 = vcombine.high %v2366_v38, %v2366_v38  ;;  %v1080_v52 = vld [vmem:[%s16118_s1 + $0x1f80] sm:$0xff]  ;;  %v1127_v53 = vld [vmem:[%s16118_s1 + $0x20f8] sm:$0xff] }
 0x205   :  { %8526 = vmatprep.subr.mxu0 %v1061_v54  ;;  %8559 = vmatprep.subr.mxu1 %v1094_v55  ;;  %v2375_v54 = vcombine.high %v2373_v45, %v2373_v45  ;;  %v1064_v55 = vld [vmem:[%s16118_s1 + $0x1f00] sm:$0xff] }
 0x206   :  { %8527 = vmatpush3.msra.mxu0 %v1045_v56  ;;  %8560 = vmatpush3.msra.mxu1 %v1078_v57  ;;  %v1111_v56 = vld [vmem:[%s16118_s1 + $0x2078] sm:$0xff]  ;;  %v1126_v57 = vld [vmem:[%s16118_s1 + $0x20f0] sm:$0xff] }
 0x207   :  { %8528 = vmatprep.subr.mxu0 %v1060_v58  ;;  %8561 = vmatprep.subr.mxu1 %v1093_v59  ;;  %v1159_v58 = vld [vmem:[%s16118_s1 + $0x21f8] sm:$0xff]  ;;  %v1110_v59 = vld [vmem:[%s16118_s1 + $0x2070] sm:$0xff] }
 0x208   :  { %8529 = vmatpush3.msra.mxu0 %v1044_v60  ;;  %8562 = vmatpush3.msra.mxu1 %v1077_v61  ;;  %v1143_v60 = vld [vmem:[%s16118_s1 + $0x2178] sm:$0xff]  ;;  %v1125_v61 = vld [vmem:[%s16118_s1 + $0x20e8] sm:$0xff] }
 0x209   :  { %8530 = vmatprep.subr.mxu0 %v1059_v62  ;;  %8563 = vmatprep.subr.mxu1 %v1092_v63  ;;  %v1158_v62 = vld [vmem:[%s16118_s1 + $0x21f0] sm:$0xff]  ;;  %v1109_v63 = vld [vmem:[%s16118_s1 + $0x2068] sm:$0xff] }
 0x20a   :  { %8531 = vmatpush3.msra.mxu0 %v1043_v0  ;;  %8564 = vmatpush3.msra.mxu1 %v1076_v1  ;;  %v1142_v0 = vld [vmem:[%s16118_s1 + $0x2170] sm:$0xff]  ;;  %v1124_v1 = vld [vmem:[%s16118_s1 + $0x20e0] sm:$0xff] }
 0x20b   :  { %8532 = vmatprep.subr.mxu0 %v1058_v2  ;;  %8565 = vmatprep.subr.mxu1 %v1091_v3  ;;  %v1157_v2 = vld [vmem:[%s16118_s1 + $0x21e8] sm:$0xff]  ;;  %v1108_v3 = vld [vmem:[%s16118_s1 + $0x2060] sm:$0xff] }
 0x20c   :  { %8533 = vmatpush3.msra.mxu0 %v1042_v4  ;;  %8566 = vmatpush3.msra.mxu1 %v1075_v5  ;;  %v1141_v4 = vld [vmem:[%s16118_s1 + $0x2168] sm:$0xff]  ;;  %v1123_v5 = vld [vmem:[%s16118_s1 + $0x20d8] sm:$0xff] }
 0x20d   :  { %8534 = vmatprep.subr.mxu0 %v1057_v6  ;;  %8567 = vmatprep.subr.mxu1 %v1090_v7  ;;  %v1156_v6 = vld [vmem:[%s16118_s1 + $0x21e0] sm:$0xff]  ;;  %v1107_v7 = vld [vmem:[%s16118_s1 + $0x2058] sm:$0xff] }
 0x20e   :  { %8535 = vmatpush3.msra.mxu0 %v1041_v8  ;;  %8568 = vmatpush3.msra.mxu1 %v1074_v9  ;;  %v1140_v8 = vld [vmem:[%s16118_s1 + $0x2160] sm:$0xff]  ;;  %v1122_v9 = vld [vmem:[%s16118_s1 + $0x20d0] sm:$0xff] }
 0x20f   :  { %8536 = vmatprep.subr.mxu0 %v1056_v10  ;;  %8569 = vmatprep.subr.mxu1 %v1089_v11  ;;  %v1155_v10 = vld [vmem:[%s16118_s1 + $0x21d8] sm:$0xff]  ;;  %v1106_v11 = vld [vmem:[%s16118_s1 + $0x2050] sm:$0xff] }
 0x210   :  { %8537 = vmatpush3.msra.mxu0 %v1040_v12  ;;  %8570 = vmatpush3.msra.mxu1 %v1073_v13  ;;  %v1139_v12 = vld [vmem:[%s16118_s1 + $0x2158] sm:$0xff]  ;;  %v1121_v13 = vld [vmem:[%s16118_s1 + $0x20c8] sm:$0xff] }
 0x211   :  { %8538 = vmatprep.subr.mxu0 %v1055_v14  ;;  %8571 = vmatprep.subr.mxu1 %v1088_v15  ;;  %v1154_v14 = vld [vmem:[%s16118_s1 + $0x21d0] sm:$0xff]  ;;  %v1105_v15 = vld [vmem:[%s16118_s1 + $0x2048] sm:$0xff] }
 0x212   :  { %8539 = vmatpush3.msra.mxu0 %v1039_v16  ;;  %8572 = vmatpush3.msra.mxu1 %v1072_v17  ;;  %v1138_v16 = vld [vmem:[%s16118_s1 + $0x2150] sm:$0xff]  ;;  %v1120_v17 = vld [vmem:[%s16118_s1 + $0x20c0] sm:$0xff] }
 0x213   :  { %8540 = vmatprep.subr.mxu0 %v1054_v18  ;;  %8573 = vmatprep.subr.mxu1 %v1087_v19  ;;  %v1153_v18 = vld [vmem:[%s16118_s1 + $0x21c8] sm:$0xff]  ;;  %v1104_v19 = vld [vmem:[%s16118_s1 + $0x2040] sm:$0xff] }
 0x214   :  { %8541 = vmatpush3.msra.mxu0 %v1038_v20  ;;  %8574 = vmatpush3.msra.mxu1 %v1071_v21  ;;  %v1137_v20 = vld [vmem:[%s16118_s1 + $0x2148] sm:$0xff]  ;;  %v1119_v21 = vld [vmem:[%s16118_s1 + $0x20b8] sm:$0xff] }
 0x215   :  { %8542 = vmatprep.subr.mxu0 %v1053_v22  ;;  %8575 = vmatprep.subr.mxu1 %v1086_v23  ;;  %v1152_v22 = vld [vmem:[%s16118_s1 + $0x21c0] sm:$0xff]  ;;  %v1103_v23 = vld [vmem:[%s16118_s1 + $0x2038] sm:$0xff] }
 0x216   :  { %8543 = vmatpush3.msra.mxu0 %v1037_v24  ;;  %8576 = vmatpush3.msra.mxu1 %v1070_v25  ;;  %v1136_v24 = vld [vmem:[%s16118_s1 + $0x2140] sm:$0xff]  ;;  %v1118_v25 = vld [vmem:[%s16118_s1 + $0x20b0] sm:$0xff] }
 0x217   :  { %8544 = vmatprep.subr.mxu0 %v1052_v26  ;;  %8577 = vmatprep.subr.mxu1 %v1085_v27  ;;  %v1151_v26 = vld [vmem:[%s16118_s1 + $0x21b8] sm:$0xff]  ;;  %v1102_v27 = vld [vmem:[%s16118_s1 + $0x2030] sm:$0xff] }
 0x218   :  { %8545 = vmatpush3.msra.mxu0 %v1036_v29  ;;  %8578 = vmatpush3.msra.mxu1 %v1069_v30  ;;  %v1117_v29 = vld [vmem:[%s16118_s1 + $0x20a8] sm:$0xff]  ;;  %v1150_v30 = vld [vmem:[%s16118_s1 + $0x21b0] sm:$0xff] }
 0x219   :  { %8546 = vmatprep.subr.mxu0 %v1051_v31  ;;  %8579 = vmatprep.subr.mxu1 %v1084_v32  ;;  %v1101_v31 = vld [vmem:[%s16118_s1 + $0x2028] sm:$0xff]  ;;  %v1134_v32 = vld [vmem:[%s16118_s1 + $0x2130] sm:$0xff] }
 0x21a   :  { %8547 = vmatpush3.msra.mxu0 %v1035_v33  ;;  %8580 = vmatpush3.msra.mxu1 %v1068_v34  ;;  %v1116_v33 = vld [vmem:[%s16118_s1 + $0x20a0] sm:$0xff]  ;;  %v1149_v34 = vld [vmem:[%s16118_s1 + $0x21a8] sm:$0xff] }
 0x21b   :  { %8548 = vmatprep.subr.mxu0 %v1050_v36  ;;  %8581 = vmatprep.subr.mxu1 %v1083_v37  ;;  %v1100_v36 = vld [vmem:[%s16118_s1 + $0x2020] sm:$0xff]  ;;  %v1133_v37 = vld [vmem:[%s16118_s1 + $0x2128] sm:$0xff] }
 0x21c   :  { %8549 = vmatpush3.msra.mxu0 %v1034_v39  ;;  %8582 = vmatpush3.msra.mxu1 %v1067_v40  ;;  %v1148_v39 = vld [vmem:[%s16118_s1 + $0x21a0] sm:$0xff]  ;;  %v1099_v40 = vld [vmem:[%s16118_s1 + $0x2018] sm:$0xff] }
 0x21d   :  { %8550 = vmatprep.subr.mxu0 %v1049_v41  ;;  %8583 = vmatprep.subr.mxu1 %v1082_v42  ;;  %v1132_v41 = vld [vmem:[%s16118_s1 + $0x2120] sm:$0xff]  ;;  %v2376_v42 = vcombine.high %v56_v35, %v56_v35 }
 0x21e   :  { %8551 = vmatpush3.msra.mxu0 %v1033_v43  ;;  %8584 = vmatpush3.msra.mxu1 %v1066_v44  ;;  %v1114_v43 = vld [vmem:[%s16118_s1 + $0x2090] sm:$0xff]  ;;  %v1147_v44 = vld [vmem:[%s16118_s1 + $0x2198] sm:$0xff] }
 0x21f   :  { %8552 = vmatprep.subr.mxu0 %v1048_v46  ;;  %8585 = vmatprep.subr.mxu1 %v1081_v47  ;;  %v1098_v46 = vld [vmem:[%s16118_s1 + $0x2010] sm:$0xff]  ;;  %v1131_v47 = vld [vmem:[%s16118_s1 + $0x2118] sm:$0xff] }
 0x220   :  { %8553 = vmatpush3.msra.mxu0 %v1032_v49  ;;  %4927 = vmatprep.mubr.f32.mxu0 %v2374_v48  ;;  %v1113_v48 = vld [vmem:[%s16118_s1 + $0x2088] sm:$0xff]  ;;  %v1146_v49 = vld [vmem:[%s16118_s1 + $0x2190] sm:$0xff] }
 0x221   :  { %8586 = vmatpush3.msra.mxu1 %v1065_v50  ;;  %4928 = vmatmul.mubr.f32.vlgmr.msra.gmra.mxu0 %v2366_v38  ;;  %v1115_v38 = vld [vmem:[%s16118_s1 + $0x2098] sm:$0xff]  ;;  %v1097_v50 = vld [vmem:[%s16118_s1 + $0x2008] sm:$0xff] }
 0x222   :  { %8587 = vmatprep.subr.mxu1 %v1080_v52  ;;  %8592 = vmatprep.subr.mxu0 %v1127_v53  ;;  %v1130_v52 = vld [vmem:[%s16118_s1 + $0x2110] sm:$0xff]  ;;  %v2390_v53 = vrot.slane %v2376_v42, %v9997_v51  ;;  %v57_v42 = vld [vmem:[%s16117_s0 + $0x88] sm:$0xff] }
 0x223   :  { %8588 = vmatpush3.msra.mxu1 %v1064_v55  ;;  %4997 = vmatprep.mubr.f32.mxu1 %v2375_v54  ;;  %v1112_v54 = vld [vmem:[%s16118_s1 + $0x2080] sm:$0xff]  ;;  %v1145_v55 = vld [vmem:[%s16118_s1 + $0x2188] sm:$0xff] }
 0x224   :  { %8593 = vmatpush3.msra.mxu0 %v1111_v56  ;;  %4998 = vmatmul.mubr.f32.vlgmr.msra.gmra.mxu1 %v2373_v45  ;;  %v2383_v45 = vrot.slane %v56_v35, %v9997_v51  ;;  %v1199_v35 = vld [vmem:[%s16118_s1 + $0x2338] sm:$0xff] }
 0x225   :  { %8594 = vmatprep.subr.mxu0 %v1126_v57  ;;  %8627 = vmatprep.subr.mxu1 %v1159_v58  ;;  %v1096_v57 = vld [vmem:[%s16118_s1 + $0x2000] sm:$0xff]  ;;  %v1129_v58 = vld [vmem:[%s16118_s1 + $0x2108] sm:$0xff] }
 0x226   :  { %8595 = vmatpush3.msra.mxu0 %v1110_v59  ;;  %8628 = vmatpush3.msra.mxu1 %v1143_v60  ;;  %v2391_v56 = vcombine.high %v2383_v45, %v2383_v45  ;;  %v1144_v59 = vld [vmem:[%s16118_s1 + $0x2180] sm:$0xff]  ;;  %v1191_v60 = vld [vmem:[%s16118_s1 + $0x22f8] sm:$0xff] }
 0x227   :  { %8596 = vmatprep.subr.mxu0 %v1125_v61  ;;  %8629 = vmatprep.subr.mxu1 %v1158_v62  ;;  %v2392_v61 = vcombine.high %v2390_v53, %v2390_v53  ;;  %v1128_v62 = vld [vmem:[%s16118_s1 + $0x2100] sm:$0xff] }
 0x228   :  { %8597 = vmatpush3.msra.mxu0 %v1109_v63  ;;  %8630 = vmatpush3.msra.mxu1 %v1142_v0  ;;  %v1175_v63 = vld [vmem:[%s16118_s1 + $0x2278] sm:$0xff]  ;;  %v1190_v0 = vld [vmem:[%s16118_s1 + $0x22f0] sm:$0xff] }
 0x229   :  { %8598 = vmatprep.subr.mxu0 %v1124_v1  ;;  %8631 = vmatprep.subr.mxu1 %v1157_v2  ;;  %v1223_v1 = vld [vmem:[%s16118_s1 + $0x23f8] sm:$0xff]  ;;  %v1174_v2 = vld [vmem:[%s16118_s1 + $0x2270] sm:$0xff] }
 0x22a   :  { %8599 = vmatpush3.msra.mxu0 %v1108_v3  ;;  %8632 = vmatpush3.msra.mxu1 %v1141_v4  ;;  %v1207_v3 = vld [vmem:[%s16118_s1 + $0x2378] sm:$0xff]  ;;  %v1189_v4 = vld [vmem:[%s16118_s1 + $0x22e8] sm:$0xff] }
 0x22b   :  { %8600 = vmatprep.subr.mxu0 %v1123_v5  ;;  %8633 = vmatprep.subr.mxu1 %v1156_v6  ;;  %v1222_v5 = vld [vmem:[%s16118_s1 + $0x23f0] sm:$0xff]  ;;  %v1173_v6 = vld [vmem:[%s16118_s1 + $0x2268] sm:$0xff] }
 0x22c   :  { %8601 = vmatpush3.msra.mxu0 %v1107_v7  ;;  %8634 = vmatpush3.msra.mxu1 %v1140_v8  ;;  %v1206_v7 = vld [vmem:[%s16118_s1 + $0x2370] sm:$0xff]  ;;  %v1188_v8 = vld [vmem:[%s16118_s1 + $0x22e0] sm:$0xff] }
 0x22d   :  { %8602 = vmatprep.subr.mxu0 %v1122_v9  ;;  %8635 = vmatprep.subr.mxu1 %v1155_v10  ;;  %v1221_v9 = vld [vmem:[%s16118_s1 + $0x23e8] sm:$0xff]  ;;  %v1172_v10 = vld [vmem:[%s16118_s1 + $0x2260] sm:$0xff] }
 0x22e   :  { %8603 = vmatpush3.msra.mxu0 %v1106_v11  ;;  %8636 = vmatpush3.msra.mxu1 %v1139_v12  ;;  %v1205_v11 = vld [vmem:[%s16118_s1 + $0x2368] sm:$0xff]  ;;  %v1187_v12 = vld [vmem:[%s16118_s1 + $0x22d8] sm:$0xff] }
 0x22f   :  { %8604 = vmatprep.subr.mxu0 %v1121_v13  ;;  %8637 = vmatprep.subr.mxu1 %v1154_v14  ;;  %v1220_v13 = vld [vmem:[%s16118_s1 + $0x23e0] sm:$0xff]  ;;  %v1171_v14 = vld [vmem:[%s16118_s1 + $0x2258] sm:$0xff] }
 0x230   :  { %8605 = vmatpush3.msra.mxu0 %v1105_v15  ;;  %8638 = vmatpush3.msra.mxu1 %v1138_v16  ;;  %v1204_v15 = vld [vmem:[%s16118_s1 + $0x2360] sm:$0xff]  ;;  %v1186_v16 = vld [vmem:[%s16118_s1 + $0x22d0] sm:$0xff] }
 0x231   :  { %8606 = vmatprep.subr.mxu0 %v1120_v17  ;;  %8639 = vmatprep.subr.mxu1 %v1153_v18  ;;  %v1219_v17 = vld [vmem:[%s16118_s1 + $0x23d8] sm:$0xff]  ;;  %v1170_v18 = vld [vmem:[%s16118_s1 + $0x2250] sm:$0xff] }
 0x232   :  { %8607 = vmatpush3.msra.mxu0 %v1104_v19  ;;  %8640 = vmatpush3.msra.mxu1 %v1137_v20  ;;  %v1203_v19 = vld [vmem:[%s16118_s1 + $0x2358] sm:$0xff]  ;;  %v1185_v20 = vld [vmem:[%s16118_s1 + $0x22c8] sm:$0xff] }
 0x233   :  { %8608 = vmatprep.subr.mxu0 %v1119_v21  ;;  %8641 = vmatprep.subr.mxu1 %v1152_v22  ;;  %v1218_v21 = vld [vmem:[%s16118_s1 + $0x23d0] sm:$0xff]  ;;  %v1169_v22 = vld [vmem:[%s16118_s1 + $0x2248] sm:$0xff] }
 0x234   :  { %8609 = vmatpush3.msra.mxu0 %v1103_v23  ;;  %8642 = vmatpush3.msra.mxu1 %v1136_v24  ;;  %v1202_v23 = vld [vmem:[%s16118_s1 + $0x2350] sm:$0xff]  ;;  %v1184_v24 = vld [vmem:[%s16118_s1 + $0x22c0] sm:$0xff] }
 0x235   :  { %8610 = vmatprep.subr.mxu0 %v1118_v25  ;;  %8643 = vmatprep.subr.mxu1 %v1151_v26  ;;  %v1217_v25 = vld [vmem:[%s16118_s1 + $0x23c8] sm:$0xff]  ;;  %v1168_v26 = vld [vmem:[%s16118_s1 + $0x2240] sm:$0xff] }
 0x236   :  { %8611 = vmatpush3.msra.mxu0 %v1102_v27  ;;  %8644 = vmatpush3.msra.mxu1 %v1135_v28  ;;  %v1201_v27 = vld [vmem:[%s16118_s1 + $0x2348] sm:$0xff]  ;;  %v1183_v28 = vld [vmem:[%s16118_s1 + $0x22b8] sm:$0xff] }
 0x237   :  { %8612 = vmatprep.subr.mxu0 %v1117_v29  ;;  %8645 = vmatprep.subr.mxu1 %v1150_v30  ;;  %v1216_v29 = vld [vmem:[%s16118_s1 + $0x23c0] sm:$0xff]  ;;  %v1167_v30 = vld [vmem:[%s16118_s1 + $0x2238] sm:$0xff] }
 0x238   :  { %8613 = vmatpush3.msra.mxu0 %v1101_v31  ;;  %8646 = vmatpush3.msra.mxu1 %v1134_v32  ;;  %v1200_v31 = vld [vmem:[%s16118_s1 + $0x2340] sm:$0xff]  ;;  %v1182_v32 = vld [vmem:[%s16118_s1 + $0x22b0] sm:$0xff] }
 0x239   :  { %8614 = vmatprep.subr.mxu0 %v1116_v33  ;;  %8647 = vmatprep.subr.mxu1 %v1149_v34  ;;  %v1215_v33 = vld [vmem:[%s16118_s1 + $0x23b8] sm:$0xff]  ;;  %v1166_v34 = vld [vmem:[%s16118_s1 + $0x2230] sm:$0xff] }
 0x23a   :  { %8615 = vmatpush3.msra.mxu0 %v1100_v36  ;;  %8648 = vmatpush3.msra.mxu1 %v1133_v37  ;;  %v1181_v36 = vld [vmem:[%s16118_s1 + $0x22a8] sm:$0xff]  ;;  %v1214_v37 = vld [vmem:[%s16118_s1 + $0x23b0] sm:$0xff] }
 0x23b   :  { %8616 = vmatprep.subr.mxu0 %v1115_v38  ;;  %8649 = vmatprep.subr.mxu1 %v1148_v39  ;;  %v1165_v38 = vld [vmem:[%s16118_s1 + $0x2228] sm:$0xff]  ;;  %v1198_v39 = vld [vmem:[%s16118_s1 + $0x2330] sm:$0xff] }
 0x23c   :  { %8617 = vmatpush3.msra.mxu0 %v1099_v40  ;;  %8650 = vmatpush3.msra.mxu1 %v1132_v41  ;;  %v1180_v40 = vld [vmem:[%s16118_s1 + $0x22a0] sm:$0xff]  ;;  %v1213_v41 = vld [vmem:[%s16118_s1 + $0x23a8] sm:$0xff] }
 0x23d   :  { %8618 = vmatprep.subr.mxu0 %v1114_v43  ;;  %8651 = vmatprep.subr.mxu1 %v1147_v44  ;;  %v1164_v43 = vld [vmem:[%s16118_s1 + $0x2220] sm:$0xff]  ;;  %v1197_v44 = vld [vmem:[%s16118_s1 + $0x2328] sm:$0xff] }
 0x23e   :  { %8619 = vmatpush3.msra.mxu0 %v1098_v46  ;;  %8652 = vmatpush3.msra.mxu1 %v1131_v47  ;;  %v1212_v46 = vld [vmem:[%s16118_s1 + $0x23a0] sm:$0xff]  ;;  %v1163_v47 = vld [vmem:[%s16118_s1 + $0x2218] sm:$0xff] }
 0x23f   :  { %8620 = vmatprep.subr.mxu0 %v1113_v48  ;;  %8653 = vmatprep.subr.mxu1 %v1146_v49  ;;  %v1196_v48 = vld [vmem:[%s16118_s1 + $0x2320] sm:$0xff]  ;;  %v2393_v49 = vcombine.high %v57_v42, %v57_v42 }
 0x240   :  { %8621 = vmatpush3.msra.mxu0 %v1097_v50  ;;  %8654 = vmatpush3.msra.mxu1 %v1130_v52  ;;  %v1178_v50 = vld [vmem:[%s16118_s1 + $0x2290] sm:$0xff]  ;;  %v1211_v52 = vld [vmem:[%s16118_s1 + $0x2398] sm:$0xff] }
 0x241   :  { %8622 = vmatprep.subr.mxu0 %v1112_v54  ;;  %8655 = vmatprep.subr.mxu1 %v1145_v55  ;;  %v1162_v54 = vld [vmem:[%s16118_s1 + $0x2210] sm:$0xff]  ;;  %v1195_v55 = vld [vmem:[%s16118_s1 + $0x2318] sm:$0xff] }
 0x242   :  { %8623 = vmatpush3.msra.mxu0 %v1096_v57  ;;  %5067 = vmatprep.mubr.f32.mxu0 %v2391_v56  ;;  %v1177_v56 = vld [vmem:[%s16118_s1 + $0x2288] sm:$0xff]  ;;  %v1210_v57 = vld [vmem:[%s16118_s1 + $0x2390] sm:$0xff] }
 0x243   :  { %8656 = vmatpush3.msra.mxu1 %v1129_v58  ;;  %5068 = vmatmul.mubr.f32.vlgmr.msra.gmra.mxu0 %v2383_v45  ;;  %v1179_v45 = vld [vmem:[%s16118_s1 + $0x2298] sm:$0xff]  ;;  %v1161_v58 = vld [vmem:[%s16118_s1 + $0x2208] sm:$0xff] }
 0x244   :  { %8657 = vmatprep.subr.mxu1 %v1144_v59  ;;  %8662 = vmatprep.subr.mxu0 %v1191_v60  ;;  %v1194_v59 = vld [vmem:[%s16118_s1 + $0x2310] sm:$0xff]  ;;  %v2407_v60 = vrot.slane %v2393_v49, %v9997_v51 }
 0x245   :  { %8658 = vmatpush3.msra.mxu1 %v1128_v62  ;;  %5137 = vmatprep.mubr.f32.mxu1 %v2392_v61  ;;  %v1176_v61 = vld [vmem:[%s16118_s1 + $0x2280] sm:$0xff]  ;;  %v1209_v62 = vld [vmem:[%s16118_s1 + $0x2388] sm:$0xff]  ;;  %v58_v49 = vld [vmem:[%s16117_s0 + $0x90] sm:$0xff] }
 0x246   :  { %8663 = vmatpush3.msra.mxu0 %v1175_v63  ;;  %5138 = vmatmul.mubr.f32.vlgmr.msra.gmra.mxu1 %v2390_v53  ;;  %v2400_v53 = vrot.slane %v57_v42, %v9997_v51  ;;  %v1263_v42 = vld [vmem:[%s16118_s1 + $0x2538] sm:$0xff] }
 0x247   :  { %8664 = vmatprep.subr.mxu0 %v1190_v0  ;;  %8697 = vmatprep.subr.mxu1 %v1223_v1  ;;  %v1160_v0 = vld [vmem:[%s16118_s1 + $0x2200] sm:$0xff]  ;;  %v1193_v1 = vld [vmem:[%s16118_s1 + $0x2308] sm:$0xff] }
 0x248   :  { %8665 = vmatpush3.msra.mxu0 %v1174_v2  ;;  %8698 = vmatpush3.msra.mxu1 %v1207_v3  ;;  %v2408_v63 = vcombine.high %v2400_v53, %v2400_v53  ;;  %v1208_v2 = vld [vmem:[%s16118_s1 + $0x2380] sm:$0xff]  ;;  %v1255_v3 = vld [vmem:[%s16118_s1 + $0x24f8] sm:$0xff] }
 0x249   :  { %8666 = vmatprep.subr.mxu0 %v1189_v4  ;;  %8699 = vmatprep.subr.mxu1 %v1222_v5  ;;  %v2409_v4 = vcombine.high %v2407_v60, %v2407_v60  ;;  %v1192_v5 = vld [vmem:[%s16118_s1 + $0x2300] sm:$0xff] }
 0x24a   :  { %8667 = vmatpush3.msra.mxu0 %v1173_v6  ;;  %8700 = vmatpush3.msra.mxu1 %v1206_v7  ;;  %v1239_v6 = vld [vmem:[%s16118_s1 + $0x2478] sm:$0xff]  ;;  %v1254_v7 = vld [vmem:[%s16118_s1 + $0x24f0] sm:$0xff] }
 0x24b   :  { %8668 = vmatprep.subr.mxu0 %v1188_v8  ;;  %8701 = vmatprep.subr.mxu1 %v1221_v9  ;;  %v1287_v8 = vld [vmem:[%s16118_s1 + $0x25f8] sm:$0xff]  ;;  %v1238_v9 = vld [vmem:[%s16118_s1 + $0x2470] sm:$0xff] }
 0x24c   :  { %8669 = vmatpush3.msra.mxu0 %v1172_v10  ;;  %8702 = vmatpush3.msra.mxu1 %v1205_v11  ;;  %v1271_v10 = vld [vmem:[%s16118_s1 + $0x2578] sm:$0xff]  ;;  %v1253_v11 = vld [vmem:[%s16118_s1 + $0x24e8] sm:$0xff] }
 0x24d   :  { %8670 = vmatprep.subr.mxu0 %v1187_v12  ;;  %8703 = vmatprep.subr.mxu1 %v1220_v13  ;;  %v1286_v12 = vld [vmem:[%s16118_s1 + $0x25f0] sm:$0xff]  ;;  %v1237_v13 = vld [vmem:[%s16118_s1 + $0x2468] sm:$0xff] }
 0x24e   :  { %8671 = vmatpush3.msra.mxu0 %v1171_v14  ;;  %8704 = vmatpush3.msra.mxu1 %v1204_v15  ;;  %v1270_v14 = vld [vmem:[%s16118_s1 + $0x2570] sm:$0xff]  ;;  %v1252_v15 = vld [vmem:[%s16118_s1 + $0x24e0] sm:$0xff] }
 0x24f   :  { %8672 = vmatprep.subr.mxu0 %v1186_v16  ;;  %8705 = vmatprep.subr.mxu1 %v1219_v17  ;;  %v1285_v16 = vld [vmem:[%s16118_s1 + $0x25e8] sm:$0xff]  ;;  %v1236_v17 = vld [vmem:[%s16118_s1 + $0x2460] sm:$0xff] }
 0x250   :  { %8673 = vmatpush3.msra.mxu0 %v1170_v18  ;;  %8706 = vmatpush3.msra.mxu1 %v1203_v19  ;;  %v1269_v18 = vld [vmem:[%s16118_s1 + $0x2568] sm:$0xff]  ;;  %v1251_v19 = vld [vmem:[%s16118_s1 + $0x24d8] sm:$0xff] }
 0x251   :  { %8674 = vmatprep.subr.mxu0 %v1185_v20  ;;  %8707 = vmatprep.subr.mxu1 %v1218_v21  ;;  %v1284_v20 = vld [vmem:[%s16118_s1 + $0x25e0] sm:$0xff]  ;;  %v1235_v21 = vld [vmem:[%s16118_s1 + $0x2458] sm:$0xff] }
 0x252   :  { %8675 = vmatpush3.msra.mxu0 %v1169_v22  ;;  %8708 = vmatpush3.msra.mxu1 %v1202_v23  ;;  %v1268_v22 = vld [vmem:[%s16118_s1 + $0x2560] sm:$0xff]  ;;  %v1250_v23 = vld [vmem:[%s16118_s1 + $0x24d0] sm:$0xff] }
 0x253   :  { %8676 = vmatprep.subr.mxu0 %v1184_v24  ;;  %8709 = vmatprep.subr.mxu1 %v1217_v25  ;;  %v1283_v24 = vld [vmem:[%s16118_s1 + $0x25d8] sm:$0xff]  ;;  %v1234_v25 = vld [vmem:[%s16118_s1 + $0x2450] sm:$0xff] }
 0x254   :  { %8677 = vmatpush3.msra.mxu0 %v1168_v26  ;;  %8710 = vmatpush3.msra.mxu1 %v1201_v27  ;;  %v1267_v26 = vld [vmem:[%s16118_s1 + $0x2558] sm:$0xff]  ;;  %v1249_v27 = vld [vmem:[%s16118_s1 + $0x24c8] sm:$0xff] }
 0x255   :  { %8678 = vmatprep.subr.mxu0 %v1183_v28  ;;  %8711 = vmatprep.subr.mxu1 %v1216_v29  ;;  %v1282_v28 = vld [vmem:[%s16118_s1 + $0x25d0] sm:$0xff]  ;;  %v1233_v29 = vld [vmem:[%s16118_s1 + $0x2448] sm:$0xff] }
 0x256   :  { %8679 = vmatpush3.msra.mxu0 %v1167_v30  ;;  %8712 = vmatpush3.msra.mxu1 %v1200_v31  ;;  %v1266_v30 = vld [vmem:[%s16118_s1 + $0x2550] sm:$0xff]  ;;  %v1248_v31 = vld [vmem:[%s16118_s1 + $0x24c0] sm:$0xff] }
 0x257   :  { %8680 = vmatprep.subr.mxu0 %v1182_v32  ;;  %8713 = vmatprep.subr.mxu1 %v1215_v33  ;;  %v1281_v32 = vld [vmem:[%s16118_s1 + $0x25c8] sm:$0xff]  ;;  %v1232_v33 = vld [vmem:[%s16118_s1 + $0x2440] sm:$0xff] }
 0x258   :  { %8681 = vmatpush3.msra.mxu0 %v1166_v34  ;;  %8714 = vmatpush3.msra.mxu1 %v1199_v35  ;;  %v1265_v34 = vld [vmem:[%s16118_s1 + $0x2548] sm:$0xff]  ;;  %v1247_v35 = vld [vmem:[%s16118_s1 + $0x24b8] sm:$0xff] }
 0x259   :  { %8682 = vmatprep.subr.mxu0 %v1181_v36  ;;  %8715 = vmatprep.subr.mxu1 %v1214_v37  ;;  %v1280_v36 = vld [vmem:[%s16118_s1 + $0x25c0] sm:$0xff]  ;;  %v1231_v37 = vld [vmem:[%s16118_s1 + $0x2438] sm:$0xff] }
 0x25a   :  { %8683 = vmatpush3.msra.mxu0 %v1165_v38  ;;  %8716 = vmatpush3.msra.mxu1 %v1198_v39  ;;  %v1264_v38 = vld [vmem:[%s16118_s1 + $0x2540] sm:$0xff]  ;;  %v1246_v39 = vld [vmem:[%s16118_s1 + $0x24b0] sm:$0xff] }
 0x25b   :  { %8684 = vmatprep.subr.mxu0 %v1180_v40  ;;  %8717 = vmatprep.subr.mxu1 %v1213_v41  ;;  %v1279_v40 = vld [vmem:[%s16118_s1 + $0x25b8] sm:$0xff]  ;;  %v1230_v41 = vld [vmem:[%s16118_s1 + $0x2430] sm:$0xff] }
 0x25c   :  { %8685 = vmatpush3.msra.mxu0 %v1164_v43  ;;  %8718 = vmatpush3.msra.mxu1 %v1197_v44  ;;  %v1245_v43 = vld [vmem:[%s16118_s1 + $0x24a8] sm:$0xff]  ;;  %v1278_v44 = vld [vmem:[%s16118_s1 + $0x25b0] sm:$0xff] }
 0x25d   :  { %8686 = vmatprep.subr.mxu0 %v1179_v45  ;;  %8719 = vmatprep.subr.mxu1 %v1212_v46  ;;  %v1229_v45 = vld [vmem:[%s16118_s1 + $0x2428] sm:$0xff]  ;;  %v1262_v46 = vld [vmem:[%s16118_s1 + $0x2530] sm:$0xff] }
 0x25e   :  { %8687 = vmatpush3.msra.mxu0 %v1163_v47  ;;  %8720 = vmatpush3.msra.mxu1 %v1196_v48  ;;  %v1244_v47 = vld [vmem:[%s16118_s1 + $0x24a0] sm:$0xff]  ;;  %v1277_v48 = vld [vmem:[%s16118_s1 + $0x25a8] sm:$0xff] }
 0x25f   :  { %8688 = vmatprep.subr.mxu0 %v1178_v50  ;;  %8721 = vmatprep.subr.mxu1 %v1211_v52  ;;  %v1228_v50 = vld [vmem:[%s16118_s1 + $0x2420] sm:$0xff]  ;;  %v1261_v52 = vld [vmem:[%s16118_s1 + $0x2528] sm:$0xff] }
 0x260   :  { %8689 = vmatpush3.msra.mxu0 %v1162_v54  ;;  %8722 = vmatpush3.msra.mxu1 %v1195_v55  ;;  %v1276_v54 = vld [vmem:[%s16118_s1 + $0x25a0] sm:$0xff]  ;;  %v1227_v55 = vld [vmem:[%s16118_s1 + $0x2418] sm:$0xff] }
 0x261   :  { %8690 = vmatprep.subr.mxu0 %v1177_v56  ;;  %8723 = vmatprep.subr.mxu1 %v1210_v57  ;;  %v1260_v56 = vld [vmem:[%s16118_s1 + $0x2520] sm:$0xff]  ;;  %v2410_v57 = vcombine.high %v58_v49, %v58_v49 }
 0x262   :  { %8691 = vmatpush3.msra.mxu0 %v1161_v58  ;;  %8724 = vmatpush3.msra.mxu1 %v1194_v59  ;;  %v1242_v58 = vld [vmem:[%s16118_s1 + $0x2490] sm:$0xff]  ;;  %v1275_v59 = vld [vmem:[%s16118_s1 + $0x2598] sm:$0xff] }
 0x263   :  { %8692 = vmatprep.subr.mxu0 %v1176_v61  ;;  %8725 = vmatprep.subr.mxu1 %v1209_v62  ;;  %v1226_v61 = vld [vmem:[%s16118_s1 + $0x2410] sm:$0xff]  ;;  %v1259_v62 = vld [vmem:[%s16118_s1 + $0x2518] sm:$0xff] }
 0x264   :  { %8693 = vmatpush3.msra.mxu0 %v1160_v0  ;;  %5207 = vmatprep.mubr.f32.mxu0 %v2408_v63  ;;  %v1241_v63 = vld [vmem:[%s16118_s1 + $0x2488] sm:$0xff]  ;;  %v1274_v0 = vld [vmem:[%s16118_s1 + $0x2590] sm:$0xff] }
 0x265   :  { %8726 = vmatpush3.msra.mxu1 %v1193_v1  ;;  %5208 = vmatmul.mubr.f32.vlgmr.msra.gmra.mxu0 %v2400_v53  ;;  %v1243_v53 = vld [vmem:[%s16118_s1 + $0x2498] sm:$0xff]  ;;  %v1225_v1 = vld [vmem:[%s16118_s1 + $0x2408] sm:$0xff] }
 0x266   :  { %8727 = vmatprep.subr.mxu1 %v1208_v2  ;;  %8732 = vmatprep.subr.mxu0 %v1255_v3  ;;  %v1258_v2 = vld [vmem:[%s16118_s1 + $0x2510] sm:$0xff]  ;;  %v2424_v3 = vrot.slane %v2410_v57, %v9997_v51  ;;  %v59_v57 = vld [vmem:[%s16117_s0 + $0x98] sm:$0xff] }
 0x267   :  { %8728 = vmatpush3.msra.mxu1 %v1192_v5  ;;  %5277 = vmatprep.mubr.f32.mxu1 %v2409_v4  ;;  %v1240_v4 = vld [vmem:[%s16118_s1 + $0x2480] sm:$0xff]  ;;  %v1273_v5 = vld [vmem:[%s16118_s1 + $0x2588] sm:$0xff] }
 0x268   :  { %8733 = vmatpush3.msra.mxu0 %v1239_v6  ;;  %5278 = vmatmul.mubr.f32.vlgmr.msra.gmra.mxu1 %v2407_v60  ;;  %v2417_v60 = vrot.slane %v58_v49, %v9997_v51  ;;  %v1327_v49 = vld [vmem:[%s16118_s1 + $0x2738] sm:$0xff] }
 0x269   :  { %8734 = vmatprep.subr.mxu0 %v1254_v7  ;;  %8767 = vmatprep.subr.mxu1 %v1287_v8  ;;  %v1224_v7 = vld [vmem:[%s16118_s1 + $0x2400] sm:$0xff]  ;;  %v1257_v8 = vld [vmem:[%s16118_s1 + $0x2508] sm:$0xff] }
 0x26a   :  { %8735 = vmatpush3.msra.mxu0 %v1238_v9  ;;  %8768 = vmatpush3.msra.mxu1 %v1271_v10  ;;  %v2425_v6 = vcombine.high %v2417_v60, %v2417_v60  ;;  %v1272_v9 = vld [vmem:[%s16118_s1 + $0x2580] sm:$0xff]  ;;  %v1319_v10 = vld [vmem:[%s16118_s1 + $0x26f8] sm:$0xff] }
 0x26b   :  { %8736 = vmatprep.subr.mxu0 %v1253_v11  ;;  %8769 = vmatprep.subr.mxu1 %v1286_v12  ;;  %v2426_v11 = vcombine.high %v2424_v3, %v2424_v3  ;;  %v1256_v12 = vld [vmem:[%s16118_s1 + $0x2500] sm:$0xff] }
 0x26c   :  { %8737 = vmatpush3.msra.mxu0 %v1237_v13  ;;  %8770 = vmatpush3.msra.mxu1 %v1270_v14  ;;  %v1303_v13 = vld [vmem:[%s16118_s1 + $0x2678] sm:$0xff]  ;;  %v1318_v14 = vld [vmem:[%s16118_s1 + $0x26f0] sm:$0xff] }
 0x26d   :  { %8738 = vmatprep.subr.mxu0 %v1252_v15  ;;  %8771 = vmatprep.subr.mxu1 %v1285_v16  ;;  %v1351_v15 = vld [vmem:[%s16118_s1 + $0x27f8] sm:$0xff]  ;;  %v1302_v16 = vld [vmem:[%s16118_s1 + $0x2670] sm:$0xff] }
 0x26e   :  { %8739 = vmatpush3.msra.mxu0 %v1236_v17  ;;  %8772 = vmatpush3.msra.mxu1 %v1269_v18  ;;  %v1335_v17 = vld [vmem:[%s16118_s1 + $0x2778] sm:$0xff]  ;;  %v1317_v18 = vld [vmem:[%s16118_s1 + $0x26e8] sm:$0xff] }
 0x26f   :  { %8740 = vmatprep.subr.mxu0 %v1251_v19  ;;  %8773 = vmatprep.subr.mxu1 %v1284_v20  ;;  %v1350_v19 = vld [vmem:[%s16118_s1 + $0x27f0] sm:$0xff]  ;;  %v1301_v20 = vld [vmem:[%s16118_s1 + $0x2668] sm:$0xff] }
 0x270   :  { %8741 = vmatpush3.msra.mxu0 %v1235_v21  ;;  %8774 = vmatpush3.msra.mxu1 %v1268_v22  ;;  %v1334_v21 = vld [vmem:[%s16118_s1 + $0x2770] sm:$0xff]  ;;  %v1316_v22 = vld [vmem:[%s16118_s1 + $0x26e0] sm:$0xff] }
 0x271   :  { %8742 = vmatprep.subr.mxu0 %v1250_v23  ;;  %8775 = vmatprep.subr.mxu1 %v1283_v24  ;;  %v1349_v23 = vld [vmem:[%s16118_s1 + $0x27e8] sm:$0xff]  ;;  %v1300_v24 = vld [vmem:[%s16118_s1 + $0x2660] sm:$0xff] }
 0x272   :  { %8743 = vmatpush3.msra.mxu0 %v1234_v25  ;;  %8776 = vmatpush3.msra.mxu1 %v1267_v26  ;;  %v1333_v25 = vld [vmem:[%s16118_s1 + $0x2768] sm:$0xff]  ;;  %v1315_v26 = vld [vmem:[%s16118_s1 + $0x26d8] sm:$0xff] }
 0x273   :  { %8744 = vmatprep.subr.mxu0 %v1249_v27  ;;  %8777 = vmatprep.subr.mxu1 %v1282_v28  ;;  %v1348_v27 = vld [vmem:[%s16118_s1 + $0x27e0] sm:$0xff]  ;;  %v1299_v28 = vld [vmem:[%s16118_s1 + $0x2658] sm:$0xff] }
 0x274   :  { %8745 = vmatpush3.msra.mxu0 %v1233_v29  ;;  %8778 = vmatpush3.msra.mxu1 %v1266_v30  ;;  %v1332_v29 = vld [vmem:[%s16118_s1 + $0x2760] sm:$0xff]  ;;  %v1314_v30 = vld [vmem:[%s16118_s1 + $0x26d0] sm:$0xff] }
 0x275   :  { %8746 = vmatprep.subr.mxu0 %v1248_v31  ;;  %8779 = vmatprep.subr.mxu1 %v1281_v32  ;;  %v1347_v31 = vld [vmem:[%s16118_s1 + $0x27d8] sm:$0xff]  ;;  %v1298_v32 = vld [vmem:[%s16118_s1 + $0x2650] sm:$0xff] }
 0x276   :  { %8747 = vmatpush3.msra.mxu0 %v1232_v33  ;;  %8780 = vmatpush3.msra.mxu1 %v1265_v34  ;;  %v1331_v33 = vld [vmem:[%s16118_s1 + $0x2758] sm:$0xff]  ;;  %v1313_v34 = vld [vmem:[%s16118_s1 + $0x26c8] sm:$0xff] }
 0x277   :  { %8748 = vmatprep.subr.mxu0 %v1247_v35  ;;  %8781 = vmatprep.subr.mxu1 %v1280_v36  ;;  %v1346_v35 = vld [vmem:[%s16118_s1 + $0x27d0] sm:$0xff]  ;;  %v1297_v36 = vld [vmem:[%s16118_s1 + $0x2648] sm:$0xff] }
 0x278   :  { %8749 = vmatpush3.msra.mxu0 %v1231_v37  ;;  %8782 = vmatpush3.msra.mxu1 %v1264_v38  ;;  %v1330_v37 = vld [vmem:[%s16118_s1 + $0x2750] sm:$0xff]  ;;  %v1312_v38 = vld [vmem:[%s16118_s1 + $0x26c0] sm:$0xff] }
 0x279   :  { %8750 = vmatprep.subr.mxu0 %v1246_v39  ;;  %8783 = vmatprep.subr.mxu1 %v1279_v40  ;;  %v1345_v39 = vld [vmem:[%s16118_s1 + $0x27c8] sm:$0xff]  ;;  %v1296_v40 = vld [vmem:[%s16118_s1 + $0x2640] sm:$0xff] }
 0x27a   :  { %8751 = vmatpush3.msra.mxu0 %v1230_v41  ;;  %8784 = vmatpush3.msra.mxu1 %v1263_v42  ;;  %v1329_v41 = vld [vmem:[%s16118_s1 + $0x2748] sm:$0xff]  ;;  %v1311_v42 = vld [vmem:[%s16118_s1 + $0x26b8] sm:$0xff] }
 0x27b   :  { %8752 = vmatprep.subr.mxu0 %v1245_v43  ;;  %8785 = vmatprep.subr.mxu1 %v1278_v44  ;;  %v1344_v43 = vld [vmem:[%s16118_s1 + $0x27c0] sm:$0xff]  ;;  %v1295_v44 = vld [vmem:[%s16118_s1 + $0x2638] sm:$0xff] }
 0x27c   :  { %8753 = vmatpush3.msra.mxu0 %v1229_v45  ;;  %8786 = vmatpush3.msra.mxu1 %v1262_v46  ;;  %v1328_v45 = vld [vmem:[%s16118_s1 + $0x2740] sm:$0xff]  ;;  %v1310_v46 = vld [vmem:[%s16118_s1 + $0x26b0] sm:$0xff] }
 0x27d   :  { %8754 = vmatprep.subr.mxu0 %v1244_v47  ;;  %8787 = vmatprep.subr.mxu1 %v1277_v48  ;;  %v1343_v47 = vld [vmem:[%s16118_s1 + $0x27b8] sm:$0xff]  ;;  %v1294_v48 = vld [vmem:[%s16118_s1 + $0x2630] sm:$0xff] }
 0x27e   :  { %8755 = vmatpush3.msra.mxu0 %v1228_v50  ;;  %8788 = vmatpush3.msra.mxu1 %v1261_v52  ;;  %v1309_v50 = vld [vmem:[%s16118_s1 + $0x26a8] sm:$0xff]  ;;  %v1342_v52 = vld [vmem:[%s16118_s1 + $0x27b0] sm:$0xff] }
 0x27f   :  { %8756 = vmatprep.subr.mxu0 %v1243_v53  ;;  %8789 = vmatprep.subr.mxu1 %v1276_v54  ;;  %v1293_v53 = vld [vmem:[%s16118_s1 + $0x2628] sm:$0xff]  ;;  %v1326_v54 = vld [vmem:[%s16118_s1 + $0x2730] sm:$0xff] }
 0x280   :  { %8757 = vmatpush3.msra.mxu0 %v1227_v55  ;;  %8790 = vmatpush3.msra.mxu1 %v1260_v56  ;;  %v1308_v55 = vld [vmem:[%s16118_s1 + $0x26a0] sm:$0xff]  ;;  %v1341_v56 = vld [vmem:[%s16118_s1 + $0x27a8] sm:$0xff] }
 0x281   :  { %8758 = vmatprep.subr.mxu0 %v1242_v58  ;;  %8791 = vmatprep.subr.mxu1 %v1275_v59  ;;  %v1292_v58 = vld [vmem:[%s16118_s1 + $0x2620] sm:$0xff]  ;;  %v1325_v59 = vld [vmem:[%s16118_s1 + $0x2728] sm:$0xff] }
 0x282   :  { %8759 = vmatpush3.msra.mxu0 %v1226_v61  ;;  %8792 = vmatpush3.msra.mxu1 %v1259_v62  ;;  %v1340_v61 = vld [vmem:[%s16118_s1 + $0x27a0] sm:$0xff]  ;;  %v1291_v62 = vld [vmem:[%s16118_s1 + $0x2618] sm:$0xff] }
 0x283   :  { %8760 = vmatprep.subr.mxu0 %v1241_v63  ;;  %8793 = vmatprep.subr.mxu1 %v1274_v0  ;;  %v1324_v63 = vld [vmem:[%s16118_s1 + $0x2720] sm:$0xff]  ;;  %v2427_v0 = vcombine.high %v59_v57, %v59_v57 }
 0x284   :  { %8761 = vmatpush3.msra.mxu0 %v1225_v1  ;;  %8794 = vmatpush3.msra.mxu1 %v1258_v2  ;;  %v1306_v1 = vld [vmem:[%s16118_s1 + $0x2690] sm:$0xff]  ;;  %v1339_v2 = vld [vmem:[%s16118_s1 + $0x2798] sm:$0xff] }
 0x285   :  { %8762 = vmatprep.subr.mxu0 %v1240_v4  ;;  %8795 = vmatprep.subr.mxu1 %v1273_v5  ;;  %v1290_v4 = vld [vmem:[%s16118_s1 + $0x2610] sm:$0xff]  ;;  %v1323_v5 = vld [vmem:[%s16118_s1 + $0x2718] sm:$0xff] }
 0x286   :  { %8763 = vmatpush3.msra.mxu0 %v1224_v7  ;;  %5347 = vmatprep.mubr.f32.mxu0 %v2425_v6  ;;  %v1305_v6 = vld [vmem:[%s16118_s1 + $0x2688] sm:$0xff]  ;;  %v1338_v7 = vld [vmem:[%s16118_s1 + $0x2790] sm:$0xff] }
 0x287   :  { %8796 = vmatpush3.msra.mxu1 %v1257_v8  ;;  %5348 = vmatmul.mubr.f32.vlgmr.msra.gmra.mxu0 %v2417_v60  ;;  %v1307_v60 = vld [vmem:[%s16118_s1 + $0x2698] sm:$0xff]  ;;  %v1289_v8 = vld [vmem:[%s16118_s1 + $0x2608] sm:$0xff] }
 0x288   :  { %8797 = vmatprep.subr.mxu1 %v1272_v9  ;;  %8802 = vmatprep.subr.mxu0 %v1319_v10  ;;  %v1322_v9 = vld [vmem:[%s16118_s1 + $0x2710] sm:$0xff]  ;;  %v2441_v10 = vrot.slane %v2427_v0, %v9997_v51  ;;  %v60_v0 = vld [vmem:[%s16117_s0 + $0xa0] sm:$0xff] }
 0x289   :  { %8798 = vmatpush3.msra.mxu1 %v1256_v12  ;;  %5417 = vmatprep.mubr.f32.mxu1 %v2426_v11  ;;  %v1304_v11 = vld [vmem:[%s16118_s1 + $0x2680] sm:$0xff]  ;;  %v1337_v12 = vld [vmem:[%s16118_s1 + $0x2788] sm:$0xff] }
 0x28a   :  { %8803 = vmatpush3.msra.mxu0 %v1303_v13  ;;  %5418 = vmatmul.mubr.f32.vlgmr.msra.gmra.mxu1 %v2424_v3  ;;  %v2434_v3 = vrot.slane %v59_v57, %v9997_v51  ;;  %v1391_v57 = vld [vmem:[%s16118_s1 + $0x2938] sm:$0xff] }
 0x28b   :  { %8804 = vmatprep.subr.mxu0 %v1318_v14  ;;  %8837 = vmatprep.subr.mxu1 %v1351_v15  ;;  %v1288_v14 = vld [vmem:[%s16118_s1 + $0x2600] sm:$0xff]  ;;  %v1321_v15 = vld [vmem:[%s16118_s1 + $0x2708] sm:$0xff] }
 0x28c   :  { %8805 = vmatpush3.msra.mxu0 %v1302_v16  ;;  %8838 = vmatpush3.msra.mxu1 %v1335_v17  ;;  %v2442_v13 = vcombine.high %v2434_v3, %v2434_v3  ;;  %v1336_v16 = vld [vmem:[%s16118_s1 + $0x2780] sm:$0xff]  ;;  %v1383_v17 = vld [vmem:[%s16118_s1 + $0x28f8] sm:$0xff] }
 0x28d   :  { %8806 = vmatprep.subr.mxu0 %v1317_v18  ;;  %8839 = vmatprep.subr.mxu1 %v1350_v19  ;;  %v2443_v18 = vcombine.high %v2441_v10, %v2441_v10  ;;  %v1320_v19 = vld [vmem:[%s16118_s1 + $0x2700] sm:$0xff] }
 0x28e   :  { %8807 = vmatpush3.msra.mxu0 %v1301_v20  ;;  %8840 = vmatpush3.msra.mxu1 %v1334_v21  ;;  %v1367_v20 = vld [vmem:[%s16118_s1 + $0x2878] sm:$0xff]  ;;  %v1382_v21 = vld [vmem:[%s16118_s1 + $0x28f0] sm:$0xff] }
 0x28f   :  { %8808 = vmatprep.subr.mxu0 %v1316_v22  ;;  %8841 = vmatprep.subr.mxu1 %v1349_v23  ;;  %v1415_v22 = vld [vmem:[%s16118_s1 + $0x29f8] sm:$0xff]  ;;  %v1366_v23 = vld [vmem:[%s16118_s1 + $0x2870] sm:$0xff] }
 0x290   :  { %8809 = vmatpush3.msra.mxu0 %v1300_v24  ;;  %8842 = vmatpush3.msra.mxu1 %v1333_v25  ;;  %v1399_v24 = vld [vmem:[%s16118_s1 + $0x2978] sm:$0xff]  ;;  %v1381_v25 = vld [vmem:[%s16118_s1 + $0x28e8] sm:$0xff] }
 0x291   :  { %8810 = vmatprep.subr.mxu0 %v1315_v26  ;;  %8843 = vmatprep.subr.mxu1 %v1348_v27  ;;  %v1414_v26 = vld [vmem:[%s16118_s1 + $0x29f0] sm:$0xff]  ;;  %v1365_v27 = vld [vmem:[%s16118_s1 + $0x2868] sm:$0xff] }
 0x292   :  { %8811 = vmatpush3.msra.mxu0 %v1299_v28  ;;  %8844 = vmatpush3.msra.mxu1 %v1332_v29  ;;  %v1398_v28 = vld [vmem:[%s16118_s1 + $0x2970] sm:$0xff]  ;;  %v1380_v29 = vld [vmem:[%s16118_s1 + $0x28e0] sm:$0xff] }
 0x293   :  { %8812 = vmatprep.subr.mxu0 %v1314_v30  ;;  %8845 = vmatprep.subr.mxu1 %v1347_v31  ;;  %v1413_v30 = vld [vmem:[%s16118_s1 + $0x29e8] sm:$0xff]  ;;  %v1364_v31 = vld [vmem:[%s16118_s1 + $0x2860] sm:$0xff] }
 0x294   :  { %8813 = vmatpush3.msra.mxu0 %v1298_v32  ;;  %8846 = vmatpush3.msra.mxu1 %v1331_v33  ;;  %v1397_v32 = vld [vmem:[%s16118_s1 + $0x2968] sm:$0xff]  ;;  %v1379_v33 = vld [vmem:[%s16118_s1 + $0x28d8] sm:$0xff] }
 0x295   :  { %8814 = vmatprep.subr.mxu0 %v1313_v34  ;;  %8847 = vmatprep.subr.mxu1 %v1346_v35  ;;  %v1412_v34 = vld [vmem:[%s16118_s1 + $0x29e0] sm:$0xff]  ;;  %v1363_v35 = vld [vmem:[%s16118_s1 + $0x2858] sm:$0xff] }
 0x296   :  { %8815 = vmatpush3.msra.mxu0 %v1297_v36  ;;  %8848 = vmatpush3.msra.mxu1 %v1330_v37  ;;  %v1396_v36 = vld [vmem:[%s16118_s1 + $0x2960] sm:$0xff]  ;;  %v1378_v37 = vld [vmem:[%s16118_s1 + $0x28d0] sm:$0xff] }
 0x297   :  { %8816 = vmatprep.subr.mxu0 %v1312_v38  ;;  %8849 = vmatprep.subr.mxu1 %v1345_v39  ;;  %v1411_v38 = vld [vmem:[%s16118_s1 + $0x29d8] sm:$0xff]  ;;  %v1362_v39 = vld [vmem:[%s16118_s1 + $0x2850] sm:$0xff] }
 0x298   :  { %8817 = vmatpush3.msra.mxu0 %v1296_v40  ;;  %8850 = vmatpush3.msra.mxu1 %v1329_v41  ;;  %v1395_v40 = vld [vmem:[%s16118_s1 + $0x2958] sm:$0xff]  ;;  %v1377_v41 = vld [vmem:[%s16118_s1 + $0x28c8] sm:$0xff] }
 0x299   :  { %8818 = vmatprep.subr.mxu0 %v1311_v42  ;;  %8851 = vmatprep.subr.mxu1 %v1344_v43  ;;  %v1410_v42 = vld [vmem:[%s16118_s1 + $0x29d0] sm:$0xff]  ;;  %v1361_v43 = vld [vmem:[%s16118_s1 + $0x2848] sm:$0xff] }
 0x29a   :  { %8819 = vmatpush3.msra.mxu0 %v1295_v44  ;;  %8852 = vmatpush3.msra.mxu1 %v1328_v45  ;;  %v1394_v44 = vld [vmem:[%s16118_s1 + $0x2950] sm:$0xff]  ;;  %v1376_v45 = vld [vmem:[%s16118_s1 + $0x28c0] sm:$0xff] }
 0x29b   :  { %8820 = vmatprep.subr.mxu0 %v1310_v46  ;;  %8853 = vmatprep.subr.mxu1 %v1343_v47  ;;  %v1409_v46 = vld [vmem:[%s16118_s1 + $0x29c8] sm:$0xff]  ;;  %v1360_v47 = vld [vmem:[%s16118_s1 + $0x2840] sm:$0xff] }
 0x29c   :  { %8821 = vmatpush3.msra.mxu0 %v1294_v48  ;;  %8854 = vmatpush3.msra.mxu1 %v1327_v49  ;;  %v1393_v48 = vld [vmem:[%s16118_s1 + $0x2948] sm:$0xff]  ;;  %v1375_v49 = vld [vmem:[%s16118_s1 + $0x28b8] sm:$0xff] }
 0x29d   :  { %8822 = vmatprep.subr.mxu0 %v1309_v50  ;;  %8855 = vmatprep.subr.mxu1 %v1342_v52  ;;  %v1408_v50 = vld [vmem:[%s16118_s1 + $0x29c0] sm:$0xff]  ;;  %v1359_v52 = vld [vmem:[%s16118_s1 + $0x2838] sm:$0xff] }
 0x29e   :  { %8823 = vmatpush3.msra.mxu0 %v1293_v53  ;;  %8856 = vmatpush3.msra.mxu1 %v1326_v54  ;;  %v1392_v53 = vld [vmem:[%s16118_s1 + $0x2940] sm:$0xff]  ;;  %v1374_v54 = vld [vmem:[%s16118_s1 + $0x28b0] sm:$0xff] }
 0x29f   :  { %8824 = vmatprep.subr.mxu0 %v1308_v55  ;;  %8857 = vmatprep.subr.mxu1 %v1341_v56  ;;  %v1407_v55 = vld [vmem:[%s16118_s1 + $0x29b8] sm:$0xff]  ;;  %v1358_v56 = vld [vmem:[%s16118_s1 + $0x2830] sm:$0xff] }
 0x2a0   :  { %8825 = vmatpush3.msra.mxu0 %v1292_v58  ;;  %8858 = vmatpush3.msra.mxu1 %v1325_v59  ;;  %v1373_v58 = vld [vmem:[%s16118_s1 + $0x28a8] sm:$0xff]  ;;  %v1406_v59 = vld [vmem:[%s16118_s1 + $0x29b0] sm:$0xff] }
 0x2a1   :  { %8826 = vmatprep.subr.mxu0 %v1307_v60  ;;  %8859 = vmatprep.subr.mxu1 %v1340_v61  ;;  %v1357_v60 = vld [vmem:[%s16118_s1 + $0x2828] sm:$0xff]  ;;  %v1390_v61 = vld [vmem:[%s16118_s1 + $0x2930] sm:$0xff] }
 0x2a2   :  { %8827 = vmatpush3.msra.mxu0 %v1291_v62  ;;  %8860 = vmatpush3.msra.mxu1 %v1324_v63  ;;  %v1372_v62 = vld [vmem:[%s16118_s1 + $0x28a0] sm:$0xff]  ;;  %v1405_v63 = vld [vmem:[%s16118_s1 + $0x29a8] sm:$0xff] }
 0x2a3   :  { %8828 = vmatprep.subr.mxu0 %v1306_v1  ;;  %8861 = vmatprep.subr.mxu1 %v1339_v2  ;;  %v1356_v1 = vld [vmem:[%s16118_s1 + $0x2820] sm:$0xff]  ;;  %v1389_v2 = vld [vmem:[%s16118_s1 + $0x2928] sm:$0xff] }
 0x2a4   :  { %8829 = vmatpush3.msra.mxu0 %v1290_v4  ;;  %8862 = vmatpush3.msra.mxu1 %v1323_v5  ;;  %v1404_v4 = vld [vmem:[%s16118_s1 + $0x29a0] sm:$0xff]  ;;  %v1355_v5 = vld [vmem:[%s16118_s1 + $0x2818] sm:$0xff] }
 0x2a5   :  { %8830 = vmatprep.subr.mxu0 %v1305_v6  ;;  %8863 = vmatprep.subr.mxu1 %v1338_v7  ;;  %v1388_v6 = vld [vmem:[%s16118_s1 + $0x2920] sm:$0xff]  ;;  %v2444_v7 = vcombine.high %v60_v0, %v60_v0 }
 0x2a6   :  { %8831 = vmatpush3.msra.mxu0 %v1289_v8  ;;  %8864 = vmatpush3.msra.mxu1 %v1322_v9  ;;  %v1370_v8 = vld [vmem:[%s16118_s1 + $0x2890] sm:$0xff]  ;;  %v1403_v9 = vld [vmem:[%s16118_s1 + $0x2998] sm:$0xff] }
 0x2a7   :  { %8832 = vmatprep.subr.mxu0 %v1304_v11  ;;  %8865 = vmatprep.subr.mxu1 %v1337_v12  ;;  %v1354_v11 = vld [vmem:[%s16118_s1 + $0x2810] sm:$0xff]  ;;  %v1387_v12 = vld [vmem:[%s16118_s1 + $0x2918] sm:$0xff] }
 0x2a8   :  { %8833 = vmatpush3.msra.mxu0 %v1288_v14  ;;  %5487 = vmatprep.mubr.f32.mxu0 %v2442_v13  ;;  %v1369_v13 = vld [vmem:[%s16118_s1 + $0x2888] sm:$0xff]  ;;  %v1402_v14 = vld [vmem:[%s16118_s1 + $0x2990] sm:$0xff] }
 0x2a9   :  { %8866 = vmatpush3.msra.mxu1 %v1321_v15  ;;  %5488 = vmatmul.mubr.f32.vlgmr.msra.gmra.mxu0 %v2434_v3  ;;  %v1371_v3 = vld [vmem:[%s16118_s1 + $0x2898] sm:$0xff]  ;;  %v1353_v15 = vld [vmem:[%s16118_s1 + $0x2808] sm:$0xff] }
 0x2aa   :  { %8867 = vmatprep.subr.mxu1 %v1336_v16  ;;  %8872 = vmatprep.subr.mxu0 %v1383_v17  ;;  %v1386_v16 = vld [vmem:[%s16118_s1 + $0x2910] sm:$0xff]  ;;  %v2458_v17 = vrot.slane %v2444_v7, %v9997_v51  ;;  %v61_v7 = vld [vmem:[%s16117_s0 + $0xa8] sm:$0xff] }
 0x2ab   :  { %8868 = vmatpush3.msra.mxu1 %v1320_v19  ;;  %5557 = vmatprep.mubr.f32.mxu1 %v2443_v18  ;;  %v1368_v18 = vld [vmem:[%s16118_s1 + $0x2880] sm:$0xff]  ;;  %v1401_v19 = vld [vmem:[%s16118_s1 + $0x2988] sm:$0xff] }
 0x2ac   :  { %8873 = vmatpush3.msra.mxu0 %v1367_v20  ;;  %5558 = vmatmul.mubr.f32.vlgmr.msra.gmra.mxu1 %v2441_v10  ;;  %v2451_v10 = vrot.slane %v60_v0, %v9997_v51  ;;  %v1455_v0 = vld [vmem:[%s16118_s1 + $0x2b38] sm:$0xff] }
 0x2ad   :  { %8874 = vmatprep.subr.mxu0 %v1382_v21  ;;  %8907 = vmatprep.subr.mxu1 %v1415_v22  ;;  %v1352_v21 = vld [vmem:[%s16118_s1 + $0x2800] sm:$0xff]  ;;  %v1385_v22 = vld [vmem:[%s16118_s1 + $0x2908] sm:$0xff] }
 0x2ae   :  { %8875 = vmatpush3.msra.mxu0 %v1366_v23  ;;  %8908 = vmatpush3.msra.mxu1 %v1399_v24  ;;  %v2459_v20 = vcombine.high %v2451_v10, %v2451_v10  ;;  %v1400_v23 = vld [vmem:[%s16118_s1 + $0x2980] sm:$0xff]  ;;  %v1447_v24 = vld [vmem:[%s16118_s1 + $0x2af8] sm:$0xff] }
 0x2af   :  { %8876 = vmatprep.subr.mxu0 %v1381_v25  ;;  %8909 = vmatprep.subr.mxu1 %v1414_v26  ;;  %v2460_v25 = vcombine.high %v2458_v17, %v2458_v17  ;;  %v1384_v26 = vld [vmem:[%s16118_s1 + $0x2900] sm:$0xff] }
 0x2b0   :  { %8877 = vmatpush3.msra.mxu0 %v1365_v27  ;;  %8910 = vmatpush3.msra.mxu1 %v1398_v28  ;;  %v1431_v27 = vld [vmem:[%s16118_s1 + $0x2a78] sm:$0xff]  ;;  %v1446_v28 = vld [vmem:[%s16118_s1 + $0x2af0] sm:$0xff] }
 0x2b1   :  { %8878 = vmatprep.subr.mxu0 %v1380_v29  ;;  %8911 = vmatprep.subr.mxu1 %v1413_v30  ;;  %v1479_v29 = vld [vmem:[%s16118_s1 + $0x2bf8] sm:$0xff]  ;;  %v1430_v30 = vld [vmem:[%s16118_s1 + $0x2a70] sm:$0xff] }
 0x2b2   :  { %8879 = vmatpush3.msra.mxu0 %v1364_v31  ;;  %8912 = vmatpush3.msra.mxu1 %v1397_v32  ;;  %v1463_v31 = vld [vmem:[%s16118_s1 + $0x2b78] sm:$0xff]  ;;  %v1445_v32 = vld [vmem:[%s16118_s1 + $0x2ae8] sm:$0xff] }
 0x2b3   :  { %8880 = vmatprep.subr.mxu0 %v1379_v33  ;;  %8913 = vmatprep.subr.mxu1 %v1412_v34  ;;  %v1478_v33 = vld [vmem:[%s16118_s1 + $0x2bf0] sm:$0xff]  ;;  %v1429_v34 = vld [vmem:[%s16118_s1 + $0x2a68] sm:$0xff] }
 0x2b4   :  { %8881 = vmatpush3.msra.mxu0 %v1363_v35  ;;  %8914 = vmatpush3.msra.mxu1 %v1396_v36  ;;  %v1462_v35 = vld [vmem:[%s16118_s1 + $0x2b70] sm:$0xff]  ;;  %v1444_v36 = vld [vmem:[%s16118_s1 + $0x2ae0] sm:$0xff] }
 0x2b5   :  { %8882 = vmatprep.subr.mxu0 %v1378_v37  ;;  %8915 = vmatprep.subr.mxu1 %v1411_v38  ;;  %v1477_v37 = vld [vmem:[%s16118_s1 + $0x2be8] sm:$0xff]  ;;  %v1428_v38 = vld [vmem:[%s16118_s1 + $0x2a60] sm:$0xff] }
 0x2b6   :  { %8883 = vmatpush3.msra.mxu0 %v1362_v39  ;;  %8916 = vmatpush3.msra.mxu1 %v1395_v40  ;;  %v1461_v39 = vld [vmem:[%s16118_s1 + $0x2b68] sm:$0xff]  ;;  %v1443_v40 = vld [vmem:[%s16118_s1 + $0x2ad8] sm:$0xff] }
 0x2b7   :  { %8884 = vmatprep.subr.mxu0 %v1377_v41  ;;  %8917 = vmatprep.subr.mxu1 %v1410_v42  ;;  %v1476_v41 = vld [vmem:[%s16118_s1 + $0x2be0] sm:$0xff]  ;;  %v1427_v42 = vld [vmem:[%s16118_s1 + $0x2a58] sm:$0xff] }
 0x2b8   :  { %8885 = vmatpush3.msra.mxu0 %v1361_v43  ;;  %8918 = vmatpush3.msra.mxu1 %v1394_v44  ;;  %v1460_v43 = vld [vmem:[%s16118_s1 + $0x2b60] sm:$0xff]  ;;  %v1442_v44 = vld [vmem:[%s16118_s1 + $0x2ad0] sm:$0xff] }
 0x2b9   :  { %8886 = vmatprep.subr.mxu0 %v1376_v45  ;;  %8919 = vmatprep.subr.mxu1 %v1409_v46  ;;  %v1475_v45 = vld [vmem:[%s16118_s1 + $0x2bd8] sm:$0xff]  ;;  %v1426_v46 = vld [vmem:[%s16118_s1 + $0x2a50] sm:$0xff] }
 0x2ba   :  { %8887 = vmatpush3.msra.mxu0 %v1360_v47  ;;  %8920 = vmatpush3.msra.mxu1 %v1393_v48  ;;  %v1459_v47 = vld [vmem:[%s16118_s1 + $0x2b58] sm:$0xff]  ;;  %v1441_v48 = vld [vmem:[%s16118_s1 + $0x2ac8] sm:$0xff] }
 0x2bb   :  { %8888 = vmatprep.subr.mxu0 %v1375_v49  ;;  %8921 = vmatprep.subr.mxu1 %v1408_v50  ;;  %v1474_v49 = vld [vmem:[%s16118_s1 + $0x2bd0] sm:$0xff]  ;;  %v1425_v50 = vld [vmem:[%s16118_s1 + $0x2a48] sm:$0xff] }
 0x2bc   :  { %8889 = vmatpush3.msra.mxu0 %v1359_v52  ;;  %8922 = vmatpush3.msra.mxu1 %v1392_v53  ;;  %v1458_v52 = vld [vmem:[%s16118_s1 + $0x2b50] sm:$0xff]  ;;  %v1440_v53 = vld [vmem:[%s16118_s1 + $0x2ac0] sm:$0xff] }
 0x2bd   :  { %8890 = vmatprep.subr.mxu0 %v1374_v54  ;;  %8923 = vmatprep.subr.mxu1 %v1407_v55  ;;  %v1473_v54 = vld [vmem:[%s16118_s1 + $0x2bc8] sm:$0xff]  ;;  %v1424_v55 = vld [vmem:[%s16118_s1 + $0x2a40] sm:$0xff] }
 0x2be   :  { %8891 = vmatpush3.msra.mxu0 %v1358_v56  ;;  %8924 = vmatpush3.msra.mxu1 %v1391_v57  ;;  %v1457_v56 = vld [vmem:[%s16118_s1 + $0x2b48] sm:$0xff]  ;;  %v1439_v57 = vld [vmem:[%s16118_s1 + $0x2ab8] sm:$0xff] }
 0x2bf   :  { %8892 = vmatprep.subr.mxu0 %v1373_v58  ;;  %8925 = vmatprep.subr.mxu1 %v1406_v59  ;;  %v1472_v58 = vld [vmem:[%s16118_s1 + $0x2bc0] sm:$0xff]  ;;  %v1423_v59 = vld [vmem:[%s16118_s1 + $0x2a38] sm:$0xff] }
 0x2c0   :  { %8893 = vmatpush3.msra.mxu0 %v1357_v60  ;;  %8926 = vmatpush3.msra.mxu1 %v1390_v61  ;;  %v1456_v60 = vld [vmem:[%s16118_s1 + $0x2b40] sm:$0xff]  ;;  %v1438_v61 = vld [vmem:[%s16118_s1 + $0x2ab0] sm:$0xff] }
 0x2c1   :  { %8894 = vmatprep.subr.mxu0 %v1372_v62  ;;  %8927 = vmatprep.subr.mxu1 %v1405_v63  ;;  %v1471_v62 = vld [vmem:[%s16118_s1 + $0x2bb8] sm:$0xff]  ;;  %v1422_v63 = vld [vmem:[%s16118_s1 + $0x2a30] sm:$0xff] }
 0x2c2   :  { %8895 = vmatpush3.msra.mxu0 %v1356_v1  ;;  %8928 = vmatpush3.msra.mxu1 %v1389_v2  ;;  %v1437_v1 = vld [vmem:[%s16118_s1 + $0x2aa8] sm:$0xff]  ;;  %v1470_v2 = vld [vmem:[%s16118_s1 + $0x2bb0] sm:$0xff] }
 0x2c3   :  { %8896 = vmatprep.subr.mxu0 %v1371_v3  ;;  %8929 = vmatprep.subr.mxu1 %v1404_v4  ;;  %v1421_v3 = vld [vmem:[%s16118_s1 + $0x2a28] sm:$0xff]  ;;  %v1454_v4 = vld [vmem:[%s16118_s1 + $0x2b30] sm:$0xff] }
 0x2c4   :  { %8897 = vmatpush3.msra.mxu0 %v1355_v5  ;;  %8930 = vmatpush3.msra.mxu1 %v1388_v6  ;;  %v1436_v5 = vld [vmem:[%s16118_s1 + $0x2aa0] sm:$0xff]  ;;  %v1469_v6 = vld [vmem:[%s16118_s1 + $0x2ba8] sm:$0xff] }
 0x2c5   :  { %8898 = vmatprep.subr.mxu0 %v1370_v8  ;;  %8931 = vmatprep.subr.mxu1 %v1403_v9  ;;  %v1420_v8 = vld [vmem:[%s16118_s1 + $0x2a20] sm:$0xff]  ;;  %v1453_v9 = vld [vmem:[%s16118_s1 + $0x2b28] sm:$0xff] }
 0x2c6   :  { %8899 = vmatpush3.msra.mxu0 %v1354_v11  ;;  %8932 = vmatpush3.msra.mxu1 %v1387_v12  ;;  %v1468_v11 = vld [vmem:[%s16118_s1 + $0x2ba0] sm:$0xff]  ;;  %v1419_v12 = vld [vmem:[%s16118_s1 + $0x2a18] sm:$0xff] }
 0x2c7   :  { %8900 = vmatprep.subr.mxu0 %v1369_v13  ;;  %8933 = vmatprep.subr.mxu1 %v1402_v14  ;;  %v1452_v13 = vld [vmem:[%s16118_s1 + $0x2b20] sm:$0xff]  ;;  %v2461_v14 = vcombine.high %v61_v7, %v61_v7 }
 0x2c8   :  { %8901 = vmatpush3.msra.mxu0 %v1353_v15  ;;  %8934 = vmatpush3.msra.mxu1 %v1386_v16  ;;  %v1434_v15 = vld [vmem:[%s16118_s1 + $0x2a90] sm:$0xff]  ;;  %v1467_v16 = vld [vmem:[%s16118_s1 + $0x2b98] sm:$0xff] }
 0x2c9   :  { %8902 = vmatprep.subr.mxu0 %v1368_v18  ;;  %8935 = vmatprep.subr.mxu1 %v1401_v19  ;;  %v1418_v18 = vld [vmem:[%s16118_s1 + $0x2a10] sm:$0xff]  ;;  %v1451_v19 = vld [vmem:[%s16118_s1 + $0x2b18] sm:$0xff] }
 0x2ca   :  { %8903 = vmatpush3.msra.mxu0 %v1352_v21  ;;  %5627 = vmatprep.mubr.f32.mxu0 %v2459_v20  ;;  %v1433_v20 = vld [vmem:[%s16118_s1 + $0x2a88] sm:$0xff]  ;;  %v1466_v21 = vld [vmem:[%s16118_s1 + $0x2b90] sm:$0xff] }
 0x2cb   :  { %8936 = vmatpush3.msra.mxu1 %v1385_v22  ;;  %5628 = vmatmul.mubr.f32.vlgmr.msra.gmra.mxu0 %v2451_v10  ;;  %v1435_v10 = vld [vmem:[%s16118_s1 + $0x2a98] sm:$0xff]  ;;  %v1417_v22 = vld [vmem:[%s16118_s1 + $0x2a08] sm:$0xff] }
 0x2cc   :  { %8937 = vmatprep.subr.mxu1 %v1400_v23  ;;  %8942 = vmatprep.subr.mxu0 %v1447_v24  ;;  %v1450_v23 = vld [vmem:[%s16118_s1 + $0x2b10] sm:$0xff]  ;;  %v2475_v24 = vrot.slane %v2461_v14, %v9997_v51 }
 0x2cd   :  { %8938 = vmatpush3.msra.mxu1 %v1384_v26  ;;  %5697 = vmatprep.mubr.f32.mxu1 %v2460_v25  ;;  %v1432_v25 = vld [vmem:[%s16118_s1 + $0x2a80] sm:$0xff]  ;;  %v1465_v26 = vld [vmem:[%s16118_s1 + $0x2b88] sm:$0xff]  ;;  %v62_v14 = vld [vmem:[%s16117_s0 + $0xb0] sm:$0xff] }
 0x2ce   :  { %8943 = vmatpush3.msra.mxu0 %v1431_v27  ;;  %5698 = vmatmul.mubr.f32.vlgmr.msra.gmra.mxu1 %v2458_v17  ;;  %v2468_v17 = vrot.slane %v61_v7, %v9997_v51  ;;  %v1519_v7 = vld [vmem:[%s16118_s1 + $0x2d38] sm:$0xff] }
 0x2cf   :  { %8944 = vmatprep.subr.mxu0 %v1446_v28  ;;  %8977 = vmatprep.subr.mxu1 %v1479_v29  ;;  %v1416_v28 = vld [vmem:[%s16118_s1 + $0x2a00] sm:$0xff]  ;;  %v1449_v29 = vld [vmem:[%s16118_s1 + $0x2b08] sm:$0xff] }
 0x2d0   :  { %8945 = vmatpush3.msra.mxu0 %v1430_v30  ;;  %8978 = vmatpush3.msra.mxu1 %v1463_v31  ;;  %v2476_v27 = vcombine.high %v2468_v17, %v2468_v17  ;;  %v1464_v30 = vld [vmem:[%s16118_s1 + $0x2b80] sm:$0xff]  ;;  %v1511_v31 = vld [vmem:[%s16118_s1 + $0x2cf8] sm:$0xff] }
 0x2d1   :  { %8946 = vmatprep.subr.mxu0 %v1445_v32  ;;  %8979 = vmatprep.subr.mxu1 %v1478_v33  ;;  %v2477_v32 = vcombine.high %v2475_v24, %v2475_v24  ;;  %v1448_v33 = vld [vmem:[%s16118_s1 + $0x2b00] sm:$0xff] }
 0x2d2   :  { %8947 = vmatpush3.msra.mxu0 %v1429_v34  ;;  %8980 = vmatpush3.msra.mxu1 %v1462_v35  ;;  %v1495_v34 = vld [vmem:[%s16118_s1 + $0x2c78] sm:$0xff]  ;;  %v1510_v35 = vld [vmem:[%s16118_s1 + $0x2cf0] sm:$0xff] }
 0x2d3   :  { %8948 = vmatprep.subr.mxu0 %v1444_v36  ;;  %8981 = vmatprep.subr.mxu1 %v1477_v37  ;;  %v1543_v36 = vld [vmem:[%s16118_s1 + $0x2df8] sm:$0xff]  ;;  %v1494_v37 = vld [vmem:[%s16118_s1 + $0x2c70] sm:$0xff] }
 0x2d4   :  { %8949 = vmatpush3.msra.mxu0 %v1428_v38  ;;  %8982 = vmatpush3.msra.mxu1 %v1461_v39  ;;  %v1527_v38 = vld [vmem:[%s16118_s1 + $0x2d78] sm:$0xff]  ;;  %v1509_v39 = vld [vmem:[%s16118_s1 + $0x2ce8] sm:$0xff] }
 0x2d5   :  { %8950 = vmatprep.subr.mxu0 %v1443_v40  ;;  %8983 = vmatprep.subr.mxu1 %v1476_v41  ;;  %v1542_v40 = vld [vmem:[%s16118_s1 + $0x2df0] sm:$0xff]  ;;  %v1493_v41 = vld [vmem:[%s16118_s1 + $0x2c68] sm:$0xff] }
 0x2d6   :  { %8951 = vmatpush3.msra.mxu0 %v1427_v42  ;;  %8984 = vmatpush3.msra.mxu1 %v1460_v43  ;;  %v1526_v42 = vld [vmem:[%s16118_s1 + $0x2d70] sm:$0xff]  ;;  %v1508_v43 = vld [vmem:[%s16118_s1 + $0x2ce0] sm:$0xff] }
 0x2d7   :  { %8952 = vmatprep.subr.mxu0 %v1442_v44  ;;  %8985 = vmatprep.subr.mxu1 %v1475_v45  ;;  %v1541_v44 = vld [vmem:[%s16118_s1 + $0x2de8] sm:$0xff]  ;;  %v1492_v45 = vld [vmem:[%s16118_s1 + $0x2c60] sm:$0xff] }
 0x2d8   :  { %8953 = vmatpush3.msra.mxu0 %v1426_v46  ;;  %8986 = vmatpush3.msra.mxu1 %v1459_v47  ;;  %v1525_v46 = vld [vmem:[%s16118_s1 + $0x2d68] sm:$0xff]  ;;  %v1507_v47 = vld [vmem:[%s16118_s1 + $0x2cd8] sm:$0xff] }
 0x2d9   :  { %8954 = vmatprep.subr.mxu0 %v1441_v48  ;;  %8987 = vmatprep.subr.mxu1 %v1474_v49  ;;  %v1540_v48 = vld [vmem:[%s16118_s1 + $0x2de0] sm:$0xff]  ;;  %v1491_v49 = vld [vmem:[%s16118_s1 + $0x2c58] sm:$0xff] }
 0x2da   :  { %8955 = vmatpush3.msra.mxu0 %v1425_v50  ;;  %8988 = vmatpush3.msra.mxu1 %v1458_v52  ;;  %v1524_v50 = vld [vmem:[%s16118_s1 + $0x2d60] sm:$0xff]  ;;  %v1506_v52 = vld [vmem:[%s16118_s1 + $0x2cd0] sm:$0xff] }
 0x2db   :  { %8956 = vmatprep.subr.mxu0 %v1440_v53  ;;  %8989 = vmatprep.subr.mxu1 %v1473_v54  ;;  %v1539_v53 = vld [vmem:[%s16118_s1 + $0x2dd8] sm:$0xff]  ;;  %v1490_v54 = vld [vmem:[%s16118_s1 + $0x2c50] sm:$0xff] }
 0x2dc   :  { %8957 = vmatpush3.msra.mxu0 %v1424_v55  ;;  %8990 = vmatpush3.msra.mxu1 %v1457_v56  ;;  %v1523_v55 = vld [vmem:[%s16118_s1 + $0x2d58] sm:$0xff]  ;;  %v1505_v56 = vld [vmem:[%s16118_s1 + $0x2cc8] sm:$0xff] }
 0x2dd   :  { %8958 = vmatprep.subr.mxu0 %v1439_v57  ;;  %8991 = vmatprep.subr.mxu1 %v1472_v58  ;;  %v1538_v57 = vld [vmem:[%s16118_s1 + $0x2dd0] sm:$0xff]  ;;  %v1489_v58 = vld [vmem:[%s16118_s1 + $0x2c48] sm:$0xff] }
 0x2de   :  { %8959 = vmatpush3.msra.mxu0 %v1423_v59  ;;  %8992 = vmatpush3.msra.mxu1 %v1456_v60  ;;  %v1522_v59 = vld [vmem:[%s16118_s1 + $0x2d50] sm:$0xff]  ;;  %v1504_v60 = vld [vmem:[%s16118_s1 + $0x2cc0] sm:$0xff] }
 0x2df   :  { %8960 = vmatprep.subr.mxu0 %v1438_v61  ;;  %8993 = vmatprep.subr.mxu1 %v1471_v62  ;;  %v1537_v61 = vld [vmem:[%s16118_s1 + $0x2dc8] sm:$0xff]  ;;  %v1488_v62 = vld [vmem:[%s16118_s1 + $0x2c40] sm:$0xff] }
 0x2e0   :  { %8961 = vmatpush3.msra.mxu0 %v1422_v63  ;;  %8994 = vmatpush3.msra.mxu1 %v1455_v0  ;;  %v1521_v63 = vld [vmem:[%s16118_s1 + $0x2d48] sm:$0xff]  ;;  %v1503_v0 = vld [vmem:[%s16118_s1 + $0x2cb8] sm:$0xff] }
 0x2e1   :  { %8962 = vmatprep.subr.mxu0 %v1437_v1  ;;  %8995 = vmatprep.subr.mxu1 %v1470_v2  ;;  %v1536_v1 = vld [vmem:[%s16118_s1 + $0x2dc0] sm:$0xff]  ;;  %v1487_v2 = vld [vmem:[%s16118_s1 + $0x2c38] sm:$0xff] }
 0x2e2   :  { %8963 = vmatpush3.msra.mxu0 %v1421_v3  ;;  %8996 = vmatpush3.msra.mxu1 %v1454_v4  ;;  %v1520_v3 = vld [vmem:[%s16118_s1 + $0x2d40] sm:$0xff]  ;;  %v1502_v4 = vld [vmem:[%s16118_s1 + $0x2cb0] sm:$0xff] }
 0x2e3   :  { %8964 = vmatprep.subr.mxu0 %v1436_v5  ;;  %8997 = vmatprep.subr.mxu1 %v1469_v6  ;;  %v1535_v5 = vld [vmem:[%s16118_s1 + $0x2db8] sm:$0xff]  ;;  %v1486_v6 = vld [vmem:[%s16118_s1 + $0x2c30] sm:$0xff] }
 0x2e4   :  { %8965 = vmatpush3.msra.mxu0 %v1420_v8  ;;  %8998 = vmatpush3.msra.mxu1 %v1453_v9  ;;  %v1501_v8 = vld [vmem:[%s16118_s1 + $0x2ca8] sm:$0xff]  ;;  %v1534_v9 = vld [vmem:[%s16118_s1 + $0x2db0] sm:$0xff] }
 0x2e5   :  { %8966 = vmatprep.subr.mxu0 %v1435_v10  ;;  %8999 = vmatprep.subr.mxu1 %v1468_v11  ;;  %v1485_v10 = vld [vmem:[%s16118_s1 + $0x2c28] sm:$0xff]  ;;  %v1518_v11 = vld [vmem:[%s16118_s1 + $0x2d30] sm:$0xff] }
 0x2e6   :  { %8967 = vmatpush3.msra.mxu0 %v1419_v12  ;;  %9000 = vmatpush3.msra.mxu1 %v1452_v13  ;;  %v1500_v12 = vld [vmem:[%s16118_s1 + $0x2ca0] sm:$0xff]  ;;  %v1533_v13 = vld [vmem:[%s16118_s1 + $0x2da8] sm:$0xff] }
 0x2e7   :  { %8968 = vmatprep.subr.mxu0 %v1434_v15  ;;  %9001 = vmatprep.subr.mxu1 %v1467_v16  ;;  %v1484_v15 = vld [vmem:[%s16118_s1 + $0x2c20] sm:$0xff]  ;;  %v1517_v16 = vld [vmem:[%s16118_s1 + $0x2d28] sm:$0xff] }
 0x2e8   :  { %8969 = vmatpush3.msra.mxu0 %v1418_v18  ;;  %9002 = vmatpush3.msra.mxu1 %v1451_v19  ;;  %v1532_v18 = vld [vmem:[%s16118_s1 + $0x2da0] sm:$0xff]  ;;  %v1483_v19 = vld [vmem:[%s16118_s1 + $0x2c18] sm:$0xff] }
 0x2e9   :  { %8970 = vmatprep.subr.mxu0 %v1433_v20  ;;  %9003 = vmatprep.subr.mxu1 %v1466_v21  ;;  %v1516_v20 = vld [vmem:[%s16118_s1 + $0x2d20] sm:$0xff]  ;;  %v2478_v21 = vcombine.high %v62_v14, %v62_v14 }
 0x2ea   :  { %8971 = vmatpush3.msra.mxu0 %v1417_v22  ;;  %9004 = vmatpush3.msra.mxu1 %v1450_v23  ;;  %v1498_v22 = vld [vmem:[%s16118_s1 + $0x2c90] sm:$0xff]  ;;  %v1531_v23 = vld [vmem:[%s16118_s1 + $0x2d98] sm:$0xff] }
 0x2eb   :  { %8972 = vmatprep.subr.mxu0 %v1432_v25  ;;  %9005 = vmatprep.subr.mxu1 %v1465_v26  ;;  %v1482_v25 = vld [vmem:[%s16118_s1 + $0x2c10] sm:$0xff]  ;;  %v1515_v26 = vld [vmem:[%s16118_s1 + $0x2d18] sm:$0xff] }
 0x2ec   :  { %8973 = vmatpush3.msra.mxu0 %v1416_v28  ;;  %5767 = vmatprep.mubr.f32.mxu0 %v2476_v27  ;;  %v1497_v27 = vld [vmem:[%s16118_s1 + $0x2c88] sm:$0xff]  ;;  %v1530_v28 = vld [vmem:[%s16118_s1 + $0x2d90] sm:$0xff] }
 0x2ed   :  { %9006 = vmatpush3.msra.mxu1 %v1449_v29  ;;  %5768 = vmatmul.mubr.f32.vlgmr.msra.gmra.mxu0 %v2468_v17  ;;  %v1499_v17 = vld [vmem:[%s16118_s1 + $0x2c98] sm:$0xff]  ;;  %v1481_v29 = vld [vmem:[%s16118_s1 + $0x2c08] sm:$0xff] }
 0x2ee   :  { %9007 = vmatprep.subr.mxu1 %v1464_v30  ;;  %9012 = vmatprep.subr.mxu0 %v1511_v31  ;;  %v1514_v30 = vld [vmem:[%s16118_s1 + $0x2d10] sm:$0xff]  ;;  %v2492_v31 = vrot.slane %v2478_v21, %v9997_v51  ;;  %v63_v21 = vld [vmem:[%s16117_s0 + $0xb8] sm:$0xff] }
 0x2ef   :  { %9008 = vmatpush3.msra.mxu1 %v1448_v33  ;;  %5837 = vmatprep.mubr.f32.mxu1 %v2477_v32  ;;  %v1496_v32 = vld [vmem:[%s16118_s1 + $0x2c80] sm:$0xff]  ;;  %v1529_v33 = vld [vmem:[%s16118_s1 + $0x2d88] sm:$0xff] }
 0x2f0   :  { %9013 = vmatpush3.msra.mxu0 %v1495_v34  ;;  %5838 = vmatmul.mubr.f32.vlgmr.msra.gmra.mxu1 %v2475_v24  ;;  %v2485_v24 = vrot.slane %v62_v14, %v9997_v51  ;;  %v1583_v14 = vld [vmem:[%s16118_s1 + $0x2f38] sm:$0xff] }
 0x2f1   :  { %9014 = vmatprep.subr.mxu0 %v1510_v35  ;;  %9047 = vmatprep.subr.mxu1 %v1543_v36  ;;  %v1480_v35 = vld [vmem:[%s16118_s1 + $0x2c00] sm:$0xff]  ;;  %v1513_v36 = vld [vmem:[%s16118_s1 + $0x2d08] sm:$0xff] }
 0x2f2   :  { %9015 = vmatpush3.msra.mxu0 %v1494_v37  ;;  %9048 = vmatpush3.msra.mxu1 %v1527_v38  ;;  %v2493_v34 = vcombine.high %v2485_v24, %v2485_v24  ;;  %v1528_v37 = vld [vmem:[%s16118_s1 + $0x2d80] sm:$0xff]  ;;  %v1575_v38 = vld [vmem:[%s16118_s1 + $0x2ef8] sm:$0xff] }
 0x2f3   :  { %9016 = vmatprep.subr.mxu0 %v1509_v39  ;;  %9049 = vmatprep.subr.mxu1 %v1542_v40  ;;  %v2494_v39 = vcombine.high %v2492_v31, %v2492_v31  ;;  %v1512_v40 = vld [vmem:[%s16118_s1 + $0x2d00] sm:$0xff] }
 0x2f4   :  { %9017 = vmatpush3.msra.mxu0 %v1493_v41  ;;  %9050 = vmatpush3.msra.mxu1 %v1526_v42  ;;  %v1559_v41 = vld [vmem:[%s16118_s1 + $0x2e78] sm:$0xff]  ;;  %v1574_v42 = vld [vmem:[%s16118_s1 + $0x2ef0] sm:$0xff] }
 0x2f5   :  { %9018 = vmatprep.subr.mxu0 %v1508_v43  ;;  %9051 = vmatprep.subr.mxu1 %v1541_v44  ;;  %v1607_v43 = vld [vmem:[%s16118_s1 + $0x2ff8] sm:$0xff]  ;;  %v1558_v44 = vld [vmem:[%s16118_s1 + $0x2e70] sm:$0xff] }
 0x2f6   :  { %9019 = vmatpush3.msra.mxu0 %v1492_v45  ;;  %9052 = vmatpush3.msra.mxu1 %v1525_v46  ;;  %v1591_v45 = vld [vmem:[%s16118_s1 + $0x2f78] sm:$0xff]  ;;  %v1573_v46 = vld [vmem:[%s16118_s1 + $0x2ee8] sm:$0xff] }
 0x2f7   :  { %9020 = vmatprep.subr.mxu0 %v1507_v47  ;;  %9053 = vmatprep.subr.mxu1 %v1540_v48  ;;  %v1606_v47 = vld [vmem:[%s16118_s1 + $0x2ff0] sm:$0xff]  ;;  %v1557_v48 = vld [vmem:[%s16118_s1 + $0x2e68] sm:$0xff] }
 0x2f8   :  { %9021 = vmatpush3.msra.mxu0 %v1491_v49  ;;  %9054 = vmatpush3.msra.mxu1 %v1524_v50  ;;  %v1590_v49 = vld [vmem:[%s16118_s1 + $0x2f70] sm:$0xff]  ;;  %v1572_v50 = vld [vmem:[%s16118_s1 + $0x2ee0] sm:$0xff] }
 0x2f9   :  { %9022 = vmatprep.subr.mxu0 %v1506_v52  ;;  %9055 = vmatprep.subr.mxu1 %v1539_v53  ;;  %v1605_v52 = vld [vmem:[%s16118_s1 + $0x2fe8] sm:$0xff]  ;;  %v1556_v53 = vld [vmem:[%s16118_s1 + $0x2e60] sm:$0xff] }
 0x2fa   :  { %9023 = vmatpush3.msra.mxu0 %v1490_v54  ;;  %9056 = vmatpush3.msra.mxu1 %v1523_v55  ;;  %v1589_v54 = vld [vmem:[%s16118_s1 + $0x2f68] sm:$0xff]  ;;  %v1571_v55 = vld [vmem:[%s16118_s1 + $0x2ed8] sm:$0xff] }
 0x2fb   :  { %9024 = vmatprep.subr.mxu0 %v1505_v56  ;;  %9057 = vmatprep.subr.mxu1 %v1538_v57  ;;  %v1604_v56 = vld [vmem:[%s16118_s1 + $0x2fe0] sm:$0xff]  ;;  %v1555_v57 = vld [vmem:[%s16118_s1 + $0x2e58] sm:$0xff] }
 0x2fc   :  { %9025 = vmatpush3.msra.mxu0 %v1489_v58  ;;  %9058 = vmatpush3.msra.mxu1 %v1522_v59  ;;  %v1588_v58 = vld [vmem:[%s16118_s1 + $0x2f60] sm:$0xff]  ;;  %v1570_v59 = vld [vmem:[%s16118_s1 + $0x2ed0] sm:$0xff] }
 0x2fd   :  { %9026 = vmatprep.subr.mxu0 %v1504_v60  ;;  %9059 = vmatprep.subr.mxu1 %v1537_v61  ;;  %v1603_v60 = vld [vmem:[%s16118_s1 + $0x2fd8] sm:$0xff]  ;;  %v1554_v61 = vld [vmem:[%s16118_s1 + $0x2e50] sm:$0xff] }
 0x2fe   :  { %9027 = vmatpush3.msra.mxu0 %v1488_v62  ;;  %9060 = vmatpush3.msra.mxu1 %v1521_v63  ;;  %v1587_v62 = vld [vmem:[%s16118_s1 + $0x2f58] sm:$0xff]  ;;  %v1569_v63 = vld [vmem:[%s16118_s1 + $0x2ec8] sm:$0xff] }
 0x2ff   :  { %9028 = vmatprep.subr.mxu0 %v1503_v0  ;;  %9061 = vmatprep.subr.mxu1 %v1536_v1  ;;  %v1602_v0 = vld [vmem:[%s16118_s1 + $0x2fd0] sm:$0xff]  ;;  %v1553_v1 = vld [vmem:[%s16118_s1 + $0x2e48] sm:$0xff] }
 0x300   :  { %9029 = vmatpush3.msra.mxu0 %v1487_v2  ;;  %9062 = vmatpush3.msra.mxu1 %v1520_v3  ;;  %v1586_v2 = vld [vmem:[%s16118_s1 + $0x2f50] sm:$0xff]  ;;  %v1568_v3 = vld [vmem:[%s16118_s1 + $0x2ec0] sm:$0xff] }
 0x301   :  { %9030 = vmatprep.subr.mxu0 %v1502_v4  ;;  %9063 = vmatprep.subr.mxu1 %v1535_v5  ;;  %v1601_v4 = vld [vmem:[%s16118_s1 + $0x2fc8] sm:$0xff]  ;;  %v1552_v5 = vld [vmem:[%s16118_s1 + $0x2e40] sm:$0xff] }
 0x302   :  { %9031 = vmatpush3.msra.mxu0 %v1486_v6  ;;  %9064 = vmatpush3.msra.mxu1 %v1519_v7  ;;  %v1585_v6 = vld [vmem:[%s16118_s1 + $0x2f48] sm:$0xff]  ;;  %v1567_v7 = vld [vmem:[%s16118_s1 + $0x2eb8] sm:$0xff] }
 0x303   :  { %9032 = vmatprep.subr.mxu0 %v1501_v8  ;;  %9065 = vmatprep.subr.mxu1 %v1534_v9  ;;  %v1600_v8 = vld [vmem:[%s16118_s1 + $0x2fc0] sm:$0xff]  ;;  %v1551_v9 = vld [vmem:[%s16118_s1 + $0x2e38] sm:$0xff] }
 0x304   :  { %9033 = vmatpush3.msra.mxu0 %v1485_v10  ;;  %9066 = vmatpush3.msra.mxu1 %v1518_v11  ;;  %v1584_v10 = vld [vmem:[%s16118_s1 + $0x2f40] sm:$0xff]  ;;  %v1566_v11 = vld [vmem:[%s16118_s1 + $0x2eb0] sm:$0xff] }
 0x305   :  { %9034 = vmatprep.subr.mxu0 %v1500_v12  ;;  %9067 = vmatprep.subr.mxu1 %v1533_v13  ;;  %v1599_v12 = vld [vmem:[%s16118_s1 + $0x2fb8] sm:$0xff]  ;;  %v1550_v13 = vld [vmem:[%s16118_s1 + $0x2e30] sm:$0xff] }
 0x306   :  { %9035 = vmatpush3.msra.mxu0 %v1484_v15  ;;  %9068 = vmatpush3.msra.mxu1 %v1517_v16  ;;  %v1565_v15 = vld [vmem:[%s16118_s1 + $0x2ea8] sm:$0xff]  ;;  %v1598_v16 = vld [vmem:[%s16118_s1 + $0x2fb0] sm:$0xff] }
 0x307   :  { %9036 = vmatprep.subr.mxu0 %v1499_v17  ;;  %9069 = vmatprep.subr.mxu1 %v1532_v18  ;;  %v1549_v17 = vld [vmem:[%s16118_s1 + $0x2e28] sm:$0xff]  ;;  %v1582_v18 = vld [vmem:[%s16118_s1 + $0x2f30] sm:$0xff] }
 0x308   :  { %9037 = vmatpush3.msra.mxu0 %v1483_v19  ;;  %9070 = vmatpush3.msra.mxu1 %v1516_v20  ;;  %v1564_v19 = vld [vmem:[%s16118_s1 + $0x2ea0] sm:$0xff]  ;;  %v1597_v20 = vld [vmem:[%s16118_s1 + $0x2fa8] sm:$0xff] }
 0x309   :  { %9038 = vmatprep.subr.mxu0 %v1498_v22  ;;  %9071 = vmatprep.subr.mxu1 %v1531_v23  ;;  %v1548_v22 = vld [vmem:[%s16118_s1 + $0x2e20] sm:$0xff]  ;;  %v1581_v23 = vld [vmem:[%s16118_s1 + $0x2f28] sm:$0xff] }
 0x30a   :  { %9039 = vmatpush3.msra.mxu0 %v1482_v25  ;;  %9072 = vmatpush3.msra.mxu1 %v1515_v26  ;;  %v1596_v25 = vld [vmem:[%s16118_s1 + $0x2fa0] sm:$0xff]  ;;  %v1547_v26 = vld [vmem:[%s16118_s1 + $0x2e18] sm:$0xff] }
 0x30b   :  { %9040 = vmatprep.subr.mxu0 %v1497_v27  ;;  %9073 = vmatprep.subr.mxu1 %v1530_v28  ;;  %v1580_v27 = vld [vmem:[%s16118_s1 + $0x2f20] sm:$0xff]  ;;  %v2495_v28 = vcombine.high %v63_v21, %v63_v21 }
 0x30c   :  { %9041 = vmatpush3.msra.mxu0 %v1481_v29  ;;  %9074 = vmatpush3.msra.mxu1 %v1514_v30  ;;  %v1562_v29 = vld [vmem:[%s16118_s1 + $0x2e90] sm:$0xff]  ;;  %v1595_v30 = vld [vmem:[%s16118_s1 + $0x2f98] sm:$0xff] }
 0x30d   :  { %9042 = vmatprep.subr.mxu0 %v1496_v32  ;;  %9075 = vmatprep.subr.mxu1 %v1529_v33  ;;  %v1546_v32 = vld [vmem:[%s16118_s1 + $0x2e10] sm:$0xff]  ;;  %v1579_v33 = vld [vmem:[%s16118_s1 + $0x2f18] sm:$0xff] }
 0x30e   :  { %9043 = vmatpush3.msra.mxu0 %v1480_v35  ;;  %5907 = vmatprep.mubr.f32.mxu0 %v2493_v34  ;;  %v1561_v34 = vld [vmem:[%s16118_s1 + $0x2e88] sm:$0xff]  ;;  %v1594_v35 = vld [vmem:[%s16118_s1 + $0x2f90] sm:$0xff] }
 0x30f   :  { %9076 = vmatpush3.msra.mxu1 %v1513_v36  ;;  %5908 = vmatmul.mubr.f32.vlgmr.msra.gmra.mxu0 %v2485_v24  ;;  %v1563_v24 = vld [vmem:[%s16118_s1 + $0x2e98] sm:$0xff]  ;;  %v1545_v36 = vld [vmem:[%s16118_s1 + $0x2e08] sm:$0xff] }
 0x310   :  { %9077 = vmatprep.subr.mxu1 %v1528_v37  ;;  %9082 = vmatprep.subr.mxu0 %v1575_v38  ;;  %v1578_v37 = vld [vmem:[%s16118_s1 + $0x2f10] sm:$0xff]  ;;  %v2509_v38 = vrot.slane %v2495_v28, %v9997_v51  ;;  %v64_v28 = vld [vmem:[%s16117_s0 + $0xc0] sm:$0xff] }
 0x311   :  { %9078 = vmatpush3.msra.mxu1 %v1512_v40  ;;  %5977 = vmatprep.mubr.f32.mxu1 %v2494_v39  ;;  %v1560_v39 = vld [vmem:[%s16118_s1 + $0x2e80] sm:$0xff]  ;;  %v1593_v40 = vld [vmem:[%s16118_s1 + $0x2f88] sm:$0xff] }
 0x312   :  { %9083 = vmatpush3.msra.mxu0 %v1559_v41  ;;  %5978 = vmatmul.mubr.f32.vlgmr.msra.gmra.mxu1 %v2492_v31  ;;  %v2502_v31 = vrot.slane %v63_v21, %v9997_v51  ;;  %v1647_v21 = vld [vmem:[%s16118_s1 + $0x3138] sm:$0xff] }
 0x313   :  { %9084 = vmatprep.subr.mxu0 %v1574_v42  ;;  %9117 = vmatprep.subr.mxu1 %v1607_v43  ;;  %v1544_v42 = vld [vmem:[%s16118_s1 + $0x2e00] sm:$0xff]  ;;  %v1577_v43 = vld [vmem:[%s16118_s1 + $0x2f08] sm:$0xff] }
 0x314   :  { %9085 = vmatpush3.msra.mxu0 %v1558_v44  ;;  %9118 = vmatpush3.msra.mxu1 %v1591_v45  ;;  %v2510_v41 = vcombine.high %v2502_v31, %v2502_v31  ;;  %v1592_v44 = vld [vmem:[%s16118_s1 + $0x2f80] sm:$0xff]  ;;  %v1639_v45 = vld [vmem:[%s16118_s1 + $0x30f8] sm:$0xff] }
 0x315   :  { %9086 = vmatprep.subr.mxu0 %v1573_v46  ;;  %9119 = vmatprep.subr.mxu1 %v1606_v47  ;;  %v2511_v46 = vcombine.high %v2509_v38, %v2509_v38  ;;  %v1576_v47 = vld [vmem:[%s16118_s1 + $0x2f00] sm:$0xff] }
 0x316   :  { %9087 = vmatpush3.msra.mxu0 %v1557_v48  ;;  %9120 = vmatpush3.msra.mxu1 %v1590_v49  ;;  %v1623_v48 = vld [vmem:[%s16118_s1 + $0x3078] sm:$0xff]  ;;  %v1638_v49 = vld [vmem:[%s16118_s1 + $0x30f0] sm:$0xff] }
 0x317   :  { %9088 = vmatprep.subr.mxu0 %v1572_v50  ;;  %9121 = vmatprep.subr.mxu1 %v1605_v52  ;;  %v1671_v50 = vld [vmem:[%s16118_s1 + $0x31f8] sm:$0xff]  ;;  %v1622_v52 = vld [vmem:[%s16118_s1 + $0x3070] sm:$0xff] }
 0x318   :  { %9089 = vmatpush3.msra.mxu0 %v1556_v53  ;;  %9122 = vmatpush3.msra.mxu1 %v1589_v54  ;;  %v1655_v53 = vld [vmem:[%s16118_s1 + $0x3178] sm:$0xff]  ;;  %v1637_v54 = vld [vmem:[%s16118_s1 + $0x30e8] sm:$0xff] }
 0x319   :  { %9090 = vmatprep.subr.mxu0 %v1571_v55  ;;  %9123 = vmatprep.subr.mxu1 %v1604_v56  ;;  %v1670_v55 = vld [vmem:[%s16118_s1 + $0x31f0] sm:$0xff]  ;;  %v1621_v56 = vld [vmem:[%s16118_s1 + $0x3068] sm:$0xff] }
 0x31a   :  { %9091 = vmatpush3.msra.mxu0 %v1555_v57  ;;  %9124 = vmatpush3.msra.mxu1 %v1588_v58  ;;  %v1654_v57 = vld [vmem:[%s16118_s1 + $0x3170] sm:$0xff]  ;;  %v1636_v58 = vld [vmem:[%s16118_s1 + $0x30e0] sm:$0xff] }
 0x31b   :  { %9092 = vmatprep.subr.mxu0 %v1570_v59  ;;  %9125 = vmatprep.subr.mxu1 %v1603_v60  ;;  %v1669_v59 = vld [vmem:[%s16118_s1 + $0x31e8] sm:$0xff]  ;;  %v1620_v60 = vld [vmem:[%s16118_s1 + $0x3060] sm:$0xff] }
 0x31c   :  { %9093 = vmatpush3.msra.mxu0 %v1554_v61  ;;  %9126 = vmatpush3.msra.mxu1 %v1587_v62  ;;  %v1653_v61 = vld [vmem:[%s16118_s1 + $0x3168] sm:$0xff]  ;;  %v1635_v62 = vld [vmem:[%s16118_s1 + $0x30d8] sm:$0xff] }
 0x31d   :  { %9094 = vmatprep.subr.mxu0 %v1569_v63  ;;  %9127 = vmatprep.subr.mxu1 %v1602_v0  ;;  %v1668_v63 = vld [vmem:[%s16118_s1 + $0x31e0] sm:$0xff]  ;;  %v1619_v0 = vld [vmem:[%s16118_s1 + $0x3058] sm:$0xff] }
 0x31e   :  { %9095 = vmatpush3.msra.mxu0 %v1553_v1  ;;  %9128 = vmatpush3.msra.mxu1 %v1586_v2  ;;  %v1652_v1 = vld [vmem:[%s16118_s1 + $0x3160] sm:$0xff]  ;;  %v1634_v2 = vld [vmem:[%s16118_s1 + $0x30d0] sm:$0xff] }
 0x31f   :  { %9096 = vmatprep.subr.mxu0 %v1568_v3  ;;  %9129 = vmatprep.subr.mxu1 %v1601_v4  ;;  %v1667_v3 = vld [vmem:[%s16118_s1 + $0x31d8] sm:$0xff]  ;;  %v1618_v4 = vld [vmem:[%s16118_s1 + $0x3050] sm:$0xff] }
 0x320   :  { %9097 = vmatpush3.msra.mxu0 %v1552_v5  ;;  %9130 = vmatpush3.msra.mxu1 %v1585_v6  ;;  %v1651_v5 = vld [vmem:[%s16118_s1 + $0x3158] sm:$0xff]  ;;  %v1633_v6 = vld [vmem:[%s16118_s1 + $0x30c8] sm:$0xff] }
 0x321   :  { %9098 = vmatprep.subr.mxu0 %v1567_v7  ;;  %9131 = vmatprep.subr.mxu1 %v1600_v8  ;;  %v1666_v7 = vld [vmem:[%s16118_s1 + $0x31d0] sm:$0xff]  ;;  %v1617_v8 = vld [vmem:[%s16118_s1 + $0x3048] sm:$0xff] }
 0x322   :  { %9099 = vmatpush3.msra.mxu0 %v1551_v9  ;;  %9132 = vmatpush3.msra.mxu1 %v1584_v10  ;;  %v1650_v9 = vld [vmem:[%s16118_s1 + $0x3150] sm:$0xff]  ;;  %v1632_v10 = vld [vmem:[%s16118_s1 + $0x30c0] sm:$0xff] }
 0x323   :  { %9100 = vmatprep.subr.mxu0 %v1566_v11  ;;  %9133 = vmatprep.subr.mxu1 %v1599_v12  ;;  %v1665_v11 = vld [vmem:[%s16118_s1 + $0x31c8] sm:$0xff]  ;;  %v1616_v12 = vld [vmem:[%s16118_s1 + $0x3040] sm:$0xff] }
 0x324   :  { %9101 = vmatpush3.msra.mxu0 %v1550_v13  ;;  %9134 = vmatpush3.msra.mxu1 %v1583_v14  ;;  %v1649_v13 = vld [vmem:[%s16118_s1 + $0x3148] sm:$0xff]  ;;  %v1631_v14 = vld [vmem:[%s16118_s1 + $0x30b8] sm:$0xff] }
 0x325   :  { %9102 = vmatprep.subr.mxu0 %v1565_v15  ;;  %9135 = vmatprep.subr.mxu1 %v1598_v16  ;;  %v1664_v15 = vld [vmem:[%s16118_s1 + $0x31c0] sm:$0xff]  ;;  %v1615_v16 = vld [vmem:[%s16118_s1 + $0x3038] sm:$0xff] }
 0x326   :  { %9103 = vmatpush3.msra.mxu0 %v1549_v17  ;;  %9136 = vmatpush3.msra.mxu1 %v1582_v18  ;;  %v1648_v17 = vld [vmem:[%s16118_s1 + $0x3140] sm:$0xff]  ;;  %v1630_v18 = vld [vmem:[%s16118_s1 + $0x30b0] sm:$0xff] }
 0x327   :  { %9104 = vmatprep.subr.mxu0 %v1564_v19  ;;  %9137 = vmatprep.subr.mxu1 %v1597_v20  ;;  %v1663_v19 = vld [vmem:[%s16118_s1 + $0x31b8] sm:$0xff]  ;;  %v1614_v20 = vld [vmem:[%s16118_s1 + $0x3030] sm:$0xff] }
 0x328   :  { %9105 = vmatpush3.msra.mxu0 %v1548_v22  ;;  %9138 = vmatpush3.msra.mxu1 %v1581_v23  ;;  %v1629_v22 = vld [vmem:[%s16118_s1 + $0x30a8] sm:$0xff]  ;;  %v1662_v23 = vld [vmem:[%s16118_s1 + $0x31b0] sm:$0xff] }
 0x329   :  { %9106 = vmatprep.subr.mxu0 %v1563_v24  ;;  %9139 = vmatprep.subr.mxu1 %v1596_v25  ;;  %v1613_v24 = vld [vmem:[%s16118_s1 + $0x3028] sm:$0xff]  ;;  %v1646_v25 = vld [vmem:[%s16118_s1 + $0x3130] sm:$0xff] }
 0x32a   :  { %9107 = vmatpush3.msra.mxu0 %v1547_v26  ;;  %9140 = vmatpush3.msra.mxu1 %v1580_v27  ;;  %v1628_v26 = vld [vmem:[%s16118_s1 + $0x30a0] sm:$0xff]  ;;  %v1661_v27 = vld [vmem:[%s16118_s1 + $0x31a8] sm:$0xff] }
 0x32b   :  { %9108 = vmatprep.subr.mxu0 %v1562_v29  ;;  %9141 = vmatprep.subr.mxu1 %v1595_v30  ;;  %v1612_v29 = vld [vmem:[%s16118_s1 + $0x3020] sm:$0xff]  ;;  %v1645_v30 = vld [vmem:[%s16118_s1 + $0x3128] sm:$0xff] }
 0x32c   :  { %9109 = vmatpush3.msra.mxu0 %v1546_v32  ;;  %9142 = vmatpush3.msra.mxu1 %v1579_v33  ;;  %v1660_v32 = vld [vmem:[%s16118_s1 + $0x31a0] sm:$0xff]  ;;  %v1611_v33 = vld [vmem:[%s16118_s1 + $0x3018] sm:$0xff] }
 0x32d   :  { %9110 = vmatprep.subr.mxu0 %v1561_v34  ;;  %9143 = vmatprep.subr.mxu1 %v1594_v35  ;;  %v1644_v34 = vld [vmem:[%s16118_s1 + $0x3120] sm:$0xff]  ;;  %v2512_v35 = vcombine.high %v64_v28, %v64_v28 }
 0x32e   :  { %9111 = vmatpush3.msra.mxu0 %v1545_v36  ;;  %9144 = vmatpush3.msra.mxu1 %v1578_v37  ;;  %v1626_v36 = vld [vmem:[%s16118_s1 + $0x3090] sm:$0xff]  ;;  %v1659_v37 = vld [vmem:[%s16118_s1 + $0x3198] sm:$0xff] }
 0x32f   :  { %9112 = vmatprep.subr.mxu0 %v1560_v39  ;;  %9145 = vmatprep.subr.mxu1 %v1593_v40  ;;  %v1610_v39 = vld [vmem:[%s16118_s1 + $0x3010] sm:$0xff]  ;;  %v1643_v40 = vld [vmem:[%s16118_s1 + $0x3118] sm:$0xff] }
 0x330   :  { %9113 = vmatpush3.msra.mxu0 %v1544_v42  ;;  %6047 = vmatprep.mubr.f32.mxu0 %v2510_v41  ;;  %v1625_v41 = vld [vmem:[%s16118_s1 + $0x3088] sm:$0xff]  ;;  %v1658_v42 = vld [vmem:[%s16118_s1 + $0x3190] sm:$0xff] }
 0x331   :  { %9146 = vmatpush3.msra.mxu1 %v1577_v43  ;;  %6048 = vmatmul.mubr.f32.vlgmr.msra.gmra.mxu0 %v2502_v31  ;;  %v1627_v31 = vld [vmem:[%s16118_s1 + $0x3098] sm:$0xff]  ;;  %v1609_v43 = vld [vmem:[%s16118_s1 + $0x3008] sm:$0xff] }
 0x332   :  { %9147 = vmatprep.subr.mxu1 %v1592_v44  ;;  %9152 = vmatprep.subr.mxu0 %v1639_v45  ;;  %v1642_v44 = vld [vmem:[%s16118_s1 + $0x3110] sm:$0xff]  ;;  %v2526_v45 = vrot.slane %v2512_v35, %v9997_v51  ;;  %v65_v35 = vld [vmem:[%s16117_s0 + $0xc8] sm:$0xff] }
 0x333   :  { %9148 = vmatpush3.msra.mxu1 %v1576_v47  ;;  %6117 = vmatprep.mubr.f32.mxu1 %v2511_v46  ;;  %v1624_v46 = vld [vmem:[%s16118_s1 + $0x3080] sm:$0xff]  ;;  %v1657_v47 = vld [vmem:[%s16118_s1 + $0x3188] sm:$0xff] }
 0x334   :  { %9153 = vmatpush3.msra.mxu0 %v1623_v48  ;;  %6118 = vmatmul.mubr.f32.vlgmr.msra.gmra.mxu1 %v2509_v38  ;;  %v2519_v38 = vrot.slane %v64_v28, %v9997_v51  ;;  %v1711_v28 = vld [vmem:[%s16118_s1 + $0x3338] sm:$0xff] }
 0x335   :  { %9154 = vmatprep.subr.mxu0 %v1638_v49  ;;  %9187 = vmatprep.subr.mxu1 %v1671_v50  ;;  %v1608_v49 = vld [vmem:[%s16118_s1 + $0x3000] sm:$0xff]  ;;  %v1641_v50 = vld [vmem:[%s16118_s1 + $0x3108] sm:$0xff] }
 0x336   :  { %9155 = vmatpush3.msra.mxu0 %v1622_v52  ;;  %9188 = vmatpush3.msra.mxu1 %v1655_v53  ;;  %v2527_v48 = vcombine.high %v2519_v38, %v2519_v38  ;;  %v1656_v52 = vld [vmem:[%s16118_s1 + $0x3180] sm:$0xff]  ;;  %v1703_v53 = vld [vmem:[%s16118_s1 + $0x32f8] sm:$0xff] }
 0x337   :  { %9156 = vmatprep.subr.mxu0 %v1637_v54  ;;  %9189 = vmatprep.subr.mxu1 %v1670_v55  ;;  %v2528_v54 = vcombine.high %v2526_v45, %v2526_v45  ;;  %v1640_v55 = vld [vmem:[%s16118_s1 + $0x3100] sm:$0xff] }
 0x338   :  { %9157 = vmatpush3.msra.mxu0 %v1621_v56  ;;  %9190 = vmatpush3.msra.mxu1 %v1654_v57  ;;  %v1687_v56 = vld [vmem:[%s16118_s1 + $0x3278] sm:$0xff]  ;;  %v1702_v57 = vld [vmem:[%s16118_s1 + $0x32f0] sm:$0xff] }
 0x339   :  { %9158 = vmatprep.subr.mxu0 %v1636_v58  ;;  %9191 = vmatprep.subr.mxu1 %v1669_v59  ;;  %v1735_v58 = vld [vmem:[%s16118_s1 + $0x33f8] sm:$0xff]  ;;  %v1686_v59 = vld [vmem:[%s16118_s1 + $0x3270] sm:$0xff] }
 0x33a   :  { %9159 = vmatpush3.msra.mxu0 %v1620_v60  ;;  %9192 = vmatpush3.msra.mxu1 %v1653_v61  ;;  %v1719_v60 = vld [vmem:[%s16118_s1 + $0x3378] sm:$0xff]  ;;  %v1701_v61 = vld [vmem:[%s16118_s1 + $0x32e8] sm:$0xff] }
 0x33b   :  { %9160 = vmatprep.subr.mxu0 %v1635_v62  ;;  %9193 = vmatprep.subr.mxu1 %v1668_v63  ;;  %v1734_v62 = vld [vmem:[%s16118_s1 + $0x33f0] sm:$0xff]  ;;  %v1685_v63 = vld [vmem:[%s16118_s1 + $0x3268] sm:$0xff] }
 0x33c   :  { %9161 = vmatpush3.msra.mxu0 %v1619_v0  ;;  %9194 = vmatpush3.msra.mxu1 %v1652_v1  ;;  %v1718_v0 = vld [vmem:[%s16118_s1 + $0x3370] sm:$0xff]  ;;  %v1700_v1 = vld [vmem:[%s16118_s1 + $0x32e0] sm:$0xff] }
 0x33d   :  { %9162 = vmatprep.subr.mxu0 %v1634_v2  ;;  %9195 = vmatprep.subr.mxu1 %v1667_v3  ;;  %v1733_v2 = vld [vmem:[%s16118_s1 + $0x33e8] sm:$0xff]  ;;  %v1684_v3 = vld [vmem:[%s16118_s1 + $0x3260] sm:$0xff] }
 0x33e   :  { %9163 = vmatpush3.msra.mxu0 %v1618_v4  ;;  %9196 = vmatpush3.msra.mxu1 %v1651_v5  ;;  %v1717_v4 = vld [vmem:[%s16118_s1 + $0x3368] sm:$0xff]  ;;  %v1699_v5 = vld [vmem:[%s16118_s1 + $0x32d8] sm:$0xff] }
 0x33f   :  { %9164 = vmatprep.subr.mxu0 %v1633_v6  ;;  %9197 = vmatprep.subr.mxu1 %v1666_v7  ;;  %v1732_v6 = vld [vmem:[%s16118_s1 + $0x33e0] sm:$0xff]  ;;  %v1683_v7 = vld [vmem:[%s16118_s1 + $0x3258] sm:$0xff] }
 0x340   :  { %9165 = vmatpush3.msra.mxu0 %v1617_v8  ;;  %9198 = vmatpush3.msra.mxu1 %v1650_v9  ;;  %v1716_v8 = vld [vmem:[%s16118_s1 + $0x3360] sm:$0xff]  ;;  %v1698_v9 = vld [vmem:[%s16118_s1 + $0x32d0] sm:$0xff] }
 0x341   :  { %9166 = vmatprep.subr.mxu0 %v1632_v10  ;;  %9199 = vmatprep.subr.mxu1 %v1665_v11  ;;  %v1731_v10 = vld [vmem:[%s16118_s1 + $0x33d8] sm:$0xff]  ;;  %v1682_v11 = vld [vmem:[%s16118_s1 + $0x3250] sm:$0xff] }
 0x342   :  { %9167 = vmatpush3.msra.mxu0 %v1616_v12  ;;  %9200 = vmatpush3.msra.mxu1 %v1649_v13  ;;  %v1715_v12 = vld [vmem:[%s16118_s1 + $0x3358] sm:$0xff]  ;;  %v1697_v13 = vld [vmem:[%s16118_s1 + $0x32c8] sm:$0xff] }
 0x343   :  { %9168 = vmatprep.subr.mxu0 %v1631_v14  ;;  %9201 = vmatprep.subr.mxu1 %v1664_v15  ;;  %v1730_v14 = vld [vmem:[%s16118_s1 + $0x33d0] sm:$0xff]  ;;  %v1681_v15 = vld [vmem:[%s16118_s1 + $0x3248] sm:$0xff] }
 0x344   :  { %9169 = vmatpush3.msra.mxu0 %v1615_v16  ;;  %9202 = vmatpush3.msra.mxu1 %v1648_v17  ;;  %v1714_v16 = vld [vmem:[%s16118_s1 + $0x3350] sm:$0xff]  ;;  %v1696_v17 = vld [vmem:[%s16118_s1 + $0x32c0] sm:$0xff] }
 0x345   :  { %9170 = vmatprep.subr.mxu0 %v1630_v18  ;;  %9203 = vmatprep.subr.mxu1 %v1663_v19  ;;  %v1729_v18 = vld [vmem:[%s16118_s1 + $0x33c8] sm:$0xff]  ;;  %v1680_v19 = vld [vmem:[%s16118_s1 + $0x3240] sm:$0xff] }
 0x346   :  { %9171 = vmatpush3.msra.mxu0 %v1614_v20  ;;  %9204 = vmatpush3.msra.mxu1 %v1647_v21  ;;  %v1713_v20 = vld [vmem:[%s16118_s1 + $0x3348] sm:$0xff]  ;;  %v1695_v21 = vld [vmem:[%s16118_s1 + $0x32b8] sm:$0xff] }
 0x347   :  { %9172 = vmatprep.subr.mxu0 %v1629_v22  ;;  %9205 = vmatprep.subr.mxu1 %v1662_v23  ;;  %v1728_v22 = vld [vmem:[%s16118_s1 + $0x33c0] sm:$0xff]  ;;  %v1679_v23 = vld [vmem:[%s16118_s1 + $0x3238] sm:$0xff] }
 0x348   :  { %9173 = vmatpush3.msra.mxu0 %v1613_v24  ;;  %9206 = vmatpush3.msra.mxu1 %v1646_v25  ;;  %v1712_v24 = vld [vmem:[%s16118_s1 + $0x3340] sm:$0xff]  ;;  %v1694_v25 = vld [vmem:[%s16118_s1 + $0x32b0] sm:$0xff] }
 0x349   :  { %9174 = vmatprep.subr.mxu0 %v1628_v26  ;;  %9207 = vmatprep.subr.mxu1 %v1661_v27  ;;  %v1727_v26 = vld [vmem:[%s16118_s1 + $0x33b8] sm:$0xff]  ;;  %v1678_v27 = vld [vmem:[%s16118_s1 + $0x3230] sm:$0xff] }
 0x34a   :  { %9175 = vmatpush3.msra.mxu0 %v1612_v29  ;;  %9208 = vmatpush3.msra.mxu1 %v1645_v30  ;;  %v1693_v29 = vld [vmem:[%s16118_s1 + $0x32a8] sm:$0xff]  ;;  %v1726_v30 = vld [vmem:[%s16118_s1 + $0x33b0] sm:$0xff] }
 0x34b   :  { %9176 = vmatprep.subr.mxu0 %v1627_v31  ;;  %9209 = vmatprep.subr.mxu1 %v1660_v32  ;;  %v1677_v31 = vld [vmem:[%s16118_s1 + $0x3228] sm:$0xff]  ;;  %v1710_v32 = vld [vmem:[%s16118_s1 + $0x3330] sm:$0xff] }
 0x34c   :  { %9177 = vmatpush3.msra.mxu0 %v1611_v33  ;;  %9210 = vmatpush3.msra.mxu1 %v1644_v34  ;;  %v1692_v33 = vld [vmem:[%s16118_s1 + $0x32a0] sm:$0xff]  ;;  %v1725_v34 = vld [vmem:[%s16118_s1 + $0x33a8] sm:$0xff] }
 0x34d   :  { %9178 = vmatprep.subr.mxu0 %v1626_v36  ;;  %9211 = vmatprep.subr.mxu1 %v1659_v37  ;;  %v1676_v36 = vld [vmem:[%s16118_s1 + $0x3220] sm:$0xff]  ;;  %v1709_v37 = vld [vmem:[%s16118_s1 + $0x3328] sm:$0xff] }
 0x34e   :  { %9179 = vmatpush3.msra.mxu0 %v1610_v39  ;;  %9212 = vmatpush3.msra.mxu1 %v1643_v40  ;;  %v1724_v39 = vld [vmem:[%s16118_s1 + $0x33a0] sm:$0xff]  ;;  %v1675_v40 = vld [vmem:[%s16118_s1 + $0x3218] sm:$0xff] }
 0x34f   :  { %9180 = vmatprep.subr.mxu0 %v1625_v41  ;;  %9213 = vmatprep.subr.mxu1 %v1658_v42  ;;  %v1708_v41 = vld [vmem:[%s16118_s1 + $0x3320] sm:$0xff]  ;;  %v2529_v42 = vcombine.high %v65_v35, %v65_v35 }
 0x350   :  { %9181 = vmatpush3.msra.mxu0 %v1609_v43  ;;  %9214 = vmatpush3.msra.mxu1 %v1642_v44  ;;  %v1690_v43 = vld [vmem:[%s16118_s1 + $0x3290] sm:$0xff]  ;;  %v1723_v44 = vld [vmem:[%s16118_s1 + $0x3398] sm:$0xff] }
 0x351   :  { %9182 = vmatprep.subr.mxu0 %v1624_v46  ;;  %9215 = vmatprep.subr.mxu1 %v1657_v47  ;;  %v1674_v46 = vld [vmem:[%s16118_s1 + $0x3210] sm:$0xff]  ;;  %v1707_v47 = vld [vmem:[%s16118_s1 + $0x3318] sm:$0xff] }
 0x352   :  { %9183 = vmatpush3.msra.mxu0 %v1608_v49  ;;  %6187 = vmatprep.mubr.f32.mxu0 %v2527_v48  ;;  %v1689_v48 = vld [vmem:[%s16118_s1 + $0x3288] sm:$0xff]  ;;  %v1722_v49 = vld [vmem:[%s16118_s1 + $0x3390] sm:$0xff] }
 0x353   :  { %9216 = vmatpush3.msra.mxu1 %v1641_v50  ;;  %6188 = vmatmul.mubr.f32.vlgmr.msra.gmra.mxu0 %v2519_v38  ;;  %v1691_v38 = vld [vmem:[%s16118_s1 + $0x3298] sm:$0xff]  ;;  %v1673_v50 = vld [vmem:[%s16118_s1 + $0x3208] sm:$0xff] }
 0x354   :  { %9217 = vmatprep.subr.mxu1 %v1656_v52  ;;  %9222 = vmatprep.subr.mxu0 %v1703_v53  ;;  %v1706_v52 = vld [vmem:[%s16118_s1 + $0x3310] sm:$0xff]  ;;  %v2543_v53 = vrot.slane %v2529_v42, %v9997_v51 }
 0x355   :  { %9218 = vmatpush3.msra.mxu1 %v1640_v55  ;;  %6257 = vmatprep.mubr.f32.mxu1 %v2528_v54  ;;  %v1688_v54 = vld [vmem:[%s16118_s1 + $0x3280] sm:$0xff]  ;;  %v1721_v55 = vld [vmem:[%s16118_s1 + $0x3388] sm:$0xff]  ;;  %v66_v42 = vld [vmem:[%s16117_s0 + $0xd0] sm:$0xff] }
 0x356   :  { %9223 = vmatpush3.msra.mxu0 %v1687_v56  ;;  %6258 = vmatmul.mubr.f32.vlgmr.msra.gmra.mxu1 %v2526_v45  ;;  %v2536_v45 = vrot.slane %v65_v35, %v9997_v51  ;;  %v1775_v35 = vld [vmem:[%s16118_s1 + $0x3538] sm:$0xff] }
 0x357   :  { %9224 = vmatprep.subr.mxu0 %v1702_v57  ;;  %9257 = vmatprep.subr.mxu1 %v1735_v58  ;;  %v1672_v57 = vld [vmem:[%s16118_s1 + $0x3200] sm:$0xff]  ;;  %v1705_v58 = vld [vmem:[%s16118_s1 + $0x3308] sm:$0xff] }
 0x358   :  { %9225 = vmatpush3.msra.mxu0 %v1686_v59  ;;  %9258 = vmatpush3.msra.mxu1 %v1719_v60  ;;  %v2544_v56 = vcombine.high %v2536_v45, %v2536_v45  ;;  %v1720_v59 = vld [vmem:[%s16118_s1 + $0x3380] sm:$0xff]  ;;  %v1767_v60 = vld [vmem:[%s16118_s1 + $0x34f8] sm:$0xff] }
 0x359   :  { %9226 = vmatprep.subr.mxu0 %v1701_v61  ;;  %9259 = vmatprep.subr.mxu1 %v1734_v62  ;;  %v2545_v61 = vcombine.high %v2543_v53, %v2543_v53  ;;  %v1704_v62 = vld [vmem:[%s16118_s1 + $0x3300] sm:$0xff] }
 0x35a   :  { %9227 = vmatpush3.msra.mxu0 %v1685_v63  ;;  %9260 = vmatpush3.msra.mxu1 %v1718_v0  ;;  %v1751_v63 = vld [vmem:[%s16118_s1 + $0x3478] sm:$0xff]  ;;  %v1766_v0 = vld [vmem:[%s16118_s1 + $0x34f0] sm:$0xff] }
 0x35b   :  { %9228 = vmatprep.subr.mxu0 %v1700_v1  ;;  %9261 = vmatprep.subr.mxu1 %v1733_v2  ;;  %v1799_v1 = vld [vmem:[%s16118_s1 + $0x35f8] sm:$0xff]  ;;  %v1750_v2 = vld [vmem:[%s16118_s1 + $0x3470] sm:$0xff] }
 0x35c   :  { %9229 = vmatpush3.msra.mxu0 %v1684_v3  ;;  %9262 = vmatpush3.msra.mxu1 %v1717_v4  ;;  %v1783_v3 = vld [vmem:[%s16118_s1 + $0x3578] sm:$0xff]  ;;  %v1765_v4 = vld [vmem:[%s16118_s1 + $0x34e8] sm:$0xff] }
 0x35d   :  { %9230 = vmatprep.subr.mxu0 %v1699_v5  ;;  %9263 = vmatprep.subr.mxu1 %v1732_v6  ;;  %v1798_v5 = vld [vmem:[%s16118_s1 + $0x35f0] sm:$0xff]  ;;  %v1749_v6 = vld [vmem:[%s16118_s1 + $0x3468] sm:$0xff] }
 0x35e   :  { %9231 = vmatpush3.msra.mxu0 %v1683_v7  ;;  %9264 = vmatpush3.msra.mxu1 %v1716_v8  ;;  %v1782_v7 = vld [vmem:[%s16118_s1 + $0x3570] sm:$0xff]  ;;  %v1764_v8 = vld [vmem:[%s16118_s1 + $0x34e0] sm:$0xff] }
 0x35f   :  { %9232 = vmatprep.subr.mxu0 %v1698_v9  ;;  %9265 = vmatprep.subr.mxu1 %v1731_v10  ;;  %v1797_v9 = vld [vmem:[%s16118_s1 + $0x35e8] sm:$0xff]  ;;  %v1748_v10 = vld [vmem:[%s16118_s1 + $0x3460] sm:$0xff] }
 0x360   :  { %9233 = vmatpush3.msra.mxu0 %v1682_v11  ;;  %9266 = vmatpush3.msra.mxu1 %v1715_v12  ;;  %v1781_v11 = vld [vmem:[%s16118_s1 + $0x3568] sm:$0xff]  ;;  %v1763_v12 = vld [vmem:[%s16118_s1 + $0x34d8] sm:$0xff] }
 0x361   :  { %9234 = vmatprep.subr.mxu0 %v1697_v13  ;;  %9267 = vmatprep.subr.mxu1 %v1730_v14  ;;  %v1796_v13 = vld [vmem:[%s16118_s1 + $0x35e0] sm:$0xff]  ;;  %v1747_v14 = vld [vmem:[%s16118_s1 + $0x3458] sm:$0xff] }
 0x362   :  { %9235 = vmatpush3.msra.mxu0 %v1681_v15  ;;  %9268 = vmatpush3.msra.mxu1 %v1714_v16  ;;  %v1780_v15 = vld [vmem:[%s16118_s1 + $0x3560] sm:$0xff]  ;;  %v1762_v16 = vld [vmem:[%s16118_s1 + $0x34d0] sm:$0xff] }
 0x363   :  { %9236 = vmatprep.subr.mxu0 %v1696_v17  ;;  %9269 = vmatprep.subr.mxu1 %v1729_v18  ;;  %v1795_v17 = vld [vmem:[%s16118_s1 + $0x35d8] sm:$0xff]  ;;  %v1746_v18 = vld [vmem:[%s16118_s1 + $0x3450] sm:$0xff] }
 0x364   :  { %9237 = vmatpush3.msra.mxu0 %v1680_v19  ;;  %9270 = vmatpush3.msra.mxu1 %v1713_v20  ;;  %v1779_v19 = vld [vmem:[%s16118_s1 + $0x3558] sm:$0xff]  ;;  %v1761_v20 = vld [vmem:[%s16118_s1 + $0x34c8] sm:$0xff] }
 0x365   :  { %9238 = vmatprep.subr.mxu0 %v1695_v21  ;;  %9271 = vmatprep.subr.mxu1 %v1728_v22  ;;  %v1794_v21 = vld [vmem:[%s16118_s1 + $0x35d0] sm:$0xff]  ;;  %v1745_v22 = vld [vmem:[%s16118_s1 + $0x3448] sm:$0xff] }
 0x366   :  { %9239 = vmatpush3.msra.mxu0 %v1679_v23  ;;  %9272 = vmatpush3.msra.mxu1 %v1712_v24  ;;  %v1778_v23 = vld [vmem:[%s16118_s1 + $0x3550] sm:$0xff]  ;;  %v1760_v24 = vld [vmem:[%s16118_s1 + $0x34c0] sm:$0xff] }
 0x367   :  { %9240 = vmatprep.subr.mxu0 %v1694_v25  ;;  %9273 = vmatprep.subr.mxu1 %v1727_v26  ;;  %v1793_v25 = vld [vmem:[%s16118_s1 + $0x35c8] sm:$0xff]  ;;  %v1744_v26 = vld [vmem:[%s16118_s1 + $0x3440] sm:$0xff] }
 0x368   :  { %9241 = vmatpush3.msra.mxu0 %v1678_v27  ;;  %9274 = vmatpush3.msra.mxu1 %v1711_v28  ;;  %v1777_v27 = vld [vmem:[%s16118_s1 + $0x3548] sm:$0xff]  ;;  %v1759_v28 = vld [vmem:[%s16118_s1 + $0x34b8] sm:$0xff] }
 0x369   :  { %9242 = vmatprep.subr.mxu0 %v1693_v29  ;;  %9275 = vmatprep.subr.mxu1 %v1726_v30  ;;  %v1792_v29 = vld [vmem:[%s16118_s1 + $0x35c0] sm:$0xff]  ;;  %v1743_v30 = vld [vmem:[%s16118_s1 + $0x3438] sm:$0xff] }
 0x36a   :  { %9243 = vmatpush3.msra.mxu0 %v1677_v31  ;;  %9276 = vmatpush3.msra.mxu1 %v1710_v32  ;;  %v1776_v31 = vld [vmem:[%s16118_s1 + $0x3540] sm:$0xff]  ;;  %v1758_v32 = vld [vmem:[%s16118_s1 + $0x34b0] sm:$0xff] }
 0x36b   :  { %9244 = vmatprep.subr.mxu0 %v1692_v33  ;;  %9277 = vmatprep.subr.mxu1 %v1725_v34  ;;  %v1791_v33 = vld [vmem:[%s16118_s1 + $0x35b8] sm:$0xff]  ;;  %v1742_v34 = vld [vmem:[%s16118_s1 + $0x3430] sm:$0xff] }
 0x36c   :  { %9245 = vmatpush3.msra.mxu0 %v1676_v36  ;;  %9278 = vmatpush3.msra.mxu1 %v1709_v37  ;;  %v1757_v36 = vld [vmem:[%s16118_s1 + $0x34a8] sm:$0xff]  ;;  %v1790_v37 = vld [vmem:[%s16118_s1 + $0x35b0] sm:$0xff] }
 0x36d   :  { %9246 = vmatprep.subr.mxu0 %v1691_v38  ;;  %9279 = vmatprep.subr.mxu1 %v1724_v39  ;;  %v1741_v38 = vld [vmem:[%s16118_s1 + $0x3428] sm:$0xff]  ;;  %v1774_v39 = vld [vmem:[%s16118_s1 + $0x3530] sm:$0xff] }
 0x36e   :  { %9247 = vmatpush3.msra.mxu0 %v1675_v40  ;;  %9280 = vmatpush3.msra.mxu1 %v1708_v41  ;;  %v1756_v40 = vld [vmem:[%s16118_s1 + $0x34a0] sm:$0xff]  ;;  %v1789_v41 = vld [vmem:[%s16118_s1 + $0x35a8] sm:$0xff] }
 0x36f   :  { %9248 = vmatprep.subr.mxu0 %v1690_v43  ;;  %9281 = vmatprep.subr.mxu1 %v1723_v44  ;;  %v1740_v43 = vld [vmem:[%s16118_s1 + $0x3420] sm:$0xff]  ;;  %v1773_v44 = vld [vmem:[%s16118_s1 + $0x3528] sm:$0xff] }
 0x370   :  { %9249 = vmatpush3.msra.mxu0 %v1674_v46  ;;  %9282 = vmatpush3.msra.mxu1 %v1707_v47  ;;  %v1788_v46 = vld [vmem:[%s16118_s1 + $0x35a0] sm:$0xff]  ;;  %v1739_v47 = vld [vmem:[%s16118_s1 + $0x3418] sm:$0xff] }
 0x371   :  { %9250 = vmatprep.subr.mxu0 %v1689_v48  ;;  %9283 = vmatprep.subr.mxu1 %v1722_v49  ;;  %v1772_v48 = vld [vmem:[%s16118_s1 + $0x3520] sm:$0xff]  ;;  %v2546_v49 = vcombine.high %v66_v42, %v66_v42 }
 0x372   :  { %9251 = vmatpush3.msra.mxu0 %v1673_v50  ;;  %9284 = vmatpush3.msra.mxu1 %v1706_v52  ;;  %v1754_v50 = vld [vmem:[%s16118_s1 + $0x3490] sm:$0xff]  ;;  %v1787_v52 = vld [vmem:[%s16118_s1 + $0x3598] sm:$0xff] }
 0x373   :  { %9252 = vmatprep.subr.mxu0 %v1688_v54  ;;  %9285 = vmatprep.subr.mxu1 %v1721_v55  ;;  %v1738_v54 = vld [vmem:[%s16118_s1 + $0x3410] sm:$0xff]  ;;  %v1771_v55 = vld [vmem:[%s16118_s1 + $0x3518] sm:$0xff] }
 0x374   :  { %9253 = vmatpush3.msra.mxu0 %v1672_v57  ;;  %6327 = vmatprep.mubr.f32.mxu0 %v2544_v56  ;;  %v1753_v56 = vld [vmem:[%s16118_s1 + $0x3488] sm:$0xff]  ;;  %v1786_v57 = vld [vmem:[%s16118_s1 + $0x3590] sm:$0xff] }
 0x375   :  { %9286 = vmatpush3.msra.mxu1 %v1705_v58  ;;  %6328 = vmatmul.mubr.f32.vlgmr.msra.gmra.mxu0 %v2536_v45  ;;  %v1755_v45 = vld [vmem:[%s16118_s1 + $0x3498] sm:$0xff]  ;;  %v1737_v58 = vld [vmem:[%s16118_s1 + $0x3408] sm:$0xff] }
 0x376   :  { %9287 = vmatprep.subr.mxu1 %v1720_v59  ;;  %9292 = vmatprep.subr.mxu0 %v1767_v60  ;;  %v1770_v59 = vld [vmem:[%s16118_s1 + $0x3510] sm:$0xff]  ;;  %v2560_v60 = vrot.slane %v2546_v49, %v9997_v51  ;;  %v67_v49 = vld [vmem:[%s16117_s0 + $0xd8] sm:$0xff] }
 0x377   :  { %9288 = vmatpush3.msra.mxu1 %v1704_v62  ;;  %6397 = vmatprep.mubr.f32.mxu1 %v2545_v61  ;;  %v1752_v61 = vld [vmem:[%s16118_s1 + $0x3480] sm:$0xff]  ;;  %v1785_v62 = vld [vmem:[%s16118_s1 + $0x3588] sm:$0xff] }
 0x378   :  { %9293 = vmatpush3.msra.mxu0 %v1751_v63  ;;  %6398 = vmatmul.mubr.f32.vlgmr.msra.gmra.mxu1 %v2543_v53  ;;  %v2553_v53 = vrot.slane %v66_v42, %v9997_v51  ;;  %v1839_v42 = vld [vmem:[%s16118_s1 + $0x3738] sm:$0xff] }
 0x379   :  { %9294 = vmatprep.subr.mxu0 %v1766_v0  ;;  %9327 = vmatprep.subr.mxu1 %v1799_v1  ;;  %v1736_v0 = vld [vmem:[%s16118_s1 + $0x3400] sm:$0xff]  ;;  %v1769_v1 = vld [vmem:[%s16118_s1 + $0x3508] sm:$0xff] }
 0x37a   :  { %9295 = vmatpush3.msra.mxu0 %v1750_v2  ;;  %9328 = vmatpush3.msra.mxu1 %v1783_v3  ;;  %v2561_v63 = vcombine.high %v2553_v53, %v2553_v53  ;;  %v1784_v2 = vld [vmem:[%s16118_s1 + $0x3580] sm:$0xff]  ;;  %v1831_v3 = vld [vmem:[%s16118_s1 + $0x36f8] sm:$0xff] }
 0x37b   :  { %9296 = vmatprep.subr.mxu0 %v1765_v4  ;;  %9329 = vmatprep.subr.mxu1 %v1798_v5  ;;  %v2562_v4 = vcombine.high %v2560_v60, %v2560_v60  ;;  %v1768_v5 = vld [vmem:[%s16118_s1 + $0x3500] sm:$0xff] }
 0x37c   :  { %9297 = vmatpush3.msra.mxu0 %v1749_v6  ;;  %9330 = vmatpush3.msra.mxu1 %v1782_v7  ;;  %v1815_v6 = vld [vmem:[%s16118_s1 + $0x3678] sm:$0xff]  ;;  %v1830_v7 = vld [vmem:[%s16118_s1 + $0x36f0] sm:$0xff] }
 0x37d   :  { %9298 = vmatprep.subr.mxu0 %v1764_v8  ;;  %9331 = vmatprep.subr.mxu1 %v1797_v9  ;;  %v1863_v8 = vld [vmem:[%s16118_s1 + $0x37f8] sm:$0xff]  ;;  %v1814_v9 = vld [vmem:[%s16118_s1 + $0x3670] sm:$0xff] }
 0x37e   :  { %9299 = vmatpush3.msra.mxu0 %v1748_v10  ;;  %9332 = vmatpush3.msra.mxu1 %v1781_v11  ;;  %v1847_v10 = vld [vmem:[%s16118_s1 + $0x3778] sm:$0xff]  ;;  %v1829_v11 = vld [vmem:[%s16118_s1 + $0x36e8] sm:$0xff] }
 0x37f   :  { %9300 = vmatprep.subr.mxu0 %v1763_v12  ;;  %9333 = vmatprep.subr.mxu1 %v1796_v13  ;;  %v1862_v12 = vld [vmem:[%s16118_s1 + $0x37f0] sm:$0xff]  ;;  %v1813_v13 = vld [vmem:[%s16118_s1 + $0x3668] sm:$0xff] }
 0x380   :  { %9301 = vmatpush3.msra.mxu0 %v1747_v14  ;;  %9334 = vmatpush3.msra.mxu1 %v1780_v15  ;;  %v1846_v14 = vld [vmem:[%s16118_s1 + $0x3770] sm:$0xff]  ;;  %v1828_v15 = vld [vmem:[%s16118_s1 + $0x36e0] sm:$0xff] }
 0x381   :  { %9302 = vmatprep.subr.mxu0 %v1762_v16  ;;  %9335 = vmatprep.subr.mxu1 %v1795_v17  ;;  %v1861_v16 = vld [vmem:[%s16118_s1 + $0x37e8] sm:$0xff]  ;;  %v1812_v17 = vld [vmem:[%s16118_s1 + $0x3660] sm:$0xff] }
 0x382   :  { %9303 = vmatpush3.msra.mxu0 %v1746_v18  ;;  %9336 = vmatpush3.msra.mxu1 %v1779_v19  ;;  %v1845_v18 = vld [vmem:[%s16118_s1 + $0x3768] sm:$0xff]  ;;  %v1827_v19 = vld [vmem:[%s16118_s1 + $0x36d8] sm:$0xff] }
 0x383   :  { %9304 = vmatprep.subr.mxu0 %v1761_v20  ;;  %9337 = vmatprep.subr.mxu1 %v1794_v21  ;;  %v1860_v20 = vld [vmem:[%s16118_s1 + $0x37e0] sm:$0xff]  ;;  %v1811_v21 = vld [vmem:[%s16118_s1 + $0x3658] sm:$0xff] }
 0x384   :  { %9305 = vmatpush3.msra.mxu0 %v1745_v22  ;;  %9338 = vmatpush3.msra.mxu1 %v1778_v23  ;;  %v1844_v22 = vld [vmem:[%s16118_s1 + $0x3760] sm:$0xff]  ;;  %v1826_v23 = vld [vmem:[%s16118_s1 + $0x36d0] sm:$0xff] }
 0x385   :  { %9306 = vmatprep.subr.mxu0 %v1760_v24  ;;  %9339 = vmatprep.subr.mxu1 %v1793_v25  ;;  %v1859_v24 = vld [vmem:[%s16118_s1 + $0x37d8] sm:$0xff]  ;;  %v1810_v25 = vld [vmem:[%s16118_s1 + $0x3650] sm:$0xff] }
 0x386   :  { %9307 = vmatpush3.msra.mxu0 %v1744_v26  ;;  %9340 = vmatpush3.msra.mxu1 %v1777_v27  ;;  %v1843_v26 = vld [vmem:[%s16118_s1 + $0x3758] sm:$0xff]  ;;  %v1825_v27 = vld [vmem:[%s16118_s1 + $0x36c8] sm:$0xff] }
 0x387   :  { %9308 = vmatprep.subr.mxu0 %v1759_v28  ;;  %9341 = vmatprep.subr.mxu1 %v1792_v29  ;;  %v1858_v28 = vld [vmem:[%s16118_s1 + $0x37d0] sm:$0xff]  ;;  %v1809_v29 = vld [vmem:[%s16118_s1 + $0x3648] sm:$0xff] }
 0x388   :  { %9309 = vmatpush3.msra.mxu0 %v1743_v30  ;;  %9342 = vmatpush3.msra.mxu1 %v1776_v31  ;;  %v1842_v30 = vld [vmem:[%s16118_s1 + $0x3750] sm:$0xff]  ;;  %v1824_v31 = vld [vmem:[%s16118_s1 + $0x36c0] sm:$0xff] }
 0x389   :  { %9310 = vmatprep.subr.mxu0 %v1758_v32  ;;  %9343 = vmatprep.subr.mxu1 %v1791_v33  ;;  %v1857_v32 = vld [vmem:[%s16118_s1 + $0x37c8] sm:$0xff]  ;;  %v1808_v33 = vld [vmem:[%s16118_s1 + $0x3640] sm:$0xff] }
 0x38a   :  { %9311 = vmatpush3.msra.mxu0 %v1742_v34  ;;  %9344 = vmatpush3.msra.mxu1 %v1775_v35  ;;  %v1841_v34 = vld [vmem:[%s16118_s1 + $0x3748] sm:$0xff]  ;;  %v1823_v35 = vld [vmem:[%s16118_s1 + $0x36b8] sm:$0xff] }
 0x38b   :  { %9312 = vmatprep.subr.mxu0 %v1757_v36  ;;  %9345 = vmatprep.subr.mxu1 %v1790_v37  ;;  %v1856_v36 = vld [vmem:[%s16118_s1 + $0x37c0] sm:$0xff]  ;;  %v1807_v37 = vld [vmem:[%s16118_s1 + $0x3638] sm:$0xff] }
 0x38c   :  { %9313 = vmatpush3.msra.mxu0 %v1741_v38  ;;  %9346 = vmatpush3.msra.mxu1 %v1774_v39  ;;  %v1840_v38 = vld [vmem:[%s16118_s1 + $0x3740] sm:$0xff]  ;;  %v1822_v39 = vld [vmem:[%s16118_s1 + $0x36b0] sm:$0xff] }
 0x38d   :  { %9314 = vmatprep.subr.mxu0 %v1756_v40  ;;  %9347 = vmatprep.subr.mxu1 %v1789_v41  ;;  %v1855_v40 = vld [vmem:[%s16118_s1 + $0x37b8] sm:$0xff]  ;;  %v1806_v41 = vld [vmem:[%s16118_s1 + $0x3630] sm:$0xff] }
 0x38e   :  { %9315 = vmatpush3.msra.mxu0 %v1740_v43  ;;  %9348 = vmatpush3.msra.mxu1 %v1773_v44  ;;  %v1821_v43 = vld [vmem:[%s16118_s1 + $0x36a8] sm:$0xff]  ;;  %v1854_v44 = vld [vmem:[%s16118_s1 + $0x37b0] sm:$0xff] }
 0x38f   :  { %9316 = vmatprep.subr.mxu0 %v1755_v45  ;;  %9349 = vmatprep.subr.mxu1 %v1788_v46  ;;  %v1805_v45 = vld [vmem:[%s16118_s1 + $0x3628] sm:$0xff]  ;;  %v1838_v46 = vld [vmem:[%s16118_s1 + $0x3730] sm:$0xff] }
 0x390   :  { %9317 = vmatpush3.msra.mxu0 %v1739_v47  ;;  %9350 = vmatpush3.msra.mxu1 %v1772_v48  ;;  %v1820_v47 = vld [vmem:[%s16118_s1 + $0x36a0] sm:$0xff]  ;;  %v1853_v48 = vld [vmem:[%s16118_s1 + $0x37a8] sm:$0xff] }
 0x391   :  { %9318 = vmatprep.subr.mxu0 %v1754_v50  ;;  %9351 = vmatprep.subr.mxu1 %v1787_v52  ;;  %v1804_v50 = vld [vmem:[%s16118_s1 + $0x3620] sm:$0xff]  ;;  %v1837_v52 = vld [vmem:[%s16118_s1 + $0x3728] sm:$0xff] }
 0x392   :  { %9319 = vmatpush3.msra.mxu0 %v1738_v54  ;;  %9352 = vmatpush3.msra.mxu1 %v1771_v55  ;;  %v1852_v54 = vld [vmem:[%s16118_s1 + $0x37a0] sm:$0xff]  ;;  %v1803_v55 = vld [vmem:[%s16118_s1 + $0x3618] sm:$0xff] }
 0x393   :  { %9320 = vmatprep.subr.mxu0 %v1753_v56  ;;  %9353 = vmatprep.subr.mxu1 %v1786_v57  ;;  %v1836_v56 = vld [vmem:[%s16118_s1 + $0x3720] sm:$0xff]  ;;  %v2563_v57 = vcombine.high %v67_v49, %v67_v49 }
 0x394   :  { %9321 = vmatpush3.msra.mxu0 %v1737_v58  ;;  %9354 = vmatpush3.msra.mxu1 %v1770_v59  ;;  %v1818_v58 = vld [vmem:[%s16118_s1 + $0x3690] sm:$0xff]  ;;  %v1851_v59 = vld [vmem:[%s16118_s1 + $0x3798] sm:$0xff] }
 0x395   :  { %9322 = vmatprep.subr.mxu0 %v1752_v61  ;;  %9355 = vmatprep.subr.mxu1 %v1785_v62  ;;  %v1802_v61 = vld [vmem:[%s16118_s1 + $0x3610] sm:$0xff]  ;;  %v1835_v62 = vld [vmem:[%s16118_s1 + $0x3718] sm:$0xff] }
 0x396   :  { %9323 = vmatpush3.msra.mxu0 %v1736_v0  ;;  %6467 = vmatprep.mubr.f32.mxu0 %v2561_v63  ;;  %v1817_v63 = vld [vmem:[%s16118_s1 + $0x3688] sm:$0xff]  ;;  %v1850_v0 = vld [vmem:[%s16118_s1 + $0x3790] sm:$0xff] }
 0x397   :  { %9356 = vmatpush3.msra.mxu1 %v1769_v1  ;;  %6468 = vmatmul.mubr.f32.vlgmr.msra.gmra.mxu0 %v2553_v53  ;;  %v1819_v53 = vld [vmem:[%s16118_s1 + $0x3698] sm:$0xff]  ;;  %v1801_v1 = vld [vmem:[%s16118_s1 + $0x3608] sm:$0xff] }
 0x398   :  { %9357 = vmatprep.subr.mxu1 %v1784_v2  ;;  %9362 = vmatprep.subr.mxu0 %v1831_v3  ;;  %v1834_v2 = vld [vmem:[%s16118_s1 + $0x3710] sm:$0xff]  ;;  %v2577_v3 = vrot.slane %v2563_v57, %v9997_v51  ;;  %v68_v57 = vld [vmem:[%s16117_s0 + $0xe0] sm:$0xff] }
 0x399   :  { %9358 = vmatpush3.msra.mxu1 %v1768_v5  ;;  %6537 = vmatprep.mubr.f32.mxu1 %v2562_v4  ;;  %v1816_v4 = vld [vmem:[%s16118_s1 + $0x3680] sm:$0xff]  ;;  %v1849_v5 = vld [vmem:[%s16118_s1 + $0x3788] sm:$0xff] }
 0x39a   :  { %9363 = vmatpush3.msra.mxu0 %v1815_v6  ;;  %6538 = vmatmul.mubr.f32.vlgmr.msra.gmra.mxu1 %v2560_v60  ;;  %v2570_v60 = vrot.slane %v67_v49, %v9997_v51  ;;  %v1903_v49 = vld [vmem:[%s16118_s1 + $0x3938] sm:$0xff] }
 0x39b   :  { %9364 = vmatprep.subr.mxu0 %v1830_v7  ;;  %9397 = vmatprep.subr.mxu1 %v1863_v8  ;;  %v1800_v7 = vld [vmem:[%s16118_s1 + $0x3600] sm:$0xff]  ;;  %v1833_v8 = vld [vmem:[%s16118_s1 + $0x3708] sm:$0xff] }
 0x39c   :  { %9365 = vmatpush3.msra.mxu0 %v1814_v9  ;;  %9398 = vmatpush3.msra.mxu1 %v1847_v10  ;;  %v2578_v6 = vcombine.high %v2570_v60, %v2570_v60  ;;  %v1848_v9 = vld [vmem:[%s16118_s1 + $0x3780] sm:$0xff]  ;;  %v1895_v10 = vld [vmem:[%s16118_s1 + $0x38f8] sm:$0xff] }
 0x39d   :  { %9366 = vmatprep.subr.mxu0 %v1829_v11  ;;  %9399 = vmatprep.subr.mxu1 %v1862_v12  ;;  %v2579_v11 = vcombine.high %v2577_v3, %v2577_v3  ;;  %v1832_v12 = vld [vmem:[%s16118_s1 + $0x3700] sm:$0xff] }
 0x39e   :  { %9367 = vmatpush3.msra.mxu0 %v1813_v13  ;;  %9400 = vmatpush3.msra.mxu1 %v1846_v14  ;;  %v1879_v13 = vld [vmem:[%s16118_s1 + $0x3878] sm:$0xff]  ;;  %v1894_v14 = vld [vmem:[%s16118_s1 + $0x38f0] sm:$0xff] }
 0x39f   :  { %9368 = vmatprep.subr.mxu0 %v1828_v15  ;;  %9401 = vmatprep.subr.mxu1 %v1861_v16  ;;  %v1927_v15 = vld [vmem:[%s16118_s1 + $0x39f8] sm:$0xff]  ;;  %v1878_v16 = vld [vmem:[%s16118_s1 + $0x3870] sm:$0xff] }
 0x3a0   :  { %9369 = vmatpush3.msra.mxu0 %v1812_v17  ;;  %9402 = vmatpush3.msra.mxu1 %v1845_v18  ;;  %v1911_v17 = vld [vmem:[%s16118_s1 + $0x3978] sm:$0xff]  ;;  %v1893_v18 = vld [vmem:[%s16118_s1 + $0x38e8] sm:$0xff] }
 0x3a1   :  { %9370 = vmatprep.subr.mxu0 %v1827_v19  ;;  %9403 = vmatprep.subr.mxu1 %v1860_v20  ;;  %v1926_v19 = vld [vmem:[%s16118_s1 + $0x39f0] sm:$0xff]  ;;  %v1877_v20 = vld [vmem:[%s16118_s1 + $0x3868] sm:$0xff] }
 0x3a2   :  { %9371 = vmatpush3.msra.mxu0 %v1811_v21  ;;  %9404 = vmatpush3.msra.mxu1 %v1844_v22  ;;  %v1910_v21 = vld [vmem:[%s16118_s1 + $0x3970] sm:$0xff]  ;;  %v1892_v22 = vld [vmem:[%s16118_s1 + $0x38e0] sm:$0xff] }
 0x3a3   :  { %9372 = vmatprep.subr.mxu0 %v1826_v23  ;;  %9405 = vmatprep.subr.mxu1 %v1859_v24  ;;  %v1925_v23 = vld [vmem:[%s16118_s1 + $0x39e8] sm:$0xff]  ;;  %v1876_v24 = vld [vmem:[%s16118_s1 + $0x3860] sm:$0xff] }
 0x3a4   :  { %9373 = vmatpush3.msra.mxu0 %v1810_v25  ;;  %9406 = vmatpush3.msra.mxu1 %v1843_v26  ;;  %v1909_v25 = vld [vmem:[%s16118_s1 + $0x3968] sm:$0xff]  ;;  %v1891_v26 = vld [vmem:[%s16118_s1 + $0x38d8] sm:$0xff] }
 0x3a5   :  { %9374 = vmatprep.subr.mxu0 %v1825_v27  ;;  %9407 = vmatprep.subr.mxu1 %v1858_v28  ;;  %v1924_v27 = vld [vmem:[%s16118_s1 + $0x39e0] sm:$0xff]  ;;  %v1875_v28 = vld [vmem:[%s16118_s1 + $0x3858] sm:$0xff] }
 0x3a6   :  { %9375 = vmatpush3.msra.mxu0 %v1809_v29  ;;  %9408 = vmatpush3.msra.mxu1 %v1842_v30  ;;  %v1908_v29 = vld [vmem:[%s16118_s1 + $0x3960] sm:$0xff]  ;;  %v1890_v30 = vld [vmem:[%s16118_s1 + $0x38d0] sm:$0xff] }
 0x3a7   :  { %9376 = vmatprep.subr.mxu0 %v1824_v31  ;;  %9409 = vmatprep.subr.mxu1 %v1857_v32  ;;  %v1923_v31 = vld [vmem:[%s16118_s1 + $0x39d8] sm:$0xff]  ;;  %v1874_v32 = vld [vmem:[%s16118_s1 + $0x3850] sm:$0xff] }
 0x3a8   :  { %9377 = vmatpush3.msra.mxu0 %v1808_v33  ;;  %9410 = vmatpush3.msra.mxu1 %v1841_v34  ;;  %v1907_v33 = vld [vmem:[%s16118_s1 + $0x3958] sm:$0xff]  ;;  %v1889_v34 = vld [vmem:[%s16118_s1 + $0x38c8] sm:$0xff] }
 0x3a9   :  { %9378 = vmatprep.subr.mxu0 %v1823_v35  ;;  %9411 = vmatprep.subr.mxu1 %v1856_v36  ;;  %v1922_v35 = vld [vmem:[%s16118_s1 + $0x39d0] sm:$0xff]  ;;  %v1873_v36 = vld [vmem:[%s16118_s1 + $0x3848] sm:$0xff] }
 0x3aa   :  { %9379 = vmatpush3.msra.mxu0 %v1807_v37  ;;  %9412 = vmatpush3.msra.mxu1 %v1840_v38  ;;  %v1906_v37 = vld [vmem:[%s16118_s1 + $0x3950] sm:$0xff]  ;;  %v1888_v38 = vld [vmem:[%s16118_s1 + $0x38c0] sm:$0xff] }
 0x3ab   :  { %9380 = vmatprep.subr.mxu0 %v1822_v39  ;;  %9413 = vmatprep.subr.mxu1 %v1855_v40  ;;  %v1921_v39 = vld [vmem:[%s16118_s1 + $0x39c8] sm:$0xff]  ;;  %v1872_v40 = vld [vmem:[%s16118_s1 + $0x3840] sm:$0xff] }
 0x3ac   :  { %9381 = vmatpush3.msra.mxu0 %v1806_v41  ;;  %9414 = vmatpush3.msra.mxu1 %v1839_v42  ;;  %v1905_v41 = vld [vmem:[%s16118_s1 + $0x3948] sm:$0xff]  ;;  %v1887_v42 = vld [vmem:[%s16118_s1 + $0x38b8] sm:$0xff] }
 0x3ad   :  { %9382 = vmatprep.subr.mxu0 %v1821_v43  ;;  %9415 = vmatprep.subr.mxu1 %v1854_v44  ;;  %v1920_v43 = vld [vmem:[%s16118_s1 + $0x39c0] sm:$0xff]  ;;  %v1871_v44 = vld [vmem:[%s16118_s1 + $0x3838] sm:$0xff] }
 0x3ae   :  { %9383 = vmatpush3.msra.mxu0 %v1805_v45  ;;  %9416 = vmatpush3.msra.mxu1 %v1838_v46  ;;  %v1904_v45 = vld [vmem:[%s16118_s1 + $0x3940] sm:$0xff]  ;;  %v1886_v46 = vld [vmem:[%s16118_s1 + $0x38b0] sm:$0xff] }
 0x3af   :  { %9384 = vmatprep.subr.mxu0 %v1820_v47  ;;  %9417 = vmatprep.subr.mxu1 %v1853_v48  ;;  %v1919_v47 = vld [vmem:[%s16118_s1 + $0x39b8] sm:$0xff]  ;;  %v1870_v48 = vld [vmem:[%s16118_s1 + $0x3830] sm:$0xff] }
 0x3b0   :  { %9385 = vmatpush3.msra.mxu0 %v1804_v50  ;;  %9418 = vmatpush3.msra.mxu1 %v1837_v52  ;;  %v1885_v50 = vld [vmem:[%s16118_s1 + $0x38a8] sm:$0xff]  ;;  %v1918_v52 = vld [vmem:[%s16118_s1 + $0x39b0] sm:$0xff] }
 0x3b1   :  { %9386 = vmatprep.subr.mxu0 %v1819_v53  ;;  %9419 = vmatprep.subr.mxu1 %v1852_v54  ;;  %v1869_v53 = vld [vmem:[%s16118_s1 + $0x3828] sm:$0xff]  ;;  %v1902_v54 = vld [vmem:[%s16118_s1 + $0x3930] sm:$0xff] }
 0x3b2   :  { %9387 = vmatpush3.msra.mxu0 %v1803_v55  ;;  %9420 = vmatpush3.msra.mxu1 %v1836_v56  ;;  %v1884_v55 = vld [vmem:[%s16118_s1 + $0x38a0] sm:$0xff]  ;;  %v1917_v56 = vld [vmem:[%s16118_s1 + $0x39a8] sm:$0xff] }
 0x3b3   :  { %9388 = vmatprep.subr.mxu0 %v1818_v58  ;;  %9421 = vmatprep.subr.mxu1 %v1851_v59  ;;  %v1868_v58 = vld [vmem:[%s16118_s1 + $0x3820] sm:$0xff]  ;;  %v1901_v59 = vld [vmem:[%s16118_s1 + $0x3928] sm:$0xff] }
 0x3b4   :  { %9389 = vmatpush3.msra.mxu0 %v1802_v61  ;;  %9422 = vmatpush3.msra.mxu1 %v1835_v62  ;;  %v1916_v61 = vld [vmem:[%s16118_s1 + $0x39a0] sm:$0xff]  ;;  %v1867_v62 = vld [vmem:[%s16118_s1 + $0x3818] sm:$0xff] }
 0x3b5   :  { %9390 = vmatprep.subr.mxu0 %v1817_v63  ;;  %9423 = vmatprep.subr.mxu1 %v1850_v0  ;;  %v1900_v63 = vld [vmem:[%s16118_s1 + $0x3920] sm:$0xff]  ;;  %v2580_v0 = vcombine.high %v68_v57, %v68_v57 }
 0x3b6   :  { %9391 = vmatpush3.msra.mxu0 %v1801_v1  ;;  %9424 = vmatpush3.msra.mxu1 %v1834_v2  ;;  %v1882_v1 = vld [vmem:[%s16118_s1 + $0x3890] sm:$0xff]  ;;  %v1915_v2 = vld [vmem:[%s16118_s1 + $0x3998] sm:$0xff] }
 0x3b7   :  { %9392 = vmatprep.subr.mxu0 %v1816_v4  ;;  %9425 = vmatprep.subr.mxu1 %v1849_v5  ;;  %v1866_v4 = vld [vmem:[%s16118_s1 + $0x3810] sm:$0xff]  ;;  %v1899_v5 = vld [vmem:[%s16118_s1 + $0x3918] sm:$0xff] }
 0x3b8   :  { %9393 = vmatpush3.msra.mxu0 %v1800_v7  ;;  %6607 = vmatprep.mubr.f32.mxu0 %v2578_v6  ;;  %v1881_v6 = vld [vmem:[%s16118_s1 + $0x3888] sm:$0xff]  ;;  %v1914_v7 = vld [vmem:[%s16118_s1 + $0x3990] sm:$0xff] }
 0x3b9   :  { %9426 = vmatpush3.msra.mxu1 %v1833_v8  ;;  %6608 = vmatmul.mubr.f32.vlgmr.msra.gmra.mxu0 %v2570_v60  ;;  %v1883_v60 = vld [vmem:[%s16118_s1 + $0x3898] sm:$0xff]  ;;  %v1865_v8 = vld [vmem:[%s16118_s1 + $0x3808] sm:$0xff] }
 0x3ba   :  { %9427 = vmatprep.subr.mxu1 %v1848_v9  ;;  %9432 = vmatprep.subr.mxu0 %v1895_v10  ;;  %v1898_v9 = vld [vmem:[%s16118_s1 + $0x3910] sm:$0xff]  ;;  %v2594_v10 = vrot.slane %v2580_v0, %v9997_v51  ;;  %v69_v0 = vld [vmem:[%s16117_s0 + $0xe8] sm:$0xff] }
 0x3bb   :  { %9428 = vmatpush3.msra.mxu1 %v1832_v12  ;;  %6677 = vmatprep.mubr.f32.mxu1 %v2579_v11  ;;  %v1880_v11 = vld [vmem:[%s16118_s1 + $0x3880] sm:$0xff]  ;;  %v1913_v12 = vld [vmem:[%s16118_s1 + $0x3988] sm:$0xff] }
 0x3bc   :  { %9433 = vmatpush3.msra.mxu0 %v1879_v13  ;;  %6678 = vmatmul.mubr.f32.vlgmr.msra.gmra.mxu1 %v2577_v3  ;;  %v2587_v3 = vrot.slane %v68_v57, %v9997_v51  ;;  %v1967_v57 = vld [vmem:[%s16118_s1 + $0x3b38] sm:$0xff] }
 0x3bd   :  { %9434 = vmatprep.subr.mxu0 %v1894_v14  ;;  %9467 = vmatprep.subr.mxu1 %v1927_v15  ;;  %v1864_v14 = vld [vmem:[%s16118_s1 + $0x3800] sm:$0xff]  ;;  %v1897_v15 = vld [vmem:[%s16118_s1 + $0x3908] sm:$0xff] }
 0x3be   :  { %9435 = vmatpush3.msra.mxu0 %v1878_v16  ;;  %9468 = vmatpush3.msra.mxu1 %v1911_v17  ;;  %v2595_v13 = vcombine.high %v2587_v3, %v2587_v3  ;;  %v1912_v16 = vld [vmem:[%s16118_s1 + $0x3980] sm:$0xff]  ;;  %v1959_v17 = vld [vmem:[%s16118_s1 + $0x3af8] sm:$0xff] }
 0x3bf   :  { %9436 = vmatprep.subr.mxu0 %v1893_v18  ;;  %9469 = vmatprep.subr.mxu1 %v1926_v19  ;;  %v2596_v18 = vcombine.high %v2594_v10, %v2594_v10  ;;  %v1896_v19 = vld [vmem:[%s16118_s1 + $0x3900] sm:$0xff] }
 0x3c0   :  { %9437 = vmatpush3.msra.mxu0 %v1877_v20  ;;  %9470 = vmatpush3.msra.mxu1 %v1910_v21  ;;  %v1943_v20 = vld [vmem:[%s16118_s1 + $0x3a78] sm:$0xff]  ;;  %v1958_v21 = vld [vmem:[%s16118_s1 + $0x3af0] sm:$0xff] }
 0x3c1   :  { %9438 = vmatprep.subr.mxu0 %v1892_v22  ;;  %9471 = vmatprep.subr.mxu1 %v1925_v23  ;;  %v1991_v22 = vld [vmem:[%s16118_s1 + $0x3bf8] sm:$0xff]  ;;  %v1942_v23 = vld [vmem:[%s16118_s1 + $0x3a70] sm:$0xff] }
 0x3c2   :  { %9439 = vmatpush3.msra.mxu0 %v1876_v24  ;;  %9472 = vmatpush3.msra.mxu1 %v1909_v25  ;;  %v1975_v24 = vld [vmem:[%s16118_s1 + $0x3b78] sm:$0xff]  ;;  %v1957_v25 = vld [vmem:[%s16118_s1 + $0x3ae8] sm:$0xff] }
 0x3c3   :  { %9440 = vmatprep.subr.mxu0 %v1891_v26  ;;  %9473 = vmatprep.subr.mxu1 %v1924_v27  ;;  %v1990_v26 = vld [vmem:[%s16118_s1 + $0x3bf0] sm:$0xff]  ;;  %v1941_v27 = vld [vmem:[%s16118_s1 + $0x3a68] sm:$0xff] }
 0x3c4   :  { %9441 = vmatpush3.msra.mxu0 %v1875_v28  ;;  %9474 = vmatpush3.msra.mxu1 %v1908_v29  ;;  %v1974_v28 = vld [vmem:[%s16118_s1 + $0x3b70] sm:$0xff]  ;;  %v1956_v29 = vld [vmem:[%s16118_s1 + $0x3ae0] sm:$0xff] }
 0x3c5   :  { %9442 = vmatprep.subr.mxu0 %v1890_v30  ;;  %9475 = vmatprep.subr.mxu1 %v1923_v31  ;;  %v1989_v30 = vld [vmem:[%s16118_s1 + $0x3be8] sm:$0xff]  ;;  %v1940_v31 = vld [vmem:[%s16118_s1 + $0x3a60] sm:$0xff] }
 0x3c6   :  { %9443 = vmatpush3.msra.mxu0 %v1874_v32  ;;  %9476 = vmatpush3.msra.mxu1 %v1907_v33  ;;  %v1973_v32 = vld [vmem:[%s16118_s1 + $0x3b68] sm:$0xff]  ;;  %v1955_v33 = vld [vmem:[%s16118_s1 + $0x3ad8] sm:$0xff] }
 0x3c7   :  { %9444 = vmatprep.subr.mxu0 %v1889_v34  ;;  %9477 = vmatprep.subr.mxu1 %v1922_v35  ;;  %v1988_v34 = vld [vmem:[%s16118_s1 + $0x3be0] sm:$0xff]  ;;  %v1939_v35 = vld [vmem:[%s16118_s1 + $0x3a58] sm:$0xff] }
 0x3c8   :  { %9445 = vmatpush3.msra.mxu0 %v1873_v36  ;;  %9478 = vmatpush3.msra.mxu1 %v1906_v37  ;;  %v1972_v36 = vld [vmem:[%s16118_s1 + $0x3b60] sm:$0xff]  ;;  %v1954_v37 = vld [vmem:[%s16118_s1 + $0x3ad0] sm:$0xff] }
 0x3c9   :  { %9446 = vmatprep.subr.mxu0 %v1888_v38  ;;  %9479 = vmatprep.subr.mxu1 %v1921_v39  ;;  %v1987_v38 = vld [vmem:[%s16118_s1 + $0x3bd8] sm:$0xff]  ;;  %v1938_v39 = vld [vmem:[%s16118_s1 + $0x3a50] sm:$0xff] }
 0x3ca   :  { %9447 = vmatpush3.msra.mxu0 %v1872_v40  ;;  %9480 = vmatpush3.msra.mxu1 %v1905_v41  ;;  %v1971_v40 = vld [vmem:[%s16118_s1 + $0x3b58] sm:$0xff]  ;;  %v1953_v41 = vld [vmem:[%s16118_s1 + $0x3ac8] sm:$0xff] }
 0x3cb   :  { %9448 = vmatprep.subr.mxu0 %v1887_v42  ;;  %9481 = vmatprep.subr.mxu1 %v1920_v43  ;;  %v1986_v42 = vld [vmem:[%s16118_s1 + $0x3bd0] sm:$0xff]  ;;  %v1937_v43 = vld [vmem:[%s16118_s1 + $0x3a48] sm:$0xff] }
 0x3cc   :  { %9449 = vmatpush3.msra.mxu0 %v1871_v44  ;;  %9482 = vmatpush3.msra.mxu1 %v1904_v45  ;;  %v1970_v44 = vld [vmem:[%s16118_s1 + $0x3b50] sm:$0xff]  ;;  %v1952_v45 = vld [vmem:[%s16118_s1 + $0x3ac0] sm:$0xff] }
 0x3cd   :  { %9450 = vmatprep.subr.mxu0 %v1886_v46  ;;  %9483 = vmatprep.subr.mxu1 %v1919_v47  ;;  %v1985_v46 = vld [vmem:[%s16118_s1 + $0x3bc8] sm:$0xff]  ;;  %v1936_v47 = vld [vmem:[%s16118_s1 + $0x3a40] sm:$0xff] }
 0x3ce   :  { %9451 = vmatpush3.msra.mxu0 %v1870_v48  ;;  %9484 = vmatpush3.msra.mxu1 %v1903_v49  ;;  %v1969_v48 = vld [vmem:[%s16118_s1 + $0x3b48] sm:$0xff]  ;;  %v1951_v49 = vld [vmem:[%s16118_s1 + $0x3ab8] sm:$0xff] }
 0x3cf   :  { %9452 = vmatprep.subr.mxu0 %v1885_v50  ;;  %9485 = vmatprep.subr.mxu1 %v1918_v52  ;;  %v1984_v50 = vld [vmem:[%s16118_s1 + $0x3bc0] sm:$0xff]  ;;  %v1935_v52 = vld [vmem:[%s16118_s1 + $0x3a38] sm:$0xff] }
 0x3d0   :  { %9453 = vmatpush3.msra.mxu0 %v1869_v53  ;;  %9486 = vmatpush3.msra.mxu1 %v1902_v54  ;;  %v1968_v53 = vld [vmem:[%s16118_s1 + $0x3b40] sm:$0xff]  ;;  %v1950_v54 = vld [vmem:[%s16118_s1 + $0x3ab0] sm:$0xff] }
 0x3d1   :  { %9454 = vmatprep.subr.mxu0 %v1884_v55  ;;  %9487 = vmatprep.subr.mxu1 %v1917_v56  ;;  %v1983_v55 = vld [vmem:[%s16118_s1 + $0x3bb8] sm:$0xff]  ;;  %v1934_v56 = vld [vmem:[%s16118_s1 + $0x3a30] sm:$0xff] }
 0x3d2   :  { %9455 = vmatpush3.msra.mxu0 %v1868_v58  ;;  %9488 = vmatpush3.msra.mxu1 %v1901_v59  ;;  %v1949_v58 = vld [vmem:[%s16118_s1 + $0x3aa8] sm:$0xff]  ;;  %v1982_v59 = vld [vmem:[%s16118_s1 + $0x3bb0] sm:$0xff] }
 0x3d3   :  { %9456 = vmatprep.subr.mxu0 %v1883_v60  ;;  %9489 = vmatprep.subr.mxu1 %v1916_v61  ;;  %v1933_v60 = vld [vmem:[%s16118_s1 + $0x3a28] sm:$0xff]  ;;  %v1966_v61 = vld [vmem:[%s16118_s1 + $0x3b30] sm:$0xff] }
 0x3d4   :  { %9457 = vmatpush3.msra.mxu0 %v1867_v62  ;;  %9490 = vmatpush3.msra.mxu1 %v1900_v63  ;;  %v1948_v62 = vld [vmem:[%s16118_s1 + $0x3aa0] sm:$0xff]  ;;  %v1981_v63 = vld [vmem:[%s16118_s1 + $0x3ba8] sm:$0xff] }
 0x3d5   :  { %9458 = vmatprep.subr.mxu0 %v1882_v1  ;;  %9491 = vmatprep.subr.mxu1 %v1915_v2  ;;  %v1932_v1 = vld [vmem:[%s16118_s1 + $0x3a20] sm:$0xff]  ;;  %v1965_v2 = vld [vmem:[%s16118_s1 + $0x3b28] sm:$0xff] }
 0x3d6   :  { %9459 = vmatpush3.msra.mxu0 %v1866_v4  ;;  %9492 = vmatpush3.msra.mxu1 %v1899_v5  ;;  %v1980_v4 = vld [vmem:[%s16118_s1 + $0x3ba0] sm:$0xff]  ;;  %v1931_v5 = vld [vmem:[%s16118_s1 + $0x3a18] sm:$0xff] }
 0x3d7   :  { %9460 = vmatprep.subr.mxu0 %v1881_v6  ;;  %9493 = vmatprep.subr.mxu1 %v1914_v7  ;;  %v1964_v6 = vld [vmem:[%s16118_s1 + $0x3b20] sm:$0xff]  ;;  %v2597_v7 = vcombine.high %v69_v0, %v69_v0 }
 0x3d8   :  { %9461 = vmatpush3.msra.mxu0 %v1865_v8  ;;  %9494 = vmatpush3.msra.mxu1 %v1898_v9  ;;  %v1946_v8 = vld [vmem:[%s16118_s1 + $0x3a90] sm:$0xff]  ;;  %v1979_v9 = vld [vmem:[%s16118_s1 + $0x3b98] sm:$0xff] }
 0x3d9   :  { %9462 = vmatprep.subr.mxu0 %v1880_v11  ;;  %9495 = vmatprep.subr.mxu1 %v1913_v12  ;;  %v1930_v11 = vld [vmem:[%s16118_s1 + $0x3a10] sm:$0xff]  ;;  %v1963_v12 = vld [vmem:[%s16118_s1 + $0x3b18] sm:$0xff] }
 0x3da   :  { %9463 = vmatpush3.msra.mxu0 %v1864_v14  ;;  %6747 = vmatprep.mubr.f32.mxu0 %v2595_v13  ;;  %v1945_v13 = vld [vmem:[%s16118_s1 + $0x3a88] sm:$0xff]  ;;  %v1978_v14 = vld [vmem:[%s16118_s1 + $0x3b90] sm:$0xff] }
 0x3db   :  { %9496 = vmatpush3.msra.mxu1 %v1897_v15  ;;  %6748 = vmatmul.mubr.f32.vlgmr.msra.gmra.mxu0 %v2587_v3  ;;  %v1947_v3 = vld [vmem:[%s16118_s1 + $0x3a98] sm:$0xff]  ;;  %v1929_v15 = vld [vmem:[%s16118_s1 + $0x3a08] sm:$0xff] }
 0x3dc   :  { %9497 = vmatprep.subr.mxu1 %v1912_v16  ;;  %9502 = vmatprep.subr.mxu0 %v1959_v17  ;;  %v1962_v16 = vld [vmem:[%s16118_s1 + $0x3b10] sm:$0xff]  ;;  %v2611_v17 = vrot.slane %v2597_v7, %v9997_v51 }
 0x3dd   :  { %9498 = vmatpush3.msra.mxu1 %v1896_v19  ;;  %6817 = vmatprep.mubr.f32.mxu1 %v2596_v18  ;;  %v1944_v18 = vld [vmem:[%s16118_s1 + $0x3a80] sm:$0xff]  ;;  %v1977_v19 = vld [vmem:[%s16118_s1 + $0x3b88] sm:$0xff]  ;;  %v70_v7 = vld [vmem:[%s16117_s0 + $0xf0] sm:$0xff] }
 0x3de   :  { %9503 = vmatpush3.msra.mxu0 %v1943_v20  ;;  %6818 = vmatmul.mubr.f32.vlgmr.msra.gmra.mxu1 %v2594_v10  ;;  %v2604_v10 = vrot.slane %v69_v0, %v9997_v51  ;;  %v2031_v0 = vld [vmem:[%s16118_s1 + $0x3d38] sm:$0xff] }
 0x3df   :  { %9504 = vmatprep.subr.mxu0 %v1958_v21  ;;  %9537 = vmatprep.subr.mxu1 %v1991_v22  ;;  %v1928_v21 = vld [vmem:[%s16118_s1 + $0x3a00] sm:$0xff]  ;;  %v1961_v22 = vld [vmem:[%s16118_s1 + $0x3b08] sm:$0xff] }
 0x3e0   :  { %9505 = vmatpush3.msra.mxu0 %v1942_v23  ;;  %9538 = vmatpush3.msra.mxu1 %v1975_v24  ;;  %v2612_v20 = vcombine.high %v2604_v10, %v2604_v10  ;;  %v1976_v23 = vld [vmem:[%s16118_s1 + $0x3b80] sm:$0xff]  ;;  %v2023_v24 = vld [vmem:[%s16118_s1 + $0x3cf8] sm:$0xff] }
 0x3e1   :  { %9506 = vmatprep.subr.mxu0 %v1957_v25  ;;  %9539 = vmatprep.subr.mxu1 %v1990_v26  ;;  %v2613_v25 = vcombine.high %v2611_v17, %v2611_v17  ;;  %v1960_v26 = vld [vmem:[%s16118_s1 + $0x3b00] sm:$0xff] }
 0x3e2   :  { %9507 = vmatpush3.msra.mxu0 %v1941_v27  ;;  %9540 = vmatpush3.msra.mxu1 %v1974_v28  ;;  %v2007_v27 = vld [vmem:[%s16118_s1 + $0x3c78] sm:$0xff]  ;;  %v2022_v28 = vld [vmem:[%s16118_s1 + $0x3cf0] sm:$0xff] }
 0x3e3   :  { %9508 = vmatprep.subr.mxu0 %v1956_v29  ;;  %9541 = vmatprep.subr.mxu1 %v1989_v30  ;;  %v2055_v29 = vld [vmem:[%s16118_s1 + $0x3df8] sm:$0xff]  ;;  %v2006_v30 = vld [vmem:[%s16118_s1 + $0x3c70] sm:$0xff] }
 0x3e4   :  { %9509 = vmatpush3.msra.mxu0 %v1940_v31  ;;  %9542 = vmatpush3.msra.mxu1 %v1973_v32  ;;  %v2039_v31 = vld [vmem:[%s16118_s1 + $0x3d78] sm:$0xff]  ;;  %v2021_v32 = vld [vmem:[%s16118_s1 + $0x3ce8] sm:$0xff] }
 0x3e5   :  { %9510 = vmatprep.subr.mxu0 %v1955_v33  ;;  %9543 = vmatprep.subr.mxu1 %v1988_v34  ;;  %v2054_v33 = vld [vmem:[%s16118_s1 + $0x3df0] sm:$0xff]  ;;  %v2005_v34 = vld [vmem:[%s16118_s1 + $0x3c68] sm:$0xff] }
 0x3e6   :  { %9511 = vmatpush3.msra.mxu0 %v1939_v35  ;;  %9544 = vmatpush3.msra.mxu1 %v1972_v36  ;;  %v2038_v35 = vld [vmem:[%s16118_s1 + $0x3d70] sm:$0xff]  ;;  %v2020_v36 = vld [vmem:[%s16118_s1 + $0x3ce0] sm:$0xff] }
 0x3e7   :  { %9512 = vmatprep.subr.mxu0 %v1954_v37  ;;  %9545 = vmatprep.subr.mxu1 %v1987_v38  ;;  %v2053_v37 = vld [vmem:[%s16118_s1 + $0x3de8] sm:$0xff]  ;;  %v2004_v38 = vld [vmem:[%s16118_s1 + $0x3c60] sm:$0xff] }
 0x3e8   :  { %9513 = vmatpush3.msra.mxu0 %v1938_v39  ;;  %9546 = vmatpush3.msra.mxu1 %v1971_v40  ;;  %v2037_v39 = vld [vmem:[%s16118_s1 + $0x3d68] sm:$0xff]  ;;  %v2019_v40 = vld [vmem:[%s16118_s1 + $0x3cd8] sm:$0xff] }
 0x3e9   :  { %9514 = vmatprep.subr.mxu0 %v1953_v41  ;;  %9547 = vmatprep.subr.mxu1 %v1986_v42  ;;  %v2052_v41 = vld [vmem:[%s16118_s1 + $0x3de0] sm:$0xff]  ;;  %v2003_v42 = vld [vmem:[%s16118_s1 + $0x3c58] sm:$0xff] }
 0x3ea   :  { %9515 = vmatpush3.msra.mxu0 %v1937_v43  ;;  %9548 = vmatpush3.msra.mxu1 %v1970_v44  ;;  %v2036_v43 = vld [vmem:[%s16118_s1 + $0x3d60] sm:$0xff]  ;;  %v2018_v44 = vld [vmem:[%s16118_s1 + $0x3cd0] sm:$0xff] }
 0x3eb   :  { %9516 = vmatprep.subr.mxu0 %v1952_v45  ;;  %9549 = vmatprep.subr.mxu1 %v1985_v46  ;;  %v2051_v45 = vld [vmem:[%s16118_s1 + $0x3dd8] sm:$0xff]  ;;  %v2002_v46 = vld [vmem:[%s16118_s1 + $0x3c50] sm:$0xff] }
 0x3ec   :  { %9517 = vmatpush3.msra.mxu0 %v1936_v47  ;;  %9550 = vmatpush3.msra.mxu1 %v1969_v48  ;;  %v2035_v47 = vld [vmem:[%s16118_s1 + $0x3d58] sm:$0xff]  ;;  %v2017_v48 = vld [vmem:[%s16118_s1 + $0x3cc8] sm:$0xff] }
 0x3ed   :  { %9518 = vmatprep.subr.mxu0 %v1951_v49  ;;  %9551 = vmatprep.subr.mxu1 %v1984_v50  ;;  %v2050_v49 = vld [vmem:[%s16118_s1 + $0x3dd0] sm:$0xff]  ;;  %v2001_v50 = vld [vmem:[%s16118_s1 + $0x3c48] sm:$0xff] }
 0x3ee   :  { %9519 = vmatpush3.msra.mxu0 %v1935_v52  ;;  %9552 = vmatpush3.msra.mxu1 %v1968_v53  ;;  %v2034_v52 = vld [vmem:[%s16118_s1 + $0x3d50] sm:$0xff]  ;;  %v2016_v53 = vld [vmem:[%s16118_s1 + $0x3cc0] sm:$0xff] }
 0x3ef   :  { %9520 = vmatprep.subr.mxu0 %v1950_v54  ;;  %9553 = vmatprep.subr.mxu1 %v1983_v55  ;;  %v2049_v54 = vld [vmem:[%s16118_s1 + $0x3dc8] sm:$0xff]  ;;  %v2000_v55 = vld [vmem:[%s16118_s1 + $0x3c40] sm:$0xff] }
 0x3f0   :  { %9521 = vmatpush3.msra.mxu0 %v1934_v56  ;;  %9554 = vmatpush3.msra.mxu1 %v1967_v57  ;;  %v2033_v56 = vld [vmem:[%s16118_s1 + $0x3d48] sm:$0xff]  ;;  %v2015_v57 = vld [vmem:[%s16118_s1 + $0x3cb8] sm:$0xff] }
 0x3f1   :  { %9522 = vmatprep.subr.mxu0 %v1949_v58  ;;  %9555 = vmatprep.subr.mxu1 %v1982_v59  ;;  %v2048_v58 = vld [vmem:[%s16118_s1 + $0x3dc0] sm:$0xff]  ;;  %v1999_v59 = vld [vmem:[%s16118_s1 + $0x3c38] sm:$0xff] }
 0x3f2   :  { %9523 = vmatpush3.msra.mxu0 %v1933_v60  ;;  %9556 = vmatpush3.msra.mxu1 %v1966_v61  ;;  %v2032_v60 = vld [vmem:[%s16118_s1 + $0x3d40] sm:$0xff]  ;;  %v2014_v61 = vld [vmem:[%s16118_s1 + $0x3cb0] sm:$0xff] }
 0x3f3   :  { %9524 = vmatprep.subr.mxu0 %v1948_v62  ;;  %9557 = vmatprep.subr.mxu1 %v1981_v63  ;;  %v2047_v62 = vld [vmem:[%s16118_s1 + $0x3db8] sm:$0xff]  ;;  %v1998_v63 = vld [vmem:[%s16118_s1 + $0x3c30] sm:$0xff] }
 0x3f4   :  { %9525 = vmatpush3.msra.mxu0 %v1932_v1  ;;  %9558 = vmatpush3.msra.mxu1 %v1965_v2  ;;  %v2013_v1 = vld [vmem:[%s16118_s1 + $0x3ca8] sm:$0xff]  ;;  %v2046_v2 = vld [vmem:[%s16118_s1 + $0x3db0] sm:$0xff] }
 0x3f5   :  { %9526 = vmatprep.subr.mxu0 %v1947_v3  ;;  %9559 = vmatprep.subr.mxu1 %v1980_v4  ;;  %v1997_v3 = vld [vmem:[%s16118_s1 + $0x3c28] sm:$0xff]  ;;  %v2030_v4 = vld [vmem:[%s16118_s1 + $0x3d30] sm:$0xff] }
 0x3f6   :  { %9527 = vmatpush3.msra.mxu0 %v1931_v5  ;;  %9560 = vmatpush3.msra.mxu1 %v1964_v6  ;;  %v2012_v5 = vld [vmem:[%s16118_s1 + $0x3ca0] sm:$0xff]  ;;  %v2045_v6 = vld [vmem:[%s16118_s1 + $0x3da8] sm:$0xff] }
 0x3f7   :  { %9528 = vmatprep.subr.mxu0 %v1946_v8  ;;  %9561 = vmatprep.subr.mxu1 %v1979_v9  ;;  %v1996_v8 = vld [vmem:[%s16118_s1 + $0x3c20] sm:$0xff]  ;;  %v2029_v9 = vld [vmem:[%s16118_s1 + $0x3d28] sm:$0xff] }
 0x3f8   :  { %9529 = vmatpush3.msra.mxu0 %v1930_v11  ;;  %9562 = vmatpush3.msra.mxu1 %v1963_v12  ;;  %v2044_v11 = vld [vmem:[%s16118_s1 + $0x3da0] sm:$0xff]  ;;  %v1995_v12 = vld [vmem:[%s16118_s1 + $0x3c18] sm:$0xff] }
 0x3f9   :  { %9530 = vmatprep.subr.mxu0 %v1945_v13  ;;  %9563 = vmatprep.subr.mxu1 %v1978_v14  ;;  %v2028_v13 = vld [vmem:[%s16118_s1 + $0x3d20] sm:$0xff]  ;;  %v2614_v14 = vcombine.high %v70_v7, %v70_v7 }
 0x3fa   :  { %9531 = vmatpush3.msra.mxu0 %v1929_v15  ;;  %9564 = vmatpush3.msra.mxu1 %v1962_v16  ;;  %v2010_v15 = vld [vmem:[%s16118_s1 + $0x3c90] sm:$0xff]  ;;  %v2043_v16 = vld [vmem:[%s16118_s1 + $0x3d98] sm:$0xff] }
 0x3fb   :  { %9532 = vmatprep.subr.mxu0 %v1944_v18  ;;  %9565 = vmatprep.subr.mxu1 %v1977_v19  ;;  %v1994_v18 = vld [vmem:[%s16118_s1 + $0x3c10] sm:$0xff]  ;;  %v2027_v19 = vld [vmem:[%s16118_s1 + $0x3d18] sm:$0xff] }
 0x3fc   :  { %9533 = vmatpush3.msra.mxu0 %v1928_v21  ;;  %6887 = vmatprep.mubr.f32.mxu0 %v2612_v20  ;;  %v2009_v20 = vld [vmem:[%s16118_s1 + $0x3c88] sm:$0xff]  ;;  %v2042_v21 = vld [vmem:[%s16118_s1 + $0x3d90] sm:$0xff] }
 0x3fd   :  { %9566 = vmatpush3.msra.mxu1 %v1961_v22  ;;  %6888 = vmatmul.mubr.f32.vlgmr.msra.gmra.mxu0 %v2604_v10  ;;  %v2011_v10 = vld [vmem:[%s16118_s1 + $0x3c98] sm:$0xff]  ;;  %v1993_v22 = vld [vmem:[%s16118_s1 + $0x3c08] sm:$0xff] }
 0x3fe   :  { %9567 = vmatprep.subr.mxu1 %v1976_v23  ;;  %9572 = vmatprep.subr.mxu0 %v2023_v24  ;;  %v2026_v23 = vld [vmem:[%s16118_s1 + $0x3d10] sm:$0xff]  ;;  %v2628_v24 = vrot.slane %v2614_v14, %v9997_v51 }
 0x3ff   :  { %9568 = vmatpush3.msra.mxu1 %v1960_v26  ;;  %6957 = vmatprep.mubr.f32.mxu1 %v2613_v25  ;;  %v2008_v25 = vld [vmem:[%s16118_s1 + $0x3c80] sm:$0xff]  ;;  %v2041_v26 = vld [vmem:[%s16118_s1 + $0x3d88] sm:$0xff] }
 0x400   :  { %9573 = vmatpush3.msra.mxu0 %v2007_v27  ;;  %6958 = vmatmul.mubr.f32.vlgmr.msra.gmra.mxu1 %v2611_v17  ;;  %v2621_v17 = vrot.slane %v70_v7, %v9997_v51  ;;  %v2025_v51 = vld [vmem:[%s16118_s1 + $0x3d08] sm:$0xff] }
 0x401   :  { %9574 = vmatprep.subr.mxu0 %v2022_v28  ;;  %9607 = vmatprep.subr.mxu1 %v2055_v29  ;;  %v1992_v28 = vld [vmem:[%s16118_s1 + $0x3c00] sm:$0xff] }
 0x402   :  { %9575 = vmatpush3.msra.mxu0 %v2006_v30  ;;  %9608 = vmatpush3.msra.mxu1 %v2039_v31  ;;  %v2629_v27 = vcombine.high %v2621_v17, %v2621_v17  ;;  %v2040_v29 = vld [vmem:[%s16118_s1 + $0x3d80] sm:$0xff]  ;;  %v2630_v30 = vcombine.high %v2628_v24, %v2628_v24 }
 0x403   :  { %9576 = vmatprep.subr.mxu0 %v2021_v32  ;;  %9609 = vmatprep.subr.mxu1 %v2054_v33  ;;  %v2024_v31 = vld [vmem:[%s16118_s1 + $0x3d00] sm:$0xff]  ;;  %v2071_v32 = vld [vmem:[%s16118_s1 + $0x3e78] sm:$0xff]  ;;  %v9806_v33 = vmov 0.0  }
 0x404   :  { %9577 = vmatpush3.msra.mxu0 %v2005_v34  ;;  %9610 = vmatpush3.msra.mxu1 %v2038_v35  ;;  %v2070_v34 = vld [vmem:[%s16118_s1 + $0x3e70] sm:$0xff]  ;;  %v2069_v35 = vld [vmem:[%s16118_s1 + $0x3e68] sm:$0xff]  ;;  %38 = vst.msk [vmem:[#allocation2] sm:$0x3] %vm37_vm1, %v9806_v33 }
 0x405   :  { %9578 = vmatprep.subr.mxu0 %v2020_v36  ;;  %9611 = vmatprep.subr.mxu1 %v2053_v37  ;;  %v2068_v36 = vld [vmem:[%s16118_s1 + $0x3e60] sm:$0xff]  ;;  %v2067_v37 = vld [vmem:[%s16118_s1 + $0x3e58] sm:$0xff] }
 0x406   :  { %9579 = vmatpush3.msra.mxu0 %v2004_v38  ;;  %9612 = vmatpush3.msra.mxu1 %v2037_v39  ;;  %v2066_v38 = vld [vmem:[%s16118_s1 + $0x3e50] sm:$0xff]  ;;  %v2065_v39 = vld [vmem:[%s16118_s1 + $0x3e48] sm:$0xff] }
 0x407   :  { %9580 = vmatprep.subr.mxu0 %v2019_v40  ;;  %9613 = vmatprep.subr.mxu1 %v2052_v41  ;;  %v2064_v40 = vld [vmem:[%s16118_s1 + $0x3e40] sm:$0xff]  ;;  %v2063_v41 = vld [vmem:[%s16118_s1 + $0x3e38] sm:$0xff] }
 0x408   :  { %9581 = vmatpush3.msra.mxu0 %v2003_v42  ;;  %9614 = vmatpush3.msra.mxu1 %v2036_v43  ;;  %v2062_v42 = vld [vmem:[%s16118_s1 + $0x3e30] sm:$0xff]  ;;  %v2061_v43 = vld [vmem:[%s16118_s1 + $0x3e28] sm:$0xff] }
 0x409   :  { %9582 = vmatprep.subr.mxu0 %v2018_v44  ;;  %9615 = vmatprep.subr.mxu1 %v2051_v45  ;;  %v2060_v44 = vld [vmem:[%s16118_s1 + $0x3e20] sm:$0xff]  ;;  %v2059_v45 = vld [vmem:[%s16118_s1 + $0x3e18] sm:$0xff] }
 0x40a   :  { %9583 = vmatpush3.msra.mxu0 %v2002_v46  ;;  %9616 = vmatpush3.msra.mxu1 %v2035_v47  ;;  %v2058_v46 = vld [vmem:[%s16118_s1 + $0x3e10] sm:$0xff]  ;;  %v2057_v47 = vld [vmem:[%s16118_s1 + $0x3e08] sm:$0xff] }
 0x40b   :  { %9584 = vmatprep.subr.mxu0 %v2017_v48  ;;  %9617 = vmatprep.subr.mxu1 %v2050_v49  ;;  %v7504_v48 = vpop.f32.mrf.mxu0  ;;  %v2056_v49 = vld [vmem:[%s16118_s1 + $0x3e00] sm:$0xff] }
 0x40c   :  { %9585 = vmatpush3.msra.mxu0 %v2001_v50  ;;  %9618 = vmatpush3.msra.mxu1 %v2034_v52  ;;  %v7464_v50 = vld.sshfl [vmem:[%s16117_s0 + $0xf8] sm:$0x3 pattern:$0x76325410]  ;;  %v7539_v52 = vpop.f32.mrf.mxu1 }
 0x40d   :  { %9586 = vmatprep.subr.mxu0 %v2016_v53  ;;  %9619 = vmatprep.subr.mxu1 %v2049_v54  ;;  %v7505_v53 = vpop.f32.mrf.mxu0 }
 0x40e   :  { %9587 = vmatpush3.msra.mxu0 %v2000_v55  ;;  %9620 = vmatpush3.msra.mxu1 %v2033_v56  ;;  %v7540_v55 = vpop.f32.mrf.mxu1 }
 0x40f   :  { %9588 = vmatprep.subr.mxu0 %v2015_v57  ;;  %9621 = vmatprep.subr.mxu1 %v2048_v58  ;;  %v7574_v54 = vpop.f32.mrf.mxu0  ;;  %v7506_v58 = vadd.f32 %v7505_v53, %v7504_v48 }
 0x410   :  { %9589 = vmatpush3.msra.mxu0 %v1999_v59  ;;  %9622 = vmatpush3.msra.mxu1 %v2032_v60  ;;  %v7609_v57 = vpop.f32.mrf.mxu1  ;;  %v7541_v59 = vadd.f32 %v7540_v55, %v7539_v52 }
 0x411   :  { %9590 = vmatprep.subr.mxu0 %v2014_v61  ;;  %9623 = vmatprep.subr.mxu1 %v2047_v62  ;;  %v7575_v56 = vpop.f32.mrf.mxu0 }
 0x412   :  { %9591 = vmatpush3.msra.mxu0 %v1998_v63  ;;  %9624 = vmatpush3.msra.mxu1 %v2031_v0  ;;  %v7576_v61 = vadd.f32 %v7575_v56, %v7574_v54  ;;  %v7610_v62 = vpop.f32.mrf.mxu1  ;;  %v2900_v63 = vadd.f32 %v7541_v59, %v7506_v58 }
 0x413   :  { %9592 = vmatprep.subr.mxu0 %v2013_v1  ;;  %9625 = vmatprep.subr.mxu1 %v2046_v2  ;;  %v7644_v60 = vpop.f32.mrf.mxu0 }
 0x414   :  { %9593 = vmatpush3.msra.mxu0 %v1997_v3  ;;  %9626 = vmatpush3.msra.mxu1 %v2030_v4  ;;  %v7679_v1 = vpop.f32.mrf.mxu1  ;;  %v2970_v2 = vadd.f32 %v7576_v61, %v2900_v63  ;;  %v7611_v3 = vadd.f32 %v7610_v62, %v7609_v57 }
 0x415   :  { %9594 = vmatprep.subr.mxu0 %v2012_v5  ;;  %9627 = vmatprep.subr.mxu1 %v2045_v6  ;;  %v7645_v0 = vpop.f32.mrf.mxu0 }
 0x416   :  { %9595 = vmatpush3.msra.mxu0 %v1996_v8  ;;  %9628 = vmatpush3.msra.mxu1 %v2029_v9  ;;  %v7646_v5 = vadd.f32 %v7645_v0, %v7644_v60  ;;  %v7680_v6 = vpop.f32.mrf.mxu1  ;;  %v3040_v7 = vadd.f32 %v7611_v3, %v2970_v2 }
 0x417   :  { %9596 = vmatprep.subr.mxu0 %v2011_v10  ;;  %9629 = vmatprep.subr.mxu1 %v2044_v11  ;;  %v7714_v4 = vpop.f32.mrf.mxu0  ;;  %v7681_v11 = vadd.f32 %v7680_v6, %v7679_v1 }
 0x418   :  { %9597 = vmatpush3.msra.mxu0 %v1995_v12  ;;  %9630 = vmatpush3.msra.mxu1 %v2028_v13  ;;  %v7749_v9 = vpop.f32.mrf.mxu1  ;;  %v3110_v10 = vadd.f32 %v7646_v5, %v3040_v7 }
 0x419   :  { %9598 = vmatprep.subr.mxu0 %v2010_v15  ;;  %9631 = vmatprep.subr.mxu1 %v2043_v16  ;;  %v7715_v8 = vpop.f32.mrf.mxu0 }
 0x41a   :  { %9599 = vmatpush3.msra.mxu0 %v1994_v18  ;;  %9632 = vmatpush3.msra.mxu1 %v2027_v19  ;;  %v7716_v13 = vadd.f32 %v7715_v8, %v7714_v4  ;;  %v7750_v14 = vpop.f32.mrf.mxu1  ;;  %v3180_v15 = vadd.f32 %v7681_v11, %v3110_v10 }
 0x41b   :  { %9600 = vmatprep.subr.mxu0 %v2009_v20  ;;  %9633 = vmatprep.subr.mxu1 %v2042_v21  ;;  %v7784_v12 = vpop.f32.mrf.mxu0  ;;  %v7751_v19 = vadd.f32 %v7750_v14, %v7749_v9  ;;  %v7196_v9 = vld [vmem:[%s16120_s3 + $0x38] sm:$0xff]  ;;  %v7195_v14 = vld [vmem:[%s16120_s3 + $0x30] sm:$0xff] }
 0x41c   :  { %9601 = vmatpush3.msra.mxu0 %v1993_v22  ;;  %9634 = vmatpush3.msra.mxu1 %v2026_v23  ;;  %v3250_v18 = vadd.f32 %v7716_v13, %v3180_v15 }
 0x41d   :  { %9602 = vmatprep.subr.mxu0 %v2008_v25  ;;  %9635 = vmatprep.subr.mxu1 %v2041_v26  ;;  %v7785_v16 = vpop.f32.mrf.mxu0 }
 0x41e   :  { %9603 = vmatpush3.msra.mxu0 %v1992_v28  ;;  %7027 = vmatprep.mubr.f32.mxu0 %v2629_v27  ;;  %v7786_v21 = vadd.f32 %v7785_v16, %v7784_v12  ;;  %v3320_v23 = vadd.f32 %v7751_v19, %v3250_v18  ;;  %v7193_v18 = vld [vmem:[%s16120_s3 + $0x20] sm:$0xff] }
 0x41f   :  { %9636 = vmatpush3.msra.mxu1 %v2025_v51  ;;  %7028 = vmatmul.mubr.f32.vlgmr.msra.gmra.mxu0 %v2621_v17  ;;  %v7819_v17 = vpop.f32.mrf.mxu1  ;;  %v7854_v20 = vpop.f32.mrf.mxu0 }
 0x420   :  { %9637 = vmatprep.subr.mxu1 %v2040_v29  ;;  %9676 = vmatprep.subr.mxu0 %v9806_v33  ;;  %v3390_v26 = vadd.f32 %v7786_v21, %v3320_v23  ;;  %v7192_v21 = vld [vmem:[%s16120_s3 + $0x18] sm:$0xff] }
 0x421   :  { %9638 = vmatpush3.msra.mxu1 %v2024_v31  ;;  %7097 = vmatprep.mubr.f32.mxu1 %v2630_v30  ;;  %v7820_v22 = vpop.f32.mrf.mxu1 }
 0x422   :  { %9677 = vmatpush3.msra.mxu0 %v2071_v32  ;;  %7098 = vmatmul.mubr.f32.vlgmr.msra.gmra.mxu1 %v2628_v24  ;;  %v7855_v24 = vpop.f32.mrf.mxu0  ;;  %v7821_v27 = vadd.f32 %v7820_v22, %v7819_v17  ;;  %v7194_v17 = vld [vmem:[%s16120_s3 + $0x28] sm:$0xff] }
 0x423   :  { %9678 = vmatprep.subr.mxu0 %v9806_v33  ;;  %9708 = vmatprep.mubr.msk.f32.mxu0 %vm9807_vm0, %v9806_v33  ;;  %v7889_v25 = vpop.f32.mrf.mxu1  ;;  %v7856_v51 = vadd.f32 %v7855_v24, %v7854_v20 }
 0x424   :  { %9679 = vmatpush3.msra.mxu0 %v2070_v34  ;;  %9711 = vmatprep.subr.mxu1 %v9806_v33  ;;  %v7924_v28 = vpop.f32.mrf.mxu0  ;;  %v3460_v30 = vadd.f32 %v7821_v27, %v3390_v26  ;;  %v7191_v26 = vld [vmem:[%s16120_s3 + $0x10] sm:$0xff] }
 0x425   :  { %9680 = vmatprep.subr.mxu0 %v9806_v33  ;;  %9727 = vmatprep.mubr.msk.f32.mxu1 %vm9807_vm0, %v9806_v33  ;;  %v7890_v29 = vpop.f32.mrf.mxu1 }
 0x426   :  { %9681 = vmatpush3.msra.mxu0 %v2069_v35  ;;  %v7925_v31 = vpop.f32.mrf.mxu0  ;;  %v3530_v34 = vadd.f32 %v7856_v51, %v3460_v30  ;;  %v7891_v35 = vadd.f32 %v7890_v29, %v7889_v25  ;;  %9712 = vmatpush3.msra.mxu1 %v7196_v9  ;;  %v7190_v51 = vld [vmem:[%s16120_s3 + $0x8] sm:$0xff] }
 0x427   :  { %9682 = vmatprep.subr.mxu0 %v9806_v33  ;;  %v7959_v32 = vpop.f32.mrf.mxu1  ;;  %9713 = vmatprep.subr.mxu1 %v9806_v33 }
 0x428   :  { %9683 = vmatpush3.msra.mxu0 %v2068_v36  ;;  %v7994_v36 = vpop.f32.mrf.mxu0  ;;  %9714 = vmatpush3.msra.mxu1 %v7195_v14 }
 0x429   :  { %9684 = vmatprep.subr.mxu0 %v9806_v33  ;;  %9715 = vmatprep.subr.mxu1 %v9806_v33 }
 0x42a   :  { %9685 = vmatpush3.msra.mxu0 %v2067_v37  ;;  %v7926_v37 = vadd.f32 %v7925_v31, %v7924_v28  ;;  %9716 = vmatpush3.msra.mxu1 %v7194_v17  ;;  %v7189_v31 = vld [vmem:[%s16120_s3] sm:$0xff] }
 0x42b   :  { %9686 = vmatprep.subr.mxu0 %v9806_v33  ;;  %9717 = vmatprep.subr.mxu1 %v9806_v33 }
 0x42c   :  { %9687 = vmatpush3.msra.mxu0 %v2066_v38  ;;  %v7960_v38 = vpop.f32.mrf.mxu1  ;;  %9718 = vmatpush3.msra.mxu1 %v7193_v18 }
 0x42d   :  { %9688 = vmatprep.subr.mxu0 %v9806_v33  ;;  %9719 = vmatprep.subr.mxu1 %v9806_v33 }
 0x42e   :  { %9689 = vmatpush3.msra.mxu0 %v2065_v39  ;;  %v3600_v39 = vadd.f32 %v7891_v35, %v3530_v34  ;;  %9720 = vmatpush3.msra.mxu1 %v7192_v21 }
 0x42f   :  { %9690 = vmatprep.subr.mxu0 %v9806_v33  ;;  %9721 = vmatprep.subr.mxu1 %v9806_v33 }
 0x430   :  { %9691 = vmatpush3.msra.mxu0 %v2064_v40  ;;  %v7995_v40 = vpop.f32.mrf.mxu0  ;;  %9722 = vmatpush3.msra.mxu1 %v7191_v26 }
 0x431   :  { %9692 = vmatprep.subr.mxu0 %v9806_v33  ;;  %9723 = vmatprep.subr.mxu1 %v9806_v33 }
 0x432   :  { %9693 = vmatpush3.msra.mxu0 %v2063_v41  ;;  %v8029_v41 = vpop.f32.mrf.mxu1  ;;  %9724 = vmatpush3.msra.mxu1 %v7190_v51 }
 0x433   :  { %9694 = vmatprep.subr.mxu0 %v9806_v33  ;;  %9725 = vmatprep.subr.mxu1 %v9806_v33 }
 0x434   :  { %9695 = vmatpush3.msra.mxu0 %v2062_v42  ;;  %v3670_v42 = vadd.f32 %v7926_v37, %v3600_v39  ;;  %9726 = vmatpush3.msra.mxu1 %v7189_v31 }
 0x435   :  { %9696 = vmatprep.subr.mxu0 %v9806_v33  ;;  %9730 = vmatprep.subr.mxu1 %v9806_v33 }
 0x436   :  { %9697 = vmatpush3.msra.mxu0 %v2061_v43  ;;  %v7961_v43 = vadd.f32 %v7960_v38, %v7959_v32 }
 0x437   :  { %9698 = vmatprep.subr.mxu0 %v9806_v33 }
 0x438   :  { %9699 = vmatpush3.msra.mxu0 %v2060_v44  ;;  %v8064_v44 = vpop.f32.mrf.mxu0 }
 0x439   :  { %9700 = vmatprep.subr.mxu0 %v9806_v33 }
 0x43a   :  { %9701 = vmatpush3.msra.mxu0 %v2059_v45  ;;  %v7996_v45 = vadd.f32 %v7995_v40, %v7994_v36  ;;  %v8065_v48 = vpop.f32.mrf.mxu0 }
 0x43b   :  { %9702 = vmatprep.subr.mxu0 %v9806_v33  ;;  %v8066_v54 = vadd.f32 %v8065_v48, %v8064_v44 }
 0x43c   :  { %9703 = vmatpush3.msra.mxu0 %v2058_v46  ;;  %v8030_v46 = vpop.f32.mrf.mxu1  ;;  %v8134_v53 = vpop.f32.mrf.mxu0 }
 0x43d   :  { %9704 = vmatprep.subr.mxu0 %v9806_v33  ;;  %v8031_v52 = vadd.f32 %v8030_v46, %v8029_v41 }
 0x43e   :  { %9705 = vmatpush3.msra.mxu0 %v2057_v47  ;;  %v3740_v47 = vadd.f32 %v7961_v43, %v3670_v42  ;;  %v8135_v57 = vpop.f32.mrf.mxu0 }
 0x43f   :  { %9706 = vmatprep.subr.mxu0 %v9806_v33  ;;  %v8136_v62 = vadd.f32 %v8135_v57, %v8134_v53 }
 0x440   :  { %9707 = vmatpush3.msra.mxu0 %v2056_v49  ;;  %v8099_v49 = vpop.f32.mrf.mxu1  ;;  %v8204_v61 = vpop.f32.mrf.mxu0 }
 0x441   :  { %9709 = vmatmul.mubr.f32.vlgmr.msra.gmra.mxu0 %v7464_v50  ;;  %v3810_v50 = vadd.f32 %v7996_v45, %v3740_v47 }
 0x442   :  { %v8100_v55 = vpop.f32.mrf.mxu1  ;;  %v8205_v1 = vpop.f32.mrf.mxu0 }
 0x443   :  { %v3880_v56 = vadd.f32 %v8031_v52, %v3810_v50  ;;  %v8101_v60 = vadd.f32 %v8100_v55, %v8099_v49  ;;  %v8206_v6 = vadd.f32 %v8205_v1, %v8204_v61 }
 0x444   :  { %v8169_v58 = vpop.f32.mrf.mxu1  ;;  %v8274_v5 = vpop.f32.mrf.mxu0 }
 0x445   :  { %v3950_v59 = vadd.f32 %v8066_v54, %v3880_v56 }
 0x446   :  { %v8170_v63 = vpop.f32.mrf.mxu1  ;;  %v8275_v10 = vpop.f32.mrf.mxu0 }
 0x447   :  { %v4020_v0 = vadd.f32 %v8101_v60, %v3950_v59  ;;  %v8171_v4 = vadd.f32 %v8170_v63, %v8169_v58  ;;  %v8276_v16 = vadd.f32 %v8275_v10, %v8274_v5 }
 0x448   :  { %v8239_v2 = vpop.f32.mrf.mxu1  ;;  %v8344_v15 = vpop.f32.mrf.mxu0 }
 0x449   :  { %v4090_v3 = vadd.f32 %v8136_v62, %v4020_v0 }
 0x44a   :  { %v8240_v7 = vpop.f32.mrf.mxu1  ;;  %v8345_v22 = vpop.f32.mrf.mxu0 }
 0x44b   :  { %v4160_v8 = vadd.f32 %v8171_v4, %v4090_v3  ;;  %v8241_v13 = vadd.f32 %v8240_v7, %v8239_v2  ;;  %v8346_v28 = vadd.f32 %v8345_v22, %v8344_v15 }
 0x44c   :  { %v8309_v11 = vpop.f32.mrf.mxu1  ;;  %v8414_v27 = vpop.f32.mrf.mxu0 }
 0x44d   :  { %v4230_v12 = vadd.f32 %v8206_v6, %v4160_v8 }
 0x44e   :  { %v8310_v19 = vpop.f32.mrf.mxu1  ;;  %v8415_v32 = vpop.f32.mrf.mxu0 }
 0x44f   :  { %v4300_v20 = vadd.f32 %v8241_v13, %v4230_v12  ;;  %v8311_v25 = vadd.f32 %v8310_v19, %v8309_v11  ;;  %v8416_v38 = vadd.f32 %v8415_v32, %v8414_v27 }
 0x450   :  { %v8379_v23 = vpop.f32.mrf.mxu1  ;;  %v8484_v37 = vpop.f32.mrf.mxu0 }
 0x451   :  { %v4370_v24 = vadd.f32 %v8276_v16, %v4300_v20 }
 0x452   :  { %v8380_v29 = vpop.f32.mrf.mxu1  ;;  %v8485_v41 = vpop.f32.mrf.mxu0 }
 0x453   :  { %v4440_v30 = vadd.f32 %v8311_v25, %v4370_v24  ;;  %v8381_v36 = vadd.f32 %v8380_v29, %v8379_v23  ;;  %v8486_v46 = vadd.f32 %v8485_v41, %v8484_v37 }
 0x454   :  { %v8449_v34 = vpop.f32.mrf.mxu1  ;;  %v8554_v45 = vpop.f32.mrf.mxu0 }
 0x455   :  { %v4510_v35 = vadd.f32 %v8346_v28, %v4440_v30 }
 0x456   :  { %v8450_v39 = vpop.f32.mrf.mxu1  ;;  %v8555_v49 = vpop.f32.mrf.mxu0 }
 0x457   :  { %v4580_v40 = vadd.f32 %v8381_v36, %v4510_v35  ;;  %v8451_v44 = vadd.f32 %v8450_v39, %v8449_v34  ;;  %v8556_v55 = vadd.f32 %v8555_v49, %v8554_v45 }
 0x458   :  { %v8519_v42 = vpop.f32.mrf.mxu1  ;;  %v8624_v54 = vpop.f32.mrf.mxu0 }
 0x459   :  { %v4650_v43 = vadd.f32 %v8416_v38, %v4580_v40 }
 0x45a   :  { %v8520_v47 = vpop.f32.mrf.mxu1  ;;  %v8625_v58 = vpop.f32.mrf.mxu0 }
 0x45b   :  { %v4720_v48 = vadd.f32 %v8451_v44, %v4650_v43  ;;  %v8521_v53 = vadd.f32 %v8520_v47, %v8519_v42  ;;  %v8626_v63 = vadd.f32 %v8625_v58, %v8624_v54 }
 0x45c   :  { %v8589_v50 = vpop.f32.mrf.mxu1  ;;  %v8694_v62 = vpop.f32.mrf.mxu0 }
 0x45d   :  { %v4790_v52 = vadd.f32 %v8486_v46, %v4720_v48 }
 0x45e   :  { %v8590_v56 = vpop.f32.mrf.mxu1  ;;  %v8695_v2 = vpop.f32.mrf.mxu0 }
 0x45f   :  { %v4860_v57 = vadd.f32 %v8521_v53, %v4790_v52  ;;  %v8591_v61 = vadd.f32 %v8590_v56, %v8589_v50  ;;  %v8696_v7 = vadd.f32 %v8695_v2, %v8694_v62 }
 0x460   :  { %v8659_v59 = vpop.f32.mrf.mxu1  ;;  %v8764_v6 = vpop.f32.mrf.mxu0 }
 0x461   :  { %v4930_v60 = vadd.f32 %v8556_v55, %v4860_v57 }
 0x462   :  { %v8660_v0 = vpop.f32.mrf.mxu1  ;;  %v8765_v10 = vpop.f32.mrf.mxu0 }
 0x463   :  { %v5000_v1 = vadd.f32 %v8591_v61, %v4930_v60  ;;  %v8661_v5 = vadd.f32 %v8660_v0, %v8659_v59  ;;  %v8766_v15 = vadd.f32 %v8765_v10, %v8764_v6 }
 0x464   :  { %v8729_v3 = vpop.f32.mrf.mxu1  ;;  %v8834_v14 = vpop.f32.mrf.mxu0 }
 0x465   :  { %v5070_v4 = vadd.f32 %v8626_v63, %v5000_v1 }
 0x466   :  { %v8730_v8 = vpop.f32.mrf.mxu1  ;;  %v8835_v18 = vpop.f32.mrf.mxu0 }
 0x467   :  { %v5140_v9 = vadd.f32 %v8661_v5, %v5070_v4  ;;  %v8731_v13 = vadd.f32 %v8730_v8, %v8729_v3  ;;  %v8836_v23 = vadd.f32 %v8835_v18, %v8834_v14 }
 0x468   :  { %v8799_v11 = vpop.f32.mrf.mxu1  ;;  %v8904_v22 = vpop.f32.mrf.mxu0 }
 0x469   :  { %v5210_v12 = vadd.f32 %v8696_v7, %v5140_v9 }
 0x46a   :  { %v8800_v16 = vpop.f32.mrf.mxu1  ;;  %v8905_v26 = vpop.f32.mrf.mxu0 }
 0x46b   :  { %v5280_v17 = vadd.f32 %v8731_v13, %v5210_v12  ;;  %v8801_v21 = vadd.f32 %v8800_v16, %v8799_v11  ;;  %v8906_v30 = vadd.f32 %v8905_v26, %v8904_v22 }
 0x46c   :  { %v8869_v19 = vpop.f32.mrf.mxu1  ;;  %v8974_v29 = vpop.f32.mrf.mxu0 }
 0x46d   :  { %v5350_v20 = vadd.f32 %v8766_v15, %v5280_v17 }
 0x46e   :  { %v8870_v24 = vpop.f32.mrf.mxu1  ;;  %v8975_v34 = vpop.f32.mrf.mxu0 }
 0x46f   :  { %v5420_v25 = vadd.f32 %v8801_v21, %v5350_v20  ;;  %v8871_v51 = vadd.f32 %v8870_v24, %v8869_v19  ;;  %v8976_v39 = vadd.f32 %v8975_v34, %v8974_v29 }
 0x470   :  { %v8939_v27 = vpop.f32.mrf.mxu1  ;;  %v9044_v38 = vpop.f32.mrf.mxu0 }
 0x471   :  { %v5490_v28 = vadd.f32 %v8836_v23, %v5420_v25 }
 0x472   :  { %v8940_v31 = vpop.f32.mrf.mxu1  ;;  %v9045_v42 = vpop.f32.mrf.mxu0 }
 0x473   :  { %v5560_v32 = vadd.f32 %v8871_v51, %v5490_v28  ;;  %v8941_v37 = vadd.f32 %v8940_v31, %v8939_v27  ;;  %v9046_v47 = vadd.f32 %v9045_v42, %v9044_v38 }
 0x474   :  { %v9009_v35 = vpop.f32.mrf.mxu1  ;;  %v9114_v46 = vpop.f32.mrf.mxu0 }
 0x475   :  { %v5630_v36 = vadd.f32 %v8906_v30, %v5560_v32 }
 0x476   :  { %v9010_v40 = vpop.f32.mrf.mxu1  ;;  %v9115_v50 = vpop.f32.mrf.mxu0 }
 0x477   :  { %v5700_v41 = vadd.f32 %v8941_v37, %v5630_v36  ;;  %v9011_v45 = vadd.f32 %v9010_v40, %v9009_v35  ;;  %v9116_v56 = vadd.f32 %v9115_v50, %v9114_v46 }
 0x478   :  { %v9079_v43 = vpop.f32.mrf.mxu1  ;;  %v9184_v55 = vpop.f32.mrf.mxu0 }
 0x479   :  { %v5770_v44 = vadd.f32 %v8976_v39, %v5700_v41 }
 0x47a   :  { %v9080_v48 = vpop.f32.mrf.mxu1  ;;  %v9185_v59 = vpop.f32.mrf.mxu0 }
 0x47b   :  { %v5840_v49 = vadd.f32 %v9011_v45, %v5770_v44  ;;  %v9081_v54 = vadd.f32 %v9080_v48, %v9079_v43  ;;  %v9186_v0 = vadd.f32 %v9185_v59, %v9184_v55  ;;  %v7465_v59 = vld [vmem:[%s16119_s2] ss:$0 sm:$0xff] }
 0x47c   :  { %v9149_v52 = vpop.f32.mrf.mxu1  ;;  %v9254_v63 = vpop.f32.mrf.mxu0 }
 0x47d   :  { %v5910_v53 = vadd.f32 %v9046_v47, %v5840_v49 }
 0x47e   :  { %v9150_v57 = vpop.f32.mrf.mxu1  ;;  %v9255_v3 = vpop.f32.mrf.mxu0 }
 0x47f   :  { %v5980_v58 = vadd.f32 %v9081_v54, %v5910_v53  ;;  %v9151_v62 = vadd.f32 %v9150_v57, %v9149_v52  ;;  %v9256_v8 = vadd.f32 %v9255_v3, %v9254_v63  ;;  %v39_v54 = vld [vmem:[#allocation2] sm:$0x3]  ;;  %v7282_v63 = vld [vmem:[%s16122_s5 + $0x18] sm:$0xff] }
 0x480   :  { %v9219_v60 = vpop.f32.mrf.mxu1  ;;  %v9324_v7 = vpop.f32.mrf.mxu0  ;;  %v7466_v3 = vld [vmem:[%s16121_s4] ss:$0 sm:$0xff] }
 0x481   :  { %v6050_v61 = vadd.f32 %v9116_v56, %v5980_v58 }
 0x482   :  { %v9220_v1 = vpop.f32.mrf.mxu1  ;;  %v9325_v11 = vpop.f32.mrf.mxu0 }
 0x483   :  { %v6120_v2 = vadd.f32 %v9151_v62, %v6050_v61  ;;  %v9221_v6 = vadd.f32 %v9220_v1, %v9219_v60  ;;  %v9326_v16 = vadd.f32 %v9325_v11, %v9324_v7  ;;  %v7280_v1 = vld [vmem:[%s16122_s5 + $0x8] sm:$0xff] }
 0x484   :  { %v9289_v4 = vpop.f32.mrf.mxu1  ;;  %v9394_v15 = vpop.f32.mrf.mxu0 }
 0x485   :  { %v6190_v5 = vadd.f32 %v9186_v0, %v6120_v2  ;;  %v7281_v0 = vld [vmem:[%s16122_s5 + $0x10] sm:$0xff]  ;;  %v7279_v2 = vld [vmem:[%s16122_s5] sm:$0xff] }
 0x486   :  { %v9290_v9 = vpop.f32.mrf.mxu1  ;;  %v9395_v19 = vpop.f32.mrf.mxu0 }
 0x487   :  { %v6260_v10 = vadd.f32 %v9221_v6, %v6190_v5  ;;  %v9291_v14 = vadd.f32 %v9290_v9, %v9289_v4  ;;  %v9396_v24 = vadd.f32 %v9395_v19, %v9394_v15  ;;  %v7365_v9 = vld [vmem:[%s16124_s7] sm:$0xff] }
 0x488   :  { %v9359_v12 = vpop.f32.mrf.mxu1  ;;  %v7470_v15 = vld [vmem:[%s16125_s8] ss:$0 sm:$0xff] }
 0x489   :  { %v6330_v13 = vadd.f32 %v9256_v8, %v6260_v10  ;;  %v7366_v8 = vld [vmem:[%s16124_s7 + $0x8] sm:$0xff]  ;;  %v7468_v10 = vld [vmem:[%s16123_s6] ss:$0 sm:$0xff]  ;;  %s9783_s7 = scalar_lea.vmem %s7457_s28, 32 }
 0x48a   :  { %v9360_v17 = vpop.f32.mrf.mxu1  ;;  %p9784_p0 = scmp.ne.s32.totalorder %s7457_s28, %s9783_s7  ;;  %p9789_p2 = scmp.lt.s32.totalorder %s9783_s7, %s9783_s7 }
 0x48b   :  { %v6400_v18 = vadd.f32 %v9291_v14, %v6330_v13  ;;  %v9361_v22 = vadd.f32 %v9360_v17, %v9359_v12 }
 0x48c   :  { %v9429_v20 = vpop.f32.mrf.mxu1  ;;  %p9790_p3 = por %p9789_p2, %p9788_p1 }
 0x48d   :  { %v6470_v21 = vadd.f32 %v9326_v16, %v6400_v18 }
 0x48e   :  { %v9430_v25 = vpop.f32.mrf.mxu1  ;;  %p9791_p4 = pnand %p9790_p3, %p9784_p0 }
 0x48f   :  { %v6540_v26 = vadd.f32 %v9361_v22, %v6470_v21  ;;  %v9431_v29 = vadd.f32 %v9430_v25, %v9429_v20 }
 0x491   :  { %v6610_v51 = vadd.f32 %v9396_v24, %v6540_v26 }
 0x493   :  { %v6680_v34 = vadd.f32 %v9431_v29, %v6610_v51 }
 0x49b   :  { %v9464_v23 = vpop.f32.mrf.mxu0 }
 0x49d   :  { %v9465_v27 = vpop.f32.mrf.mxu0 }
 0x49e   :  { %v9499_v28 = vpop.f32.mrf.mxu1  ;;  %v9466_v31 = vadd.f32 %v9465_v27, %v9464_v23 }
 0x4a0   :  { %v9500_v32 = vpop.f32.mrf.mxu1  ;;  %v6750_v37 = vadd.f32 %v9466_v31, %v6680_v34 }
 0x4a1   :  { %v9501_v38 = vadd.f32 %v9500_v32, %v9499_v28 }
 0x4a3   :  { %v6820_v42 = vadd.f32 %v9501_v38, %v6750_v37 }
 0x4bd   :  { %v9534_v30 = vpop.f32.mrf.mxu0 }
 0x4bf   :  { %v9535_v35 = vpop.f32.mrf.mxu0 }
 0x4c0   :  { %v9569_v36 = vpop.f32.mrf.mxu1  ;;  %v9536_v40 = vadd.f32 %v9535_v35, %v9534_v30 }
 0x4c2   :  { %v9570_v41 = vpop.f32.mrf.mxu1  ;;  %v6890_v45 = vadd.f32 %v9536_v40, %v6820_v42 }
 0x4c3   :  { %v9571_v46 = vadd.f32 %v9570_v41, %v9569_v36 }
 0x4c5   :  { %v6960_v49 = vadd.f32 %v9571_v46, %v6890_v45 }
 0x4df   :  { %v9604_v39 = vpop.f32.mrf.mxu0 }
 0x4e1   :  { %v9605_v43 = vpop.f32.mrf.mxu0 }
 0x4e2   :  { %v9639_v44 = vpop.f32.mrf.mxu1  ;;  %v9606_v47 = vadd.f32 %v9605_v43, %v9604_v39 }
 0x4e4   :  { %v9640_v48 = vpop.f32.mrf.mxu1  ;;  %v7030_v50 = vadd.f32 %v9606_v47, %v6960_v49 }
 0x4e5   :  { %v9641_v52 = vadd.f32 %v9640_v48, %v9639_v44 }
 0x4e7   :  { %v7100_v53 = vadd.f32 %v9641_v52, %v7030_v50 }
 0x501   :  { %v7169_v55 = vpop.f32.mrf.mxu0 }
 0x502   :  { %v7170_v56 = vadd.f32 %v7169_v55, %v7100_v53 }
 0x503   :  { %v9710_v57 = vpop.f32.mrf.mxu0 }
 0x504   :  { %v7173_v58 = vadd.f32 %v7170_v56, %v39_v54 }
 0x506   :  { %7175 = vst.msk [vmem:[#allocation2] sm:$0x3] %vm37_vm1, %v7173_v58 }
 0x50d   :  { %v7179_v60 = vld [vmem:[#allocation2] sm:$0x3] }
 0x50e   :  { %v7187_v61 = vadd.f32 %v7465_v59, %v7179_v60 }
 0x510   :  { %v7188_v62 = vmax.f32 %v7187_v61, 0.0 }
 0x512   :  { %9728 = vmatmul.mubr.msk.f32.vlgmr.msra.gmra.mxu1 %vm7204_vm2, %v7188_v62 }
 0x513   :  { %9731 = vmatpush3.msra.mxu1 %v7282_v63  ;;  %9738 = vmatprep.mubr.msk.f32.mxu1 %vm9807_vm0, %v9806_v33 }
 0x514   :  { %9732 = vmatprep.subr.mxu1 %v9806_v33 }
 0x515   :  { %9733 = vmatpush3.msra.mxu1 %v7281_v0 }
 0x516   :  { %9734 = vmatprep.subr.mxu1 %v9806_v33 }
 0x517   :  { %9735 = vmatpush3.msra.mxu1 %v7280_v1 }
 0x518   :  { %9736 = vmatprep.subr.mxu1 %v9806_v33 }
 0x519   :  { %9737 = vmatpush3.msra.mxu1 %v7279_v2 }
 0x51a   :  { %9741 = vmatprep.subr.mxu1 %v9806_v33 }
 0x5d2   :  { %v7274_v4 = vpop.f32.mrf.mxu1 }
 0x5d3   :  { %v7275_v5 = vadd.f32 %v7466_v3, %v7274_v4 }
 0x5d4   :  { %v9729_v6 = vpop.f32.mrf.mxu1 }
 0x5d5   :  { %v7278_v7 = vmax.f32 %v7275_v5, 0.0 }
 0x5d7   :  { %9739 = vmatmul.mubr.msk.f32.vlgmr.msra.gmra.mxu1 %vm7290_vm3, %v7278_v7 }
 0x5d8   :  { %9745 = vmatprep.mubr.msk.f32.mxu1 %vm9807_vm0, %v9806_v33  ;;  %9742 = vmatpush3.msra.mxu1 %v7366_v8 }
 0x5d9   :  { %9743 = vmatprep.subr.mxu1 %v9806_v33 }
 0x5da   :  { %9744 = vmatpush3.msra.mxu1 %v7365_v9 }
 0x697   :  { %v7360_v11 = vpop.f32.mrf.mxu1 }
 0x698   :  { %v7361_v12 = vadd.f32 %v7468_v10, %v7360_v11 }
 0x699   :  { %v9740_v13 = vpop.f32.mrf.mxu1 }
 0x69a   :  { %v7364_v14 = vmax.f32 %v7361_v12, 0.0 }
 0x69c   :  { %9746 = vmatmul.mubr.msk.f32.vlgmr.msra.gmra.mxu1 %vm7374_vm4, %v7364_v14 }
 0x75c   :  { %v7444_v33 = vpop.f32.mrf.mxu1 }
 0x75d   :  { %v7445_v16 = vadd.f32 %v7470_v15, %v7444_v33 }
 0x75e   :  { %v9747_v17 = vpop.f32.mrf.mxu1 }
 0x75f   :  { %7449 = vst.msk [vmem:[#allocation3] sm:$0x3] %vm7448_vm5, %v7445_v16 }
 0x760   :  { %9794 = shalt.err (!%p9791_p4)
}
 0x761   :  { %7459 = dma.vmem_to_hbm [thread:$0]  %s7457_s28, 32, %s16126_s9, [#allocation4]  }
 0x762   :  { %9803 = dma.done.wait [#allocation4], 32  }
 0x763   :  { %9804 = vsyncadd [#allocation4], 4294967264 }
 0x764   :  { %7463 = vsyncpa [#allocation4], 1 }

</bundles_post_ra>
